<compile_context>
chip_gen: v7x
topology: tpu7x:2x2x1
jax: 0.10.0
libtpu: 0.0.40
codegen_flags: <defaults>
</compile_context>

<pallas_src>
import functools
import numpy as np
import jax
import jax.numpy as jnp
from jax import lax
from jax.experimental import pallas as pl
from jax.experimental.pallas import tpu as pltpu

# ----------------------- small, module-consistent config -----------------------
IMG = 32          # spatial size (instead of 224)
PATCH = 4         # patch_size=4  (same as swin_base_patch4)
IN_CH = 3
EMBED = 32        # embed dim (instead of 128)
DEPTHS = (2, 2)   # (instead of (2, 2, 18, 2))
HEADS = (2, 4)    # (instead of (4, 8, 16, 32))
WINDOW = 4        # window size (instead of 7)
MLP_RATIO = 4
EMB_SIZE = 512    # replaced head: nn.Linear(in_features, 512)


# ----------------------------- static block configs -----------------------------
def _stage_configs():
    cfgs = []
    H = W = IMG // PATCH
    C = EMBED
    for si, (depth, heads) in enumerate(zip(DEPTHS, HEADS)):
        ws = min(WINDOW, H, W)
        blocks = []
        for bi in range(depth):
            shift = ws // 2 if (bi % 2 == 1 and min(H, W) > ws) else 0
            blocks.append(dict(ws=ws, shift=shift, heads=heads, H=H, W=W, C=C))
        cfgs.append(blocks)
        if si < len(DEPTHS) - 1:
            H, W, C = H // 2, W // 2, 2 * C
    return cfgs, C


BLOCK_CFGS, FINAL_C = _stage_configs()


# ------------------------------ fused linear kernel -----------------------------
def _ln_rows(x, g, b, eps=1e-5):
    """Row-wise LayerNorm over the last dim; g/b are (1, C) (broadcast)."""
    mu = jnp.mean(x, axis=-1, keepdims=True)
    var = jnp.mean(jnp.square(x - mu), axis=-1, keepdims=True)
    return (x - mu) * lax.rsqrt(var + eps) * g + b


def _make_linear_kernel(has_pre_ln, has_bias, has_post_ln, act):
    def kernel(*refs):
        idx = 0
        x_ref = refs[idx]; idx += 1
        w_ref = refs[idx]; idx += 1
        if has_pre_ln:
            g1_ref = refs[idx]; b1_ref = refs[idx + 1]; idx += 2
        if has_bias:
            bias_ref = refs[idx]; idx += 1
        if has_post_ln:
            g2_ref = refs[idx]; b2_ref = refs[idx + 1]; idx += 2
        o_ref = refs[idx]

        x = x_ref[...].astype(jnp.float32)
        if has_pre_ln:
            x = _ln_rows(x, g1_ref[...], b1_ref[...])
        # bf16 MXU operands, f32 accumulation.
        acc = jnp.dot(x.astype(jnp.bfloat16), w_ref[...].astype(jnp.bfloat16),
                      preferred_element_type=jnp.float32)
        if has_bias:
            acc = acc + bias_ref[...]
        if act == "gelu":
            # TODO(synk): timm Swin uses exact (erf) GELU; tanh approximation fused in-kernel.
            acc = 0.5 * acc * (1.0 + jnp.tanh(
                0.7978845608028654 * (acc + 0.044715 * acc * acc * acc)))
        if has_post_ln:
            acc = _ln_rows(acc, g2_ref[...], b2_ref[...])
        o_ref[...] = acc.astype(o_ref.dtype)
    return kernel


def _choose_tm(M, cap=512):
    """Row-tile size: divides M, multiple of 8 (or == M), >=2 grid steps when clean."""
    if M > cap:
        for tm in range(cap, 7, -8):
            if M % tm == 0:
                return tm
        return M
    if M % 2 == 0 and (M // 2) % 8 == 0:
        return M // 2
    return M


def linear(x, w, b=None, *, pre_ln=None, post_ln=None, act=None):
    """y = act(LN(x) @ w + b) (+ optional post-LN), via a tiled Pallas MXU kernel.

    x: (..., K), w: (K, N).  Leading dims are flattened into rows and tiled.
    """
    orig_shape = x.shape
    K = orig_shape[-1]
    x2 = x.reshape(-1, K)
    M = x2.shape[0]
    N = w.shape[1]

    TM = _choose_tm(M)
    if M % TM != 0:
        TM = M
    grid = (M // TM,)

    inputs = [x2, w]
    in_specs = [pl.BlockSpec((TM, K), lambda i: (i, 0)),
                pl.BlockSpec((K, N), lambda i: (0, 0))]
    if pre_ln is not None:
        g1, b1 = pre_ln
        inputs += [g1.reshape(1, K), b1.reshape(1, K)]
        in_specs += [pl.BlockSpec((1, K), lambda i: (0, 0)),
                     pl.BlockSpec((1, K), lambda i: (0, 0))]
    if b is not None:
        inputs += [b.reshape(1, N)]
        in_specs += [pl.BlockSpec((1, N), lambda i: (0, 0))]
    if post_ln is not None:
        g2, b2 = post_ln
        inputs += [g2.reshape(1, N), b2.reshape(1, N)]
        in_specs += [pl.BlockSpec((1, N), lambda i: (0, 0)),
                     pl.BlockSpec((1, N), lambda i: (0, 0))]

    kernel = _make_linear_kernel(pre_ln is not None, b is not None,
                                 post_ln is not None, act)
    flops = 2 * M * K * N
    bytes_accessed = 4 * (M * K + K * N + M * N)
    out = pl.pallas_call(
        kernel,
        out_shape=jax.ShapeDtypeStruct((M, N), x2.dtype),
        grid=grid,
        in_specs=in_specs,
        out_specs=pl.BlockSpec((TM, N), lambda i: (i, 0)),
        compiler_params=pltpu.CompilerParams(dimension_semantics=("parallel",)),
        cost_estimate=pl.CostEstimate(flops=flops, transcendentals=M * N,
                                      bytes_accessed=bytes_accessed),
    )(*inputs)
    return out.reshape(*orig_shape[:-1], N)


# ----------------------------- window attention kernel --------------------------
def _win_attn_kernel(qkv_ref, bias_ref, *rest, heads, dh, scale, has_mask):
    if has_mask:
        mask_ref, o_ref = rest
    else:
        (o_ref,) = rest
    C = heads * dh
    qkv = qkv_ref[...]                                   # (WB, N, 3C) in VMEM
    for h in range(heads):                               # static unroll (2-4 heads)
        q = qkv[:, :, h * dh:(h + 1) * dh]
        k = qkv[:, :, C + h * dh:C + (h + 1) * dh]
        v = qkv[:, :, 2 * C + h * dh:2 * C + (h + 1) * dh]
        # contract on Dh (no explicit transpose), bf16 operands, f32 scores.
        s = lax.dot_general(q.astype(jnp.bfloat16), k.astype(jnp.bfloat16),
                            dimension_numbers=(((2,), (2,)), ((0,), (0,))),
                            preferred_element_type=jnp.float32) * scale
        s = s + bias_ref[h]                              # (N,N) bcast over windows
        if has_mask:
            s = s + mask_ref[...]                        # (WB, N, N)
        s = s - jnp.max(s, axis=-1, keepdims=True)
        p = jnp.exp(s)
        p = p * pl.reciprocal(jnp.sum(p, axis=-1, keepdims=True), approx=True)
        o = lax.dot_general(p.astype(jnp.bfloat16), v.astype(jnp.bfloat16),
                            dimension_numbers=(((2,), (1,)), ((0,), (0,))),
                            preferred_element_type=jnp.float32)
        o_ref[:, :, h * dh:(h + 1) * dh] = o.astype(o_ref.dtype)


def _choose_wb(nWtot, nW_img, shifted):
    if shifted:
        return nW_img            # shift mask becomes a broadcast (nW_img,N,N) block
    wb = nWtot
    if nWtot % 2 == 0:
        wb = nWtot // 2          # >=2 parallel grid steps when clean
    while wb > 16 and wb % 2 == 0:
        wb //= 2
    return max(wb, 1)


def window_attention(qkv, rel_bias, mask, *, heads, nW_img):
    """qkv: (nWtot, N, 3C); rel_bias: (heads, N, N); mask: (nW_img, N, N) or None.

    Returns (nWtot, N, C) with head outputs already interleaved along C.
    """
    nWtot, N, threeC = qkv.shape
    C = threeC // 3
    Dh = C // heads
    shifted = mask is not None
    WB = _choose_wb(nWtot, nW_img, shifted)
    grid = (nWtot // WB,)

    kernel = functools.partial(_win_attn_kernel, heads=heads, dh=Dh,
                               scale=Dh ** -0.5, has_mask=shifted)
    in_specs = [pl.BlockSpec((WB, N, threeC), lambda i: (i, 0, 0)),
                pl.BlockSpec((heads, N, N), lambda i: (0, 0, 0))]
    inputs = [qkv, rel_bias]
    if shifted:
        in_specs.append(pl.BlockSpec((WB, N, N), lambda i: (0, 0, 0)))
        inputs.append(mask)

    flops = 4 * nWtot * heads * N * N * Dh               # qk^T + pv
    bytes_accessed = 4 * (qkv.size + rel_bias.size + nWtot * N * C)
    return pl.pallas_call(
        kernel,
        out_shape=jax.ShapeDtypeStruct((nWtot, N, C), qkv.dtype),
        grid=grid,
        in_specs=in_specs,
        out_specs=pl.BlockSpec((WB, N, C), lambda i: (i, 0, 0)),
        compiler_params=pltpu.CompilerParams(dimension_semantics=("parallel",)),
        cost_estimate=pl.CostEstimate(flops=flops,
                                      transcendentals=nWtot * heads * N * N,
                                      bytes_accessed=bytes_accessed),
    )(*inputs)


# ------------------------ fused final LN + mean-pool + head ----------------------
def _tail_kernel(x_ref, g_ref, b_ref, w_ref, hb_ref, o_ref):
    x = x_ref[...].astype(jnp.float32)                   # (B, L, C)
    xn = _ln_rows(x, g_ref[...], b_ref[...])             # LayerNorm over C
    pooled = jnp.mean(xn, axis=1)                        # avgpool over tokens -> (B, C)
    acc = jnp.dot(pooled.astype(jnp.bfloat16), w_ref[...].astype(jnp.bfloat16),
                  preferred_element_type=jnp.float32)
    o_ref[...] = (acc + hb_ref[...]).astype(o_ref.dtype)


def ln_pool_head(x, g, b, w, hb):
    B, L, C = x.shape
    E = w.shape[1]
    return pl.pallas_call(
        _tail_kernel,
        out_shape=jax.ShapeDtypeStruct((B, E), x.dtype),
        grid=(1,),
        in_specs=[pl.BlockSpec((B, L, C), lambda i: (0, 0, 0)),
                  pl.BlockSpec((1, C), lambda i: (0, 0)),
                  pl.BlockSpec((1, C), lambda i: (0, 0)),
                  pl.BlockSpec((C, E), lambda i: (0, 0)),
                  pl.BlockSpec((1, E), lambda i: (0, 0))],
        out_specs=pl.BlockSpec((B, E), lambda i: (0, 0)),
        cost_estimate=pl.CostEstimate(flops=2 * B * C * E, transcendentals=B * L,
                                      bytes_accessed=4 * (B * L * C + C * E + B * E)),
    )(x, g.reshape(1, C), b.reshape(1, C), w, hb.reshape(1, E))


# ------------------------------- JAX glue ops ----------------------------------
def window_partition(x, ws):
    B, H, W, C = x.shape
    x = x.reshape(B, H // ws, ws, W // ws, ws, C)
    return x.transpose(0, 1, 3, 2, 4, 5).reshape(-1, ws * ws, C)


def window_reverse(win, ws, H, W, B):
    C = win.shape[-1]
    x = win.reshape(B, H // ws, W // ws, ws, ws, C)
    return x.transpose(0, 1, 3, 2, 4, 5).reshape(B, H, W, C)


def make_rel_index(ws):
    coords = np.stack(np.meshgrid(np.arange(ws), np.arange(ws), indexing="ij"))
    flat = coords.reshape(2, -1)
    rel = (flat[:, :, None] - flat[:, None, :]).transpose(1, 2, 0)
    rel[:, :, 0] += ws - 1
    rel[:, :, 1] += ws - 1
    rel[:, :, 0] *= 2 * ws - 1
    return rel.sum(-1).astype(np.int32)                      # (N, N)


def make_attn_mask(H, W, ws, shift):
    img_mask = np.zeros((1, H, W, 1), np.float32)
    cnt = 0
    for h in (slice(0, -ws), slice(-ws, -shift), slice(-shift, None)):
        for w in (slice(0, -ws), slice(-ws, -shift), slice(-shift, None)):
            img_mask[:, h, w, :] = cnt
            cnt += 1
    mw = img_mask.reshape(1, H // ws, ws, W // ws, ws, 1)
    mw = mw.transpose(0, 1, 3, 2, 4, 5).reshape(-1, ws * ws)
    attn_mask = mw[:, None, :] - mw[:, :, None]
    return np.where(attn_mask != 0, -100.0, 0.0).astype(np.float32)  # (nW_img, N, N)


# --------------------------------- params --------------------------------------
def init_params(key):
    keys = list(jax.random.split(key, 256))
    it = iter(keys)

    def nrm(shape, s=0.02):
        return jax.random.normal(next(it), shape, jnp.float32) * s

    params = {}
    params["patch_embed"] = dict(
        w=nrm((IN_CH * PATCH * PATCH, EMBED)), b=jnp.zeros((EMBED,), jnp.float32),
        ln_g=jnp.ones((EMBED,), jnp.float32), ln_b=jnp.zeros((EMBED,), jnp.float32))

    for si, stage_cfg in enumerate(BLOCK_CFGS):
        blocks = []
        for cfg in stage_cfg:
            C, ws, heads = cfg["C"], cfg["ws"], cfg["heads"]
            bp = dict(
                ln1_g=jnp.ones((C,), jnp.float32), ln1_b=jnp.zeros((C,), jnp.float32),
                qkv_w=nrm((C, 3 * C)), qkv_b=jnp.zeros((3 * C,), jnp.float32),
                rel_bias_table=nrm(((2 * ws - 1) ** 2, heads)),
                rel_index=jnp.asarray(make_rel_index(ws)),
                proj_w=nrm((C, C)), proj_b=jnp.zeros((C,), jnp.float32),
                ln2_g=jnp.ones((C,), jnp.float32), ln2_b=jnp.zeros((C,), jnp.float32),
                fc1_w=nrm((C, MLP_RATIO * C)), fc1_b=jnp.zeros((MLP_RATIO * C,), jnp.float32),
                fc2_w=nrm((MLP_RATIO * C, C)), fc2_b=jnp.zeros((C,), jnp.float32),
            )
            if cfg["shift"] > 0:
                bp["attn_mask"] = jnp.asarray(
                    make_attn_mask(cfg["H"], cfg["W"], ws, cfg["shift"]))
            blocks.append(bp)
        params[f"stage{si}"] = blocks
        if si < len(BLOCK_CFGS) - 1:
            C = stage_cfg[0]["C"]
            params[f"merge{si}"] = dict(
                ln_g=jnp.ones((4 * C,), jnp.float32), ln_b=jnp.zeros((4 * C,), jnp.float32),
                w=nrm((4 * C, 2 * C)))

    params["norm"] = dict(g=jnp.ones((FINAL_C,), jnp.float32),
                          b=jnp.zeros((FINAL_C,), jnp.float32))
    params["head"] = dict(w=nrm((FINAL_C, EMB_SIZE)), b=jnp.zeros((EMB_SIZE,), jnp.float32))
    return params


# -------------------------------- forward --------------------------------------
def swin_block(x, bp, cfg):
    B, L, C = x.shape
    ws, shift, heads = cfg["ws"], cfg["shift"], cfg["heads"]
    H, W = cfg["H"], cfg["W"]
    N = ws * ws

    shortcut = x
    xs = x.reshape(B, H, W, C)
    if shift > 0:
        xs = jnp.roll(xs, (-shift, -shift), axis=(1, 2))
    # LN1 is per-token, so it commutes with roll/window_partition; fuse it into QKV.
    xw = window_partition(xs, ws)                         # (B*nW, N, C) pre-LN tokens
    nW_img = (H // ws) * (W // ws)

    qkv = linear(xw, bp["qkv_w"], bp["qkv_b"],
                 pre_ln=(bp["ln1_g"], bp["ln1_b"]))        # (B*nW, N, 3C)

    bias = bp["rel_bias_table"][bp["rel_index"].reshape(-1)]
    bias = bias.reshape(N, N, heads).transpose(2, 0, 1).astype(jnp.float32)  # (heads,N,N)
    mask = bp.get("attn_mask") if shift > 0 else None      # (nW_img, N, N) f32

    out = window_attention(qkv, bias, mask, heads=heads, nW_img=nW_img)  # (B*nW, N, C)
    out = linear(out, bp["proj_w"], bp["proj_b"])

    xr = window_reverse(out, ws, H, W, B)
    if shift > 0:
        xr = jnp.roll(xr, (shift, shift), axis=(1, 2))
    x = shortcut + xr.reshape(B, L, C)

    # fused LN2 + fc1 + GELU, then fc2
    y = linear(x, bp["fc1_w"], bp["fc1_b"], pre_ln=(bp["ln2_g"], bp["ln2_b"]), act="gelu")
    y = linear(y, bp["fc2_w"], bp["fc2_b"])
    return x + y


def swin_forward(params, images):
    # layout: images are NCHW (B, 3, IMG, IMG), matching the PyTorch module.
    B = images.shape[0]
    Hp = Wp = IMG // PATCH
    # Patch embedding (4x4 stride-4 conv == non-overlapping patch matmul) + fused LN
    x = images.reshape(B, IN_CH, Hp, PATCH, Wp, PATCH)
    x = x.transpose(0, 2, 4, 1, 3, 5).reshape(B, Hp * Wp, IN_CH * PATCH * PATCH)
    pe = params["patch_embed"]
    x = linear(x, pe["w"], pe["b"], post_ln=(pe["ln_g"], pe["ln_b"]))

    for si, stage_cfg in enumerate(BLOCK_CFGS):
        for cfg, bp in zip(stage_cfg, params[f"stage{si}"]):
            x = swin_block(x, bp, cfg)
        if si < len(BLOCK_CFGS) - 1:
            H, W, C = stage_cfg[0]["H"], stage_cfg[0]["W"], stage_cfg[0]["C"]
            mp = params[f"merge{si}"]
            xi = x.reshape(B, H, W, C)
            x0 = xi[:, 0::2, 0::2]
            x1 = xi[:, 1::2, 0::2]
            x2 = xi[:, 0::2, 1::2]
            x3 = xi[:, 1::2, 1::2]
            xm = jnp.concatenate([x0, x1, x2, x3], axis=-1)
            xm = xm.reshape(B, (H // 2) * (W // 2), 4 * C)
            # PatchMerging: fused LN + bias-free reduction linear
            x = linear(xm, mp["w"], None, pre_ln=(mp["ln_g"], mp["ln_b"]))

    # fused final LayerNorm + token mean-pool + Linear(in_features -> 512) head
    return ln_pool_head(x, params["norm"]["g"], params["norm"]["b"],
                        params["head"]["w"], params["head"]["b"])


# ---------------------------------- main ----------------------------------------
if __name__ == "__main__":
    key = jax.random.PRNGKey(0)
    pkey, xkey = jax.random.split(key)
    params = init_params(pkey)
    images = jax.random.normal(xkey, (2, IN_CH, IMG, IMG), jnp.float32)
    fwd = jax.jit(swin_forward)
    out = jax.block_until_ready(fwd(params, images))
    assert out.shape == (2, EMB_SIZE), out.shape
    assert bool(jnp.all(jnp.isfinite(out)))
    print("KERNEL_OK")
</pallas_src>

<mosaic_0001>
module attributes {stable_mosaic.version = 11 : i64} {
  func.func @kernel(%arg0: i32, %arg1: memref<64x48xf32, #tpu.memory_space<vmem>>, %arg2: memref<48x32xf32, #tpu.memory_space<vmem>>, %arg3: memref<1x32xf32, #tpu.memory_space<vmem>>, %arg4: memref<1x32xf32, #tpu.memory_space<vmem>>, %arg5: memref<1x32xf32, #tpu.memory_space<vmem>>, %arg6: memref<64x32xf32, #tpu.memory_space<vmem>>) attributes {dimension_semantics = [#tpu.dimension_semantics<parallel>], iteration_bounds = array<i64: 2>, scalar_prefetch = 0 : i64, scratch_operands = 0 : i64, tpu.core_type = #tpu.core_type<tc>, window_params = [{transform_indices = @transform_0, window_bounds = array<i64: 64, 48>}, {pipeline_mode = #tpu.pipeline_mode<synchronous>, transform_indices = @transform_1, window_bounds = array<i64: 48, 32>}, {pipeline_mode = #tpu.pipeline_mode<synchronous>, transform_indices = @transform_2, window_bounds = array<i64: 1, 32>}, {pipeline_mode = #tpu.pipeline_mode<synchronous>, transform_indices = @transform_3, window_bounds = array<i64: 1, 32>}, {pipeline_mode = #tpu.pipeline_mode<synchronous>, transform_indices = @transform_4, window_bounds = array<i64: 1, 32>}, {transform_indices = @transform_5, window_bounds = array<i64: 64, 32>}]} {
    %c0 = arith.constant 0 : index
    %c0_0 = arith.constant 0 : index
    %0 = vector.load %arg1[%c0, %c0_0] : memref<64x48xf32, #tpu.memory_space<vmem>>, vector<64x48xf32>
    %1 = arith.truncf %0 : vector<64x48xf32> to vector<64x48xbf16>
    %c0_1 = arith.constant 0 : index
    %c0_2 = arith.constant 0 : index
    %2 = vector.load %arg2[%c0_1, %c0_2] : memref<48x32xf32, #tpu.memory_space<vmem>>, vector<48x32xf32>
    %3 = arith.truncf %2 : vector<48x32xf32> to vector<48x32xbf16>
    %cst = arith.constant dense<0.000000e+00> : vector<64x32xf32>
    %4 = tpu.matmul %1, %3, %cst {dimension_numbers = #tpu.dot_dimension_numbers<[1], [0], [0], [1], [0, 0, 1, 1], [], []>} : vector<64x48xbf16>, vector<48x32xbf16>, vector<64x32xf32> -> vector<64x32xf32>
    %c0_3 = arith.constant 0 : index
    %c0_4 = arith.constant 0 : index
    %5 = vector.load %arg3[%c0_3, %c0_4] : memref<1x32xf32, #tpu.memory_space<vmem>>, vector<1x32xf32>
    %6 = vector.broadcast %5 : vector<1x32xf32> to vector<64x32xf32>
    %7 = arith.addf %4, %6 : vector<64x32xf32>
    %c0_5 = arith.constant 0 : index
    %c0_6 = arith.constant 0 : index
    %8 = vector.load %arg4[%c0_5, %c0_6] : memref<1x32xf32, #tpu.memory_space<vmem>>, vector<1x32xf32>
    %c0_7 = arith.constant 0 : index
    %c0_8 = arith.constant 0 : index
    %9 = vector.load %arg5[%c0_7, %c0_8] : memref<1x32xf32, #tpu.memory_space<vmem>>, vector<1x32xf32>
    %cst_9 = arith.constant dense<0.000000e+00> : vector<64xf32>
    %10 = vector.multi_reduction <add>, %7, %cst_9 [1] : vector<64x32xf32> to vector<64xf32>
    %11 = vector.shape_cast %10 : vector<64xf32> to vector<64x1xf32>
    %cst_10 = arith.constant 3.200000e+01 : f32
    %12 = vector.broadcast %cst_10 : f32 to vector<64x1xf32>
    %13 = arith.divf %11, %12 : vector<64x1xf32>
    %14 = vector.broadcast %13 : vector<64x1xf32> to vector<64x32xf32>
    %15 = arith.subf %7, %14 : vector<64x32xf32>
    %16 = arith.mulf %15, %15 : vector<64x32xf32>
    %cst_11 = arith.constant dense<0.000000e+00> : vector<64xf32>
    %17 = vector.multi_reduction <add>, %16, %cst_11 [1] : vector<64x32xf32> to vector<64xf32>
    %18 = vector.shape_cast %17 : vector<64xf32> to vector<64x1xf32>
    %cst_12 = arith.constant 3.200000e+01 : f32
    %19 = vector.broadcast %cst_12 : f32 to vector<64x1xf32>
    %20 = arith.divf %18, %19 : vector<64x1xf32>
    %21 = vector.broadcast %13 : vector<64x1xf32> to vector<64x32xf32>
    %22 = arith.subf %7, %21 : vector<64x32xf32>
    %cst_13 = arith.constant 9.99999974E-6 : f32
    %23 = vector.broadcast %cst_13 : f32 to vector<64x1xf32>
    %24 = arith.addf %20, %23 : vector<64x1xf32>
    %25 = math.rsqrt %24 : vector<64x1xf32>
    %26 = vector.broadcast %25 : vector<64x1xf32> to vector<64x32xf32>
    %27 = arith.mulf %22, %26 : vector<64x32xf32>
    %28 = vector.broadcast %8 : vector<1x32xf32> to vector<64x32xf32>
    %29 = arith.mulf %27, %28 : vector<64x32xf32>
    %30 = vector.broadcast %9 : vector<1x32xf32> to vector<64x32xf32>
    %31 = arith.addf %29, %30 : vector<64x32xf32>
    %c0_14 = arith.constant 0 : index
    %c0_15 = arith.constant 0 : index
    %32 = vector.load %arg6[%c0_14, %c0_15] : memref<64x32xf32, #tpu.memory_space<vmem>>, vector<64x32xf32>
    tpu.vector_store %arg6[%c0_14, %c0_15], %31 {strides = array<i32>} : memref<64x32xf32, #tpu.memory_space<vmem>>, vector<64x32xf32>,
    return
  }
  func.func @transform_0(%arg0: i32) -> (i32, i32) {
    %c0_i32 = arith.constant 0 : i32
    %c0_i32_0 = arith.constant 0 : i32
    return %arg0, %c0_i32 : i32, i32
  }
  func.func @transform_1(%arg0: i32) -> (i32, i32) {
    %c0_i32 = arith.constant 0 : i32
    %c0_i32_0 = arith.constant 0 : i32
    %c0_i32_1 = arith.constant 0 : i32
    return %c0_i32, %c0_i32_0 : i32, i32
  }
  func.func @transform_2(%arg0: i32) -> (i32, i32) {
    %c0_i32 = arith.constant 0 : i32
    %c0_i32_0 = arith.constant 0 : i32
    %c0_i32_1 = arith.constant 0 : i32
    return %c0_i32, %c0_i32_0 : i32, i32
  }
  func.func @transform_3(%arg0: i32) -> (i32, i32) {
    %c0_i32 = arith.constant 0 : i32
    %c0_i32_0 = arith.constant 0 : i32
    %c0_i32_1 = arith.constant 0 : i32
    return %c0_i32, %c0_i32_0 : i32, i32
  }
  func.func @transform_4(%arg0: i32) -> (i32, i32) {
    %c0_i32 = arith.constant 0 : i32
    %c0_i32_0 = arith.constant 0 : i32
    %c0_i32_1 = arith.constant 0 : i32
    return %c0_i32, %c0_i32_0 : i32, i32
  }
  func.func @transform_5(%arg0: i32) -> (i32, i32) {
    %c0_i32 = arith.constant 0 : i32
    %c0_i32_0 = arith.constant 0 : i32
    return %arg0, %c0_i32 : i32, i32
  }
}

module attributes {stable_mosaic.version = 11 : i64} {
  func.func @kernel(%arg0: i32, %arg1: memref<64x32xf32, #tpu.memory_space<vmem>>, %arg2: memref<32x96xf32, #tpu.memory_space<vmem>>, %arg3: memref<1x32xf32, #tpu.memory_space<vmem>>, %arg4: memref<1x32xf32, #tpu.memory_space<vmem>>, %arg5: memref<1x96xf32, #tpu.memory_space<vmem>>, %arg6: memref<64x96xf32, #tpu.memory_space<vmem>>) attributes {dimension_semantics = [#tpu.dimension_semantics<parallel>], iteration_bounds = array<i64: 2>, scalar_prefetch = 0 : i64, scratch_operands = 0 : i64, tpu.core_type = #tpu.core_type<tc>, window_params = [{transform_indices = @transform_0, window_bounds = array<i64: 64, 32>}, {pipeline_mode = #tpu.pipeline_mode<synchronous>, transform_indices = @transform_1, window_bounds = array<i64: 32, 96>}, {pipeline_mode = #tpu.pipeline_mode<synchronous>, transform_indices = @transform_2, window_bounds = array<i64: 1, 32>}, {pipeline_mode = #tpu.pipeline_mode<synchronous>, transform_indices = @transform_3, window_bounds = array<i64: 1, 32>}, {pipeline_mode = #tpu.pipeline_mode<synchronous>, transform_indices = @transform_4, window_bounds = array<i64: 1, 96>}, {transform_indices = @transform_5, window_bounds = array<i64: 64, 96>}]} {
    %c0 = arith.constant 0 : index
    %c0_0 = arith.constant 0 : index
    %0 = vector.load %arg1[%c0, %c0_0] : memref<64x32xf32, #tpu.memory_space<vmem>>, vector<64x32xf32>
    %c0_1 = arith.constant 0 : index
    %c0_2 = arith.constant 0 : index
    %1 = vector.load %arg3[%c0_1, %c0_2] : memref<1x32xf32, #tpu.memory_space<vmem>>, vector<1x32xf32>
    %c0_3 = arith.constant 0 : index
    %c0_4 = arith.constant 0 : index
    %2 = vector.load %arg4[%c0_3, %c0_4] : memref<1x32xf32, #tpu.memory_space<vmem>>, vector<1x32xf32>
    %cst = arith.constant dense<0.000000e+00> : vector<64xf32>
    %3 = vector.multi_reduction <add>, %0, %cst [1] : vector<64x32xf32> to vector<64xf32>
    %4 = vector.shape_cast %3 : vector<64xf32> to vector<64x1xf32>
    %cst_5 = arith.constant 3.200000e+01 : f32
    %5 = vector.broadcast %cst_5 : f32 to vector<64x1xf32>
    %6 = arith.divf %4, %5 : vector<64x1xf32>
    %7 = vector.broadcast %6 : vector<64x1xf32> to vector<64x32xf32>
    %8 = arith.subf %0, %7 : vector<64x32xf32>
    %9 = arith.mulf %8, %8 : vector<64x32xf32>
    %cst_6 = arith.constant dense<0.000000e+00> : vector<64xf32>
    %10 = vector.multi_reduction <add>, %9, %cst_6 [1] : vector<64x32xf32> to vector<64xf32>
    %11 = vector.shape_cast %10 : vector<64xf32> to vector<64x1xf32>
    %cst_7 = arith.constant 3.200000e+01 : f32
    %12 = vector.broadcast %cst_7 : f32 to vector<64x1xf32>
    %13 = arith.divf %11, %12 : vector<64x1xf32>
    %14 = vector.broadcast %6 : vector<64x1xf32> to vector<64x32xf32>
    %15 = arith.subf %0, %14 : vector<64x32xf32>
    %cst_8 = arith.constant 9.99999974E-6 : f32
    %16 = vector.broadcast %cst_8 : f32 to vector<64x1xf32>
    %17 = arith.addf %13, %16 : vector<64x1xf32>
    %18 = math.rsqrt %17 : vector<64x1xf32>
    %19 = vector.broadcast %18 : vector<64x1xf32> to vector<64x32xf32>
    %20 = arith.mulf %15, %19 : vector<64x32xf32>
    %21 = vector.broadcast %1 : vector<1x32xf32> to vector<64x32xf32>
    %22 = arith.mulf %20, %21 : vector<64x32xf32>
    %23 = vector.broadcast %2 : vector<1x32xf32> to vector<64x32xf32>
    %24 = arith.addf %22, %23 : vector<64x32xf32>
    %25 = arith.truncf %24 : vector<64x32xf32> to vector<64x32xbf16>
    %c0_9 = arith.constant 0 : index
    %c0_10 = arith.constant 0 : index
    %26 = vector.load %arg2[%c0_9, %c0_10] : memref<32x96xf32, #tpu.memory_space<vmem>>, vector<32x96xf32>
    %27 = arith.truncf %26 : vector<32x96xf32> to vector<32x96xbf16>
    %cst_11 = arith.constant dense<0.000000e+00> : vector<64x96xf32>
    %28 = tpu.matmul %25, %27, %cst_11 {dimension_numbers = #tpu.dot_dimension_numbers<[1], [0], [0], [1], [0, 0, 1, 1], [], []>} : vector<64x32xbf16>, vector<32x96xbf16>, vector<64x96xf32> -> vector<64x96xf32>
    %c0_12 = arith.constant 0 : index
    %c0_13 = arith.constant 0 : index
    %29 = vector.load %arg5[%c0_12, %c0_13] : memref<1x96xf32, #tpu.memory_space<vmem>>, vector<1x96xf32>
    %30 = vector.broadcast %29 : vector<1x96xf32> to vector<64x96xf32>
    %31 = arith.addf %28, %30 : vector<64x96xf32>
    %c0_14 = arith.constant 0 : index
    %c0_15 = arith.constant 0 : index
    %32 = vector.load %arg6[%c0_14, %c0_15] : memref<64x96xf32, #tpu.memory_space<vmem>>, vector<64x96xf32>
    tpu.vector_store %arg6[%c0_14, %c0_15], %31 {strides = array<i32>} : memref<64x96xf32, #tpu.memory_space<vmem>>, vector<64x96xf32>,
    return
  }
  func.func @transform_0(%arg0: i32) -> (i32, i32) {
    %c0_i32 = arith.constant 0 : i32
    %c0_i32_0 = arith.constant 0 : i32
    return %arg0, %c0_i32 : i32, i32
  }
  func.func @transform_1(%arg0: i32) -> (i32, i32) {
    %c0_i32 = arith.constant 0 : i32
    %c0_i32_0 = arith.constant 0 : i32
    %c0_i32_1 = arith.constant 0 : i32
    return %c0_i32, %c0_i32_0 : i32, i32
  }
  func.func @transform_2(%arg0: i32) -> (i32, i32) {
    %c0_i32 = arith.constant 0 : i32
    %c0_i32_0 = arith.constant 0 : i32
    %c0_i32_1 = arith.constant 0 : i32
    return %c0_i32, %c0_i32_0 : i32, i32
  }
  func.func @transform_3(%arg0: i32) -> (i32, i32) {
    %c0_i32 = arith.constant 0 : i32
    %c0_i32_0 = arith.constant 0 : i32
    %c0_i32_1 = arith.constant 0 : i32
    return %c0_i32, %c0_i32_0 : i32, i32
  }
  func.func @transform_4(%arg0: i32) -> (i32, i32) {
    %c0_i32 = arith.constant 0 : i32
    %c0_i32_0 = arith.constant 0 : i32
    %c0_i32_1 = arith.constant 0 : i32
    return %c0_i32, %c0_i32_0 : i32, i32
  }
  func.func @transform_5(%arg0: i32) -> (i32, i32) {
    %c0_i32 = arith.constant 0 : i32
    %c0_i32_0 = arith.constant 0 : i32
    return %arg0, %c0_i32 : i32, i32
  }
}

module attributes {stable_mosaic.version = 11 : i64} {
  func.func @_win_attn_kernel(%arg0: i32, %arg1: memref<4x16x96xf32, #tpu.memory_space<vmem>>, %arg2: memref<2x16x16xf32, #tpu.memory_space<vmem>>, %arg3: memref<4x16x32xf32, #tpu.memory_space<vmem>>) attributes {dimension_semantics = [#tpu.dimension_semantics<parallel>], iteration_bounds = array<i64: 2>, scalar_prefetch = 0 : i64, scratch_operands = 0 : i64, tpu.core_type = #tpu.core_type<tc>, window_params = [{transform_indices = @transform_0, window_bounds = array<i64: 4, 16, 96>}, {pipeline_mode = #tpu.pipeline_mode<synchronous>, transform_indices = @transform_1, window_bounds = array<i64: 2, 16, 16>}, {transform_indices = @transform_2, window_bounds = array<i64: 4, 16, 32>}]} {
    %c0 = arith.constant 0 : index
    %c0_0 = arith.constant 0 : index
    %c0_1 = arith.constant 0 : index
    %0 = vector.load %arg1[%c0, %c0_0, %c0_1] : memref<4x16x96xf32, #tpu.memory_space<vmem>>, vector<4x16x96xf32>
    %1 = vector.extract_strided_slice %0 {offsets = [0, 0, 0], sizes = [4, 16, 16], strides = [1, 1, 1]} : vector<4x16x96xf32> to vector<4x16x16xf32>
    %2 = vector.extract_strided_slice %0 {offsets = [0, 0, 32], sizes = [4, 16, 16], strides = [1, 1, 1]} : vector<4x16x96xf32> to vector<4x16x16xf32>
    %3 = vector.extract_strided_slice %0 {offsets = [0, 0, 64], sizes = [4, 16, 16], strides = [1, 1, 1]} : vector<4x16x96xf32> to vector<4x16x16xf32>
    %4 = arith.truncf %1 : vector<4x16x16xf32> to vector<4x16x16xbf16>
    %5 = arith.truncf %2 : vector<4x16x16xf32> to vector<4x16x16xbf16>
    %cst = arith.constant dense<0.000000e+00> : vector<4x16x16xf32>
    %6 = tpu.matmul %4, %5, %cst {dimension_numbers = #tpu.dot_dimension_numbers<[2], [2], [1], [1], [0, 0, 0, 1, 1, 1], [0], [0]>} : vector<4x16x16xbf16>, vector<4x16x16xbf16>, vector<4x16x16xf32> -> vector<4x16x16xf32>
    %cst_2 = arith.constant 2.500000e-01 : f32
    %7 = vector.broadcast %cst_2 : f32 to vector<4x16x16xf32>
    %8 = arith.mulf %6, %7 : vector<4x16x16xf32>
    %c0_3 = arith.constant 0 : index
    %c0_4 = arith.constant 0 : index
    %c0_5 = arith.constant 0 : index
    %9 = vector.load %arg2[%c0_3, %c0_4, %c0_5] : memref<2x16x16xf32, #tpu.memory_space<vmem>>, vector<1x16x16xf32>
    %10 = vector.shape_cast %9 : vector<1x16x16xf32> to vector<16x16xf32>
    %11 = vector.shape_cast %10 : vector<16x16xf32> to vector<1x16x16xf32>
    %12 = vector.broadcast %11 : vector<1x16x16xf32> to vector<4x16x16xf32>
    %13 = arith.addf %8, %12 : vector<4x16x16xf32>
    %cst_6 = arith.constant dense<0xFF800000> : vector<4x16xf32>
    %14 = vector.multi_reduction <maximumf>, %13, %cst_6 [2] : vector<4x16x16xf32> to vector<4x16xf32>
    %15 = vector.shape_cast %14 : vector<4x16xf32> to vector<4x16x1xf32>
    %16 = vector.broadcast %15 : vector<4x16x1xf32> to vector<4x16x16xf32>
    %17 = arith.subf %13, %16 : vector<4x16x16xf32>
    %18 = math.exp %17 : vector<4x16x16xf32>
    %cst_7 = arith.constant dense<0.000000e+00> : vector<4x16xf32>
    %19 = vector.multi_reduction <add>, %18, %cst_7 [2] : vector<4x16x16xf32> to vector<4x16xf32>
    %20 = vector.shape_cast %19 : vector<4x16xf32> to vector<4x16x1xf32>
    %21 = tpu.reciprocal %20 {approx = true} : vector<4x16x1xf32> -> vector<4x16x1xf32>
    %22 = vector.broadcast %21 : vector<4x16x1xf32> to vector<4x16x16xf32>
    %23 = arith.mulf %18, %22 : vector<4x16x16xf32>
    %24 = arith.truncf %23 : vector<4x16x16xf32> to vector<4x16x16xbf16>
    %25 = arith.truncf %3 : vector<4x16x16xf32> to vector<4x16x16xbf16>
    %cst_8 = arith.constant dense<0.000000e+00> : vector<4x16x16xf32>
    %26 = tpu.matmul %24, %25, %cst_8 {dimension_numbers = #tpu.dot_dimension_numbers<[2], [1], [1], [2], [0, 0, 0, 1, 1, 2], [0], [0]>} : vector<4x16x16xbf16>, vector<4x16x16xbf16>, vector<4x16x16xf32> -> vector<4x16x16xf32>
    %c0_9 = arith.constant 0 : index
    %c0_10 = arith.constant 0 : index
    %c0_11 = arith.constant 0 : index
    %27 = vector.load %arg3[%c0_9, %c0_10, %c0_11] : memref<4x16x32xf32, #tpu.memory_space<vmem>>, vector<4x16x16xf32>
    tpu.vector_store %arg3[%c0_9, %c0_10, %c0_11], %26 {strides = array<i32>} : memref<4x16x32xf32, #tpu.memory_space<vmem>>, vector<4x16x16xf32>,
    %28 = vector.extract_strided_slice %0 {offsets = [0, 0, 16], sizes = [4, 16, 16], strides = [1, 1, 1]} : vector<4x16x96xf32> to vector<4x16x16xf32>
    %29 = vector.extract_strided_slice %0 {offsets = [0, 0, 48], sizes = [4, 16, 16], strides = [1, 1, 1]} : vector<4x16x96xf32> to vector<4x16x16xf32>
    %30 = vector.extract_strided_slice %0 {offsets = [0, 0, 80], sizes = [4, 16, 16], strides = [1, 1, 1]} : vector<4x16x96xf32> to vector<4x16x16xf32>
    %31 = arith.truncf %28 : vector<4x16x16xf32> to vector<4x16x16xbf16>
    %32 = arith.truncf %29 : vector<4x16x16xf32> to vector<4x16x16xbf16>
    %cst_12 = arith.constant dense<0.000000e+00> : vector<4x16x16xf32>
    %33 = tpu.matmul %31, %32, %cst_12 {dimension_numbers = #tpu.dot_dimension_numbers<[2], [2], [1], [1], [0, 0, 0, 1, 1, 1], [0], [0]>} : vector<4x16x16xbf16>, vector<4x16x16xbf16>, vector<4x16x16xf32> -> vector<4x16x16xf32>
    %cst_13 = arith.constant 2.500000e-01 : f32
    %34 = vector.broadcast %cst_13 : f32 to vector<4x16x16xf32>
    %35 = arith.mulf %33, %34 : vector<4x16x16xf32>
    %c1 = arith.constant 1 : index
    %c0_14 = arith.constant 0 : index
    %c0_15 = arith.constant 0 : index
    %36 = vector.load %arg2[%c1, %c0_14, %c0_15] : memref<2x16x16xf32, #tpu.memory_space<vmem>>, vector<1x16x16xf32>
    %37 = vector.shape_cast %36 : vector<1x16x16xf32> to vector<16x16xf32>
    %38 = vector.shape_cast %37 : vector<16x16xf32> to vector<1x16x16xf32>
    %39 = vector.broadcast %38 : vector<1x16x16xf32> to vector<4x16x16xf32>
    %40 = arith.addf %35, %39 : vector<4x16x16xf32>
    %cst_16 = arith.constant dense<0xFF800000> : vector<4x16xf32>
    %41 = vector.multi_reduction <maximumf>, %40, %cst_16 [2] : vector<4x16x16xf32> to vector<4x16xf32>
    %42 = vector.shape_cast %41 : vector<4x16xf32> to vector<4x16x1xf32>
    %43 = vector.broadcast %42 : vector<4x16x1xf32> to vector<4x16x16xf32>
    %44 = arith.subf %40, %43 : vector<4x16x16xf32>
    %45 = math.exp %44 : vector<4x16x16xf32>
    %cst_17 = arith.constant dense<0.000000e+00> : vector<4x16xf32>
    %46 = vector.multi_reduction <add>, %45, %cst_17 [2] : vector<4x16x16xf32> to vector<4x16xf32>
    %47 = vector.shape_cast %46 : vector<4x16xf32> to vector<4x16x1xf32>
    %48 = tpu.reciprocal %47 {approx = true} : vector<4x16x1xf32> -> vector<4x16x1xf32>
    %49 = vector.broadcast %48 : vector<4x16x1xf32> to vector<4x16x16xf32>
    %50 = arith.mulf %45, %49 : vector<4x16x16xf32>
    %51 = arith.truncf %50 : vector<4x16x16xf32> to vector<4x16x16xbf16>
    %52 = arith.truncf %30 : vector<4x16x16xf32> to vector<4x16x16xbf16>
    %cst_18 = arith.constant dense<0.000000e+00> : vector<4x16x16xf32>
    %53 = tpu.matmul %51, %52, %cst_18 {dimension_numbers = #tpu.dot_dimension_numbers<[2], [1], [1], [2], [0, 0, 0, 1, 1, 2], [0], [0]>} : vector<4x16x16xbf16>, vector<4x16x16xbf16>, vector<4x16x16xf32> -> vector<4x16x16xf32>
    %c0_19 = arith.constant 0 : index
    %c0_20 = arith.constant 0 : index
    %c16 = arith.constant 16 : index
    %54 = vector.load %arg3[%c0_19, %c0_20, %c16] : memref<4x16x32xf32, #tpu.memory_space<vmem>>, vector<4x16x16xf32>
    tpu.vector_store %arg3[%c0_19, %c0_20, %c16], %53 {strides = array<i32>} : memref<4x16x32xf32, #tpu.memory_space<vmem>>, vector<4x16x16xf32>,
    return
  }
  func.func @transform_0(%arg0: i32) -> (i32, i32, i32) {
    %c0_i32 = arith.constant 0 : i32
    %c0_i32_0 = arith.constant 0 : i32
    %c0_i32_1 = arith.constant 0 : i32
    return %arg0, %c0_i32, %c0_i32_0 : i32, i32, i32
  }
  func.func @transform_1(%arg0: i32) -> (i32, i32, i32) {
    %c0_i32 = arith.constant 0 : i32
    %c0_i32_0 = arith.constant 0 : i32
    %c0_i32_1 = arith.constant 0 : i32
    %c0_i32_2 = arith.constant 0 : i32
    return %c0_i32, %c0_i32_0, %c0_i32_1 : i32, i32, i32
  }
  func.func @transform_2(%arg0: i32) -> (i32, i32, i32) {
    %c0_i32 = arith.constant 0 : i32
    %c0_i32_0 = arith.constant 0 : i32
    %c0_i32_1 = arith.constant 0 : i32
    return %arg0, %c0_i32, %c0_i32_0 : i32, i32, i32
  }
}

module attributes {stable_mosaic.version = 11 : i64} {
  func.func @kernel(%arg0: i32, %arg1: memref<64x32xf32, #tpu.memory_space<vmem>>, %arg2: memref<32x32xf32, #tpu.memory_space<vmem>>, %arg3: memref<1x32xf32, #tpu.memory_space<vmem>>, %arg4: memref<64x32xf32, #tpu.memory_space<vmem>>) attributes {dimension_semantics = [#tpu.dimension_semantics<parallel>], iteration_bounds = array<i64: 2>, scalar_prefetch = 0 : i64, scratch_operands = 0 : i64, tpu.core_type = #tpu.core_type<tc>, window_params = [{transform_indices = @transform_0, window_bounds = array<i64: 64, 32>}, {pipeline_mode = #tpu.pipeline_mode<synchronous>, transform_indices = @transform_1, window_bounds = array<i64: 32, 32>}, {pipeline_mode = #tpu.pipeline_mode<synchronous>, transform_indices = @transform_2, window_bounds = array<i64: 1, 32>}, {transform_indices = @transform_3, window_bounds = array<i64: 64, 32>}]} {
    %c0 = arith.constant 0 : index
    %c0_0 = arith.constant 0 : index
    %0 = vector.load %arg1[%c0, %c0_0] : memref<64x32xf32, #tpu.memory_space<vmem>>, vector<64x32xf32>
    %1 = arith.truncf %0 : vector<64x32xf32> to vector<64x32xbf16>
    %c0_1 = arith.constant 0 : index
    %c0_2 = arith.constant 0 : index
    %2 = vector.load %arg2[%c0_1, %c0_2] : memref<32x32xf32, #tpu.memory_space<vmem>>, vector<32x32xf32>
    %3 = arith.truncf %2 : vector<32x32xf32> to vector<32x32xbf16>
    %cst = arith.constant dense<0.000000e+00> : vector<64x32xf32>
    %4 = tpu.matmul %1, %3, %cst {dimension_numbers = #tpu.dot_dimension_numbers<[1], [0], [0], [1], [0, 0, 1, 1], [], []>} : vector<64x32xbf16>, vector<32x32xbf16>, vector<64x32xf32> -> vector<64x32xf32>
    %c0_3 = arith.constant 0 : index
    %c0_4 = arith.constant 0 : index
    %5 = vector.load %arg3[%c0_3, %c0_4] : memref<1x32xf32, #tpu.memory_space<vmem>>, vector<1x32xf32>
    %6 = vector.broadcast %5 : vector<1x32xf32> to vector<64x32xf32>
    %7 = arith.addf %4, %6 : vector<64x32xf32>
    %c0_5 = arith.constant 0 : index
    %c0_6 = arith.constant 0 : index
    %8 = vector.load %arg4[%c0_5, %c0_6] : memref<64x32xf32, #tpu.memory_space<vmem>>, vector<64x32xf32>
    tpu.vector_store %arg4[%c0_5, %c0_6], %7 {strides = array<i32>} : memref<64x32xf32, #tpu.memory_space<vmem>>, vector<64x32xf32>,
    return
  }
  func.func @transform_0(%arg0: i32) -> (i32, i32) {
    %c0_i32 = arith.constant 0 : i32
    %c0_i32_0 = arith.constant 0 : i32
    return %arg0, %c0_i32 : i32, i32
  }
  func.func @transform_1(%arg0: i32) -> (i32, i32) {
    %c0_i32 = arith.constant 0 : i32
    %c0_i32_0 = arith.constant 0 : i32
    %c0_i32_1 = arith.constant 0 : i32
    return %c0_i32, %c0_i32_0 : i32, i32
  }
  func.func @transform_2(%arg0: i32) -> (i32, i32) {
    %c0_i32 = arith.constant 0 : i32
    %c0_i32_0 = arith.constant 0 : i32
    %c0_i32_1 = arith.constant 0 : i32
    return %c0_i32, %c0_i32_0 : i32, i32
  }
  func.func @transform_3(%arg0: i32) -> (i32, i32) {
    %c0_i32 = arith.constant 0 : i32
    %c0_i32_0 = arith.constant 0 : i32
    return %arg0, %c0_i32 : i32, i32
  }
}

module attributes {stable_mosaic.version = 11 : i64} {
  func.func @kernel(%arg0: i32, %arg1: memref<64x32xf32, #tpu.memory_space<vmem>>, %arg2: memref<32x128xf32, #tpu.memory_space<vmem>>, %arg3: memref<1x32xf32, #tpu.memory_space<vmem>>, %arg4: memref<1x32xf32, #tpu.memory_space<vmem>>, %arg5: memref<1x128xf32, #tpu.memory_space<vmem>>, %arg6: memref<64x128xf32, #tpu.memory_space<vmem>>) attributes {dimension_semantics = [#tpu.dimension_semantics<parallel>], iteration_bounds = array<i64: 2>, scalar_prefetch = 0 : i64, scratch_operands = 0 : i64, tpu.core_type = #tpu.core_type<tc>, window_params = [{transform_indices = @transform_0, window_bounds = array<i64: 64, 32>}, {pipeline_mode = #tpu.pipeline_mode<synchronous>, transform_indices = @transform_1, window_bounds = array<i64: 32, 128>}, {pipeline_mode = #tpu.pipeline_mode<synchronous>, transform_indices = @transform_2, window_bounds = array<i64: 1, 32>}, {pipeline_mode = #tpu.pipeline_mode<synchronous>, transform_indices = @transform_3, window_bounds = array<i64: 1, 32>}, {pipeline_mode = #tpu.pipeline_mode<synchronous>, transform_indices = @transform_4, window_bounds = array<i64: 1, 128>}, {transform_indices = @transform_5, window_bounds = array<i64: 64, 128>}]} {
    %c0 = arith.constant 0 : index
    %c0_0 = arith.constant 0 : index
    %0 = vector.load %arg1[%c0, %c0_0] : memref<64x32xf32, #tpu.memory_space<vmem>>, vector<64x32xf32>
    %c0_1 = arith.constant 0 : index
    %c0_2 = arith.constant 0 : index
    %1 = vector.load %arg3[%c0_1, %c0_2] : memref<1x32xf32, #tpu.memory_space<vmem>>, vector<1x32xf32>
    %c0_3 = arith.constant 0 : index
    %c0_4 = arith.constant 0 : index
    %2 = vector.load %arg4[%c0_3, %c0_4] : memref<1x32xf32, #tpu.memory_space<vmem>>, vector<1x32xf32>
    %cst = arith.constant dense<0.000000e+00> : vector<64xf32>
    %3 = vector.multi_reduction <add>, %0, %cst [1] : vector<64x32xf32> to vector<64xf32>
    %4 = vector.shape_cast %3 : vector<64xf32> to vector<64x1xf32>
    %cst_5 = arith.constant 3.200000e+01 : f32
    %5 = vector.broadcast %cst_5 : f32 to vector<64x1xf32>
    %6 = arith.divf %4, %5 : vector<64x1xf32>
    %7 = vector.broadcast %6 : vector<64x1xf32> to vector<64x32xf32>
    %8 = arith.subf %0, %7 : vector<64x32xf32>
    %9 = arith.mulf %8, %8 : vector<64x32xf32>
    %cst_6 = arith.constant dense<0.000000e+00> : vector<64xf32>
    %10 = vector.multi_reduction <add>, %9, %cst_6 [1] : vector<64x32xf32> to vector<64xf32>
    %11 = vector.shape_cast %10 : vector<64xf32> to vector<64x1xf32>
    %cst_7 = arith.constant 3.200000e+01 : f32
    %12 = vector.broadcast %cst_7 : f32 to vector<64x1xf32>
    %13 = arith.divf %11, %12 : vector<64x1xf32>
    %14 = vector.broadcast %6 : vector<64x1xf32> to vector<64x32xf32>
    %15 = arith.subf %0, %14 : vector<64x32xf32>
    %cst_8 = arith.constant 9.99999974E-6 : f32
    %16 = vector.broadcast %cst_8 : f32 to vector<64x1xf32>
    %17 = arith.addf %13, %16 : vector<64x1xf32>
    %18 = math.rsqrt %17 : vector<64x1xf32>
    %19 = vector.broadcast %18 : vector<64x1xf32> to vector<64x32xf32>
    %20 = arith.mulf %15, %19 : vector<64x32xf32>
    %21 = vector.broadcast %1 : vector<1x32xf32> to vector<64x32xf32>
    %22 = arith.mulf %20, %21 : vector<64x32xf32>
    %23 = vector.broadcast %2 : vector<1x32xf32> to vector<64x32xf32>
    %24 = arith.addf %22, %23 : vector<64x32xf32>
    %25 = arith.truncf %24 : vector<64x32xf32> to vector<64x32xbf16>
    %c0_9 = arith.constant 0 : index
    %c0_10 = arith.constant 0 : index
    %26 = vector.load %arg2[%c0_9, %c0_10] : memref<32x128xf32, #tpu.memory_space<vmem>>, vector<32x128xf32>
    %27 = arith.truncf %26 : vector<32x128xf32> to vector<32x128xbf16>
    %cst_11 = arith.constant dense<0.000000e+00> : vector<64x128xf32>
    %28 = tpu.matmul %25, %27, %cst_11 {dimension_numbers = #tpu.dot_dimension_numbers<[1], [0], [0], [1], [0, 0, 1, 1], [], []>} : vector<64x32xbf16>, vector<32x128xbf16>, vector<64x128xf32> -> vector<64x128xf32>
    %c0_12 = arith.constant 0 : index
    %c0_13 = arith.constant 0 : index
    %29 = vector.load %arg5[%c0_12, %c0_13] : memref<1x128xf32, #tpu.memory_space<vmem>>, vector<1x128xf32>
    %30 = vector.broadcast %29 : vector<1x128xf32> to vector<64x128xf32>
    %31 = arith.addf %28, %30 : vector<64x128xf32>
    %cst_14 = arith.constant 5.000000e-01 : f32
    %32 = vector.broadcast %cst_14 : f32 to vector<64x128xf32>
    %33 = arith.mulf %32, %31 : vector<64x128xf32>
    %cst_15 = arith.constant 4.471500e-02 : f32
    %34 = vector.broadcast %cst_15 : f32 to vector<64x128xf32>
    %35 = arith.mulf %34, %31 : vector<64x128xf32>
    %36 = arith.mulf %35, %31 : vector<64x128xf32>
    %37 = arith.mulf %36, %31 : vector<64x128xf32>
    %38 = arith.addf %31, %37 : vector<64x128xf32>
    %cst_16 = arith.constant 0.797884583 : f32
    %39 = vector.broadcast %cst_16 : f32 to vector<64x128xf32>
    %40 = arith.mulf %39, %38 : vector<64x128xf32>
    %41 = math.tanh %40 : vector<64x128xf32>
    %cst_17 = arith.constant 1.000000e+00 : f32
    %42 = vector.broadcast %cst_17 : f32 to vector<64x128xf32>
    %43 = arith.addf %42, %41 : vector<64x128xf32>
    %44 = arith.mulf %33, %43 : vector<64x128xf32>
    %c0_18 = arith.constant 0 : index
    %c0_19 = arith.constant 0 : index
    %45 = vector.load %arg6[%c0_18, %c0_19] : memref<64x128xf32, #tpu.memory_space<vmem>>, vector<64x128xf32>
    tpu.vector_store %arg6[%c0_18, %c0_19], %44 {strides = array<i32>} : memref<64x128xf32, #tpu.memory_space<vmem>>, vector<64x128xf32>,
    return
  }
  func.func @transform_0(%arg0: i32) -> (i32, i32) {
    %c0_i32 = arith.constant 0 : i32
    %c0_i32_0 = arith.constant 0 : i32
    return %arg0, %c0_i32 : i32, i32
  }
  func.func @transform_1(%arg0: i32) -> (i32, i32) {
    %c0_i32 = arith.constant 0 : i32
    %c0_i32_0 = arith.constant 0 : i32
    %c0_i32_1 = arith.constant 0 : i32
    return %c0_i32, %c0_i32_0 : i32, i32
  }
  func.func @transform_2(%arg0: i32) -> (i32, i32) {
    %c0_i32 = arith.constant 0 : i32
    %c0_i32_0 = arith.constant 0 : i32
    %c0_i32_1 = arith.constant 0 : i32
    return %c0_i32, %c0_i32_0 : i32, i32
  }
  func.func @transform_3(%arg0: i32) -> (i32, i32) {
    %c0_i32 = arith.constant 0 : i32
    %c0_i32_0 = arith.constant 0 : i32
    %c0_i32_1 = arith.constant 0 : i32
    return %c0_i32, %c0_i32_0 : i32, i32
  }
  func.func @transform_4(%arg0: i32) -> (i32, i32) {
    %c0_i32 = arith.constant 0 : i32
    %c0_i32_0 = arith.constant 0 : i32
    %c0_i32_1 = arith.constant 0 : i32
    return %c0_i32, %c0_i32_0 : i32, i32
  }
  func.func @transform_5(%arg0: i32) -> (i32, i32) {
    %c0_i32 = arith.constant 0 : i32
    %c0_i32_0 = arith.constant 0 : i32
    return %arg0, %c0_i32 : i32, i32
  }
}

module attributes {stable_mosaic.version = 11 : i64} {
  func.func @kernel(%arg0: i32, %arg1: memref<64x128xf32, #tpu.memory_space<vmem>>, %arg2: memref<128x32xf32, #tpu.memory_space<vmem>>, %arg3: memref<1x32xf32, #tpu.memory_space<vmem>>, %arg4: memref<64x32xf32, #tpu.memory_space<vmem>>) attributes {dimension_semantics = [#tpu.dimension_semantics<parallel>], iteration_bounds = array<i64: 2>, scalar_prefetch = 0 : i64, scratch_operands = 0 : i64, tpu.core_type = #tpu.core_type<tc>, window_params = [{transform_indices = @transform_0, window_bounds = array<i64: 64, 128>}, {pipeline_mode = #tpu.pipeline_mode<synchronous>, transform_indices = @transform_1, window_bounds = array<i64: 128, 32>}, {pipeline_mode = #tpu.pipeline_mode<synchronous>, transform_indices = @transform_2, window_bounds = array<i64: 1, 32>}, {transform_indices = @transform_3, window_bounds = array<i64: 64, 32>}]} {
    %c0 = arith.constant 0 : index
    %c0_0 = arith.constant 0 : index
    %0 = vector.load %arg1[%c0, %c0_0] : memref<64x128xf32, #tpu.memory_space<vmem>>, vector<64x128xf32>
    %1 = arith.truncf %0 : vector<64x128xf32> to vector<64x128xbf16>
    %c0_1 = arith.constant 0 : index
    %c0_2 = arith.constant 0 : index
    %2 = vector.load %arg2[%c0_1, %c0_2] : memref<128x32xf32, #tpu.memory_space<vmem>>, vector<128x32xf32>
    %3 = arith.truncf %2 : vector<128x32xf32> to vector<128x32xbf16>
    %cst = arith.constant dense<0.000000e+00> : vector<64x32xf32>
    %4 = tpu.matmul %1, %3, %cst {dimension_numbers = #tpu.dot_dimension_numbers<[1], [0], [0], [1], [0, 0, 1, 1], [], []>} : vector<64x128xbf16>, vector<128x32xbf16>, vector<64x32xf32> -> vector<64x32xf32>
    %c0_3 = arith.constant 0 : index
    %c0_4 = arith.constant 0 : index
    %5 = vector.load %arg3[%c0_3, %c0_4] : memref<1x32xf32, #tpu.memory_space<vmem>>, vector<1x32xf32>
    %6 = vector.broadcast %5 : vector<1x32xf32> to vector<64x32xf32>
    %7 = arith.addf %4, %6 : vector<64x32xf32>
    %c0_5 = arith.constant 0 : index
    %c0_6 = arith.constant 0 : index
    %8 = vector.load %arg4[%c0_5, %c0_6] : memref<64x32xf32, #tpu.memory_space<vmem>>, vector<64x32xf32>
    tpu.vector_store %arg4[%c0_5, %c0_6], %7 {strides = array<i32>} : memref<64x32xf32, #tpu.memory_space<vmem>>, vector<64x32xf32>,
    return
  }
  func.func @transform_0(%arg0: i32) -> (i32, i32) {
    %c0_i32 = arith.constant 0 : i32
    %c0_i32_0 = arith.constant 0 : i32
    return %arg0, %c0_i32 : i32, i32
  }
  func.func @transform_1(%arg0: i32) -> (i32, i32) {
    %c0_i32 = arith.constant 0 : i32
    %c0_i32_0 = arith.constant 0 : i32
    %c0_i32_1 = arith.constant 0 : i32
    return %c0_i32, %c0_i32_0 : i32, i32
  }
  func.func @transform_2(%arg0: i32) -> (i32, i32) {
    %c0_i32 = arith.constant 0 : i32
    %c0_i32_0 = arith.constant 0 : i32
    %c0_i32_1 = arith.constant 0 : i32
    return %c0_i32, %c0_i32_0 : i32, i32
  }
  func.func @transform_3(%arg0: i32) -> (i32, i32) {
    %c0_i32 = arith.constant 0 : i32
    %c0_i32_0 = arith.constant 0 : i32
    return %arg0, %c0_i32 : i32, i32
  }
}

module attributes {stable_mosaic.version = 11 : i64} {
  func.func @_win_attn_kernel(%arg0: i32, %arg1: memref<4x16x96xf32, #tpu.memory_space<vmem>>, %arg2: memref<2x16x16xf32, #tpu.memory_space<vmem>>, %arg3: memref<4x16x16xf32, #tpu.memory_space<vmem>>, %arg4: memref<4x16x32xf32, #tpu.memory_space<vmem>>) attributes {dimension_semantics = [#tpu.dimension_semantics<parallel>], iteration_bounds = array<i64: 2>, scalar_prefetch = 0 : i64, scratch_operands = 0 : i64, tpu.core_type = #tpu.core_type<tc>, window_params = [{transform_indices = @transform_0, window_bounds = array<i64: 4, 16, 96>}, {pipeline_mode = #tpu.pipeline_mode<synchronous>, transform_indices = @transform_1, window_bounds = array<i64: 2, 16, 16>}, {pipeline_mode = #tpu.pipeline_mode<synchronous>, transform_indices = @transform_2, window_bounds = array<i64: 4, 16, 16>}, {transform_indices = @transform_3, window_bounds = array<i64: 4, 16, 32>}]} {
    %c0 = arith.constant 0 : index
    %c0_0 = arith.constant 0 : index
    %c0_1 = arith.constant 0 : index
    %0 = vector.load %arg1[%c0, %c0_0, %c0_1] : memref<4x16x96xf32, #tpu.memory_space<vmem>>, vector<4x16x96xf32>
    %1 = vector.extract_strided_slice %0 {offsets = [0, 0, 0], sizes = [4, 16, 16], strides = [1, 1, 1]} : vector<4x16x96xf32> to vector<4x16x16xf32>
    %2 = vector.extract_strided_slice %0 {offsets = [0, 0, 32], sizes = [4, 16, 16], strides = [1, 1, 1]} : vector<4x16x96xf32> to vector<4x16x16xf32>
    %3 = vector.extract_strided_slice %0 {offsets = [0, 0, 64], sizes = [4, 16, 16], strides = [1, 1, 1]} : vector<4x16x96xf32> to vector<4x16x16xf32>
    %4 = arith.truncf %1 : vector<4x16x16xf32> to vector<4x16x16xbf16>
    %5 = arith.truncf %2 : vector<4x16x16xf32> to vector<4x16x16xbf16>
    %cst = arith.constant dense<0.000000e+00> : vector<4x16x16xf32>
    %6 = tpu.matmul %4, %5, %cst {dimension_numbers = #tpu.dot_dimension_numbers<[2], [2], [1], [1], [0, 0, 0, 1, 1, 1], [0], [0]>} : vector<4x16x16xbf16>, vector<4x16x16xbf16>, vector<4x16x16xf32> -> vector<4x16x16xf32>
    %cst_2 = arith.constant 2.500000e-01 : f32
    %7 = vector.broadcast %cst_2 : f32 to vector<4x16x16xf32>
    %8 = arith.mulf %6, %7 : vector<4x16x16xf32>
    %c0_3 = arith.constant 0 : index
    %c0_4 = arith.constant 0 : index
    %c0_5 = arith.constant 0 : index
    %9 = vector.load %arg2[%c0_3, %c0_4, %c0_5] : memref<2x16x16xf32, #tpu.memory_space<vmem>>, vector<1x16x16xf32>
    %10 = vector.shape_cast %9 : vector<1x16x16xf32> to vector<16x16xf32>
    %11 = vector.shape_cast %10 : vector<16x16xf32> to vector<1x16x16xf32>
    %12 = vector.broadcast %11 : vector<1x16x16xf32> to vector<4x16x16xf32>
    %13 = arith.addf %8, %12 : vector<4x16x16xf32>
    %c0_6 = arith.constant 0 : index
    %c0_7 = arith.constant 0 : index
    %c0_8 = arith.constant 0 : index
    %14 = vector.load %arg3[%c0_6, %c0_7, %c0_8] : memref<4x16x16xf32, #tpu.memory_space<vmem>>, vector<4x16x16xf32>
    %15 = arith.addf %13, %14 : vector<4x16x16xf32>
    %cst_9 = arith.constant dense<0xFF800000> : vector<4x16xf32>
    %16 = vector.multi_reduction <maximumf>, %15, %cst_9 [2] : vector<4x16x16xf32> to vector<4x16xf32>
    %17 = vector.shape_cast %16 : vector<4x16xf32> to vector<4x16x1xf32>
    %18 = vector.broadcast %17 : vector<4x16x1xf32> to vector<4x16x16xf32>
    %19 = arith.subf %15, %18 : vector<4x16x16xf32>
    %20 = math.exp %19 : vector<4x16x16xf32>
    %cst_10 = arith.constant dense<0.000000e+00> : vector<4x16xf32>
    %21 = vector.multi_reduction <add>, %20, %cst_10 [2] : vector<4x16x16xf32> to vector<4x16xf32>
    %22 = vector.shape_cast %21 : vector<4x16xf32> to vector<4x16x1xf32>
    %23 = tpu.reciprocal %22 {approx = true} : vector<4x16x1xf32> -> vector<4x16x1xf32>
    %24 = vector.broadcast %23 : vector<4x16x1xf32> to vector<4x16x16xf32>
    %25 = arith.mulf %20, %24 : vector<4x16x16xf32>
    %26 = arith.truncf %25 : vector<4x16x16xf32> to vector<4x16x16xbf16>
    %27 = arith.truncf %3 : vector<4x16x16xf32> to vector<4x16x16xbf16>
    %cst_11 = arith.constant dense<0.000000e+00> : vector<4x16x16xf32>
    %28 = tpu.matmul %26, %27, %cst_11 {dimension_numbers = #tpu.dot_dimension_numbers<[2], [1], [1], [2], [0, 0, 0, 1, 1, 2], [0], [0]>} : vector<4x16x16xbf16>, vector<4x16x16xbf16>, vector<4x16x16xf32> -> vector<4x16x16xf32>
    %c0_12 = arith.constant 0 : index
    %c0_13 = arith.constant 0 : index
    %c0_14 = arith.constant 0 : index
    %29 = vector.load %arg4[%c0_12, %c0_13, %c0_14] : memref<4x16x32xf32, #tpu.memory_space<vmem>>, vector<4x16x16xf32>
    tpu.vector_store %arg4[%c0_12, %c0_13, %c0_14], %28 {strides = array<i32>} : memref<4x16x32xf32, #tpu.memory_space<vmem>>, vector<4x16x16xf32>,
    %30 = vector.extract_strided_slice %0 {offsets = [0, 0, 16], sizes = [4, 16, 16], strides = [1, 1, 1]} : vector<4x16x96xf32> to vector<4x16x16xf32>
    %31 = vector.extract_strided_slice %0 {offsets = [0, 0, 48], sizes = [4, 16, 16], strides = [1, 1, 1]} : vector<4x16x96xf32> to vector<4x16x16xf32>
    %32 = vector.extract_strided_slice %0 {offsets = [0, 0, 80], sizes = [4, 16, 16], strides = [1, 1, 1]} : vector<4x16x96xf32> to vector<4x16x16xf32>
    %33 = arith.truncf %30 : vector<4x16x16xf32> to vector<4x16x16xbf16>
    %34 = arith.truncf %31 : vector<4x16x16xf32> to vector<4x16x16xbf16>
    %cst_15 = arith.constant dense<0.000000e+00> : vector<4x16x16xf32>
    %35 = tpu.matmul %33, %34, %cst_15 {dimension_numbers = #tpu.dot_dimension_numbers<[2], [2], [1], [1], [0, 0, 0, 1, 1, 1], [0], [0]>} : vector<4x16x16xbf16>, vector<4x16x16xbf16>, vector<4x16x16xf32> -> vector<4x16x16xf32>
    %cst_16 = arith.constant 2.500000e-01 : f32
    %36 = vector.broadcast %cst_16 : f32 to vector<4x16x16xf32>
    %37 = arith.mulf %35, %36 : vector<4x16x16xf32>
    %c1 = arith.constant 1 : index
    %c0_17 = arith.constant 0 : index
    %c0_18 = arith.constant 0 : index
    %38 = vector.load %arg2[%c1, %c0_17, %c0_18] : memref<2x16x16xf32, #tpu.memory_space<vmem>>, vector<1x16x16xf32>
    %39 = vector.shape_cast %38 : vector<1x16x16xf32> to vector<16x16xf32>
    %40 = vector.shape_cast %39 : vector<16x16xf32> to vector<1x16x16xf32>
    %41 = vector.broadcast %40 : vector<1x16x16xf32> to vector<4x16x16xf32>
    %42 = arith.addf %37, %41 : vector<4x16x16xf32>
    %c0_19 = arith.constant 0 : index
    %c0_20 = arith.constant 0 : index
    %c0_21 = arith.constant 0 : index
    %43 = vector.load %arg3[%c0_19, %c0_20, %c0_21] : memref<4x16x16xf32, #tpu.memory_space<vmem>>, vector<4x16x16xf32>
    %44 = arith.addf %42, %43 : vector<4x16x16xf32>
    %cst_22 = arith.constant dense<0xFF800000> : vector<4x16xf32>
    %45 = vector.multi_reduction <maximumf>, %44, %cst_22 [2] : vector<4x16x16xf32> to vector<4x16xf32>
    %46 = vector.shape_cast %45 : vector<4x16xf32> to vector<4x16x1xf32>
    %47 = vector.broadcast %46 : vector<4x16x1xf32> to vector<4x16x16xf32>
    %48 = arith.subf %44, %47 : vector<4x16x16xf32>
    %49 = math.exp %48 : vector<4x16x16xf32>
    %cst_23 = arith.constant dense<0.000000e+00> : vector<4x16xf32>
    %50 = vector.multi_reduction <add>, %49, %cst_23 [2] : vector<4x16x16xf32> to vector<4x16xf32>
    %51 = vector.shape_cast %50 : vector<4x16xf32> to vector<4x16x1xf32>
    %52 = tpu.reciprocal %51 {approx = true} : vector<4x16x1xf32> -> vector<4x16x1xf32>
    %53 = vector.broadcast %52 : vector<4x16x1xf32> to vector<4x16x16xf32>
    %54 = arith.mulf %49, %53 : vector<4x16x16xf32>
    %55 = arith.truncf %54 : vector<4x16x16xf32> to vector<4x16x16xbf16>
    %56 = arith.truncf %32 : vector<4x16x16xf32> to vector<4x16x16xbf16>
    %cst_24 = arith.constant dense<0.000000e+00> : vector<4x16x16xf32>
    %57 = tpu.matmul %55, %56, %cst_24 {dimension_numbers = #tpu.dot_dimension_numbers<[2], [1], [1], [2], [0, 0, 0, 1, 1, 2], [0], [0]>} : vector<4x16x16xbf16>, vector<4x16x16xbf16>, vector<4x16x16xf32> -> vector<4x16x16xf32>
    %c0_25 = arith.constant 0 : index
    %c0_26 = arith.constant 0 : index
    %c16 = arith.constant 16 : index
    %58 = vector.load %arg4[%c0_25, %c0_26, %c16] : memref<4x16x32xf32, #tpu.memory_space<vmem>>, vector<4x16x16xf32>
    tpu.vector_store %arg4[%c0_25, %c0_26, %c16], %57 {strides = array<i32>} : memref<4x16x32xf32, #tpu.memory_space<vmem>>, vector<4x16x16xf32>,
    return
  }
  func.func @transform_0(%arg0: i32) -> (i32, i32, i32) {
    %c0_i32 = arith.constant 0 : i32
    %c0_i32_0 = arith.constant 0 : i32
    %c0_i32_1 = arith.constant 0 : i32
    return %arg0, %c0_i32, %c0_i32_0 : i32, i32, i32
  }
  func.func @transform_1(%arg0: i32) -> (i32, i32, i32) {
    %c0_i32 = arith.constant 0 : i32
    %c0_i32_0 = arith.constant 0 : i32
    %c0_i32_1 = arith.constant 0 : i32
    %c0_i32_2 = arith.constant 0 : i32
    return %c0_i32, %c0_i32_0, %c0_i32_1 : i32, i32, i32
  }
  func.func @transform_2(%arg0: i32) -> (i32, i32, i32) {
    %c0_i32 = arith.constant 0 : i32
    %c0_i32_0 = arith.constant 0 : i32
    %c0_i32_1 = arith.constant 0 : i32
    %c0_i32_2 = arith.constant 0 : i32
    return %c0_i32, %c0_i32_0, %c0_i32_1 : i32, i32, i32
  }
  func.func @transform_3(%arg0: i32) -> (i32, i32, i32) {
    %c0_i32 = arith.constant 0 : i32
    %c0_i32_0 = arith.constant 0 : i32
    %c0_i32_1 = arith.constant 0 : i32
    return %arg0, %c0_i32, %c0_i32_0 : i32, i32, i32
  }
}

module attributes {stable_mosaic.version = 11 : i64} {
  func.func @kernel(%arg0: i32, %arg1: memref<16x128xf32, #tpu.memory_space<vmem>>, %arg2: memref<128x64xf32, #tpu.memory_space<vmem>>, %arg3: memref<1x128xf32, #tpu.memory_space<vmem>>, %arg4: memref<1x128xf32, #tpu.memory_space<vmem>>, %arg5: memref<16x64xf32, #tpu.memory_space<vmem>>) attributes {dimension_semantics = [#tpu.dimension_semantics<parallel>], iteration_bounds = array<i64: 2>, scalar_prefetch = 0 : i64, scratch_operands = 0 : i64, tpu.core_type = #tpu.core_type<tc>, window_params = [{transform_indices = @transform_0, window_bounds = array<i64: 16, 128>}, {pipeline_mode = #tpu.pipeline_mode<synchronous>, transform_indices = @transform_1, window_bounds = array<i64: 128, 64>}, {pipeline_mode = #tpu.pipeline_mode<synchronous>, transform_indices = @transform_2, window_bounds = array<i64: 1, 128>}, {pipeline_mode = #tpu.pipeline_mode<synchronous>, transform_indices = @transform_3, window_bounds = array<i64: 1, 128>}, {transform_indices = @transform_4, window_bounds = array<i64: 16, 64>}]} {
    %c0 = arith.constant 0 : index
    %c0_0 = arith.constant 0 : index
    %0 = vector.load %arg1[%c0, %c0_0] : memref<16x128xf32, #tpu.memory_space<vmem>>, vector<16x128xf32>
    %c0_1 = arith.constant 0 : index
    %c0_2 = arith.constant 0 : index
    %1 = vector.load %arg3[%c0_1, %c0_2] : memref<1x128xf32, #tpu.memory_space<vmem>>, vector<1x128xf32>
    %c0_3 = arith.constant 0 : index
    %c0_4 = arith.constant 0 : index
    %2 = vector.load %arg4[%c0_3, %c0_4] : memref<1x128xf32, #tpu.memory_space<vmem>>, vector<1x128xf32>
    %cst = arith.constant dense<0.000000e+00> : vector<16xf32>
    %3 = vector.multi_reduction <add>, %0, %cst [1] : vector<16x128xf32> to vector<16xf32>
    %4 = vector.shape_cast %3 : vector<16xf32> to vector<16x1xf32>
    %cst_5 = arith.constant 1.280000e+02 : f32
    %5 = vector.broadcast %cst_5 : f32 to vector<16x1xf32>
    %6 = arith.divf %4, %5 : vector<16x1xf32>
    %7 = vector.broadcast %6 : vector<16x1xf32> to vector<16x128xf32>
    %8 = arith.subf %0, %7 : vector<16x128xf32>
    %9 = arith.mulf %8, %8 : vector<16x128xf32>
    %cst_6 = arith.constant dense<0.000000e+00> : vector<16xf32>
    %10 = vector.multi_reduction <add>, %9, %cst_6 [1] : vector<16x128xf32> to vector<16xf32>
    %11 = vector.shape_cast %10 : vector<16xf32> to vector<16x1xf32>
    %cst_7 = arith.constant 1.280000e+02 : f32
    %12 = vector.broadcast %cst_7 : f32 to vector<16x1xf32>
    %13 = arith.divf %11, %12 : vector<16x1xf32>
    %14 = vector.broadcast %6 : vector<16x1xf32> to vector<16x128xf32>
    %15 = arith.subf %0, %14 : vector<16x128xf32>
    %cst_8 = arith.constant 9.99999974E-6 : f32
    %16 = vector.broadcast %cst_8 : f32 to vector<16x1xf32>
    %17 = arith.addf %13, %16 : vector<16x1xf32>
    %18 = math.rsqrt %17 : vector<16x1xf32>
    %19 = vector.broadcast %18 : vector<16x1xf32> to vector<16x128xf32>
    %20 = arith.mulf %15, %19 : vector<16x128xf32>
    %21 = vector.broadcast %1 : vector<1x128xf32> to vector<16x128xf32>
    %22 = arith.mulf %20, %21 : vector<16x128xf32>
    %23 = vector.broadcast %2 : vector<1x128xf32> to vector<16x128xf32>
    %24 = arith.addf %22, %23 : vector<16x128xf32>
    %25 = arith.truncf %24 : vector<16x128xf32> to vector<16x128xbf16>
    %c0_9 = arith.constant 0 : index
    %c0_10 = arith.constant 0 : index
    %26 = vector.load %arg2[%c0_9, %c0_10] : memref<128x64xf32, #tpu.memory_space<vmem>>, vector<128x64xf32>
    %27 = arith.truncf %26 : vector<128x64xf32> to vector<128x64xbf16>
    %cst_11 = arith.constant dense<0.000000e+00> : vector<16x64xf32>
    %28 = tpu.matmul %25, %27, %cst_11 {dimension_numbers = #tpu.dot_dimension_numbers<[1], [0], [0], [1], [0, 0, 1, 1], [], []>} : vector<16x128xbf16>, vector<128x64xbf16>, vector<16x64xf32> -> vector<16x64xf32>
    %c0_12 = arith.constant 0 : index
    %c0_13 = arith.constant 0 : index
    %29 = vector.load %arg5[%c0_12, %c0_13] : memref<16x64xf32, #tpu.memory_space<vmem>>, vector<16x64xf32>
    tpu.vector_store %arg5[%c0_12, %c0_13], %28 {strides = array<i32>} : memref<16x64xf32, #tpu.memory_space<vmem>>, vector<16x64xf32>,
    return
  }
  func.func @transform_0(%arg0: i32) -> (i32, i32) {
    %c0_i32 = arith.constant 0 : i32
    %c0_i32_0 = arith.constant 0 : i32
    return %arg0, %c0_i32 : i32, i32
  }
  func.func @transform_1(%arg0: i32) -> (i32, i32) {
    %c0_i32 = arith.constant 0 : i32
    %c0_i32_0 = arith.constant 0 : i32
    %c0_i32_1 = arith.constant 0 : i32
    return %c0_i32, %c0_i32_0 : i32, i32
  }
  func.func @transform_2(%arg0: i32) -> (i32, i32) {
    %c0_i32 = arith.constant 0 : i32
    %c0_i32_0 = arith.constant 0 : i32
    %c0_i32_1 = arith.constant 0 : i32
    return %c0_i32, %c0_i32_0 : i32, i32
  }
  func.func @transform_3(%arg0: i32) -> (i32, i32) {
    %c0_i32 = arith.constant 0 : i32
    %c0_i32_0 = arith.constant 0 : i32
    %c0_i32_1 = arith.constant 0 : i32
    return %c0_i32, %c0_i32_0 : i32, i32
  }
  func.func @transform_4(%arg0: i32) -> (i32, i32) {
    %c0_i32 = arith.constant 0 : i32
    %c0_i32_0 = arith.constant 0 : i32
    return %arg0, %c0_i32 : i32, i32
  }
}

module attributes {stable_mosaic.version = 11 : i64} {
  func.func @kernel(%arg0: i32, %arg1: memref<16x64xf32, #tpu.memory_space<vmem>>, %arg2: memref<64x192xf32, #tpu.memory_space<vmem>>, %arg3: memref<1x64xf32, #tpu.memory_space<vmem>>, %arg4: memref<1x64xf32, #tpu.memory_space<vmem>>, %arg5: memref<1x192xf32, #tpu.memory_space<vmem>>, %arg6: memref<16x192xf32, #tpu.memory_space<vmem>>) attributes {dimension_semantics = [#tpu.dimension_semantics<parallel>], iteration_bounds = array<i64: 2>, scalar_prefetch = 0 : i64, scratch_operands = 0 : i64, tpu.core_type = #tpu.core_type<tc>, window_params = [{transform_indices = @transform_0, window_bounds = array<i64: 16, 64>}, {pipeline_mode = #tpu.pipeline_mode<synchronous>, transform_indices = @transform_1, window_bounds = array<i64: 64, 192>}, {pipeline_mode = #tpu.pipeline_mode<synchronous>, transform_indices = @transform_2, window_bounds = array<i64: 1, 64>}, {pipeline_mode = #tpu.pipeline_mode<synchronous>, transform_indices = @transform_3, window_bounds = array<i64: 1, 64>}, {pipeline_mode = #tpu.pipeline_mode<synchronous>, transform_indices = @transform_4, window_bounds = array<i64: 1, 192>}, {transform_indices = @transform_5, window_bounds = array<i64: 16, 192>}]} {
    %c0 = arith.constant 0 : index
    %c0_0 = arith.constant 0 : index
    %0 = vector.load %arg1[%c0, %c0_0] : memref<16x64xf32, #tpu.memory_space<vmem>>, vector<16x64xf32>
    %c0_1 = arith.constant 0 : index
    %c0_2 = arith.constant 0 : index
    %1 = vector.load %arg3[%c0_1, %c0_2] : memref<1x64xf32, #tpu.memory_space<vmem>>, vector<1x64xf32>
    %c0_3 = arith.constant 0 : index
    %c0_4 = arith.constant 0 : index
    %2 = vector.load %arg4[%c0_3, %c0_4] : memref<1x64xf32, #tpu.memory_space<vmem>>, vector<1x64xf32>
    %cst = arith.constant dense<0.000000e+00> : vector<16xf32>
    %3 = vector.multi_reduction <add>, %0, %cst [1] : vector<16x64xf32> to vector<16xf32>
    %4 = vector.shape_cast %3 : vector<16xf32> to vector<16x1xf32>
    %cst_5 = arith.constant 6.400000e+01 : f32
    %5 = vector.broadcast %cst_5 : f32 to vector<16x1xf32>
    %6 = arith.divf %4, %5 : vector<16x1xf32>
    %7 = vector.broadcast %6 : vector<16x1xf32> to vector<16x64xf32>
    %8 = arith.subf %0, %7 : vector<16x64xf32>
    %9 = arith.mulf %8, %8 : vector<16x64xf32>
    %cst_6 = arith.constant dense<0.000000e+00> : vector<16xf32>
    %10 = vector.multi_reduction <add>, %9, %cst_6 [1] : vector<16x64xf32> to vector<16xf32>
    %11 = vector.shape_cast %10 : vector<16xf32> to vector<16x1xf32>
    %cst_7 = arith.constant 6.400000e+01 : f32
    %12 = vector.broadcast %cst_7 : f32 to vector<16x1xf32>
    %13 = arith.divf %11, %12 : vector<16x1xf32>
    %14 = vector.broadcast %6 : vector<16x1xf32> to vector<16x64xf32>
    %15 = arith.subf %0, %14 : vector<16x64xf32>
    %cst_8 = arith.constant 9.99999974E-6 : f32
    %16 = vector.broadcast %cst_8 : f32 to vector<16x1xf32>
    %17 = arith.addf %13, %16 : vector<16x1xf32>
    %18 = math.rsqrt %17 : vector<16x1xf32>
    %19 = vector.broadcast %18 : vector<16x1xf32> to vector<16x64xf32>
    %20 = arith.mulf %15, %19 : vector<16x64xf32>
    %21 = vector.broadcast %1 : vector<1x64xf32> to vector<16x64xf32>
    %22 = arith.mulf %20, %21 : vector<16x64xf32>
    %23 = vector.broadcast %2 : vector<1x64xf32> to vector<16x64xf32>
    %24 = arith.addf %22, %23 : vector<16x64xf32>
    %25 = arith.truncf %24 : vector<16x64xf32> to vector<16x64xbf16>
    %c0_9 = arith.constant 0 : index
    %c0_10 = arith.constant 0 : index
    %26 = vector.load %arg2[%c0_9, %c0_10] : memref<64x192xf32, #tpu.memory_space<vmem>>, vector<64x192xf32>
    %27 = arith.truncf %26 : vector<64x192xf32> to vector<64x192xbf16>
    %cst_11 = arith.constant dense<0.000000e+00> : vector<16x192xf32>
    %28 = tpu.matmul %25, %27, %cst_11 {dimension_numbers = #tpu.dot_dimension_numbers<[1], [0], [0], [1], [0, 0, 1, 1], [], []>} : vector<16x64xbf16>, vector<64x192xbf16>, vector<16x192xf32> -> vector<16x192xf32>
    %c0_12 = arith.constant 0 : index
    %c0_13 = arith.constant 0 : index
    %29 = vector.load %arg5[%c0_12, %c0_13] : memref<1x192xf32, #tpu.memory_space<vmem>>, vector<1x192xf32>
    %30 = vector.broadcast %29 : vector<1x192xf32> to vector<16x192xf32>
    %31 = arith.addf %28, %30 : vector<16x192xf32>
    %c0_14 = arith.constant 0 : index
    %c0_15 = arith.constant 0 : index
    %32 = vector.load %arg6[%c0_14, %c0_15] : memref<16x192xf32, #tpu.memory_space<vmem>>, vector<16x192xf32>
    tpu.vector_store %arg6[%c0_14, %c0_15], %31 {strides = array<i32>} : memref<16x192xf32, #tpu.memory_space<vmem>>, vector<16x192xf32>,
    return
  }
  func.func @transform_0(%arg0: i32) -> (i32, i32) {
    %c0_i32 = arith.constant 0 : i32
    %c0_i32_0 = arith.constant 0 : i32
    return %arg0, %c0_i32 : i32, i32
  }
  func.func @transform_1(%arg0: i32) -> (i32, i32) {
    %c0_i32 = arith.constant 0 : i32
    %c0_i32_0 = arith.constant 0 : i32
    %c0_i32_1 = arith.constant 0 : i32
    return %c0_i32, %c0_i32_0 : i32, i32
  }
  func.func @transform_2(%arg0: i32) -> (i32, i32) {
    %c0_i32 = arith.constant 0 : i32
    %c0_i32_0 = arith.constant 0 : i32
    %c0_i32_1 = arith.constant 0 : i32
    return %c0_i32, %c0_i32_0 : i32, i32
  }
  func.func @transform_3(%arg0: i32) -> (i32, i32) {
    %c0_i32 = arith.constant 0 : i32
    %c0_i32_0 = arith.constant 0 : i32
    %c0_i32_1 = arith.constant 0 : i32
    return %c0_i32, %c0_i32_0 : i32, i32
  }
  func.func @transform_4(%arg0: i32) -> (i32, i32) {
    %c0_i32 = arith.constant 0 : i32
    %c0_i32_0 = arith.constant 0 : i32
    %c0_i32_1 = arith.constant 0 : i32
    return %c0_i32, %c0_i32_0 : i32, i32
  }
  func.func @transform_5(%arg0: i32) -> (i32, i32) {
    %c0_i32 = arith.constant 0 : i32
    %c0_i32_0 = arith.constant 0 : i32
    return %arg0, %c0_i32 : i32, i32
  }
}

module attributes {stable_mosaic.version = 11 : i64} {
  func.func @_win_attn_kernel(%arg0: i32, %arg1: memref<1x16x192xf32, #tpu.memory_space<vmem>>, %arg2: memref<4x16x16xf32, #tpu.memory_space<vmem>>, %arg3: memref<1x16x64xf32, #tpu.memory_space<vmem>>) attributes {dimension_semantics = [#tpu.dimension_semantics<parallel>], iteration_bounds = array<i64: 2>, scalar_prefetch = 0 : i64, scratch_operands = 0 : i64, tpu.core_type = #tpu.core_type<tc>, window_params = [{transform_indices = @transform_0, window_bounds = array<i64: 1, 16, 192>}, {pipeline_mode = #tpu.pipeline_mode<synchronous>, transform_indices = @transform_1, window_bounds = array<i64: 4, 16, 16>}, {transform_indices = @transform_2, window_bounds = array<i64: 1, 16, 64>}]} {
    %c0 = arith.constant 0 : index
    %c0_0 = arith.constant 0 : index
    %c0_1 = arith.constant 0 : index
    %0 = vector.load %arg1[%c0, %c0_0, %c0_1] : memref<1x16x192xf32, #tpu.memory_space<vmem>>, vector<1x16x192xf32>
    %1 = vector.extract_strided_slice %0 {offsets = [0, 0, 0], sizes = [1, 16, 16], strides = [1, 1, 1]} : vector<1x16x192xf32> to vector<1x16x16xf32>
    %2 = vector.extract_strided_slice %0 {offsets = [0, 0, 64], sizes = [1, 16, 16], strides = [1, 1, 1]} : vector<1x16x192xf32> to vector<1x16x16xf32>
    %3 = vector.extract_strided_slice %0 {offsets = [0, 0, 128], sizes = [1, 16, 16], strides = [1, 1, 1]} : vector<1x16x192xf32> to vector<1x16x16xf32>
    %4 = arith.truncf %1 : vector<1x16x16xf32> to vector<1x16x16xbf16>
    %5 = arith.truncf %2 : vector<1x16x16xf32> to vector<1x16x16xbf16>
    %cst = arith.constant dense<0.000000e+00> : vector<1x16x16xf32>
    %6 = tpu.matmul %4, %5, %cst {dimension_numbers = #tpu.dot_dimension_numbers<[2], [2], [1], [1], [0, 0, 0, 1, 1, 1], [0], [0]>} : vector<1x16x16xbf16>, vector<1x16x16xbf16>, vector<1x16x16xf32> -> vector<1x16x16xf32>
    %cst_2 = arith.constant 2.500000e-01 : f32
    %7 = vector.broadcast %cst_2 : f32 to vector<1x16x16xf32>
    %8 = arith.mulf %6, %7 : vector<1x16x16xf32>
    %c0_3 = arith.constant 0 : index
    %c0_4 = arith.constant 0 : index
    %c0_5 = arith.constant 0 : index
    %9 = vector.load %arg2[%c0_3, %c0_4, %c0_5] : memref<4x16x16xf32, #tpu.memory_space<vmem>>, vector<1x16x16xf32>
    %10 = vector.shape_cast %9 : vector<1x16x16xf32> to vector<16x16xf32>
    %11 = vector.shape_cast %10 : vector<16x16xf32> to vector<1x16x16xf32>
    %12 = arith.addf %8, %11 : vector<1x16x16xf32>
    %cst_6 = arith.constant dense<0xFF800000> : vector<1x16xf32>
    %13 = vector.multi_reduction <maximumf>, %12, %cst_6 [2] : vector<1x16x16xf32> to vector<1x16xf32>
    %14 = vector.shape_cast %13 : vector<1x16xf32> to vector<1x16x1xf32>
    %15 = vector.broadcast %14 : vector<1x16x1xf32> to vector<1x16x16xf32>
    %16 = arith.subf %12, %15 : vector<1x16x16xf32>
    %17 = math.exp %16 : vector<1x16x16xf32>
    %cst_7 = arith.constant dense<0.000000e+00> : vector<1x16xf32>
    %18 = vector.multi_reduction <add>, %17, %cst_7 [2] : vector<1x16x16xf32> to vector<1x16xf32>
    %19 = vector.shape_cast %18 : vector<1x16xf32> to vector<1x16x1xf32>
    %20 = tpu.reciprocal %19 {approx = true} : vector<1x16x1xf32> -> vector<1x16x1xf32>
    %21 = vector.broadcast %20 : vector<1x16x1xf32> to vector<1x16x16xf32>
    %22 = arith.mulf %17, %21 : vector<1x16x16xf32>
    %23 = arith.truncf %22 : vector<1x16x16xf32> to vector<1x16x16xbf16>
    %24 = arith.truncf %3 : vector<1x16x16xf32> to vector<1x16x16xbf16>
    %cst_8 = arith.constant dense<0.000000e+00> : vector<1x16x16xf32>
    %25 = tpu.matmul %23, %24, %cst_8 {dimension_numbers = #tpu.dot_dimension_numbers<[2], [1], [1], [2], [0, 0, 0, 1, 1, 2], [0], [0]>} : vector<1x16x16xbf16>, vector<1x16x16xbf16>, vector<1x16x16xf32> -> vector<1x16x16xf32>
    %c0_9 = arith.constant 0 : index
    %c0_10 = arith.constant 0 : index
    %c0_11 = arith.constant 0 : index
    %26 = vector.load %arg3[%c0_9, %c0_10, %c0_11] : memref<1x16x64xf32, #tpu.memory_space<vmem>>, vector<1x16x16xf32>
    tpu.vector_store %arg3[%c0_9, %c0_10, %c0_11], %25 {strides = array<i32>} : memref<1x16x64xf32, #tpu.memory_space<vmem>>, vector<1x16x16xf32>,
    %27 = vector.extract_strided_slice %0 {offsets = [0, 0, 16], sizes = [1, 16, 16], strides = [1, 1, 1]} : vector<1x16x192xf32> to vector<1x16x16xf32>
    %28 = vector.extract_strided_slice %0 {offsets = [0, 0, 80], sizes = [1, 16, 16], strides = [1, 1, 1]} : vector<1x16x192xf32> to vector<1x16x16xf32>
    %29 = vector.extract_strided_slice %0 {offsets = [0, 0, 144], sizes = [1, 16, 16], strides = [1, 1, 1]} : vector<1x16x192xf32> to vector<1x16x16xf32>
    %30 = arith.truncf %27 : vector<1x16x16xf32> to vector<1x16x16xbf16>
    %31 = arith.truncf %28 : vector<1x16x16xf32> to vector<1x16x16xbf16>
    %cst_12 = arith.constant dense<0.000000e+00> : vector<1x16x16xf32>
    %32 = tpu.matmul %30, %31, %cst_12 {dimension_numbers = #tpu.dot_dimension_numbers<[2], [2], [1], [1], [0, 0, 0, 1, 1, 1], [0], [0]>} : vector<1x16x16xbf16>, vector<1x16x16xbf16>, vector<1x16x16xf32> -> vector<1x16x16xf32>
    %cst_13 = arith.constant 2.500000e-01 : f32
    %33 = vector.broadcast %cst_13 : f32 to vector<1x16x16xf32>
    %34 = arith.mulf %32, %33 : vector<1x16x16xf32>
    %c1 = arith.constant 1 : index
    %c0_14 = arith.constant 0 : index
    %c0_15 = arith.constant 0 : index
    %35 = vector.load %arg2[%c1, %c0_14, %c0_15] : memref<4x16x16xf32, #tpu.memory_space<vmem>>, vector<1x16x16xf32>
    %36 = vector.shape_cast %35 : vector<1x16x16xf32> to vector<16x16xf32>
    %37 = vector.shape_cast %36 : vector<16x16xf32> to vector<1x16x16xf32>
    %38 = arith.addf %34, %37 : vector<1x16x16xf32>
    %cst_16 = arith.constant dense<0xFF800000> : vector<1x16xf32>
    %39 = vector.multi_reduction <maximumf>, %38, %cst_16 [2] : vector<1x16x16xf32> to vector<1x16xf32>
    %40 = vector.shape_cast %39 : vector<1x16xf32> to vector<1x16x1xf32>
    %41 = vector.broadcast %40 : vector<1x16x1xf32> to vector<1x16x16xf32>
    %42 = arith.subf %38, %41 : vector<1x16x16xf32>
    %43 = math.exp %42 : vector<1x16x16xf32>
    %cst_17 = arith.constant dense<0.000000e+00> : vector<1x16xf32>
    %44 = vector.multi_reduction <add>, %43, %cst_17 [2] : vector<1x16x16xf32> to vector<1x16xf32>
    %45 = vector.shape_cast %44 : vector<1x16xf32> to vector<1x16x1xf32>
    %46 = tpu.reciprocal %45 {approx = true} : vector<1x16x1xf32> -> vector<1x16x1xf32>
    %47 = vector.broadcast %46 : vector<1x16x1xf32> to vector<1x16x16xf32>
    %48 = arith.mulf %43, %47 : vector<1x16x16xf32>
    %49 = arith.truncf %48 : vector<1x16x16xf32> to vector<1x16x16xbf16>
    %50 = arith.truncf %29 : vector<1x16x16xf32> to vector<1x16x16xbf16>
    %cst_18 = arith.constant dense<0.000000e+00> : vector<1x16x16xf32>
    %51 = tpu.matmul %49, %50, %cst_18 {dimension_numbers = #tpu.dot_dimension_numbers<[2], [1], [1], [2], [0, 0, 0, 1, 1, 2], [0], [0]>} : vector<1x16x16xbf16>, vector<1x16x16xbf16>, vector<1x16x16xf32> -> vector<1x16x16xf32>
    %c0_19 = arith.constant 0 : index
    %c0_20 = arith.constant 0 : index
    %c16 = arith.constant 16 : index
    %52 = vector.load %arg3[%c0_19, %c0_20, %c16] : memref<1x16x64xf32, #tpu.memory_space<vmem>>, vector<1x16x16xf32>
    tpu.vector_store %arg3[%c0_19, %c0_20, %c16], %51 {strides = array<i32>} : memref<1x16x64xf32, #tpu.memory_space<vmem>>, vector<1x16x16xf32>,
    %53 = vector.extract_strided_slice %0 {offsets = [0, 0, 32], sizes = [1, 16, 16], strides = [1, 1, 1]} : vector<1x16x192xf32> to vector<1x16x16xf32>
    %54 = vector.extract_strided_slice %0 {offsets = [0, 0, 96], sizes = [1, 16, 16], strides = [1, 1, 1]} : vector<1x16x192xf32> to vector<1x16x16xf32>
    %55 = vector.extract_strided_slice %0 {offsets = [0, 0, 160], sizes = [1, 16, 16], strides = [1, 1, 1]} : vector<1x16x192xf32> to vector<1x16x16xf32>
    %56 = arith.truncf %53 : vector<1x16x16xf32> to vector<1x16x16xbf16>
    %57 = arith.truncf %54 : vector<1x16x16xf32> to vector<1x16x16xbf16>
    %cst_21 = arith.constant dense<0.000000e+00> : vector<1x16x16xf32>
    %58 = tpu.matmul %56, %57, %cst_21 {dimension_numbers = #tpu.dot_dimension_numbers<[2], [2], [1], [1], [0, 0, 0, 1, 1, 1], [0], [0]>} : vector<1x16x16xbf16>, vector<1x16x16xbf16>, vector<1x16x16xf32> -> vector<1x16x16xf32>
    %cst_22 = arith.constant 2.500000e-01 : f32
    %59 = vector.broadcast %cst_22 : f32 to vector<1x16x16xf32>
    %60 = arith.mulf %58, %59 : vector<1x16x16xf32>
    %c2 = arith.constant 2 : index
    %c0_23 = arith.constant 0 : index
    %c0_24 = arith.constant 0 : index
    %61 = vector.load %arg2[%c2, %c0_23, %c0_24] : memref<4x16x16xf32, #tpu.memory_space<vmem>>, vector<1x16x16xf32>
    %62 = vector.shape_cast %61 : vector<1x16x16xf32> to vector<16x16xf32>
    %63 = vector.shape_cast %62 : vector<16x16xf32> to vector<1x16x16xf32>
    %64 = arith.addf %60, %63 : vector<1x16x16xf32>
    %cst_25 = arith.constant dense<0xFF800000> : vector<1x16xf32>
    %65 = vector.multi_reduction <maximumf>, %64, %cst_25 [2] : vector<1x16x16xf32> to vector<1x16xf32>
    %66 = vector.shape_cast %65 : vector<1x16xf32> to vector<1x16x1xf32>
    %67 = vector.broadcast %66 : vector<1x16x1xf32> to vector<1x16x16xf32>
    %68 = arith.subf %64, %67 : vector<1x16x16xf32>
    %69 = math.exp %68 : vector<1x16x16xf32>
    %cst_26 = arith.constant dense<0.000000e+00> : vector<1x16xf32>
    %70 = vector.multi_reduction <add>, %69, %cst_26 [2] : vector<1x16x16xf32> to vector<1x16xf32>
    %71 = vector.shape_cast %70 : vector<1x16xf32> to vector<1x16x1xf32>
    %72 = tpu.reciprocal %71 {approx = true} : vector<1x16x1xf32> -> vector<1x16x1xf32>
    %73 = vector.broadcast %72 : vector<1x16x1xf32> to vector<1x16x16xf32>
    %74 = arith.mulf %69, %73 : vector<1x16x16xf32>
    %75 = arith.truncf %74 : vector<1x16x16xf32> to vector<1x16x16xbf16>
    %76 = arith.truncf %55 : vector<1x16x16xf32> to vector<1x16x16xbf16>
    %cst_27 = arith.constant dense<0.000000e+00> : vector<1x16x16xf32>
    %77 = tpu.matmul %75, %76, %cst_27 {dimension_numbers = #tpu.dot_dimension_numbers<[2], [1], [1], [2], [0, 0, 0, 1, 1, 2], [0], [0]>} : vector<1x16x16xbf16>, vector<1x16x16xbf16>, vector<1x16x16xf32> -> vector<1x16x16xf32>
    %c0_28 = arith.constant 0 : index
    %c0_29 = arith.constant 0 : index
    %c32 = arith.constant 32 : index
    %78 = vector.load %arg3[%c0_28, %c0_29, %c32] : memref<1x16x64xf32, #tpu.memory_space<vmem>>, vector<1x16x16xf32>
    tpu.vector_store %arg3[%c0_28, %c0_29, %c32], %77 {strides = array<i32>} : memref<1x16x64xf32, #tpu.memory_space<vmem>>, vector<1x16x16xf32>,
    %79 = vector.extract_strided_slice %0 {offsets = [0, 0, 48], sizes = [1, 16, 16], strides = [1, 1, 1]} : vector<1x16x192xf32> to vector<1x16x16xf32>
    %80 = vector.extract_strided_slice %0 {offsets = [0, 0, 112], sizes = [1, 16, 16], strides = [1, 1, 1]} : vector<1x16x192xf32> to vector<1x16x16xf32>
    %81 = vector.extract_strided_slice %0 {offsets = [0, 0, 176], sizes = [1, 16, 16], strides = [1, 1, 1]} : vector<1x16x192xf32> to vector<1x16x16xf32>
    %82 = arith.truncf %79 : vector<1x16x16xf32> to vector<1x16x16xbf16>
    %83 = arith.truncf %80 : vector<1x16x16xf32> to vector<1x16x16xbf16>
    %cst_30 = arith.constant dense<0.000000e+00> : vector<1x16x16xf32>
    %84 = tpu.matmul %82, %83, %cst_30 {dimension_numbers = #tpu.dot_dimension_numbers<[2], [2], [1], [1], [0, 0, 0, 1, 1, 1], [0], [0]>} : vector<1x16x16xbf16>, vector<1x16x16xbf16>, vector<1x16x16xf32> -> vector<1x16x16xf32>
    %cst_31 = arith.constant 2.500000e-01 : f32
    %85 = vector.broadcast %cst_31 : f32 to vector<1x16x16xf32>
    %86 = arith.mulf %84, %85 : vector<1x16x16xf32>
    %c3 = arith.constant 3 : index
    %c0_32 = arith.constant 0 : index
    %c0_33 = arith.constant 0 : index
    %87 = vector.load %arg2[%c3, %c0_32, %c0_33] : memref<4x16x16xf32, #tpu.memory_space<vmem>>, vector<1x16x16xf32>
    %88 = vector.shape_cast %87 : vector<1x16x16xf32> to vector<16x16xf32>
    %89 = vector.shape_cast %88 : vector<16x16xf32> to vector<1x16x16xf32>
    %90 = arith.addf %86, %89 : vector<1x16x16xf32>
    %cst_34 = arith.constant dense<0xFF800000> : vector<1x16xf32>
    %91 = vector.multi_reduction <maximumf>, %90, %cst_34 [2] : vector<1x16x16xf32> to vector<1x16xf32>
    %92 = vector.shape_cast %91 : vector<1x16xf32> to vector<1x16x1xf32>
    %93 = vector.broadcast %92 : vector<1x16x1xf32> to vector<1x16x16xf32>
    %94 = arith.subf %90, %93 : vector<1x16x16xf32>
    %95 = math.exp %94 : vector<1x16x16xf32>
    %cst_35 = arith.constant dense<0.000000e+00> : vector<1x16xf32>
    %96 = vector.multi_reduction <add>, %95, %cst_35 [2] : vector<1x16x16xf32> to vector<1x16xf32>
    %97 = vector.shape_cast %96 : vector<1x16xf32> to vector<1x16x1xf32>
    %98 = tpu.reciprocal %97 {approx = true} : vector<1x16x1xf32> -> vector<1x16x1xf32>
    %99 = vector.broadcast %98 : vector<1x16x1xf32> to vector<1x16x16xf32>
    %100 = arith.mulf %95, %99 : vector<1x16x16xf32>
    %101 = arith.truncf %100 : vector<1x16x16xf32> to vector<1x16x16xbf16>
    %102 = arith.truncf %81 : vector<1x16x16xf32> to vector<1x16x16xbf16>
    %cst_36 = arith.constant dense<0.000000e+00> : vector<1x16x16xf32>
    %103 = tpu.matmul %101, %102, %cst_36 {dimension_numbers = #tpu.dot_dimension_numbers<[2], [1], [1], [2], [0, 0, 0, 1, 1, 2], [0], [0]>} : vector<1x16x16xbf16>, vector<1x16x16xbf16>, vector<1x16x16xf32> -> vector<1x16x16xf32>
    %c0_37 = arith.constant 0 : index
    %c0_38 = arith.constant 0 : index
    %c48 = arith.constant 48 : index
    %104 = vector.load %arg3[%c0_37, %c0_38, %c48] : memref<1x16x64xf32, #tpu.memory_space<vmem>>, vector<1x16x16xf32>
    tpu.vector_store %arg3[%c0_37, %c0_38, %c48], %103 {strides = array<i32>} : memref<1x16x64xf32, #tpu.memory_space<vmem>>, vector<1x16x16xf32>,
    return
  }
  func.func @transform_0(%arg0: i32) -> (i32, i32, i32) {
    %c0_i32 = arith.constant 0 : i32
    %c0_i32_0 = arith.constant 0 : i32
    %c0_i32_1 = arith.constant 0 : i32
    return %arg0, %c0_i32, %c0_i32_0 : i32, i32, i32
  }
  func.func @transform_1(%arg0: i32) -> (i32, i32, i32) {
    %c0_i32 = arith.constant 0 : i32
    %c0_i32_0 = arith.constant 0 : i32
    %c0_i32_1 = arith.constant 0 : i32
    %c0_i32_2 = arith.constant 0 : i32
    return %c0_i32, %c0_i32_0, %c0_i32_1 : i32, i32, i32
  }
  func.func @transform_2(%arg0: i32) -> (i32, i32, i32) {
    %c0_i32 = arith.constant 0 : i32
    %c0_i32_0 = arith.constant 0 : i32
    %c0_i32_1 = arith.constant 0 : i32
    return %arg0, %c0_i32, %c0_i32_0 : i32, i32, i32
  }
}

module attributes {stable_mosaic.version = 11 : i64} {
  func.func @kernel(%arg0: i32, %arg1: memref<16x64xf32, #tpu.memory_space<vmem>>, %arg2: memref<64x64xf32, #tpu.memory_space<vmem>>, %arg3: memref<1x64xf32, #tpu.memory_space<vmem>>, %arg4: memref<16x64xf32, #tpu.memory_space<vmem>>) attributes {dimension_semantics = [#tpu.dimension_semantics<parallel>], iteration_bounds = array<i64: 2>, scalar_prefetch = 0 : i64, scratch_operands = 0 : i64, tpu.core_type = #tpu.core_type<tc>, window_params = [{transform_indices = @transform_0, window_bounds = array<i64: 16, 64>}, {pipeline_mode = #tpu.pipeline_mode<synchronous>, transform_indices = @transform_1, window_bounds = array<i64: 64, 64>}, {pipeline_mode = #tpu.pipeline_mode<synchronous>, transform_indices = @transform_2, window_bounds = array<i64: 1, 64>}, {transform_indices = @transform_3, window_bounds = array<i64: 16, 64>}]} {
    %c0 = arith.constant 0 : index
    %c0_0 = arith.constant 0 : index
    %0 = vector.load %arg1[%c0, %c0_0] : memref<16x64xf32, #tpu.memory_space<vmem>>, vector<16x64xf32>
    %1 = arith.truncf %0 : vector<16x64xf32> to vector<16x64xbf16>
    %c0_1 = arith.constant 0 : index
    %c0_2 = arith.constant 0 : index
    %2 = vector.load %arg2[%c0_1, %c0_2] : memref<64x64xf32, #tpu.memory_space<vmem>>, vector<64x64xf32>
    %3 = arith.truncf %2 : vector<64x64xf32> to vector<64x64xbf16>
    %cst = arith.constant dense<0.000000e+00> : vector<16x64xf32>
    %4 = tpu.matmul %1, %3, %cst {dimension_numbers = #tpu.dot_dimension_numbers<[1], [0], [0], [1], [0, 0, 1, 1], [], []>} : vector<16x64xbf16>, vector<64x64xbf16>, vector<16x64xf32> -> vector<16x64xf32>
    %c0_3 = arith.constant 0 : index
    %c0_4 = arith.constant 0 : index
    %5 = vector.load %arg3[%c0_3, %c0_4] : memref<1x64xf32, #tpu.memory_space<vmem>>, vector<1x64xf32>
    %6 = vector.broadcast %5 : vector<1x64xf32> to vector<16x64xf32>
    %7 = arith.addf %4, %6 : vector<16x64xf32>
    %c0_5 = arith.constant 0 : index
    %c0_6 = arith.constant 0 : index
    %8 = vector.load %arg4[%c0_5, %c0_6] : memref<16x64xf32, #tpu.memory_space<vmem>>, vector<16x64xf32>
    tpu.vector_store %arg4[%c0_5, %c0_6], %7 {strides = array<i32>} : memref<16x64xf32, #tpu.memory_space<vmem>>, vector<16x64xf32>,
    return
  }
  func.func @transform_0(%arg0: i32) -> (i32, i32) {
    %c0_i32 = arith.constant 0 : i32
    %c0_i32_0 = arith.constant 0 : i32
    return %arg0, %c0_i32 : i32, i32
  }
  func.func @transform_1(%arg0: i32) -> (i32, i32) {
    %c0_i32 = arith.constant 0 : i32
    %c0_i32_0 = arith.constant 0 : i32
    %c0_i32_1 = arith.constant 0 : i32
    return %c0_i32, %c0_i32_0 : i32, i32
  }
  func.func @transform_2(%arg0: i32) -> (i32, i32) {
    %c0_i32 = arith.constant 0 : i32
    %c0_i32_0 = arith.constant 0 : i32
    %c0_i32_1 = arith.constant 0 : i32
    return %c0_i32, %c0_i32_0 : i32, i32
  }
  func.func @transform_3(%arg0: i32) -> (i32, i32) {
    %c0_i32 = arith.constant 0 : i32
    %c0_i32_0 = arith.constant 0 : i32
    return %arg0, %c0_i32 : i32, i32
  }
}

module attributes {stable_mosaic.version = 11 : i64} {
  func.func @kernel(%arg0: i32, %arg1: memref<16x64xf32, #tpu.memory_space<vmem>>, %arg2: memref<64x256xf32, #tpu.memory_space<vmem>>, %arg3: memref<1x64xf32, #tpu.memory_space<vmem>>, %arg4: memref<1x64xf32, #tpu.memory_space<vmem>>, %arg5: memref<1x256xf32, #tpu.memory_space<vmem>>, %arg6: memref<16x256xf32, #tpu.memory_space<vmem>>) attributes {dimension_semantics = [#tpu.dimension_semantics<parallel>], iteration_bounds = array<i64: 2>, scalar_prefetch = 0 : i64, scratch_operands = 0 : i64, tpu.core_type = #tpu.core_type<tc>, window_params = [{transform_indices = @transform_0, window_bounds = array<i64: 16, 64>}, {pipeline_mode = #tpu.pipeline_mode<synchronous>, transform_indices = @transform_1, window_bounds = array<i64: 64, 256>}, {pipeline_mode = #tpu.pipeline_mode<synchronous>, transform_indices = @transform_2, window_bounds = array<i64: 1, 64>}, {pipeline_mode = #tpu.pipeline_mode<synchronous>, transform_indices = @transform_3, window_bounds = array<i64: 1, 64>}, {pipeline_mode = #tpu.pipeline_mode<synchronous>, transform_indices = @transform_4, window_bounds = array<i64: 1, 256>}, {transform_indices = @transform_5, window_bounds = array<i64: 16, 256>}]} {
    %c0 = arith.constant 0 : index
    %c0_0 = arith.constant 0 : index
    %0 = vector.load %arg1[%c0, %c0_0] : memref<16x64xf32, #tpu.memory_space<vmem>>, vector<16x64xf32>
    %c0_1 = arith.constant 0 : index
    %c0_2 = arith.constant 0 : index
    %1 = vector.load %arg3[%c0_1, %c0_2] : memref<1x64xf32, #tpu.memory_space<vmem>>, vector<1x64xf32>
    %c0_3 = arith.constant 0 : index
    %c0_4 = arith.constant 0 : index
    %2 = vector.load %arg4[%c0_3, %c0_4] : memref<1x64xf32, #tpu.memory_space<vmem>>, vector<1x64xf32>
    %cst = arith.constant dense<0.000000e+00> : vector<16xf32>
    %3 = vector.multi_reduction <add>, %0, %cst [1] : vector<16x64xf32> to vector<16xf32>
    %4 = vector.shape_cast %3 : vector<16xf32> to vector<16x1xf32>
    %cst_5 = arith.constant 6.400000e+01 : f32
    %5 = vector.broadcast %cst_5 : f32 to vector<16x1xf32>
    %6 = arith.divf %4, %5 : vector<16x1xf32>
    %7 = vector.broadcast %6 : vector<16x1xf32> to vector<16x64xf32>
    %8 = arith.subf %0, %7 : vector<16x64xf32>
    %9 = arith.mulf %8, %8 : vector<16x64xf32>
    %cst_6 = arith.constant dense<0.000000e+00> : vector<16xf32>
    %10 = vector.multi_reduction <add>, %9, %cst_6 [1] : vector<16x64xf32> to vector<16xf32>
    %11 = vector.shape_cast %10 : vector<16xf32> to vector<16x1xf32>
    %cst_7 = arith.constant 6.400000e+01 : f32
    %12 = vector.broadcast %cst_7 : f32 to vector<16x1xf32>
    %13 = arith.divf %11, %12 : vector<16x1xf32>
    %14 = vector.broadcast %6 : vector<16x1xf32> to vector<16x64xf32>
    %15 = arith.subf %0, %14 : vector<16x64xf32>
    %cst_8 = arith.constant 9.99999974E-6 : f32
    %16 = vector.broadcast %cst_8 : f32 to vector<16x1xf32>
    %17 = arith.addf %13, %16 : vector<16x1xf32>
    %18 = math.rsqrt %17 : vector<16x1xf32>
    %19 = vector.broadcast %18 : vector<16x1xf32> to vector<16x64xf32>
    %20 = arith.mulf %15, %19 : vector<16x64xf32>
    %21 = vector.broadcast %1 : vector<1x64xf32> to vector<16x64xf32>
    %22 = arith.mulf %20, %21 : vector<16x64xf32>
    %23 = vector.broadcast %2 : vector<1x64xf32> to vector<16x64xf32>
    %24 = arith.addf %22, %23 : vector<16x64xf32>
    %25 = arith.truncf %24 : vector<16x64xf32> to vector<16x64xbf16>
    %c0_9 = arith.constant 0 : index
    %c0_10 = arith.constant 0 : index
    %26 = vector.load %arg2[%c0_9, %c0_10] : memref<64x256xf32, #tpu.memory_space<vmem>>, vector<64x256xf32>
    %27 = arith.truncf %26 : vector<64x256xf32> to vector<64x256xbf16>
    %cst_11 = arith.constant dense<0.000000e+00> : vector<16x256xf32>
    %28 = tpu.matmul %25, %27, %cst_11 {dimension_numbers = #tpu.dot_dimension_numbers<[1], [0], [0], [1], [0, 0, 1, 1], [], []>} : vector<16x64xbf16>, vector<64x256xbf16>, vector<16x256xf32> -> vector<16x256xf32>
    %c0_12 = arith.constant 0 : index
    %c0_13 = arith.constant 0 : index
    %29 = vector.load %arg5[%c0_12, %c0_13] : memref<1x256xf32, #tpu.memory_space<vmem>>, vector<1x256xf32>
    %30 = vector.broadcast %29 : vector<1x256xf32> to vector<16x256xf32>
    %31 = arith.addf %28, %30 : vector<16x256xf32>
    %cst_14 = arith.constant 5.000000e-01 : f32
    %32 = vector.broadcast %cst_14 : f32 to vector<16x256xf32>
    %33 = arith.mulf %32, %31 : vector<16x256xf32>
    %cst_15 = arith.constant 4.471500e-02 : f32
    %34 = vector.broadcast %cst_15 : f32 to vector<16x256xf32>
    %35 = arith.mulf %34, %31 : vector<16x256xf32>
    %36 = arith.mulf %35, %31 : vector<16x256xf32>
    %37 = arith.mulf %36, %31 : vector<16x256xf32>
    %38 = arith.addf %31, %37 : vector<16x256xf32>
    %cst_16 = arith.constant 0.797884583 : f32
    %39 = vector.broadcast %cst_16 : f32 to vector<16x256xf32>
    %40 = arith.mulf %39, %38 : vector<16x256xf32>
    %41 = math.tanh %40 : vector<16x256xf32>
    %cst_17 = arith.constant 1.000000e+00 : f32
    %42 = vector.broadcast %cst_17 : f32 to vector<16x256xf32>
    %43 = arith.addf %42, %41 : vector<16x256xf32>
    %44 = arith.mulf %33, %43 : vector<16x256xf32>
    %c0_18 = arith.constant 0 : index
    %c0_19 = arith.constant 0 : index
    %45 = vector.load %arg6[%c0_18, %c0_19] : memref<16x256xf32, #tpu.memory_space<vmem>>, vector<16x256xf32>
    tpu.vector_store %arg6[%c0_18, %c0_19], %44 {strides = array<i32>} : memref<16x256xf32, #tpu.memory_space<vmem>>, vector<16x256xf32>,
    return
  }
  func.func @transform_0(%arg0: i32) -> (i32, i32) {
    %c0_i32 = arith.constant 0 : i32
    %c0_i32_0 = arith.constant 0 : i32
    return %arg0, %c0_i32 : i32, i32
  }
  func.func @transform_1(%arg0: i32) -> (i32, i32) {
    %c0_i32 = arith.constant 0 : i32
    %c0_i32_0 = arith.constant 0 : i32
    %c0_i32_1 = arith.constant 0 : i32
    return %c0_i32, %c0_i32_0 : i32, i32
  }
  func.func @transform_2(%arg0: i32) -> (i32, i32) {
    %c0_i32 = arith.constant 0 : i32
    %c0_i32_0 = arith.constant 0 : i32
    %c0_i32_1 = arith.constant 0 : i32
    return %c0_i32, %c0_i32_0 : i32, i32
  }
  func.func @transform_3(%arg0: i32) -> (i32, i32) {
    %c0_i32 = arith.constant 0 : i32
    %c0_i32_0 = arith.constant 0 : i32
    %c0_i32_1 = arith.constant 0 : i32
    return %c0_i32, %c0_i32_0 : i32, i32
  }
  func.func @transform_4(%arg0: i32) -> (i32, i32) {
    %c0_i32 = arith.constant 0 : i32
    %c0_i32_0 = arith.constant 0 : i32
    %c0_i32_1 = arith.constant 0 : i32
    return %c0_i32, %c0_i32_0 : i32, i32
  }
  func.func @transform_5(%arg0: i32) -> (i32, i32) {
    %c0_i32 = arith.constant 0 : i32
    %c0_i32_0 = arith.constant 0 : i32
    return %arg0, %c0_i32 : i32, i32
  }
}

module attributes {stable_mosaic.version = 11 : i64} {
  func.func @kernel(%arg0: i32, %arg1: memref<16x256xf32, #tpu.memory_space<vmem>>, %arg2: memref<256x64xf32, #tpu.memory_space<vmem>>, %arg3: memref<1x64xf32, #tpu.memory_space<vmem>>, %arg4: memref<16x64xf32, #tpu.memory_space<vmem>>) attributes {dimension_semantics = [#tpu.dimension_semantics<parallel>], iteration_bounds = array<i64: 2>, scalar_prefetch = 0 : i64, scratch_operands = 0 : i64, tpu.core_type = #tpu.core_type<tc>, window_params = [{transform_indices = @transform_0, window_bounds = array<i64: 16, 256>}, {pipeline_mode = #tpu.pipeline_mode<synchronous>, transform_indices = @transform_1, window_bounds = array<i64: 256, 64>}, {pipeline_mode = #tpu.pipeline_mode<synchronous>, transform_indices = @transform_2, window_bounds = array<i64: 1, 64>}, {transform_indices = @transform_3, window_bounds = array<i64: 16, 64>}]} {
    %c0 = arith.constant 0 : index
    %c0_0 = arith.constant 0 : index
    %0 = vector.load %arg1[%c0, %c0_0] : memref<16x256xf32, #tpu.memory_space<vmem>>, vector<16x256xf32>
    %1 = arith.truncf %0 : vector<16x256xf32> to vector<16x256xbf16>
    %c0_1 = arith.constant 0 : index
    %c0_2 = arith.constant 0 : index
    %2 = vector.load %arg2[%c0_1, %c0_2] : memref<256x64xf32, #tpu.memory_space<vmem>>, vector<256x64xf32>
    %3 = arith.truncf %2 : vector<256x64xf32> to vector<256x64xbf16>
    %cst = arith.constant dense<0.000000e+00> : vector<16x64xf32>
    %4 = tpu.matmul %1, %3, %cst {dimension_numbers = #tpu.dot_dimension_numbers<[1], [0], [0], [1], [0, 0, 1, 1], [], []>} : vector<16x256xbf16>, vector<256x64xbf16>, vector<16x64xf32> -> vector<16x64xf32>
    %c0_3 = arith.constant 0 : index
    %c0_4 = arith.constant 0 : index
    %5 = vector.load %arg3[%c0_3, %c0_4] : memref<1x64xf32, #tpu.memory_space<vmem>>, vector<1x64xf32>
    %6 = vector.broadcast %5 : vector<1x64xf32> to vector<16x64xf32>
    %7 = arith.addf %4, %6 : vector<16x64xf32>
    %c0_5 = arith.constant 0 : index
    %c0_6 = arith.constant 0 : index
    %8 = vector.load %arg4[%c0_5, %c0_6] : memref<16x64xf32, #tpu.memory_space<vmem>>, vector<16x64xf32>
    tpu.vector_store %arg4[%c0_5, %c0_6], %7 {strides = array<i32>} : memref<16x64xf32, #tpu.memory_space<vmem>>, vector<16x64xf32>,
    return
  }
  func.func @transform_0(%arg0: i32) -> (i32, i32) {
    %c0_i32 = arith.constant 0 : i32
    %c0_i32_0 = arith.constant 0 : i32
    return %arg0, %c0_i32 : i32, i32
  }
  func.func @transform_1(%arg0: i32) -> (i32, i32) {
    %c0_i32 = arith.constant 0 : i32
    %c0_i32_0 = arith.constant 0 : i32
    %c0_i32_1 = arith.constant 0 : i32
    return %c0_i32, %c0_i32_0 : i32, i32
  }
  func.func @transform_2(%arg0: i32) -> (i32, i32) {
    %c0_i32 = arith.constant 0 : i32
    %c0_i32_0 = arith.constant 0 : i32
    %c0_i32_1 = arith.constant 0 : i32
    return %c0_i32, %c0_i32_0 : i32, i32
  }
  func.func @transform_3(%arg0: i32) -> (i32, i32) {
    %c0_i32 = arith.constant 0 : i32
    %c0_i32_0 = arith.constant 0 : i32
    return %arg0, %c0_i32 : i32, i32
  }
}

module attributes {stable_mosaic.version = 11 : i64} {
  func.func @_tail_kernel(%arg0: i32, %arg1: memref<2x16x64xf32, #tpu.memory_space<vmem>>, %arg2: memref<1x64xf32, #tpu.memory_space<vmem>>, %arg3: memref<1x64xf32, #tpu.memory_space<vmem>>, %arg4: memref<64x512xf32, #tpu.memory_space<vmem>>, %arg5: memref<1x512xf32, #tpu.memory_space<vmem>>, %arg6: memref<2x512xf32, #tpu.memory_space<vmem>>) attributes {dimension_semantics = [#tpu.dimension_semantics<arbitrary>], iteration_bounds = array<i64: 1>, scalar_prefetch = 0 : i64, scratch_operands = 0 : i64, tpu.core_type = #tpu.core_type<tc>, window_params = [{pipeline_mode = #tpu.pipeline_mode<synchronous>, transform_indices = @transform_0, window_bounds = array<i64: 2, 16, 64>}, {pipeline_mode = #tpu.pipeline_mode<synchronous>, transform_indices = @transform_1, window_bounds = array<i64: 1, 64>}, {pipeline_mode = #tpu.pipeline_mode<synchronous>, transform_indices = @transform_2, window_bounds = array<i64: 1, 64>}, {pipeline_mode = #tpu.pipeline_mode<synchronous>, transform_indices = @transform_3, window_bounds = array<i64: 64, 512>}, {pipeline_mode = #tpu.pipeline_mode<synchronous>, transform_indices = @transform_4, window_bounds = array<i64: 1, 512>}, {pipeline_mode = #tpu.pipeline_mode<synchronous>, transform_indices = @transform_5, window_bounds = array<i64: 2, 512>}]} {
    %c0 = arith.constant 0 : index
    %c0_0 = arith.constant 0 : index
    %c0_1 = arith.constant 0 : index
    %0 = vector.load %arg1[%c0, %c0_0, %c0_1] : memref<2x16x64xf32, #tpu.memory_space<vmem>>, vector<2x16x64xf32>
    %c0_2 = arith.constant 0 : index
    %c0_3 = arith.constant 0 : index
    %1 = vector.load %arg2[%c0_2, %c0_3] : memref<1x64xf32, #tpu.memory_space<vmem>>, vector<1x64xf32>
    %c0_4 = arith.constant 0 : index
    %c0_5 = arith.constant 0 : index
    %2 = vector.load %arg3[%c0_4, %c0_5] : memref<1x64xf32, #tpu.memory_space<vmem>>, vector<1x64xf32>
    %cst = arith.constant dense<0.000000e+00> : vector<2x16xf32>
    %3 = vector.multi_reduction <add>, %0, %cst [2] : vector<2x16x64xf32> to vector<2x16xf32>
    %4 = vector.shape_cast %3 : vector<2x16xf32> to vector<2x16x1xf32>
    %cst_6 = arith.constant 6.400000e+01 : f32
    %5 = vector.broadcast %cst_6 : f32 to vector<2x16x1xf32>
    %6 = arith.divf %4, %5 : vector<2x16x1xf32>
    %7 = vector.broadcast %6 : vector<2x16x1xf32> to vector<2x16x64xf32>
    %8 = arith.subf %0, %7 : vector<2x16x64xf32>
    %9 = arith.mulf %8, %8 : vector<2x16x64xf32>
    %cst_7 = arith.constant dense<0.000000e+00> : vector<2x16xf32>
    %10 = vector.multi_reduction <add>, %9, %cst_7 [2] : vector<2x16x64xf32> to vector<2x16xf32>
    %11 = vector.shape_cast %10 : vector<2x16xf32> to vector<2x16x1xf32>
    %cst_8 = arith.constant 6.400000e+01 : f32
    %12 = vector.broadcast %cst_8 : f32 to vector<2x16x1xf32>
    %13 = arith.divf %11, %12 : vector<2x16x1xf32>
    %14 = vector.broadcast %6 : vector<2x16x1xf32> to vector<2x16x64xf32>
    %15 = arith.subf %0, %14 : vector<2x16x64xf32>
    %cst_9 = arith.constant 9.99999974E-6 : f32
    %16 = vector.broadcast %cst_9 : f32 to vector<2x16x1xf32>
    %17 = arith.addf %13, %16 : vector<2x16x1xf32>
    %18 = math.rsqrt %17 : vector<2x16x1xf32>
    %19 = vector.broadcast %18 : vector<2x16x1xf32> to vector<2x16x64xf32>
    %20 = arith.mulf %15, %19 : vector<2x16x64xf32>
    %21 = vector.shape_cast %1 : vector<1x64xf32> to vector<1x1x64xf32>
    %22 = vector.broadcast %21 : vector<1x1x64xf32> to vector<2x16x64xf32>
    %23 = arith.mulf %20, %22 : vector<2x16x64xf32>
    %24 = vector.shape_cast %2 : vector<1x64xf32> to vector<1x1x64xf32>
    %25 = vector.broadcast %24 : vector<1x1x64xf32> to vector<2x16x64xf32>
    %26 = arith.addf %23, %25 : vector<2x16x64xf32>
    %cst_10 = arith.constant dense<0.000000e+00> : vector<2x64xf32>
    %27 = vector.multi_reduction <add>, %26, %cst_10 [1] : vector<2x16x64xf32> to vector<2x64xf32>
    %cst_11 = arith.constant 1.600000e+01 : f32
    %28 = vector.broadcast %cst_11 : f32 to vector<2x64xf32>
    %29 = arith.divf %27, %28 : vector<2x64xf32>
    %30 = arith.truncf %29 : vector<2x64xf32> to vector<2x64xbf16>
    %c0_12 = arith.constant 0 : index
    %c0_13 = arith.constant 0 : index
    %31 = vector.load %arg4[%c0_12, %c0_13] : memref<64x512xf32, #tpu.memory_space<vmem>>, vector<64x512xf32>
    %32 = arith.truncf %31 : vector<64x512xf32> to vector<64x512xbf16>
    %cst_14 = arith.constant dense<0.000000e+00> : vector<2x512xf32>
    %33 = tpu.matmul %30, %32, %cst_14 {dimension_numbers = #tpu.dot_dimension_numbers<[1], [0], [0], [1], [0, 0, 1, 1], [], []>} : vector<2x64xbf16>, vector<64x512xbf16>, vector<2x512xf32> -> vector<2x512xf32>
    %c0_15 = arith.constant 0 : index
    %c0_16 = arith.constant 0 : index
    %34 = vector.load %arg5[%c0_15, %c0_16] : memref<1x512xf32, #tpu.memory_space<vmem>>, vector<1x512xf32>
    %35 = vector.broadcast %34 : vector<1x512xf32> to vector<2x512xf32>
    %36 = arith.addf %33, %35 : vector<2x512xf32>
    %c0_17 = arith.constant 0 : index
    %c0_18 = arith.constant 0 : index
    %37 = vector.load %arg6[%c0_17, %c0_18] : memref<2x512xf32, #tpu.memory_space<vmem>>, vector<2x512xf32>
    tpu.vector_store %arg6[%c0_17, %c0_18], %36 {strides = array<i32>} : memref<2x512xf32, #tpu.memory_space<vmem>>, vector<2x512xf32>,
    return
  }
  func.func @transform_0(%arg0: i32) -> (i32, i32, i32) {
    %c0_i32 = arith.constant 0 : i32
    %c0_i32_0 = arith.constant 0 : i32
    %c0_i32_1 = arith.constant 0 : i32
    %c0_i32_2 = arith.constant 0 : i32
    return %c0_i32, %c0_i32_0, %c0_i32_1 : i32, i32, i32
  }
  func.func @transform_1(%arg0: i32) -> (i32, i32) {
    %c0_i32 = arith.constant 0 : i32
    %c0_i32_0 = arith.constant 0 : i32
    %c0_i32_1 = arith.constant 0 : i32
    return %c0_i32, %c0_i32_0 : i32, i32
  }
  func.func @transform_2(%arg0: i32) -> (i32, i32) {
    %c0_i32 = arith.constant 0 : i32
    %c0_i32_0 = arith.constant 0 : i32
    %c0_i32_1 = arith.constant 0 : i32
    return %c0_i32, %c0_i32_0 : i32, i32
  }
  func.func @transform_3(%arg0: i32) -> (i32, i32) {
    %c0_i32 = arith.constant 0 : i32
    %c0_i32_0 = arith.constant 0 : i32
    %c0_i32_1 = arith.constant 0 : i32
    return %c0_i32, %c0_i32_0 : i32, i32
  }
  func.func @transform_4(%arg0: i32) -> (i32, i32) {
    %c0_i32 = arith.constant 0 : i32
    %c0_i32_0 = arith.constant 0 : i32
    %c0_i32_1 = arith.constant 0 : i32
    return %c0_i32, %c0_i32_0 : i32, i32
  }
  func.func @transform_5(%arg0: i32) -> (i32, i32) {
    %c0_i32 = arith.constant 0 : i32
    %c0_i32_0 = arith.constant 0 : i32
    %c0_i32_1 = arith.constant 0 : i32
    return %c0_i32, %c0_i32_0 : i32, i32
  }
}

</mosaic_0001>

<bundles_post_ra>
// kernel: swin_forward.23
= control target key start
LH: loop header
LB: loop body
LE: loop exit
PB: predicated region body
PF: predicated region fallthrough
CT: control target
= control target key end

     0   :  { %s642_s18 = smov 0   ;;  %s771_s0 = inlined_call_operand.vmem [shape: f32[128,48], index: 0, kind: input, shape index: {}]   ;;  %s772_s1 = inlined_call_operand.vmem [shape: f32[48,32], index: 1, kind: input, shape index: {}]   ;;  %s773_s2 = inlined_call_operand.vmem [shape: f32[1,32], index: 2, kind: input, shape index: {}]   ;;  %s774_s3 = inlined_call_operand.vmem [shape: f32[1,32], index: 3, kind: input, shape index: {}]   ;;  %s775_s4 = inlined_call_operand.vmem [shape: f32[1,32], index: 4, kind: input, shape index: {}]   ;;  %s776_s5 = inlined_call_operand.vmem [shape: f32[128,32], index: 5, kind: output, shape index: {}]  }
   0x1 LB: > { %s535_s19 = sadd.s32 4294967295, %s610_s18   ;;  %p539_p0 = scmp.ge.s32.totalorder %s610_s18, 1  ;;  %s610_s18 = sphi %s642_s18, %s15_s18  }
   0x2   : > { %p188_p1 = scmp.lt.s32.totalorder %s610_s18, 3 }
   0x4   : > { %p189_p2 = pnand %p539_p0, %p188_p1 }
   0x5   : > { %v241_v0 = vld [vmem:[%s772_s1] sm:$0xff] (!%p189_p2)  ;;  %v242_v1 = vld [vmem:[%s772_s1 + $0x8] sm:$0xff] (!%p189_p2)  ;;  %v243_v2 = vld [vmem:[%s772_s1 + $0x10] sm:$0xff] (!%p189_p2)  ;;  %s540_s26 = sshll.u32 (!%p189_p2), %s535_s19, 3  ;;  %vm257_vm0 = vcmask (!%p189_p2), 392192   ;;  %vm337_vm1 = vcmask (!%p189_p2), 261120  }
   0x6   : > { %192 = sbr.rel (%p189_p2) target bundleno = 565 (0x235), region = 40  ;;  %v247_v3 = vpack.c.bf16 (!%p189_p2), %v242_v1, %v241_v0  ;;  %v244_v4 = vld [vmem:[%s772_s1 + $0x18] sm:$0xff] (!%p189_p2)  ;;  %p217_p3 = scmp.lt.s32.totalorder (!%p189_p2), %s540_s26, 15  ;;  %v245_v6 = vld [vmem:[%s772_s1 + $0x20] sm:$0xff] (!%p189_p2)  ;;  %v246_v7 = vld [vmem:[%s772_s1 + $0x28] sm:$0xff] (!%p189_p2) }
   0x7   : > { %v248_v5 = vpack.c.bf16 (!%p189_p2), %v244_v4, %v243_v2  ;;  %v249_v8 = vpack.c.bf16 (!%p189_p2), %v246_v7, %v245_v6  ;;  %v544_v21 = vld [vmem:[%s773_s2] ss:$0 sm:$0xff] (!%p189_p2) }
   0x8   : > { %560 = vmatprep.subr.bf16.mxu0 (!%p189_p2), %v247_v3  ;;  %574 = vmatprep.subr.bf16.mxu1 (!%p189_p2), %v247_v3 }
   0x9   : > { %561 = vmatpush3.bf16.msra.mxu0 (!%p189_p2), %v247_v3  ;;  %577 = vmatpush3.bf16.msra.mxu1 (!%p189_p2), %v247_v3 }
   0xa   : > { %562 = vmatprep.subr.bf16.mxu0 (!%p189_p2), %v248_v5  ;;  %575 = vmatprep.subr.bf16.mxu1 (!%p189_p2), %v248_v5 }
   0xd   : > { %s778_s26 = smov (!%p217_p3, %s540_s26), 15  ;;  %563 = vmatpush3.bf16.msra.mxu0 %v248_v5  ;;  %578 = vmatpush3.bf16.msra.mxu1 %v248_v5 }
   0xe   : > { %s541_s8 = sshll.u32 %s778_s26, 3  ;;  %564 = vmatprep.subr.bf16.mxu0 %v249_v8  ;;  %576 = vmatprep.subr.bf16.mxu1 %v249_v8 }
   0xf   : > { %s220_s11 = scalar_lea.vmem %s771_s0, %s541_s8  ;;  %s743_s21 = scalar_lea.vmem %s776_s5, %s541_s8 }
  0x10   : > { %v229_v9 = vld [vmem:[%s220_s11] sm:$0xff]  ;;  %v230_v10 = vld [vmem:[%s220_s11 + $0x8] sm:$0xff]  ;;  %v231_v11 = vld [vmem:[%s220_s11 + $0x10] sm:$0xff] }
  0x11   : > { %v237_v12 = vpack.c.bf16 %v230_v10, %v229_v9  ;;  %v232_v13 = vld [vmem:[%s220_s11 + $0x18] sm:$0xff]  ;;  %v233_v14 = vld [vmem:[%s220_s11 + $0x20] sm:$0xff]  ;;  %v234_v15 = vld [vmem:[%s220_s11 + $0x28] sm:$0xff]  ;;  %565 = vmatpush3.bf16.msra.mxu0 %v249_v8  ;;  %579 = vmatpush3.bf16.msra.mxu1 %v249_v8 }
  0x12   : > { %v239_v16 = vpack.c.bf16 %v234_v15, %v233_v14  ;;  %v235_v17 = vld [vmem:[%s220_s11 + $0x30] sm:$0xff]  ;;  %v236_v18 = vld [vmem:[%s220_s11 + $0x38] sm:$0xff]  ;;  %v238_v19 = vpack.c.bf16 %v232_v13, %v231_v11 }
  0x13   : > { %566 = vmatprep.mubr.msk.bf16.mxu0 %vm257_vm0, %v237_v12  ;;  %v240_v20 = vpack.c.bf16 %v236_v18, %v235_v17 }
  0x14   : > { %570 = vmatprep.mubr.msk.bf16.mxu1 %vm257_vm0, %v239_v16  ;;  %567 = vmatmul.mubr.msk.bf16.vlgmr.msra.gmra.mrb[0].mxu0 %vm257_vm0, %v238_v19 }
  0x15   : > { %571 = vmatmul.mubr.msk.bf16.vlgmr.msra.gmra.mrb[0].mxu1 %vm257_vm0, %v240_v20 }
  0xe7   : > { %v568_v22 = vpop.f32.mrb[0].mxu0 }
  0xe8   : > { %v572_v23 = vpop.f32.mrb[0].mxu1  ;;  %v313_v24 = vadd.f32 %v568_v22, %v544_v21  ;;  %v304_v25 = vpop.f32.mrb[1].mxu0 }
  0xe9   : > { %v320_v26 = vpop.f32.mrb[1].mxu1  ;;  %v305_v27 = vadd.f32 %v544_v21, %v304_v25  ;;  %v569_v28 = vpop.f32.mrb[2].mxu0  ;;  %v329_v42 = vadd.f32 %v572_v23, %v544_v21 }
  0xea   : > { %v321_v29 = vadd.f32 %v544_v21, %v320_v26  ;;  %v573_v30 = vpop.f32.mrb[2].mxu1  ;;  %v316_v31 = vadd.f32 %v569_v28, %v544_v21  ;;  %v307_v32 = vpop.f32.mrb[3].mxu0  ;;  %v344_v34 = vsel %vm337_vm1, %v313_v24, 0.0 }
  0xeb   : > { %v323_v33 = vpop.f32.mrb[3].mxu1  ;;  %345 = vadd.xlane.f32.xlu1 %v344_v34  ;;  %v338_v35 = vsel %vm337_vm1, %v305_v27, 0.0  ;;  %v308_v39 = vadd.f32 %v544_v21, %v307_v32  ;;  %v332_v40 = vadd.f32 %v573_v30, %v544_v21  ;;  %v356_v45 = vsel %vm337_vm1, %v329_v42, 0.0 }
  0xec   : > { %339 = vadd.xlane.f32.xlu0 %v338_v35  ;;  %v350_v36 = vsel %vm337_vm1, %v321_v29, 0.0  ;;  %v324_v37 = vadd.f32 %v544_v21, %v323_v33  ;;  %v347_v38 = vsel %vm337_vm1, %v316_v31, 0.0 }
  0xed   : > { %v341_v43 = vsel %vm337_vm1, %v308_v39, 0.0  ;;  %v359_v44 = vsel %vm337_vm1, %v332_v40, 0.0 }
  0xee   : > { %v353_v41 = vsel %vm337_vm1, %v324_v37, 0.0 }
  0xef   : > { %348 = vadd.xlane.f32.xlu1 %v347_v38 }
  0xf0   : > { %351 = vadd.xlane.f32.xlu0 %v350_v36 }
  0xf3   : > { %354 = vadd.xlane.f32.xlu1 %v353_v41 }
  0xf4   : > { %342 = vadd.xlane.f32.xlu0 %v341_v43 }
  0xf7   : > { %360 = vadd.xlane.f32.xlu1 %v359_v44 }
  0xf8   : > { %357 = vadd.xlane.f32.xlu0 %v356_v45 }
 0x178   : > { %v346_v46 = vpop.xlane.xlu1 %345 }
 0x179   : > { %v365_v47 = vmul.f32 0.03125, %v346_v46  ;;  %v340_v48 = vpop.xlane.xlu0 %339  ;;  %v550_v46 = vld [vmem:[%s775_s4] ss:$0 sm:$0xff] }
 0x17a   : > { %v363_v49 = vmul.f32 0.03125, %v340_v48 }
 0x17b   : > { %v691_v50 = vsub.f32 %v313_v24, %v365_v47 }
 0x17c   : > { %v693_v51 = vsub.f32 %v305_v27, %v363_v49  ;;  %v349_v52 = vpop.xlane.xlu1 %348 }
 0x17d   : > { %v366_v53 = vmul.f32 0.03125, %v349_v52  ;;  %v352_v54 = vpop.xlane.xlu0 %351  ;;  %v381_v55 = vmul.f32 %v691_v50, %v691_v50 }
 0x17e   : > { %v367_v56 = vmul.f32 0.03125, %v352_v54  ;;  %v379_v59 = vmul.f32 %v693_v51, %v693_v51 }
 0x17f   : > { %v697_v57 = vsub.f32 %v316_v31, %v366_v53  ;;  %v393_v58 = vsel %vm337_vm1, %v381_v55, 0.0 }
 0x180   : > { %v702_v60 = vsub.f32 %v321_v29, %v367_v56  ;;  %v355_v61 = vpop.xlane.xlu1 %354  ;;  %394 = vadd.xlane.f32.xlu0 %v393_v58  ;;  %v387_v3 = vsel %vm337_vm1, %v379_v59, 0.0 }
 0x181   : > { %v368_v62 = vmul.f32 0.03125, %v355_v61  ;;  %v343_v63 = vpop.xlane.xlu0 %342  ;;  %v382_v0 = vmul.f32 %v697_v57, %v697_v57 }
 0x182   : > { %v364_v1 = vmul.f32 0.03125, %v343_v63  ;;  %v383_v4 = vmul.f32 %v702_v60, %v702_v60 }
 0x183   : > { %v396_v2 = vsel %vm337_vm1, %v382_v0, 0.0  ;;  %v710_v5 = vsub.f32 %v324_v37, %v368_v62 }
 0x184   : > { %v712_v6 = vsub.f32 %v308_v39, %v364_v1  ;;  %397 = vadd.xlane.f32.xlu1 %v396_v2  ;;  %v361_v7 = vpop.xlane.xlu1 %360  ;;  %388 = vadd.xlane.f32.xlu0 %v387_v3  ;;  %v399_v12 = vsel %vm337_vm1, %v383_v4, 0.0 }
 0x185   : > { %v370_v8 = vmul.f32 0.03125, %v361_v7  ;;  %v358_v9 = vpop.xlane.xlu0 %357  ;;  %v384_v16 = vmul.f32 %v710_v5, %v710_v5 }
 0x186   : > { %v369_v10 = vmul.f32 0.03125, %v358_v9  ;;  %v380_v11 = vmul.f32 %v712_v6, %v712_v6 }
 0x187   : > { %v717_v13 = vsub.f32 %v332_v40, %v370_v8  ;;  %v402_v18 = vsel %vm337_vm1, %v384_v16, 0.0 }
 0x188   : > { %v719_v14 = vsub.f32 %v329_v42, %v369_v10  ;;  %400 = vadd.xlane.f32.xlu0 %v399_v12  ;;  %v390_v15 = vsel %vm337_vm1, %v380_v11, 0.0  ;;  %v549_v42 = vld [vmem:[%s774_s3] ss:$0 sm:$0xff] }
 0x189   : > { %391 = vadd.xlane.f32.xlu1 %v390_v15  ;;  %v386_v20 = vmul.f32 %v717_v13, %v717_v13 }
 0x18a   : > { %v385_v17 = vmul.f32 %v719_v14, %v719_v14 }
 0x18b   : > { %v408_v21 = vsel %vm337_vm1, %v386_v20, 0.0 }
 0x18c   : > { %v405_v19 = vsel %vm337_vm1, %v385_v17, 0.0 }
 0x18d   : > { %403 = vadd.xlane.f32.xlu1 %v402_v18  ;;  %406 = vadd.xlane.f32.xlu0 %v405_v19 }
 0x191   : > { %409 = vadd.xlane.f32.xlu1 %v408_v21 }
 0x20d   : > { %v395_v22 = vpop.xlane.xlu0 %394 }
 0x20e   : > { %v413_v23 = vmul.f32 0.03125, %v395_v22 }
 0x210   : > { %v421_v24 = vadd.f32 1e-05, %v413_v23 }
 0x211   : > { %v398_v25 = vpop.xlane.xlu1 %397  ;;  %v389_v26 = vpop.xlane.xlu0 %388 }
 0x212   : > { %588 = vrsqrt.f32 %v421_v24  ;;  %v414_v27 = vmul.f32 0.03125, %v398_v25  ;;  %v411_v28 = vmul.f32 0.03125, %v389_v26 }
 0x214   : > { %v422_v29 = vadd.f32 1e-05, %v414_v27  ;;  %v419_v30 = vadd.f32 1e-05, %v411_v28 }
 0x215   : > { %v401_v31 = vpop.xlane.xlu0 %400 }
 0x216   : > { %590 = vrsqrt.f32 %v422_v29  ;;  %v415_v32 = vmul.f32 0.03125, %v401_v31  ;;  %v392_v33 = vpop.xlane.xlu1 %391 }
 0x217   : > { %592 = vrsqrt.f32 %v419_v30  ;;  %v412_v34 = vmul.f32 0.03125, %v392_v33 }
 0x218   : > { %v423_v35 = vadd.f32 1e-05, %v415_v32 }
 0x219   : > { %v420_v36 = vadd.f32 1e-05, %v412_v34 }
 0x21a   : > { %594 = vrsqrt.f32 %v423_v35  ;;  %v404_v37 = vpop.xlane.xlu1 %403  ;;  %v407_v38 = vpop.xlane.xlu0 %406 }
 0x21b   : > { %596 = vrsqrt.f32 %v420_v36  ;;  %v416_v39 = vmul.f32 0.03125, %v404_v37  ;;  %v417_v40 = vmul.f32 0.03125, %v407_v38 }
 0x21c   : > { %v589_v41 = vpop.eup %588 }
 0x21d   : > { %v437_v43 = vmul.f32 %v589_v41, %v691_v50  ;;  %v424_v44 = vadd.f32 1e-05, %v416_v39  ;;  %v425_v45 = vadd.f32 1e-05, %v417_v40 }
 0x21e   : > { %v410_v47 = vpop.xlane.xlu1 %409 }
 0x21f   : > { %v451_v48 = vmul.f32 %v549_v42, %v437_v43  ;;  %598 = vrsqrt.f32 %v424_v44  ;;  %v418_v49 = vmul.f32 0.03125, %v410_v47 }
 0x220   : > { %v591_v52 = vpop.eup %590  ;;  %600 = vrsqrt.f32 %v425_v45 }
 0x221   : > { %v593_v50 = vpop.eup %592  ;;  %v465_v53 = vadd.f32 %v550_v46, %v451_v48  ;;  %v438_v54 = vmul.f32 %v591_v52, %v697_v57  ;;  %v426_v55 = vadd.f32 1e-05, %v418_v49 }
 0x222   : > { %v435_v56 = vmul.f32 %v593_v50, %v693_v51 }
 0x223   : > { %473 = vst.msk [vmem:[%s743_s21 + $0x10] sm:$0xff] %vm337_vm1, %v465_v53  ;;  %v452_v58 = vmul.f32 %v549_v42, %v438_v54  ;;  %602 = vrsqrt.f32 %v426_v55 }
 0x224   : > { %v595_v59 = vpop.eup %594  ;;  %v449_v61 = vmul.f32 %v549_v42, %v435_v56 }
 0x225   : > { %v597_v62 = vpop.eup %596  ;;  %v466_v63 = vadd.f32 %v550_v46, %v452_v58  ;;  %v439_v0 = vmul.f32 %v595_v59, %v702_v60 }
 0x226   : > { %v463_v1 = vadd.f32 %v550_v46, %v449_v61  ;;  %v436_v2 = vmul.f32 %v597_v62, %v712_v6 }
 0x227   : > { %474 = vst.msk [vmem:[%s743_s21 + $0x18] sm:$0xff] %vm337_vm1, %v466_v63  ;;  %v453_v57 = vmul.f32 %v549_v42, %v439_v0 }
 0x228   : > { %471 = vst.msk [vmem:[%s743_s21] sm:$0xff] %vm337_vm1, %v463_v1  ;;  %v450_v51 = vmul.f32 %v549_v42, %v436_v2 }
 0x229   : > { %v599_v3 = vpop.eup %598  ;;  %v467_v4 = vadd.f32 %v550_v46, %v453_v57 }
 0x22a   : > { %v601_v7 = vpop.eup %600  ;;  %v464_v8 = vadd.f32 %v550_v46, %v450_v51  ;;  %v440_v9 = vmul.f32 %v599_v3, %v710_v5 }
 0x22b   : > { %475 = vst.msk [vmem:[%s743_s21 + $0x20] sm:$0xff] %vm337_vm1, %v467_v4  ;;  %v441_v60 = vmul.f32 %v601_v7, %v719_v14 }
 0x22c   : > { %472 = vst.msk [vmem:[%s743_s21 + $0x8] sm:$0xff] %vm337_vm1, %v464_v8  ;;  %v454_v6 = vmul.f32 %v549_v42, %v440_v9 }
 0x22d   : > { %v603_v10 = vpop.eup %602  ;;  %v455_v11 = vmul.f32 %v549_v42, %v441_v60 }
 0x22e   : > { %v468_v12 = vadd.f32 %v550_v46, %v454_v6  ;;  %v442_v15 = vmul.f32 %v603_v10, %v717_v13 }
 0x22f   : > { %v469_v16 = vadd.f32 %v550_v46, %v455_v11 }
 0x230   : > { %476 = vst.msk [vmem:[%s743_s21 + $0x28] sm:$0xff] %vm337_vm1, %v468_v12  ;;  %v456_v17 = vmul.f32 %v549_v42, %v442_v15 }
 0x231   : > { %477 = vst.msk [vmem:[%s743_s21 + $0x30] sm:$0xff] %vm337_vm1, %v469_v16 }
 0x232   : > { %v470_v18 = vadd.f32 %v550_v46, %v456_v17 }
 0x234   : > { %478 = vst.msk [vmem:[%s743_s21 + $0x38] sm:$0xff] %vm337_vm1, %v470_v18 }
 0x235 PF: > { %s15_s18 = sadd.s32 1, %s610_s18  }
 0x236   : > { %p12_p4 = scmp.ge.s32.totalorder %s15_s18, 4  }
 0x238   :  { %14 = sbr.rel (!%p12_p4) target bundleno = 1 (0x1), region = 70 }

// kernel: swin_forward.24
= control target key start
LH: loop header
LB: loop body
LE: loop exit
PB: predicated region body
PF: predicated region fallthrough
CT: control target
= control target key end

     0   :  { %s634_s18 = smov 0   ;;  %s747_s0 = inlined_call_operand.vmem [shape: f32[128,32], index: 0, kind: input, shape index: {}]   ;;  %s748_s1 = inlined_call_operand.vmem [shape: f32[32,96], index: 1, kind: input, shape index: {}]   ;;  %s749_s2 = inlined_call_operand.vmem [shape: f32[1,32], index: 2, kind: input, shape index: {}]   ;;  %s750_s3 = inlined_call_operand.vmem [shape: f32[1,32], index: 3, kind: input, shape index: {}]   ;;  %s751_s4 = inlined_call_operand.vmem [shape: f32[1,96], index: 4, kind: input, shape index: {}]   ;;  %s752_s5 = inlined_call_operand.vmem [shape: f32[128,96], index: 5, kind: output, shape index: {}]  }
   0x1 LB: > { %s532_s19 = sadd.s32 4294967295, %s602_s18   ;;  %p536_p0 = scmp.ge.s32.totalorder %s602_s18, 1  ;;  %s602_s18 = sphi %s634_s18, %s15_s18  }
   0x2   : > { %p188_p1 = scmp.lt.s32.totalorder %s602_s18, 3 }
   0x4   : > { %p189_p2 = pnand %p536_p0, %p188_p1 }
   0x5   : > { %s537_s20 = sshll.u32 (!%p189_p2), %s532_s19, 3  ;;  %vm239_vm0 = vcmask (!%p189_p2), 261120   ;;  %v377_v56 = vld [vmem:[%s748_s1] sm:$0xff] (!%p189_p2)  ;;  %v378_v57 = vld [vmem:[%s748_s1 + $0x8] sm:$0xff] (!%p189_p2)  ;;  %v379_v59 = vld [vmem:[%s748_s1 + $0x10] sm:$0xff] (!%p189_p2)  ;;  %vm467_vm1 = vcmask (!%p189_p2), 785408  }
   0x6   : > { %192 = sbr.rel (%p189_p2) target bundleno = 566 (0x236), region = 40  ;;  %p217_p3 = scmp.lt.s32.totalorder (!%p189_p2), %s537_s20, 15  ;;  %v381_v58 = vpack.c.bf16 (!%p189_p2), %v378_v57, %v377_v56  ;;  %v380_v60 = vld [vmem:[%s748_s1 + $0x18] sm:$0xff] (!%p189_p2) }
   0x7   : > { %v382_v61 = vpack.c.bf16 (!%p189_p2), %v380_v60, %v379_v59 }
   0x8   : > { %556 = vmatprep.subr.bf16.mxu0 (!%p189_p2), %v381_v58  ;;  %568 = vmatprep.subr.bf16.mxu1 (!%p189_p2), %v381_v58 }
   0x9   : > { %557 = vmatpush3.bf16.msra.mxu0 (!%p189_p2), %v381_v58  ;;  %570 = vmatpush3.bf16.msra.mxu1 (!%p189_p2), %v381_v58 }
   0xa   : > { %558 = vmatprep.subr.bf16.mxu0 (!%p189_p2), %v382_v61  ;;  %569 = vmatprep.subr.bf16.mxu1 (!%p189_p2), %v382_v61 }
   0xd   : > { %s754_s20 = smov (!%p217_p3, %s537_s20), 15  ;;  %559 = vmatpush3.bf16.msra.mxu0 %v382_v61  ;;  %571 = vmatpush3.bf16.msra.mxu1 %v382_v61 }
   0xe   : > { %s538_s21 = sshll.u32 %s754_s20, 3 }
   0xf   : > { %s220_s24 = scalar_lea.vmem %s747_s0, %s538_s21  ;;  %s226_s16 = scalar_lea.vmem %s752_s5, %s538_s21 }
  0x10   : > { %v229_v0 = vld [vmem:[%s220_s24] sm:$0xff]  ;;  %v230_v2 = vld [vmem:[%s220_s24 + $0x8] sm:$0xff]  ;;  %v231_v8 = vld [vmem:[%s220_s24 + $0x10] sm:$0xff] }
  0x11   : > { %v233_v1 = vld [vmem:[%s220_s24 + $0x20] sm:$0xff]  ;;  %v240_v3 = vsel %vm239_vm0, %v229_v0, 0.0  ;;  %v234_v5 = vld [vmem:[%s220_s24 + $0x28] sm:$0xff]  ;;  %v243_v6 = vsel %vm239_vm0, %v230_v2, 0.0  ;;  %v232_v9 = vld [vmem:[%s220_s24 + $0x18] sm:$0xff]  ;;  %v246_v10 = vsel %vm239_vm0, %v231_v8, 0.0 }
  0x12   : > { %v252_v4 = vsel %vm239_vm0, %v233_v1, 0.0  ;;  %241 = vadd.xlane.f32.xlu0 %v240_v3  ;;  %v255_v7 = vsel %vm239_vm0, %v234_v5, 0.0  ;;  %v249_v11 = vsel %vm239_vm0, %v232_v9, 0.0  ;;  %v235_v12 = vld [vmem:[%s220_s24 + $0x30] sm:$0xff]  ;;  %v236_v13 = vld [vmem:[%s220_s24 + $0x38] sm:$0xff] }
  0x13   : > { %253 = vadd.xlane.f32.xlu1 %v252_v4  ;;  %v258_v14 = vsel %vm239_vm0, %v235_v12, 0.0  ;;  %v261_v15 = vsel %vm239_vm0, %v236_v13, 0.0 }
  0x16   : > { %244 = vadd.xlane.f32.xlu0 %v243_v6 }
  0x17   : > { %256 = vadd.xlane.f32.xlu1 %v255_v7 }
  0x1a   : > { %247 = vadd.xlane.f32.xlu0 %v246_v10 }
  0x1b   : > { %250 = vadd.xlane.f32.xlu1 %v249_v11 }
  0x1e   : > { %259 = vadd.xlane.f32.xlu0 %v258_v14 }
  0x1f   : > { %262 = vadd.xlane.f32.xlu1 %v261_v15 }
  0x9f   : > { %v242_v16 = vpop.xlane.xlu0 %241 }
  0xa0   : > { %v254_v17 = vpop.xlane.xlu1 %253  ;;  %v265_v18 = vmul.f32 0.03125, %v242_v16 }
  0xa1   : > { %v269_v19 = vmul.f32 0.03125, %v254_v17 }
  0xa2   : > { %v658_v20 = vsub.f32 %v229_v0, %v265_v18 }
  0xa3   : > { %v660_v21 = vsub.f32 %v233_v1, %v269_v19  ;;  %v245_v22 = vpop.xlane.xlu0 %244 }
  0xa4   : > { %v257_v23 = vpop.xlane.xlu1 %256  ;;  %v266_v24 = vmul.f32 0.03125, %v245_v22  ;;  %v281_v26 = vmul.f32 %v658_v20, %v658_v20 }
  0xa5   : > { %v270_v25 = vmul.f32 0.03125, %v257_v23  ;;  %v285_v27 = vmul.f32 %v660_v21, %v660_v21 }
  0xa6   : > { %v666_v28 = vsub.f32 %v230_v2, %v266_v24  ;;  %v289_v30 = vsel %vm239_vm0, %v281_v26, 0.0 }
  0xa7   : > { %v668_v29 = vsub.f32 %v234_v5, %v270_v25  ;;  %290 = vadd.xlane.f32.xlu0 %v289_v30  ;;  %v248_v31 = vpop.xlane.xlu0 %247  ;;  %v301_v33 = vsel %vm239_vm0, %v285_v27, 0.0  ;;  %v541_v25 = vld [vmem:[%s749_s2] ss:$0 sm:$0xff] }
  0xa8   : > { %v251_v32 = vpop.xlane.xlu1 %250  ;;  %v267_v34 = vmul.f32 0.03125, %v248_v31  ;;  %v282_v36 = vmul.f32 %v666_v28, %v666_v28 }
  0xa9   : > { %v268_v35 = vmul.f32 0.03125, %v251_v32  ;;  %v286_v37 = vmul.f32 %v668_v29, %v668_v29 }
  0xaa   : > { %v676_v38 = vsub.f32 %v231_v8, %v267_v34  ;;  %v292_v40 = vsel %vm239_vm0, %v282_v36, 0.0 }
  0xab   : > { %v678_v39 = vsub.f32 %v232_v9, %v268_v35  ;;  %302 = vadd.xlane.f32.xlu0 %v301_v33  ;;  %293 = vadd.xlane.f32.xlu1 %v292_v40  ;;  %v260_v41 = vpop.xlane.xlu0 %259  ;;  %v304_v43 = vsel %vm239_vm0, %v286_v37, 0.0  ;;  %v542_v33 = vld [vmem:[%s750_s3] ss:$0 sm:$0xff] }
  0xac   : > { %v263_v42 = vpop.xlane.xlu1 %262  ;;  %v271_v44 = vmul.f32 0.03125, %v260_v41  ;;  %v283_v46 = vmul.f32 %v676_v38, %v676_v38 }
  0xad   : > { %v272_v45 = vmul.f32 0.03125, %v263_v42  ;;  %v284_v47 = vmul.f32 %v678_v39, %v678_v39 }
  0xae   : > { %v686_v48 = vsub.f32 %v235_v12, %v271_v44  ;;  %v295_v50 = vsel %vm239_vm0, %v283_v46, 0.0 }
  0xaf   : > { %v688_v49 = vsub.f32 %v236_v13, %v272_v45  ;;  %305 = vadd.xlane.f32.xlu1 %v304_v43  ;;  %296 = vadd.xlane.f32.xlu0 %v295_v50  ;;  %v298_v51 = vsel %vm239_vm0, %v284_v47, 0.0 }
  0xb0   : > { %v287_v52 = vmul.f32 %v686_v48, %v686_v48 }
  0xb1   : > { %v288_v53 = vmul.f32 %v688_v49, %v688_v49 }
  0xb2   : > { %v307_v54 = vsel %vm239_vm0, %v287_v52, 0.0 }
  0xb3   : > { %299 = vadd.xlane.f32.xlu1 %v298_v51  ;;  %308 = vadd.xlane.f32.xlu0 %v307_v54  ;;  %v310_v55 = vsel %vm239_vm0, %v288_v53, 0.0 }
  0xb7   : > { %311 = vadd.xlane.f32.xlu1 %v310_v55 }
 0x134   : > { %v291_v62 = vpop.xlane.xlu0 %290 }
 0x135   : > { %v313_v63 = vmul.f32 0.03125, %v291_v62 }
 0x137   : > { %v321_v0 = vadd.f32 1e-05, %v313_v63 }
 0x138   : > { %v294_v1 = vpop.xlane.xlu1 %293  ;;  %v303_v2 = vpop.xlane.xlu0 %302 }
 0x139   : > { %580 = vrsqrt.f32 %v321_v0  ;;  %v314_v3 = vmul.f32 0.03125, %v294_v1  ;;  %v317_v4 = vmul.f32 0.03125, %v303_v2 }
 0x13b   : > { %v322_v5 = vadd.f32 1e-05, %v314_v3  ;;  %v325_v6 = vadd.f32 1e-05, %v317_v4 }
 0x13c   : > { %v306_v7 = vpop.xlane.xlu1 %305  ;;  %v297_v8 = vpop.xlane.xlu0 %296 }
 0x13d   : > { %582 = vrsqrt.f32 %v322_v5  ;;  %v318_v9 = vmul.f32 0.03125, %v306_v7  ;;  %v315_v10 = vmul.f32 0.03125, %v297_v8 }
 0x13e   : > { %584 = vrsqrt.f32 %v325_v6 }
 0x13f   : > { %v326_v11 = vadd.f32 1e-05, %v318_v9  ;;  %v323_v12 = vadd.f32 1e-05, %v315_v10 }
 0x140   : > { %v300_v13 = vpop.xlane.xlu1 %299  ;;  %v309_v14 = vpop.xlane.xlu0 %308 }
 0x141   : > { %586 = vrsqrt.f32 %v326_v11  ;;  %v316_v15 = vmul.f32 0.03125, %v300_v13  ;;  %v319_v16 = vmul.f32 0.03125, %v309_v14 }
 0x142   : > { %588 = vrsqrt.f32 %v323_v12 }
 0x143   : > { %v581_v17 = vpop.eup %580  ;;  %v324_v18 = vadd.f32 1e-05, %v316_v15  ;;  %v327_v19 = vadd.f32 1e-05, %v319_v16 }
 0x144   : > { %v312_v22 = vpop.xlane.xlu1 %311  ;;  %v337_v23 = vmul.f32 %v581_v17, %v658_v20 }
 0x145   : > { %590 = vrsqrt.f32 %v324_v18  ;;  %v320_v24 = vmul.f32 0.03125, %v312_v22 }
 0x146   : > { %592 = vrsqrt.f32 %v327_v19  ;;  %v351_v32 = vmul.f32 %v541_v25, %v337_v23 }
 0x147   : > { %v583_v26 = vpop.eup %582  ;;  %v328_v27 = vadd.f32 1e-05, %v320_v24 }
 0x148   : > { %v585_v30 = vpop.eup %584  ;;  %v338_v31 = vmul.f32 %v583_v26, %v666_v28  ;;  %v365_v37 = vadd.f32 %v542_v33, %v351_v32 }
 0x149   : > { %594 = vrsqrt.f32 %v328_v27  ;;  %v341_v20 = vmul.f32 %v585_v30, %v660_v21 }
 0x14a   : > { %v352_v34 = vmul.f32 %v541_v25, %v338_v31 }
 0x14b   : > { %v587_v35 = vpop.eup %586  ;;  %v355_v42 = vmul.f32 %v541_v25, %v341_v20 }
 0x14c   : > { %v589_v36 = vpop.eup %588  ;;  %v366_v40 = vadd.f32 %v542_v33, %v352_v34  ;;  %v342_v41 = vmul.f32 %v587_v35, %v668_v29 }
 0x14d   : > { %v339_v43 = vmul.f32 %v589_v36, %v676_v38  ;;  %v369_v50 = vadd.f32 %v542_v33, %v355_v42 }
 0x14e   : > { %v373_v44 = vpack.c.bf16 %v366_v40, %v365_v37  ;;  %v356_v28 = vmul.f32 %v541_v25, %v342_v41 }
 0x14f   : > { %v591_v45 = vpop.eup %590  ;;  %v353_v51 = vmul.f32 %v541_v25, %v339_v43 }
 0x150   : > { %v593_v46 = vpop.eup %592  ;;  %v340_v47 = vmul.f32 %v591_v45, %v678_v39  ;;  %560 = vmatprep.mubr.msk.bf16.mxu0 %vm239_vm0, %v373_v44  ;;  %v370_v21 = vadd.f32 %v542_v33, %v356_v28 }
 0x151   : > { %v343_v52 = vmul.f32 %v593_v46, %v686_v48  ;;  %v367_v38 = vadd.f32 %v542_v33, %v353_v51  ;;  %v543_v48 = vld [vmem:[%s751_s4] ss:$0 sm:$0xff] }
 0x152   : > { %v375_v53 = vpack.c.bf16 %v370_v21, %v369_v50  ;;  %v354_v54 = vmul.f32 %v541_v25, %v340_v47 }
 0x153   : > { %v595_v29 = vpop.eup %594  ;;  %v357_v57 = vmul.f32 %v541_v25, %v343_v52 }
 0x154   : > { %v344_v55 = vmul.f32 %v595_v29, %v688_v49  ;;  %564 = vmatprep.mubr.msk.bf16.mxu1 %vm239_vm0, %v375_v53  ;;  %v368_v56 = vadd.f32 %v542_v33, %v354_v54 }
 0x155   : > { %v371_v59 = vadd.f32 %v542_v33, %v357_v57 }
 0x156   : > { %v374_v58 = vpack.c.bf16 %v368_v56, %v367_v38  ;;  %v358_v39 = vmul.f32 %v541_v25, %v344_v55 }
 0x158   : > { %561 = vmatmul.mubr.msk.bf16.vlgmr.msra.gmra.mrb[0].mxu0 %vm239_vm0, %v374_v58  ;;  %v372_v60 = vadd.f32 %v542_v33, %v358_v39 }
 0x15a   : > { %v376_v61 = vpack.c.bf16 %v372_v60, %v371_v59 }
 0x15c   : > { %565 = vmatmul.mubr.msk.bf16.vlgmr.msra.gmra.mrb[0].mxu1 %vm239_vm0, %v376_v61 }
 0x22b   : > { %v562_v49 = vpop.f32.mrb[0].mxu0 }
 0x22c   : > { %v445_v62 = vadd.f32 %v562_v49, %v543_v48  ;;  %v436_v63 = vpop.f32.mrb[1].mxu0 }
 0x22d   : > { %v437_v0 = vadd.f32 %v543_v48, %v436_v63  ;;  %v563_v1 = vpop.f32.mrb[2].mxu0 }
 0x22e   : > { %470 = vst.msk [vmem:[%s226_s16 + $0x10] sm:$0xff] %vm467_vm1, %v445_v62  ;;  %v448_v2 = vadd.f32 %v563_v1, %v543_v48  ;;  %v439_v3 = vpop.f32.mrb[3].mxu0 }
 0x22f   : > { %468 = vst.msk [vmem:[%s226_s16] sm:$0xff] %vm467_vm1, %v437_v0  ;;  %v440_v4 = vadd.f32 %v543_v48, %v439_v3  ;;  %v566_v5 = vpop.f32.mrb[0].mxu1 }
 0x230   : > { %471 = vst.msk [vmem:[%s226_s16 + $0x18] sm:$0xff] %vm467_vm1, %v448_v2  ;;  %v461_v6 = vadd.f32 %v566_v5, %v543_v48  ;;  %v452_v7 = vpop.f32.mrb[1].mxu1 }
 0x231   : > { %469 = vst.msk [vmem:[%s226_s16 + $0x8] sm:$0xff] %vm467_vm1, %v440_v4  ;;  %v453_v8 = vadd.f32 %v543_v48, %v452_v7  ;;  %v567_v9 = vpop.f32.mrb[2].mxu1 }
 0x232   : > { %474 = vst.msk [vmem:[%s226_s16 + $0x30] sm:$0xff] %vm467_vm1, %v461_v6  ;;  %v464_v10 = vadd.f32 %v567_v9, %v543_v48  ;;  %v455_v11 = vpop.f32.mrb[3].mxu1 }
 0x233   : > { %472 = vst.msk [vmem:[%s226_s16 + $0x20] sm:$0xff] %vm467_vm1, %v453_v8  ;;  %v456_v12 = vadd.f32 %v543_v48, %v455_v11 }
 0x234   : > { %475 = vst.msk [vmem:[%s226_s16 + $0x38] sm:$0xff] %vm467_vm1, %v464_v10 }
 0x235   : > { %473 = vst.msk [vmem:[%s226_s16 + $0x28] sm:$0xff] %vm467_vm1, %v456_v12 }
 0x236 PF: > { %s15_s18 = sadd.s32 1, %s602_s18  }
 0x237   : > { %p12_p4 = scmp.ge.s32.totalorder %s15_s18, 4  }
 0x239   :  { %14 = sbr.rel (!%p12_p4) target bundleno = 1 (0x1), region = 70 }

// kernel: swin_forward.26
= control target key start
LH: loop header
LB: loop body
LE: loop exit
PB: predicated region body
PF: predicated region fallthrough
CT: control target
= control target key end

     0   :  { %s416_s12 = smov 0   ;;  %s460_s0 = inlined_call_operand.vmem [shape: f32[128,32], index: 0, kind: input, shape index: {}]   ;;  %s461_s1 = inlined_call_operand.vmem [shape: f32[32,32], index: 1, kind: input, shape index: {}]   ;;  %s462_s2 = inlined_call_operand.vmem [shape: f32[1,32], index: 2, kind: input, shape index: {}]   ;;  %s463_s3 = inlined_call_operand.vmem [shape: f32[128,32], index: 3, kind: output, shape index: {}]  }
   0x1 LB: > { %s342_s13 = sadd.s32 4294967295, %s394_s12   ;;  %p346_p0 = scmp.ge.s32.totalorder %s394_s12, 1  ;;  %s394_s12 = sphi %s416_s12, %s13_s12  }
   0x2   : > { %p138_p1 = scmp.lt.s32.totalorder %s394_s12, 3 }
   0x4   : > { %p139_p2 = pnand %p346_p0, %p138_p1 }
   0x5   : > { %v187_v0 = vld [vmem:[%s461_s1] sm:$0xff] (!%p139_p2)  ;;  %v188_v1 = vld [vmem:[%s461_s1 + $0x8] sm:$0xff] (!%p139_p2)  ;;  %v189_v2 = vld [vmem:[%s461_s1 + $0x10] sm:$0xff] (!%p139_p2)  ;;  %s347_s20 = sshll.u32 (!%p139_p2), %s342_s13, 3  ;;  %vm200_vm0 = vcmask (!%p139_p2), 261120  }
   0x6   : > { %142 = sbr.rel (%p139_p2) target bundleno = 239 (0xef), region = 32  ;;  %v191_v3 = vpack.c.bf16 (!%p139_p2), %v188_v1, %v187_v0  ;;  %v190_v4 = vld [vmem:[%s461_s1 + $0x18] sm:$0xff] (!%p139_p2)  ;;  %p163_p3 = scmp.lt.s32.totalorder (!%p139_p2), %s347_s20, 15  ;;  %v351_v18 = vld [vmem:[%s462_s2] ss:$0 sm:$0xff] (!%p139_p2) }
   0x7   : > { %v192_v5 = vpack.c.bf16 (!%p139_p2), %v190_v4, %v189_v2 }
   0x8   : > { %364 = vmatprep.subr.bf16.mxu0 (!%p139_p2), %v191_v3  ;;  %376 = vmatprep.subr.bf16.mxu1 (!%p139_p2), %v191_v3 }
   0x9   : > { %365 = vmatpush3.bf16.msra.mxu0 (!%p139_p2), %v191_v3  ;;  %378 = vmatpush3.bf16.msra.mxu1 (!%p139_p2), %v191_v3 }
   0xa   : > { %366 = vmatprep.subr.bf16.mxu0 (!%p139_p2), %v192_v5  ;;  %377 = vmatprep.subr.bf16.mxu1 (!%p139_p2), %v192_v5 }
   0xd   : > { %s465_s20 = smov (!%p163_p3, %s347_s20), 15  ;;  %367 = vmatpush3.bf16.msra.mxu0 %v192_v5  ;;  %379 = vmatpush3.bf16.msra.mxu1 %v192_v5 }
   0xe   : > { %s348_s23 = sshll.u32 %s465_s20, 3 }
   0xf   : > { %s166_s26 = scalar_lea.vmem %s460_s0, %s348_s23  ;;  %s172_s4 = scalar_lea.vmem %s463_s3, %s348_s23 }
  0x10   : > { %v175_v6 = vld [vmem:[%s166_s26] sm:$0xff]  ;;  %v176_v7 = vld [vmem:[%s166_s26 + $0x8] sm:$0xff]  ;;  %v177_v11 = vld [vmem:[%s166_s26 + $0x10] sm:$0xff] }
  0x11   : > { %v179_v8 = vld [vmem:[%s166_s26 + $0x20] sm:$0xff]  ;;  %v183_v9 = vpack.c.bf16 %v176_v7, %v175_v6  ;;  %v180_v10 = vld [vmem:[%s166_s26 + $0x28] sm:$0xff]  ;;  %v178_v12 = vld [vmem:[%s166_s26 + $0x18] sm:$0xff] }
  0x12   : > { %v185_v13 = vpack.c.bf16 %v180_v10, %v179_v8  ;;  %v184_v14 = vpack.c.bf16 %v178_v12, %v177_v11  ;;  %v181_v15 = vld [vmem:[%s166_s26 + $0x30] sm:$0xff]  ;;  %v182_v16 = vld [vmem:[%s166_s26 + $0x38] sm:$0xff] }
  0x13   : > { %368 = vmatprep.mubr.msk.bf16.mxu0 %vm200_vm0, %v183_v9  ;;  %v186_v17 = vpack.c.bf16 %v182_v16, %v181_v15 }
  0x14   : > { %372 = vmatprep.mubr.msk.bf16.mxu1 %vm200_vm0, %v185_v13  ;;  %369 = vmatmul.mubr.msk.bf16.vlgmr.msra.gmra.mrb[0].mxu0 %vm200_vm0, %v184_v14 }
  0x15   : > { %373 = vmatmul.mubr.msk.bf16.vlgmr.msra.gmra.mrb[0].mxu1 %vm200_vm0, %v186_v17 }
  0xe7   : > { %v370_v19 = vpop.f32.mrb[0].mxu0 }
  0xe8   : > { %v256_v20 = vadd.f32 %v370_v19, %v351_v18  ;;  %v374_v21 = vpop.f32.mrb[0].mxu1  ;;  %v247_v22 = vpop.f32.mrb[1].mxu0 }
  0xe9   : > { %v272_v23 = vadd.f32 %v374_v21, %v351_v18  ;;  %v248_v24 = vadd.f32 %v351_v18, %v247_v22  ;;  %v263_v25 = vpop.f32.mrb[1].mxu1  ;;  %v371_v26 = vpop.f32.mrb[2].mxu0 }
  0xea   : > { %280 = vst.msk [vmem:[%s172_s4 + $0x10] sm:$0xff] %vm200_vm0, %v256_v20  ;;  %v264_v27 = vadd.f32 %v351_v18, %v263_v25  ;;  %v259_v28 = vadd.f32 %v371_v26, %v351_v18  ;;  %v375_v29 = vpop.f32.mrb[2].mxu1  ;;  %v250_v30 = vpop.f32.mrb[3].mxu0 }
  0xeb   : > { %284 = vst.msk [vmem:[%s172_s4 + $0x30] sm:$0xff] %vm200_vm0, %v272_v23  ;;  %278 = vst.msk [vmem:[%s172_s4] sm:$0xff] %vm200_vm0, %v248_v24  ;;  %v275_v31 = vadd.f32 %v375_v29, %v351_v18  ;;  %v251_v32 = vadd.f32 %v351_v18, %v250_v30  ;;  %v266_v33 = vpop.f32.mrb[3].mxu1 }
  0xec   : > { %282 = vst.msk [vmem:[%s172_s4 + $0x20] sm:$0xff] %vm200_vm0, %v264_v27  ;;  %281 = vst.msk [vmem:[%s172_s4 + $0x18] sm:$0xff] %vm200_vm0, %v259_v28  ;;  %v267_v34 = vadd.f32 %v351_v18, %v266_v33 }
  0xed   : > { %285 = vst.msk [vmem:[%s172_s4 + $0x38] sm:$0xff] %vm200_vm0, %v275_v31  ;;  %279 = vst.msk [vmem:[%s172_s4 + $0x8] sm:$0xff] %vm200_vm0, %v251_v32 }
  0xee   : > { %283 = vst.msk [vmem:[%s172_s4 + $0x28] sm:$0xff] %vm200_vm0, %v267_v34 }
  0xef PF: > { %s13_s12 = sadd.s32 1, %s394_s12  }
  0xf0   : > { %p10_p4 = scmp.ge.s32.totalorder %s13_s12, 4  }
  0xf2   :  { %12 = sbr.rel (!%p10_p4) target bundleno = 1 (0x1), region = 62 }

// kernel: swin_forward.25
= control target key start
LH: loop header
LB: loop body
LE: loop exit
PB: predicated region body
PF: predicated region fallthrough
CT: control target
= control target key end

     0   :  { %s1546_s9 = smov 0   ;;  %s1768_s0 = inlined_call_operand.vmem [shape: f32[8,16,96], index: 0, kind: input, shape index: {}]   ;;  %s1769_s1 = inlined_call_operand.vmem [shape: f32[2,16,16], index: 1, kind: input, shape index: {}]   ;;  %s1770_s2 = inlined_call_operand.vmem [shape: f32[8,16,32], index: 2, kind: output, shape index: {}]  }
   0x1 LB: > { %s1274_s10 = sadd.s32 4294967295, %s1521_s9   ;;  %p1278_p0 = scmp.ge.s32.totalorder %s1521_s9, 1  ;;  %s1521_s9 = sphi %s1546_s9, %s12_s9  }
   0x2   : > { %p114_p1 = scmp.lt.s32.totalorder %s1521_s9, 3 }
   0x4   : > { %p115_p2 = pnand %p1278_p0, %p114_p1 }
   0x5   : > { %s1279_s11 = sshll.u32 (!%p115_p2), %s1274_s10, 2  ;;  %v1523_v0 = vmov (!%p115_p2), 0.0   ;;  %vm1524_vm0 = vmmov (!%p115_p2), 0   ;;  %s1525_s16 = smov (!%p115_p2), 96   ;;  %vm168_vm1 = vcmask (!%p115_p2), 130048   ;;  %v374_v22 = vld [vmem:[%s1769_s1] sm:$0xff] (!%p115_p2) }
   0x6   : > { %118 = sbr.rel (%p115_p2) target bundleno = 1575 (0x627), region = 28  ;;  %p139_p3 = scmp.lt.s32.totalorder (!%p115_p2), %s1279_s11, 7  ;;  %1339 = vmatprep.subr.bf16.mxu0 (!%p115_p2), %v1523_v0  ;;  %1345 = vmatprep.subr.bf16.mxu1 (!%p115_p2), %v1523_v0  ;;  %v375_v26 = vld [vmem:[%s1769_s1 + $0x8] sm:$0xff] (!%p115_p2)  ;;  %vm1207_vm2 = vcmask (!%p115_p2), 261248  }
   0x7   : > { %1341 = vmatprep.mubr.msk.bf16.mxu0 (!%p115_p2), %vm1524_vm0, %v1523_v0  ;;  %1347 = vmatprep.mubr.msk.bf16.mxu1 (!%p115_p2), %vm1524_vm0, %v1523_v0  ;;  %s1526_s21 = smov (!%p115_p2), 64   ;;  %s1527_s22 = smov (!%p115_p2), 80  }
   0x8   : > { %s1528_s23 = smov (!%p115_p2), 112   ;;  %s1529_s3 = smov (!%p115_p2), 48  }
   0x9   : > { %s1530_s4 = smov (!%p115_p2), 16  }
   0xd   : > { %s1772_s11 = smov (!%p139_p3, %s1279_s11), 7 }
   0xe   : > { %s1305_s12 = sshll.u32 %s1772_s11, 4 }
   0xf   : > { %s143_s15 = scalar_lea.vmem %s1768_s0, %s1305_s12  ;;  %s1691_s26 = scalar_lea.vmem %s1770_s2, %s1305_s12 }
  0x10   : > { %v153_v1 = vld [vmem:[%s143_s15] sm:$0xff]  ;;  %v154_v2 = vld [vmem:[%s143_s15 + $0x8] sm:$0xff]  ;;  %v155_v3 = vld [vmem:[%s143_s15 + $0x10] sm:$0xff] }
  0x11   : > { %v1568_v4 = vpack.c.bf16 %v154_v2, %v153_v1  ;;  %v156_v5 = vld [vmem:[%s143_s15 + $0x18] sm:$0xff]  ;;  %v157_v6 = vld [vmem:[%s143_s15 + $0x20] sm:$0xff]  ;;  %v158_v7 = vld [vmem:[%s143_s15 + $0x28] sm:$0xff] }
  0x12   : > { %v1570_v8 = vpack.c.bf16 %v158_v7, %v157_v6  ;;  %v159_v9 = vld [vmem:[%s143_s15 + $0x30] sm:$0xff]  ;;  %v160_v10 = vld [vmem:[%s143_s15 + $0x38] sm:$0xff]  ;;  %v1573_v11 = vpack.c.bf16 %v156_v5, %v155_v3 }
  0x13   : > { %166 = vrot.lane.b32.xlu0 %v1568_v4, %s1525_s16  ;;  %v1576_v12 = vpack.c.bf16 %v160_v10, %v159_v9 }
  0x14   : > { %267 = vrot.lane.b32.xlu1 %v1570_v8, %s1525_s16 }
  0x17   : > { %217 = vrot.lane.b32.xlu0 %v1573_v11, %s1525_s16 }
  0x18   : > { %317 = vrot.lane.b32.xlu1 %v1576_v12, %s1525_s16 }
  0x85   : > { %v167_v13 = vpop.permute.xlu0 %166 }
  0x86   : > { %v173_v14 = vsel %vm168_vm1, %v167_v13, 0  ;;  %v268_v15 = vpop.permute.xlu1 %267 }
  0x87   : > { %1340 = vmatpush3.bf16.xpose.msra.mxu0 %v173_v14  ;;  %v273_v18 = vsel %vm168_vm1, %v268_v15, 0 }
  0x88   : > { %1351 = vmatprep.subr.bf16.mxu0 %v1523_v0 }
  0x89   : > { %v218_v16 = vpop.permute.xlu0 %217 }
  0x8a   : > { %v223_v17 = vsel %vm168_vm1, %v218_v16, 0  ;;  %v318_v19 = vpop.permute.xlu1 %317 }
  0x8b   : > { %1346 = vmatpush3.bf16.xpose.msra.mxu1 %v223_v17  ;;  %v323_v20 = vsel %vm168_vm1, %v318_v19, 0 }
  0x8c   : > { %1357 = vmatprep.subr.bf16.mxu1 %v1523_v0 }
  0x8e   : > { %1342 = vmatmul.mubr.msk.bf16.vlgmr.msra.gmra.mrb[0].mxu0 %vm168_vm1, %v1568_v4 }
  0x8f   : > { %1352 = vmatpush3.bf16.xpose.msra.mxu0 %v273_v18  ;;  %1353 = vmatprep.mubr.msk.bf16.mxu0 %vm1524_vm0, %v1523_v0 }
  0x90   : > { %1363 = vmatprep.subr.bf16.mxu0 %v1523_v0 }
  0x92   : > { %1348 = vmatmul.mubr.msk.bf16.vlgmr.msra.gmra.mrb[0].mxu1 %vm168_vm1, %v1573_v11 }
  0x93   : > { %1358 = vmatpush3.bf16.xpose.msra.mxu1 %v323_v20  ;;  %1359 = vmatprep.mubr.msk.bf16.mxu1 %vm1524_vm0, %v1523_v0 }
  0x94   : > { %1369 = vmatprep.subr.bf16.mxu1 %v1523_v0 }
  0x96   : > { %1354 = vmatmul.mubr.msk.bf16.vlgmr.msra.gmra.mrb[4].mxu0 %vm168_vm1, %v1570_v8 }
  0x97   : > { %1365 = vmatprep.mubr.msk.bf16.mxu0 %vm1524_vm0, %v1523_v0 }
  0x9a   : > { %1360 = vmatmul.mubr.msk.bf16.vlgmr.msra.gmra.mrb[4].mxu1 %vm168_vm1, %v1576_v12 }
  0x9b   : > { %1371 = vmatprep.mubr.msk.bf16.mxu1 %vm1524_vm0, %v1523_v0 }
 0x161   : > { %v209_v21 = vpop.f32.mrb[0].mxu0 }
 0x162   : > { %v366_v23 = vmul.f32 0.25, %v209_v21  ;;  %v1343_v24 = vpop.f32.mrb[1].mxu0 }
 0x163   : > { %v212_v25 = vpop.f32.mrb[2].mxu0 }
 0x164   : > { %v367_v27 = vmul.f32 0.25, %v212_v25  ;;  %v1344_v28 = vpop.f32.mrb[3].mxu0  ;;  %v376_v29 = vadd.f32 %v374_v22, %v366_v23 }
 0x165   : > { %v259_v30 = vpop.f32.mrb[0].mxu1 }
 0x166   : > { %v368_v31 = vmul.f32 0.25, %v259_v30  ;;  %v1349_v32 = vpop.f32.mrb[1].mxu1  ;;  %v384_v33 = vsel %vm168_vm1, %v376_v29, -inf  ;;  %v377_v34 = vadd.f32 %v375_v26, %v367_v27 }
 0x167   : > { %385 = vmax.xlane.f32.xlu0 %v384_v33  ;;  %v262_v35 = vpop.f32.mrb[2].mxu1 }
 0x168   : > { %v369_v36 = vmul.f32 0.25, %v262_v35  ;;  %v1350_v37 = vpop.f32.mrb[3].mxu1  ;;  %v387_v38 = vsel %vm168_vm1, %v377_v34, -inf  ;;  %v378_v39 = vadd.f32 %v374_v22, %v368_v31 }
 0x169   : > { %388 = vmax.xlane.f32.xlu1 %v387_v38  ;;  %v309_v40 = vpop.f32.mrb[4].mxu0 }
 0x16a   : > { %v370_v41 = vmul.f32 0.25, %v309_v40  ;;  %v1355_v42 = vpop.f32.mrb[5].mxu0  ;;  %v390_v43 = vsel %vm168_vm1, %v378_v39, -inf  ;;  %v379_v44 = vadd.f32 %v375_v26, %v369_v36 }
 0x16b   : > { %v312_v45 = vpop.f32.mrb[6].mxu0  ;;  %391 = vmax.xlane.f32.xlu0 %v390_v43 }
 0x16c   : > { %v371_v46 = vmul.f32 0.25, %v312_v45  ;;  %v1356_v47 = vpop.f32.mrb[7].mxu0  ;;  %v380_v48 = vadd.f32 %v374_v22, %v370_v41  ;;  %v393_v53 = vsel %vm168_vm1, %v379_v44, -inf }
 0x16d   : > { %v359_v49 = vpop.f32.mrb[4].mxu1 }
 0x16e   : > { %v372_v50 = vmul.f32 0.25, %v359_v49  ;;  %v1361_v51 = vpop.f32.mrb[5].mxu1  ;;  %v396_v52 = vsel %vm168_vm1, %v380_v48, -inf  ;;  %v381_v54 = vadd.f32 %v375_v26, %v371_v46 }
 0x16f   : > { %397 = vmax.xlane.f32.xlu1 %v396_v52  ;;  %394 = vmax.xlane.f32.xlu0 %v393_v53  ;;  %v362_v55 = vpop.f32.mrb[6].mxu1 }
 0x170   : > { %v373_v56 = vmul.f32 0.25, %v362_v55  ;;  %v1362_v57 = vpop.f32.mrb[7].mxu1  ;;  %v382_v58 = vadd.f32 %v374_v22, %v372_v50  ;;  %v399_v59 = vsel %vm168_vm1, %v381_v54, -inf }
 0x172   : > { %v402_v60 = vsel %vm168_vm1, %v382_v58, -inf  ;;  %v383_v61 = vadd.f32 %v375_v26, %v373_v56 }
 0x173   : > { %400 = vmax.xlane.f32.xlu0 %v399_v59  ;;  %403 = vmax.xlane.f32.xlu1 %v402_v60 }
 0x174   : > { %v405_v62 = vsel %vm168_vm1, %v383_v61, -inf }
 0x177   : > { %406 = vmax.xlane.f32.xlu0 %v405_v62 }
 0x184   : > { %476 = vrot.lane.b32.xlu1 %v1568_v4, %s1526_s21 }
 0x188   : > { %570 = vrot.lane.b32.xlu1 %v1570_v8, %s1526_s21 }
 0x18c   : > { %617 = vrot.lane.b32.xlu1 %v1576_v12, %s1526_s21 }
 0x18d   : > { %523 = vrot.lane.b32.xlu0 %v1573_v11, %s1526_s21 }
 0x1f4   : > { %v386_v63 = vpop.xlane.xlu0 %385 }
 0x1f5   : > { %v408_v1 = vsub.f32 %v376_v29, %v386_v63 }
 0x1f6   : > { %v389_v2 = vpop.xlane.xlu1 %388 }
 0x1f7   : > { %v416_v3 = vmul.f32 1.442695, %v408_v1  ;;  %v409_v5 = vsub.f32 %v377_v34, %v389_v2 }
 0x1f8   : > { %v392_v6 = vpop.xlane.xlu0 %391 }
 0x1f9   : > { %1451 = vpow2.f32 %v416_v3  ;;  %v418_v7 = vmul.f32 1.442695, %v409_v5  ;;  %v410_v9 = vsub.f32 %v378_v39, %v392_v6 }
 0x1fb   : > { %1453 = vpow2.f32 %v418_v7  ;;  %v420_v10 = vmul.f32 1.442695, %v410_v9 }
 0x1fc   : > { %v398_v13 = vpop.xlane.xlu1 %397  ;;  %v395_v14 = vpop.xlane.xlu0 %394 }
 0x1fd   : > { %1455 = vpow2.f32 %v420_v10  ;;  %v412_v15 = vsub.f32 %v380_v48, %v398_v13  ;;  %v411_v16 = vsub.f32 %v379_v44, %v395_v14 }
 0x1ff   : > { %v424_v17 = vmul.f32 1.442695, %v412_v15  ;;  %v422_v18 = vmul.f32 1.442695, %v411_v16 }
 0x200   : > { %v404_v19 = vpop.xlane.xlu1 %403  ;;  %v401_v20 = vpop.xlane.xlu0 %400 }
 0x201   : > { %1457 = vpow2.f32 %v424_v17  ;;  %v414_v21 = vsub.f32 %v382_v58, %v404_v19  ;;  %v413_v22 = vsub.f32 %v381_v54, %v401_v20 }
 0x202   : > { %1459 = vpow2.f32 %v422_v18 }
 0x203   : > { %v1622_v23 = vpop.eup %1451  ;;  %v428_v24 = vmul.f32 1.442695, %v414_v21  ;;  %v426_v25 = vmul.f32 1.442695, %v413_v22 }
 0x204   : > { %v407_v26 = vpop.xlane.xlu0 %406  ;;  %v432_v27 = vsel %vm168_vm1, %v1622_v23, 0.0  ;;  %v477_v28 = vpop.permute.xlu1 %476 }
 0x205   : > { %v1454_v29 = vpop.eup %1453  ;;  %1461 = vpow2.f32 %v428_v24  ;;  %v415_v30 = vsub.f32 %v383_v61, %v407_v26  ;;  %433 = vadd.xlane.f32.xlu1 %v432_v27  ;;  %1364 = vmatpush3.bf16.msra.mxu0 %v477_v28 }
 0x206   : > { %1463 = vpow2.f32 %v426_v25  ;;  %v435_v31 = vsel %vm168_vm1, %v1454_v29, 0.0  ;;  %1375 = vmatprep.subr.bf16.mxu0 %v1523_v0 }
 0x207   : > { %v1628_v32 = vpop.eup %1455  ;;  %v430_v33 = vmul.f32 1.442695, %v415_v30  ;;  %436 = vadd.xlane.f32.xlu0 %v435_v31 }
 0x208   : > { %v438_v34 = vsel %vm168_vm1, %v1628_v32, 0.0  ;;  %v524_v35 = vpop.permute.xlu0 %523  ;;  %v571_v46 = vpop.permute.xlu1 %570 }
 0x209   : > { %1465 = vpow2.f32 %v430_v33  ;;  %439 = vadd.xlane.f32.xlu1 %v438_v34  ;;  %1370 = vmatpush3.bf16.msra.mxu1 %v524_v35 }
 0x20a   : > { %1381 = vmatprep.subr.bf16.mxu1 %v1523_v0 }
 0x20b   : > { %v1458_v36 = vpop.eup %1457 }
 0x20c   : > { %v1460_v37 = vpop.eup %1459  ;;  %v444_v38 = vsel %vm168_vm1, %v1458_v36, 0.0  ;;  %v618_v47 = vpop.permute.xlu1 %617 }
 0x20d   : > { %445 = vadd.xlane.f32.xlu1 %v444_v38  ;;  %v441_v39 = vsel %vm168_vm1, %v1460_v37, 0.0 }
 0x20e   : > { %442 = vadd.xlane.f32.xlu0 %v441_v39 }
 0x20f   : > { %v1635_v40 = vpop.eup %1461 }
 0x210   : > { %v1464_v41 = vpop.eup %1463  ;;  %v450_v42 = vsel %vm168_vm1, %v1635_v40, 0.0 }
 0x211   : > { %451 = vadd.xlane.f32.xlu1 %v450_v42  ;;  %v447_v43 = vsel %vm168_vm1, %v1464_v41, 0.0 }
 0x212   : > { %448 = vadd.xlane.f32.xlu0 %v447_v43 }
 0x213   : > { %v1466_v44 = vpop.eup %1465 }
 0x214   : > { %v453_v45 = vsel %vm168_vm1, %v1466_v44, 0.0 }
 0x216   : > { %454 = vadd.xlane.f32.xlu0 %v453_v45 }
 0x222   : > { %725 = vrot.lane.b32.xlu1 %v1573_v11, %s1527_s22 }
 0x226   : > { %776 = vrot.lane.b32.xlu1 %v1570_v8, %s1527_s22 }
 0x22a   : > { %827 = vrot.lane.b32.xlu1 %v1576_v12, %s1527_s22 }
 0x22c   : > { %674 = vrot.lane.b32.xlu0 %v1568_v4, %s1527_s22 }
 0x22e   : > { %825 = vrot.lane.b32.xlu1 %v1576_v12, %s1528_s23 }
 0x230   : > { %672 = vrot.lane.b32.xlu0 %v1568_v4, %s1528_s23 }
 0x234   : > { %723 = vrot.lane.b32.xlu0 %v1573_v11, %s1528_s23 }
 0x238   : > { %774 = vrot.lane.b32.xlu0 %v1570_v8, %s1528_s23 }
 0x292   : > { %v434_v48 = vpop.xlane.xlu1 %433 }
 0x293   : > { %1467 = vrcp.f32 %v434_v48 }
 0x294   : > { %v437_v49 = vpop.xlane.xlu0 %436 }
 0x295   : > { %1469 = vrcp.f32 %v437_v49 }
 0x296   : > { %v440_v50 = vpop.xlane.xlu1 %439 }
 0x297   : > { %1471 = vrcp.f32 %v440_v50  ;;  %v1298_v50 = vld [vmem:[%s1769_s1 + $0x18] sm:$0xff] }
 0x29a   : > { %v446_v51 = vpop.xlane.xlu1 %445 }
 0x29b   : > { %v443_v52 = vpop.xlane.xlu0 %442 }
 0x29c   : > { %1473 = vrcp.f32 %v443_v52 }
 0x29d   : > { %v1468_v53 = vpop.eup %1467  ;;  %1475 = vrcp.f32 %v446_v51 }
 0x29e   : > { %v452_v55 = vpop.xlane.xlu1 %451  ;;  %v464_v57 = vmul.f32 %v1468_v53, %v1622_v23 }
 0x29f   : > { %v1470_v54 = vpop.eup %1469  ;;  %v449_v56 = vpop.xlane.xlu0 %448 }
 0x2a0   : > { %v465_v58 = vmul.f32 %v1470_v54, %v1454_v29  ;;  %1477 = vrcp.f32 %v449_v56 }
 0x2a1   : > { %1479 = vrcp.f32 %v452_v55  ;;  %v1472_v61 = vpop.eup %1471 }
 0x2a2   : > { %v472_v59 = vpack.c.bf16 %v465_v58, %v464_v57  ;;  %v466_v63 = vmul.f32 %v1472_v61, %v1628_v32  ;;  %v726_v10 = vpop.permute.xlu1 %725 }
 0x2a3   : > { %v455_v60 = vpop.xlane.xlu0 %454  ;;  %v731_v22 = vsel %vm168_vm1, %v726_v10, 0 }
 0x2a4   : > { %1481 = vrcp.f32 %v455_v60  ;;  %1366 = vmatmul.mubr.msk.bf16.vlgmr.msra.gmra.mrb[8].mxu0 %vm168_vm1, %v472_v59 }
 0x2a5   : > { %1376 = vmatpush3.bf16.msra.mxu0 %v571_v46  ;;  %1377 = vmatprep.mubr.msk.bf16.mxu0 %vm1524_vm0, %v1523_v0  ;;  %v1297_v46 = vld [vmem:[%s1769_s1 + $0x10] sm:$0xff] }
 0x2a6   : > { %v1474_v62 = vpop.eup %1473  ;;  %1387 = vmatprep.subr.bf16.mxu0 %v1523_v0  ;;  %v777_v21 = vpop.permute.xlu1 %776 }
 0x2a7   : > { %v467_v1 = vmul.f32 %v1474_v62, %v1460_v37  ;;  %v1476_v2 = vpop.eup %1475  ;;  %v675_v6 = vpop.permute.xlu0 %674  ;;  %v782_v23 = vsel %vm168_vm1, %v777_v21, 0 }
 0x2a8   : > { %v468_v7 = vmul.f32 %v1476_v2, %v1458_v36  ;;  %v680_v14 = vsel %vm168_vm1, %v675_v6, 0 }
 0x2a9   : > { %v473_v3 = vpack.c.bf16 %v467_v1, %v466_v63 }
 0x2aa   : > { %v1478_v5 = vpop.eup %1477  ;;  %v828_v25 = vpop.permute.xlu1 %827 }
 0x2ab   : > { %v469_v9 = vmul.f32 %v1478_v5, %v1464_v41  ;;  %1372 = vmatmul.mubr.msk.bf16.vlgmr.msra.gmra.mrb[8].mxu1 %vm168_vm1, %v473_v3  ;;  %v1480_v13 = vpop.eup %1479  ;;  %v673_v19 = vpop.permute.xlu0 %672  ;;  %v833_v26 = vsel %vm168_vm1, %v828_v25, 0 }
 0x2ac   : > { %1382 = vmatpush3.bf16.msra.mxu1 %v618_v47  ;;  %1383 = vmatprep.mubr.msk.bf16.mxu1 %vm1524_vm0, %v1523_v0  ;;  %v470_v17 = vmul.f32 %v1480_v13, %v1635_v40 }
 0x2ad   : > { %v474_v15 = vpack.c.bf16 %v469_v9, %v468_v7  ;;  %1393 = vmatprep.subr.bf16.mxu1 %v1523_v0 }
 0x2ae   : > { %v1482_v16 = vpop.eup %1481  ;;  %v826_v28 = vpop.permute.xlu1 %825 }
 0x2af   : > { %v471_v18 = vmul.f32 %v1482_v16, %v1466_v44  ;;  %1378 = vmatmul.mubr.msk.bf16.vlgmr.msra.gmra.mrb[12].mxu0 %vm168_vm1, %v474_v15  ;;  %v724_v24 = vpop.permute.xlu0 %723 }
 0x2b0   : > { %1388 = vmatpush3.bf16.xpose.msra.mxu0 %v680_v14  ;;  %1389 = vmatprep.mubr.msk.bf16.mxu0 %vm1524_vm0, %v1523_v0 }
 0x2b1   : > { %v475_v20 = vpack.c.bf16 %v471_v18, %v470_v17  ;;  %1399 = vmatprep.subr.bf16.mxu0 %v1523_v0 }
 0x2b3   : > { %1384 = vmatmul.mubr.msk.bf16.vlgmr.msra.gmra.mrb[12].mxu1 %vm168_vm1, %v475_v20  ;;  %v775_v27 = vpop.permute.xlu0 %774 }
 0x2b4   : > { %1395 = vmatprep.mubr.msk.bf16.mxu1 %vm1524_vm0, %v1523_v0 }
 0x2b5   : > { %1394 = vmatpush3.bf16.xpose.msra.mxu1 %v731_v22 }
 0x2b6   : > { %1405 = vmatprep.subr.bf16.mxu1 %v1523_v0 }
 0x2b7   : > { %1390 = vmatmul.mubr.msk.bf16.vlgmr.msra.gmra.mrb[16].mxu0 %vm168_vm1, %v673_v19 }
 0x2b8   : > { %1400 = vmatpush3.bf16.xpose.msra.mxu0 %v782_v23  ;;  %1401 = vmatprep.mubr.msk.bf16.mxu0 %vm1524_vm0, %v1523_v0 }
 0x2b9   : > { %1411 = vmatprep.subr.bf16.mxu0 %v1523_v0 }
 0x2bc   : > { %1396 = vmatmul.mubr.msk.bf16.vlgmr.msra.gmra.mrb[16].mxu1 %vm168_vm1, %v724_v24 }
 0x2bd   : > { %1406 = vmatpush3.bf16.xpose.msra.mxu1 %v833_v26  ;;  %1407 = vmatprep.mubr.msk.bf16.mxu1 %vm1524_vm0, %v1523_v0 }
 0x2be   : > { %1417 = vmatprep.subr.bf16.mxu1 %v1523_v0 }
 0x2bf   : > { %1402 = vmatmul.mubr.msk.bf16.vlgmr.msra.gmra.mrb[20].mxu0 %vm168_vm1, %v775_v27 }
 0x2c0   : > { %1413 = vmatprep.mubr.msk.bf16.mxu0 %vm1524_vm0, %v1523_v0 }
 0x2c4   : > { %1408 = vmatmul.mubr.msk.bf16.vlgmr.msra.gmra.mrb[20].mxu1 %vm168_vm1, %v826_v28 }
 0x2c5   : > { %1419 = vmatprep.mubr.msk.bf16.mxu1 %vm1524_vm0, %v1523_v0 }
 0x377   : > { %v516_v29 = vpop.f32.mrb[8].mxu0 }
 0x378   : > { %664 = vst.msk [vmem:[%s1691_s26] sm:$0xff] %vm168_vm1, %v516_v29  ;;  %v1367_v30 = vpop.f32.mrb[9].mxu0 }
 0x379   : > { %v519_v31 = vpop.f32.mrb[10].mxu0 }
 0x37a   : > { %665 = vst.msk [vmem:[%s1691_s26 + $0x8] sm:$0xff] %vm168_vm1, %v519_v31  ;;  %v1368_v32 = vpop.f32.mrb[11].mxu0 }
 0x37e   : > { %v563_v33 = vpop.f32.mrb[8].mxu1 }
 0x37f   : > { %666 = vst.msk [vmem:[%s1691_s26 + $0x10] sm:$0xff] %vm168_vm1, %v563_v33  ;;  %v1373_v34 = vpop.f32.mrb[9].mxu1 }
 0x380   : > { %v566_v35 = vpop.f32.mrb[10].mxu1 }
 0x381   : > { %667 = vst.msk [vmem:[%s1691_s26 + $0x18] sm:$0xff] %vm168_vm1, %v566_v35  ;;  %v1374_v36 = vpop.f32.mrb[11].mxu1 }
 0x382   : > { %v610_v37 = vpop.f32.mrb[12].mxu0 }
 0x383   : > { %668 = vst.msk [vmem:[%s1691_s26 + $0x20] sm:$0xff] %vm168_vm1, %v610_v37  ;;  %v1379_v38 = vpop.f32.mrb[13].mxu0 }
 0x384   : > { %v613_v39 = vpop.f32.mrb[14].mxu0 }
 0x385   : > { %669 = vst.msk [vmem:[%s1691_s26 + $0x28] sm:$0xff] %vm168_vm1, %v613_v39  ;;  %v1380_v40 = vpop.f32.mrb[15].mxu0 }
 0x386   : > { %v657_v41 = vpop.f32.mrb[12].mxu1 }
 0x387   : > { %670 = vst.msk [vmem:[%s1691_s26 + $0x30] sm:$0xff] %vm168_vm1, %v657_v41  ;;  %v1385_v42 = vpop.f32.mrb[13].mxu1 }
 0x388   : > { %v660_v43 = vpop.f32.mrb[14].mxu1 }
 0x389   : > { %671 = vst.msk [vmem:[%s1691_s26 + $0x38] sm:$0xff] %vm168_vm1, %v660_v43  ;;  %v1386_v44 = vpop.f32.mrb[15].mxu1 }
 0x38a   : > { %v716_v45 = vpop.f32.mrb[16].mxu0 }
 0x38b   : > { %v876_v47 = vmul.f32 0.25, %v716_v45  ;;  %v1391_v48 = vpop.f32.mrb[17].mxu0 }
 0x38c   : > { %v719_v49 = vpop.f32.mrb[18].mxu0 }
 0x38d   : > { %v877_v51 = vmul.f32 0.25, %v719_v49  ;;  %v1392_v52 = vpop.f32.mrb[19].mxu0  ;;  %v887_v53 = vadd.f32 %v1297_v46, %v876_v47 }
 0x38f   : > { %v767_v54 = vpop.f32.mrb[16].mxu1  ;;  %v895_v55 = vsel %vm168_vm1, %v887_v53, -inf  ;;  %v888_v56 = vadd.f32 %v1298_v50, %v877_v51 }
 0x390   : > { %v878_v57 = vmul.f32 0.25, %v767_v54  ;;  %v1397_v58 = vpop.f32.mrb[17].mxu1  ;;  %896 = vmax.xlane.f32.xlu0 %v895_v55 }
 0x391   : > { %v770_v59 = vpop.f32.mrb[18].mxu1  ;;  %v898_v60 = vsel %vm168_vm1, %v888_v56, -inf }
 0x392   : > { %v879_v61 = vmul.f32 0.25, %v770_v59  ;;  %v1398_v62 = vpop.f32.mrb[19].mxu1  ;;  %899 = vmax.xlane.f32.xlu1 %v898_v60  ;;  %v818_v63 = vpop.f32.mrb[20].mxu0  ;;  %v889_v1 = vadd.f32 %v1297_v46, %v878_v57 }
 0x393   : > { %v880_v2 = vmul.f32 0.25, %v818_v63  ;;  %v1403_v3 = vpop.f32.mrb[21].mxu0 }
 0x394   : > { %v901_v5 = vsel %vm168_vm1, %v889_v1, -inf  ;;  %v821_v6 = vpop.f32.mrb[22].mxu0  ;;  %v890_v7 = vadd.f32 %v1298_v50, %v879_v61 }
 0x395   : > { %902 = vmax.xlane.f32.xlu0 %v901_v5  ;;  %v881_v9 = vmul.f32 0.25, %v821_v6  ;;  %v1404_v10 = vpop.f32.mrb[23].mxu0  ;;  %v891_v13 = vadd.f32 %v1297_v46, %v880_v2 }
 0x396   : > { %v904_v18 = vsel %vm168_vm1, %v890_v7, -inf }
 0x397   : > { %v869_v14 = vpop.f32.mrb[20].mxu1  ;;  %v907_v15 = vsel %vm168_vm1, %v891_v13, -inf  ;;  %v892_v19 = vadd.f32 %v1298_v50, %v881_v9 }
 0x398   : > { %v882_v16 = vmul.f32 0.25, %v869_v14  ;;  %v1409_v17 = vpop.f32.mrb[21].mxu1  ;;  %908 = vmax.xlane.f32.xlu1 %v907_v15 }
 0x399   : > { %905 = vmax.xlane.f32.xlu0 %v904_v18  ;;  %v872_v20 = vpop.f32.mrb[22].mxu1  ;;  %v910_v25 = vsel %vm168_vm1, %v892_v19, -inf }
 0x39a   : > { %v883_v21 = vmul.f32 0.25, %v872_v20  ;;  %v1410_v22 = vpop.f32.mrb[23].mxu1  ;;  %v893_v23 = vadd.f32 %v1297_v46, %v882_v16 }
 0x39c   : > { %v913_v24 = vsel %vm168_vm1, %v893_v23, -inf  ;;  %v894_v26 = vadd.f32 %v1298_v50, %v883_v21 }
 0x39d   : > { %914 = vmax.xlane.f32.xlu1 %v913_v24  ;;  %911 = vmax.xlane.f32.xlu0 %v910_v25 }
 0x39e   : > { %v916_v27 = vsel %vm168_vm1, %v894_v26, -inf }
 0x3a1   : > { %917 = vmax.xlane.f32.xlu0 %v916_v27 }
 0x3ae   : > { %987 = vrot.lane.b32.xlu1 %v1568_v4, %s1529_s3 }
 0x41d   : > { %v897_v28 = vpop.xlane.xlu0 %896 }
 0x41e   : > { %v919_v29 = vsub.f32 %v887_v53, %v897_v28 }
 0x41f   : > { %v900_v30 = vpop.xlane.xlu1 %899 }
 0x420   : > { %v927_v31 = vmul.f32 1.442695, %v919_v29  ;;  %v920_v32 = vsub.f32 %v888_v56, %v900_v30 }
 0x422   : > { %1483 = vpow2.f32 %v927_v31  ;;  %v929_v33 = vmul.f32 1.442695, %v920_v32  ;;  %v903_v34 = vpop.xlane.xlu0 %902 }
 0x423   : > { %v921_v35 = vsub.f32 %v889_v1, %v903_v34 }
 0x424   : > { %1485 = vpow2.f32 %v929_v33 }
 0x425   : > { %v931_v36 = vmul.f32 1.442695, %v921_v35  ;;  %v909_v37 = vpop.xlane.xlu1 %908 }
 0x426   : > { %v923_v38 = vsub.f32 %v891_v13, %v909_v37  ;;  %v906_v39 = vpop.xlane.xlu0 %905 }
 0x427   : > { %1487 = vpow2.f32 %v931_v36  ;;  %v922_v40 = vsub.f32 %v890_v7, %v906_v39 }
 0x428   : > { %v935_v41 = vmul.f32 1.442695, %v923_v38 }
 0x429   : > { %v933_v42 = vmul.f32 1.442695, %v922_v40 }
 0x42a   : > { %1489 = vpow2.f32 %v935_v41  ;;  %v915_v4 = vpop.xlane.xlu1 %914  ;;  %v912_v43 = vpop.xlane.xlu0 %911 }
 0x42b   : > { %1491 = vpow2.f32 %v933_v42  ;;  %v925_v44 = vsub.f32 %v893_v23, %v915_v4  ;;  %v924_v45 = vsub.f32 %v892_v19, %v912_v43 }
 0x42c   : > { %v1484_v46 = vpop.eup %1483 }
 0x42d   : > { %v939_v47 = vmul.f32 1.442695, %v925_v44  ;;  %v937_v48 = vmul.f32 1.442695, %v924_v45  ;;  %v943_v49 = vsel %vm168_vm1, %v1484_v46, 0.0 }
 0x42e   : > { %v1486_v50 = vpop.eup %1485  ;;  %v918_v51 = vpop.xlane.xlu0 %917  ;;  %944 = vadd.xlane.f32.xlu1 %v943_v49 }
 0x42f   : > { %v988_v52 = vpop.permute.xlu1 %987  ;;  %1493 = vpow2.f32 %v939_v47  ;;  %v926_v53 = vsub.f32 %v894_v26, %v918_v51  ;;  %v946_v54 = vsel %vm168_vm1, %v1486_v50, 0.0 }
 0x430   : > { %1412 = vmatpush3.bf16.msra.mxu0 %v988_v52  ;;  %1495 = vpow2.f32 %v937_v48  ;;  %947 = vadd.xlane.f32.xlu0 %v946_v54 }
 0x431   : > { %1423 = vmatprep.subr.bf16.mxu0 %v1523_v0  ;;  %v1488_v55 = vpop.eup %1487  ;;  %v941_v56 = vmul.f32 1.442695, %v926_v53 }
 0x432   : > { %v949_v57 = vsel %vm168_vm1, %v1488_v55, 0.0 }
 0x433   : > { %1497 = vpow2.f32 %v941_v56  ;;  %950 = vadd.xlane.f32.xlu1 %v949_v57 }
 0x434   : > { %v1490_v58 = vpop.eup %1489 }
 0x435   : > { %v1492_v59 = vpop.eup %1491  ;;  %v955_v60 = vsel %vm168_vm1, %v1490_v58, 0.0 }
 0x436   : > { %v952_v61 = vsel %vm168_vm1, %v1492_v59, 0.0 }
 0x437   : > { %956 = vadd.xlane.f32.xlu1 %v955_v60  ;;  %953 = vadd.xlane.f32.xlu0 %v952_v61 }
 0x439   : > { %v1494_v62 = vpop.eup %1493 }
 0x43a   : > { %v1496_v63 = vpop.eup %1495  ;;  %v961_v1 = vsel %vm168_vm1, %v1494_v62, 0.0 }
 0x43b   : > { %962 = vadd.xlane.f32.xlu1 %v961_v1  ;;  %v958_v2 = vsel %vm168_vm1, %v1496_v63, 0.0 }
 0x43c   : > { %959 = vadd.xlane.f32.xlu0 %v958_v2 }
 0x43d   : > { %v1498_v3 = vpop.eup %1497 }
 0x43e   : > { %v964_v5 = vsel %vm168_vm1, %v1498_v3, 0.0 }
 0x440   : > { %965 = vadd.xlane.f32.xlu0 %v964_v5 }
 0x44c   : > { %1081 = vrot.lane.b32.xlu1 %v1570_v8, %s1529_s3 }
 0x450   : > { %1128 = vrot.lane.b32.xlu1 %v1576_v12, %s1529_s3 }
 0x456   : > { %1034 = vrot.lane.b32.xlu0 %v1573_v11, %s1529_s3 }
 0x4bb   : > { %v945_v6 = vpop.xlane.xlu1 %944 }
 0x4bc   : > { %1499 = vrcp.f32 %v945_v6 }
 0x4bd   : > { %v948_v7 = vpop.xlane.xlu0 %947 }
 0x4be   : > { %1501 = vrcp.f32 %v948_v7 }
 0x4c0   : > { %v951_v9 = vpop.xlane.xlu1 %950 }
 0x4c1   : > { %1503 = vrcp.f32 %v951_v9 }
 0x4c4   : > { %v957_v10 = vpop.xlane.xlu1 %956  ;;  %v954_v13 = vpop.xlane.xlu0 %953 }
 0x4c5   : > { %1505 = vrcp.f32 %v954_v13 }
 0x4c6   : > { %v1500_v14 = vpop.eup %1499  ;;  %1507 = vrcp.f32 %v957_v10 }
 0x4c7   : > { %v975_v8 = vmul.f32 %v1500_v14, %v1484_v46 }
 0x4c8   : > { %v1502_v15 = vpop.eup %1501  ;;  %v963_v16 = vpop.xlane.xlu1 %962 }
 0x4c9   : > { %v976_v17 = vmul.f32 %v1502_v15, %v1486_v50  ;;  %v960_v18 = vpop.xlane.xlu0 %959 }
 0x4ca   : > { %1509 = vrcp.f32 %v960_v18 }
 0x4cb   : > { %v983_v12 = vpack.c.bf16 %v976_v17, %v975_v8  ;;  %1511 = vrcp.f32 %v963_v16  ;;  %v1504_v20 = vpop.eup %1503 }
 0x4cc   : > { %v1082_v11 = vpop.permute.xlu1 %1081  ;;  %v977_v22 = vmul.f32 %v1504_v20, %v1488_v55 }
 0x4cd   : > { %v966_v19 = vpop.xlane.xlu0 %965  ;;  %1414 = vmatmul.mubr.msk.bf16.vlgmr.msra.gmra.mrb[24].mxu0 %vm168_vm1, %v983_v12 }
 0x4ce   : > { %1513 = vrcp.f32 %v966_v19  ;;  %1424 = vmatpush3.bf16.msra.mxu0 %v1082_v11  ;;  %1425 = vmatprep.mubr.msk.bf16.mxu0 %vm1524_vm0, %v1523_v0 }
 0x4cf   : > { %v1506_v21 = vpop.eup %1505 }
 0x4d0   : > { %v978_v23 = vmul.f32 %v1506_v21, %v1492_v59  ;;  %v1508_v25 = vpop.eup %1507  ;;  %v1129_v27 = vpop.permute.xlu1 %1128 }
 0x4d1   : > { %v1035_v24 = vpop.permute.xlu0 %1034  ;;  %v979_v29 = vmul.f32 %v1508_v25, %v1490_v58 }
 0x4d2   : > { %1418 = vmatpush3.bf16.msra.mxu1 %v1035_v24  ;;  %v984_v26 = vpack.c.bf16 %v978_v23, %v977_v22 }
 0x4d3   : > { %1429 = vmatprep.subr.bf16.mxu1 %v1523_v0 }
 0x4d4   : > { %v1510_v28 = vpop.eup %1509 }
 0x4d5   : > { %v980_v30 = vmul.f32 %v1510_v28, %v1496_v63  ;;  %1420 = vmatmul.mubr.msk.bf16.vlgmr.msra.gmra.mrb[24].mxu1 %vm168_vm1, %v984_v26  ;;  %v1512_v31 = vpop.eup %1511 }
 0x4d6   : > { %1430 = vmatpush3.bf16.msra.mxu1 %v1129_v27  ;;  %1431 = vmatprep.mubr.msk.bf16.mxu1 %vm1524_vm0, %v1523_v0  ;;  %v981_v34 = vmul.f32 %v1512_v31, %v1494_v62 }
 0x4d7   : > { %v985_v32 = vpack.c.bf16 %v980_v30, %v979_v29 }
 0x4d8   : > { %v1514_v33 = vpop.eup %1513 }
 0x4d9   : > { %v982_v35 = vmul.f32 %v1514_v33, %v1498_v3  ;;  %1426 = vmatmul.mubr.msk.bf16.vlgmr.msra.gmra.mrb[28].mxu0 %vm168_vm1, %v985_v32 }
 0x4db   : > { %v986_v36 = vpack.c.bf16 %v982_v35, %v981_v34 }
 0x4dd   : > { %1432 = vmatmul.mubr.msk.bf16.vlgmr.msra.gmra.mrb[28].mxu1 %vm168_vm1, %v986_v36 }
 0x5a0   : > { %v1027_v37 = vpop.f32.mrb[24].mxu0 }
 0x5a1   : > { %1183 = vrot.lane.b32.xlu0 %v1027_v37, %s1530_s4  ;;  %v1415_v38 = vpop.f32.mrb[25].mxu0 }
 0x5a2   : > { %v1030_v39 = vpop.f32.mrb[26].mxu0 }
 0x5a3   : > { %1185 = vrot.lane.b32.xlu1 %v1030_v39, %s1530_s4  ;;  %v1416_v40 = vpop.f32.mrb[27].mxu0 }
 0x5a8   : > { %v1074_v41 = vpop.f32.mrb[24].mxu1 }
 0x5a9   : > { %1187 = vrot.lane.b32.xlu0 %v1074_v41, %s1530_s4  ;;  %v1421_v42 = vpop.f32.mrb[25].mxu1 }
 0x5aa   : > { %v1077_v0 = vpop.f32.mrb[26].mxu1 }
 0x5ab   : > { %1189 = vrot.lane.b32.xlu1 %v1077_v0, %s1530_s4  ;;  %v1422_v4 = vpop.f32.mrb[27].mxu1 }
 0x5ac   : > { %v1121_v43 = vpop.f32.mrb[28].mxu0 }
 0x5ad   : > { %v1427_v44 = vpop.f32.mrb[29].mxu0  ;;  %1191 = vrot.lane.b32.xlu0 %v1121_v43, %s1530_s4 }
 0x5ae   : > { %v1124_v45 = vpop.f32.mrb[30].mxu0 }
 0x5af   : > { %v1428_v46 = vpop.f32.mrb[31].mxu0  ;;  %1193 = vrot.lane.b32.xlu1 %v1124_v45, %s1530_s4 }
 0x5b0   : > { %v1168_v47 = vpop.f32.mrb[28].mxu1 }
 0x5b1   : > { %1195 = vrot.lane.b32.xlu0 %v1168_v47, %s1530_s4  ;;  %v1433_v48 = vpop.f32.mrb[29].mxu1 }
 0x5b2   : > { %v1171_v49 = vpop.f32.mrb[30].mxu1 }
 0x5b3   : > { %1197 = vrot.lane.b32.xlu1 %v1171_v49, %s1530_s4  ;;  %v1434_v50 = vpop.f32.mrb[31].mxu1 }
 0x613   : > { %v1184_v51 = vpop.permute.xlu0 %1183 }
 0x614   : > { %1208 = vst.msk [vmem:[%s1691_s26] sm:$0xff] %vm1207_vm2, %v1184_v51 }
 0x615   : > { %v1186_v52 = vpop.permute.xlu1 %1185 }
 0x616   : > { %1209 = vst.msk [vmem:[%s1691_s26 + $0x8] sm:$0xff] %vm1207_vm2, %v1186_v52 }
 0x61b   : > { %v1188_v53 = vpop.permute.xlu0 %1187 }
 0x61c   : > { %1210 = vst.msk [vmem:[%s1691_s26 + $0x10] sm:$0xff] %vm1207_vm2, %v1188_v53 }
 0x61d   : > { %v1190_v54 = vpop.permute.xlu1 %1189 }
 0x61e   : > { %1211 = vst.msk [vmem:[%s1691_s26 + $0x18] sm:$0xff] %vm1207_vm2, %v1190_v54 }
 0x61f   : > { %v1192_v55 = vpop.permute.xlu0 %1191 }
 0x620   : > { %1212 = vst.msk [vmem:[%s1691_s26 + $0x20] sm:$0xff] %vm1207_vm2, %v1192_v55 }
 0x621   : > { %v1194_v56 = vpop.permute.xlu1 %1193 }
 0x622   : > { %1213 = vst.msk [vmem:[%s1691_s26 + $0x28] sm:$0xff] %vm1207_vm2, %v1194_v56 }
 0x623   : > { %v1196_v57 = vpop.permute.xlu0 %1195 }
 0x624   : > { %1214 = vst.msk [vmem:[%s1691_s26 + $0x30] sm:$0xff] %vm1207_vm2, %v1196_v57 }
 0x625   : > { %v1198_v58 = vpop.permute.xlu1 %1197 }
 0x626   : > { %1215 = vst.msk [vmem:[%s1691_s26 + $0x38] sm:$0xff] %vm1207_vm2, %v1198_v58 }
 0x627 PF: > { %s12_s9 = sadd.s32 1, %s1521_s9  }
 0x628   : > { %p9_p4 = scmp.ge.s32.totalorder %s12_s9, 4  }
 0x62a   :  { %11 = sbr.rel (!%p9_p4) target bundleno = 1 (0x1), region = 59 }

// kernel: swin_forward.27
= control target key start
LH: loop header
LB: loop body
LE: loop exit
PB: predicated region body
PF: predicated region fallthrough
CT: control target
= control target key end

     0   :  { %s721_s18 = smov 0   ;;  %s892_s0 = inlined_call_operand.vmem [shape: f32[128,32], index: 0, kind: input, shape index: {}]   ;;  %s893_s1 = inlined_call_operand.vmem [shape: f32[32,128], index: 1, kind: input, shape index: {}]   ;;  %s894_s2 = inlined_call_operand.vmem [shape: f32[1,32], index: 2, kind: input, shape index: {}]   ;;  %s895_s3 = inlined_call_operand.vmem [shape: f32[1,32], index: 3, kind: input, shape index: {}]   ;;  %s896_s4 = inlined_call_operand.vmem [shape: f32[1,128], index: 4, kind: input, shape index: {}]   ;;  %s897_s5 = inlined_call_operand.vmem [shape: f32[128,128], index: 5, kind: output, shape index: {}]  }
   0x1 LB: > { %s603_s19 = sadd.s32 4294967295, %s689_s18   ;;  %p607_p0 = scmp.ge.s32.totalorder %s689_s18, 1  ;;  %s689_s18 = sphi %s721_s18, %s15_s18  }
   0x2   : > { %p188_p1 = scmp.lt.s32.totalorder %s689_s18, 3 }
   0x4   : > { %p189_p2 = pnand %p607_p0, %p188_p1 }
   0x5   : > { %s608_s20 = sshll.u32 (!%p189_p2), %s603_s19, 3  ;;  %vm239_vm0 = vcmask (!%p189_p2), 261120   ;;  %v377_v56 = vld [vmem:[%s893_s1] sm:$0xff] (!%p189_p2)  ;;  %v378_v57 = vld [vmem:[%s893_s1 + $0x8] sm:$0xff] (!%p189_p2)  ;;  %v379_v59 = vld [vmem:[%s893_s1 + $0x10] sm:$0xff] (!%p189_p2) }
   0x6   : > { %192 = sbr.rel (%p189_p2) target bundleno = 591 (0x24f), region = 40  ;;  %p217_p3 = scmp.lt.s32.totalorder (!%p189_p2), %s608_s20, 15  ;;  %v381_v58 = vpack.c.bf16 (!%p189_p2), %v378_v57, %v377_v56  ;;  %v380_v60 = vld [vmem:[%s893_s1 + $0x18] sm:$0xff] (!%p189_p2) }
   0x7   : > { %v382_v61 = vpack.c.bf16 (!%p189_p2), %v380_v60, %v379_v59 }
   0x8   : > { %627 = vmatprep.subr.bf16.mxu0 (!%p189_p2), %v381_v58  ;;  %639 = vmatprep.subr.bf16.mxu1 (!%p189_p2), %v381_v58 }
   0x9   : > { %628 = vmatpush3.bf16.msra.mxu0 (!%p189_p2), %v381_v58  ;;  %641 = vmatpush3.bf16.msra.mxu1 (!%p189_p2), %v381_v58 }
   0xa   : > { %629 = vmatprep.subr.bf16.mxu0 (!%p189_p2), %v382_v61  ;;  %640 = vmatprep.subr.bf16.mxu1 (!%p189_p2), %v382_v61 }
   0xd   : > { %s899_s20 = smov (!%p217_p3, %s608_s20), 15  ;;  %630 = vmatpush3.bf16.msra.mxu0 %v382_v61  ;;  %642 = vmatpush3.bf16.msra.mxu1 %v382_v61 }
   0xe   : > { %s609_s21 = sshll.u32 %s899_s20, 3 }
   0xf   : > { %s220_s24 = scalar_lea.vmem %s892_s0, %s609_s21  ;;  %s872_s16 = scalar_lea.vmem %s897_s5, %s609_s21 }
  0x10   : > { %v229_v0 = vld [vmem:[%s220_s24] sm:$0xff]  ;;  %v230_v2 = vld [vmem:[%s220_s24 + $0x8] sm:$0xff]  ;;  %v231_v8 = vld [vmem:[%s220_s24 + $0x10] sm:$0xff] }
  0x11   : > { %v233_v1 = vld [vmem:[%s220_s24 + $0x20] sm:$0xff]  ;;  %v240_v3 = vsel %vm239_vm0, %v229_v0, 0.0  ;;  %v234_v5 = vld [vmem:[%s220_s24 + $0x28] sm:$0xff]  ;;  %v243_v6 = vsel %vm239_vm0, %v230_v2, 0.0  ;;  %v232_v9 = vld [vmem:[%s220_s24 + $0x18] sm:$0xff]  ;;  %v246_v10 = vsel %vm239_vm0, %v231_v8, 0.0 }
  0x12   : > { %v252_v4 = vsel %vm239_vm0, %v233_v1, 0.0  ;;  %241 = vadd.xlane.f32.xlu0 %v240_v3  ;;  %v255_v7 = vsel %vm239_vm0, %v234_v5, 0.0  ;;  %v249_v11 = vsel %vm239_vm0, %v232_v9, 0.0  ;;  %v235_v12 = vld [vmem:[%s220_s24 + $0x30] sm:$0xff]  ;;  %v236_v13 = vld [vmem:[%s220_s24 + $0x38] sm:$0xff] }
  0x13   : > { %253 = vadd.xlane.f32.xlu1 %v252_v4  ;;  %v258_v14 = vsel %vm239_vm0, %v235_v12, 0.0  ;;  %v261_v15 = vsel %vm239_vm0, %v236_v13, 0.0 }
  0x16   : > { %244 = vadd.xlane.f32.xlu0 %v243_v6 }
  0x17   : > { %256 = vadd.xlane.f32.xlu1 %v255_v7 }
  0x1a   : > { %247 = vadd.xlane.f32.xlu0 %v246_v10 }
  0x1b   : > { %250 = vadd.xlane.f32.xlu1 %v249_v11 }
  0x1e   : > { %259 = vadd.xlane.f32.xlu0 %v258_v14 }
  0x1f   : > { %262 = vadd.xlane.f32.xlu1 %v261_v15 }
  0x9f   : > { %v242_v16 = vpop.xlane.xlu0 %241 }
  0xa0   : > { %v254_v17 = vpop.xlane.xlu1 %253  ;;  %v265_v18 = vmul.f32 0.03125, %v242_v16 }
  0xa1   : > { %v269_v19 = vmul.f32 0.03125, %v254_v17 }
  0xa2   : > { %v745_v20 = vsub.f32 %v229_v0, %v265_v18 }
  0xa3   : > { %v747_v21 = vsub.f32 %v233_v1, %v269_v19  ;;  %v245_v22 = vpop.xlane.xlu0 %244 }
  0xa4   : > { %v257_v23 = vpop.xlane.xlu1 %256  ;;  %v266_v24 = vmul.f32 0.03125, %v245_v22  ;;  %v281_v26 = vmul.f32 %v745_v20, %v745_v20 }
  0xa5   : > { %v270_v25 = vmul.f32 0.03125, %v257_v23  ;;  %v285_v27 = vmul.f32 %v747_v21, %v747_v21 }
  0xa6   : > { %v753_v28 = vsub.f32 %v230_v2, %v266_v24  ;;  %v289_v30 = vsel %vm239_vm0, %v281_v26, 0.0 }
  0xa7   : > { %v755_v29 = vsub.f32 %v234_v5, %v270_v25  ;;  %290 = vadd.xlane.f32.xlu0 %v289_v30  ;;  %v248_v31 = vpop.xlane.xlu0 %247  ;;  %v301_v33 = vsel %vm239_vm0, %v285_v27, 0.0  ;;  %v612_v25 = vld [vmem:[%s894_s2] ss:$0 sm:$0xff] }
  0xa8   : > { %v251_v32 = vpop.xlane.xlu1 %250  ;;  %v267_v34 = vmul.f32 0.03125, %v248_v31  ;;  %v282_v36 = vmul.f32 %v753_v28, %v753_v28 }
  0xa9   : > { %v268_v35 = vmul.f32 0.03125, %v251_v32  ;;  %v286_v37 = vmul.f32 %v755_v29, %v755_v29 }
  0xaa   : > { %v763_v38 = vsub.f32 %v231_v8, %v267_v34  ;;  %v292_v40 = vsel %vm239_vm0, %v282_v36, 0.0 }
  0xab   : > { %v765_v39 = vsub.f32 %v232_v9, %v268_v35  ;;  %302 = vadd.xlane.f32.xlu0 %v301_v33  ;;  %293 = vadd.xlane.f32.xlu1 %v292_v40  ;;  %v260_v41 = vpop.xlane.xlu0 %259  ;;  %v304_v43 = vsel %vm239_vm0, %v286_v37, 0.0  ;;  %v613_v33 = vld [vmem:[%s895_s3] ss:$0 sm:$0xff] }
  0xac   : > { %v263_v42 = vpop.xlane.xlu1 %262  ;;  %v271_v44 = vmul.f32 0.03125, %v260_v41  ;;  %v283_v46 = vmul.f32 %v763_v38, %v763_v38 }
  0xad   : > { %v272_v45 = vmul.f32 0.03125, %v263_v42  ;;  %v284_v47 = vmul.f32 %v765_v39, %v765_v39 }
  0xae   : > { %v773_v48 = vsub.f32 %v235_v12, %v271_v44  ;;  %v295_v50 = vsel %vm239_vm0, %v283_v46, 0.0 }
  0xaf   : > { %v775_v49 = vsub.f32 %v236_v13, %v272_v45  ;;  %305 = vadd.xlane.f32.xlu1 %v304_v43  ;;  %296 = vadd.xlane.f32.xlu0 %v295_v50  ;;  %v298_v51 = vsel %vm239_vm0, %v284_v47, 0.0 }
  0xb0   : > { %v287_v52 = vmul.f32 %v773_v48, %v773_v48 }
  0xb1   : > { %v288_v53 = vmul.f32 %v775_v49, %v775_v49 }
  0xb2   : > { %v307_v54 = vsel %vm239_vm0, %v287_v52, 0.0 }
  0xb3   : > { %299 = vadd.xlane.f32.xlu1 %v298_v51  ;;  %308 = vadd.xlane.f32.xlu0 %v307_v54  ;;  %v310_v55 = vsel %vm239_vm0, %v288_v53, 0.0 }
  0xb7   : > { %311 = vadd.xlane.f32.xlu1 %v310_v55 }
 0x134   : > { %v291_v62 = vpop.xlane.xlu0 %290 }
 0x135   : > { %v313_v63 = vmul.f32 0.03125, %v291_v62 }
 0x137   : > { %v321_v0 = vadd.f32 1e-05, %v313_v63 }
 0x138   : > { %v294_v1 = vpop.xlane.xlu1 %293  ;;  %v303_v2 = vpop.xlane.xlu0 %302 }
 0x139   : > { %651 = vrsqrt.f32 %v321_v0  ;;  %v314_v3 = vmul.f32 0.03125, %v294_v1  ;;  %v317_v4 = vmul.f32 0.03125, %v303_v2 }
 0x13b   : > { %v322_v5 = vadd.f32 1e-05, %v314_v3  ;;  %v325_v6 = vadd.f32 1e-05, %v317_v4 }
 0x13c   : > { %v306_v7 = vpop.xlane.xlu1 %305  ;;  %v297_v8 = vpop.xlane.xlu0 %296 }
 0x13d   : > { %653 = vrsqrt.f32 %v322_v5  ;;  %v318_v9 = vmul.f32 0.03125, %v306_v7  ;;  %v315_v10 = vmul.f32 0.03125, %v297_v8 }
 0x13e   : > { %655 = vrsqrt.f32 %v325_v6 }
 0x13f   : > { %v326_v11 = vadd.f32 1e-05, %v318_v9  ;;  %v323_v12 = vadd.f32 1e-05, %v315_v10 }
 0x140   : > { %v300_v13 = vpop.xlane.xlu1 %299  ;;  %v309_v14 = vpop.xlane.xlu0 %308 }
 0x141   : > { %657 = vrsqrt.f32 %v326_v11  ;;  %v316_v15 = vmul.f32 0.03125, %v300_v13  ;;  %v319_v16 = vmul.f32 0.03125, %v309_v14 }
 0x142   : > { %659 = vrsqrt.f32 %v323_v12 }
 0x143   : > { %v652_v17 = vpop.eup %651  ;;  %v324_v18 = vadd.f32 1e-05, %v316_v15  ;;  %v327_v19 = vadd.f32 1e-05, %v319_v16 }
 0x144   : > { %v312_v22 = vpop.xlane.xlu1 %311  ;;  %v337_v23 = vmul.f32 %v652_v17, %v745_v20 }
 0x145   : > { %661 = vrsqrt.f32 %v324_v18  ;;  %v320_v24 = vmul.f32 0.03125, %v312_v22 }
 0x146   : > { %663 = vrsqrt.f32 %v327_v19  ;;  %v351_v32 = vmul.f32 %v612_v25, %v337_v23 }
 0x147   : > { %v654_v26 = vpop.eup %653  ;;  %v328_v27 = vadd.f32 1e-05, %v320_v24 }
 0x148   : > { %v656_v30 = vpop.eup %655  ;;  %v338_v31 = vmul.f32 %v654_v26, %v753_v28  ;;  %v365_v37 = vadd.f32 %v613_v33, %v351_v32 }
 0x149   : > { %665 = vrsqrt.f32 %v328_v27  ;;  %v341_v20 = vmul.f32 %v656_v30, %v747_v21 }
 0x14a   : > { %v352_v34 = vmul.f32 %v612_v25, %v338_v31 }
 0x14b   : > { %v658_v35 = vpop.eup %657  ;;  %v355_v42 = vmul.f32 %v612_v25, %v341_v20 }
 0x14c   : > { %v660_v36 = vpop.eup %659  ;;  %v366_v40 = vadd.f32 %v613_v33, %v352_v34  ;;  %v342_v41 = vmul.f32 %v658_v35, %v755_v29 }
 0x14d   : > { %v339_v43 = vmul.f32 %v660_v36, %v763_v38  ;;  %v369_v50 = vadd.f32 %v613_v33, %v355_v42 }
 0x14e   : > { %v373_v44 = vpack.c.bf16 %v366_v40, %v365_v37  ;;  %v356_v28 = vmul.f32 %v612_v25, %v342_v41 }
 0x14f   : > { %v662_v45 = vpop.eup %661  ;;  %v353_v51 = vmul.f32 %v612_v25, %v339_v43 }
 0x150   : > { %v664_v46 = vpop.eup %663  ;;  %v340_v47 = vmul.f32 %v662_v45, %v765_v39  ;;  %631 = vmatprep.mubr.msk.bf16.mxu0 %vm239_vm0, %v373_v44  ;;  %v370_v21 = vadd.f32 %v613_v33, %v356_v28 }
 0x151   : > { %v343_v52 = vmul.f32 %v664_v46, %v773_v48  ;;  %v367_v38 = vadd.f32 %v613_v33, %v353_v51  ;;  %v614_v48 = vld [vmem:[%s896_s4] ss:$0 sm:$0xff] }
 0x152   : > { %v375_v53 = vpack.c.bf16 %v370_v21, %v369_v50  ;;  %v354_v54 = vmul.f32 %v612_v25, %v340_v47 }
 0x153   : > { %v666_v55 = vpop.eup %665  ;;  %v357_v57 = vmul.f32 %v612_v25, %v343_v52 }
 0x154   : > { %v344_v29 = vmul.f32 %v666_v55, %v775_v49  ;;  %635 = vmatprep.mubr.msk.bf16.mxu1 %vm239_vm0, %v375_v53  ;;  %v368_v56 = vadd.f32 %v613_v33, %v354_v54 }
 0x155   : > { %v371_v39 = vadd.f32 %v613_v33, %v357_v57 }
 0x156   : > { %v374_v58 = vpack.c.bf16 %v368_v56, %v367_v38  ;;  %v358_v59 = vmul.f32 %v612_v25, %v344_v29 }
 0x158   : > { %632 = vmatmul.mubr.msk.bf16.vlgmr.msra.gmra.mrb[0].mxu0 %vm239_vm0, %v374_v58  ;;  %v372_v60 = vadd.f32 %v613_v33, %v358_v59 }
 0x15a   : > { %v376_v61 = vpack.c.bf16 %v372_v60, %v371_v39 }
 0x15c   : > { %636 = vmatmul.mubr.msk.bf16.vlgmr.msra.gmra.mrb[0].mxu1 %vm239_vm0, %v376_v61 }
 0x22b   : > { %v633_v62 = vpop.f32.mrb[0].mxu0 }
 0x22c   : > { %v818_v49 = vadd.f32 %v633_v62, %v614_v48  ;;  %v436_v63 = vpop.f32.mrb[1].mxu0 }
 0x22d   : > { %v820_v0 = vadd.f32 %v614_v48, %v436_v63  ;;  %v634_v1 = vpop.f32.mrb[2].mxu0 }
 0x22e   : > { %v477_v2 = vmul.f32 0.044715, %v818_v49  ;;  %v823_v3 = vadd.f32 %v634_v1, %v614_v48  ;;  %v439_v4 = vpop.f32.mrb[3].mxu0  ;;  %v469_v58 = vmul.f32 0.5, %v818_v49 }
 0x22f   : > { %v475_v5 = vmul.f32 0.044715, %v820_v0  ;;  %v826_v6 = vadd.f32 %v614_v48, %v439_v4  ;;  %v637_v7 = vpop.f32.mrb[0].mxu1  ;;  %v467_v60 = vmul.f32 0.5, %v820_v0 }
 0x230   : > { %v485_v8 = vmul.f32 %v477_v2, %v818_v49  ;;  %v478_v9 = vmul.f32 0.044715, %v823_v3  ;;  %v830_v10 = vadd.f32 %v637_v7, %v614_v48  ;;  %v452_v11 = vpop.f32.mrb[1].mxu1  ;;  %v470_v63 = vmul.f32 0.5, %v823_v3 }
 0x231   : > { %v483_v12 = vmul.f32 %v475_v5, %v820_v0  ;;  %v476_v13 = vmul.f32 0.044715, %v826_v6  ;;  %v834_v14 = vadd.f32 %v614_v48, %v452_v11  ;;  %v638_v15 = vpop.f32.mrb[2].mxu1  ;;  %v468_v4 = vmul.f32 0.5, %v826_v6 }
 0x232   : > { %v493_v16 = vmul.f32 %v485_v8, %v818_v49  ;;  %v486_v17 = vmul.f32 %v478_v9, %v823_v3  ;;  %v481_v18 = vmul.f32 0.044715, %v830_v10  ;;  %v455_v19 = vpop.f32.mrb[3].mxu1  ;;  %v845_v30 = vadd.f32 %v638_v15, %v614_v48 }
 0x233   : > { %v491_v22 = vmul.f32 %v483_v12, %v820_v0  ;;  %v484_v23 = vmul.f32 %v476_v13, %v826_v6  ;;  %v479_v24 = vmul.f32 0.044715, %v834_v14  ;;  %v852_v36 = vadd.f32 %v614_v48, %v455_v19 }
 0x234   : > { %v501_v25 = vadd.f32 %v493_v16, %v818_v49  ;;  %v494_v26 = vmul.f32 %v486_v17, %v823_v3  ;;  %v489_v27 = vmul.f32 %v481_v18, %v830_v10  ;;  %v482_v42 = vmul.f32 0.044715, %v845_v30 }
 0x235   : > { %v499_v31 = vadd.f32 %v491_v22, %v820_v0  ;;  %v492_v32 = vmul.f32 %v484_v23, %v826_v6  ;;  %v487_v33 = vmul.f32 %v479_v24, %v834_v14  ;;  %v480_v50 = vmul.f32 0.044715, %v852_v36 }
 0x236   : > { %v509_v20 = vmul.f32 0.7978846, %v501_v25  ;;  %v502_v34 = vadd.f32 %v494_v26, %v823_v3  ;;  %v497_v35 = vmul.f32 %v489_v27, %v830_v10  ;;  %v490_v46 = vmul.f32 %v482_v42, %v845_v30 }
 0x237   : > { %v507_v37 = vmul.f32 0.7978846, %v499_v31  ;;  %v500_v40 = vadd.f32 %v492_v32, %v826_v6  ;;  %v495_v41 = vmul.f32 %v487_v33, %v834_v14  ;;  %v488_v52 = vmul.f32 %v480_v50, %v852_v36 }
 0x238   : > { %667 = vtanh.f32 %v509_v20  ;;  %v510_v43 = vmul.f32 0.7978846, %v502_v34  ;;  %v505_v44 = vadd.f32 %v497_v35, %v830_v10  ;;  %v498_v51 = vmul.f32 %v490_v46, %v845_v30 }
 0x239   : > { %669 = vtanh.f32 %v507_v37  ;;  %v508_v28 = vmul.f32 0.7978846, %v500_v40  ;;  %v503_v45 = vadd.f32 %v495_v41, %v834_v14  ;;  %v496_v54 = vmul.f32 %v488_v52, %v852_v36 }
 0x23a   : > { %671 = vtanh.f32 %v510_v43  ;;  %v513_v47 = vmul.f32 0.7978846, %v505_v44  ;;  %v506_v53 = vadd.f32 %v498_v51, %v845_v30  ;;  %v473_v8 = vmul.f32 0.5, %v830_v10 }
 0x23b   : > { %673 = vtanh.f32 %v508_v28  ;;  %v511_v21 = vmul.f32 0.7978846, %v503_v45  ;;  %v504_v29 = vadd.f32 %v496_v54, %v852_v36  ;;  %v471_v3 = vmul.f32 0.5, %v834_v14 }
 0x23c   : > { %675 = vtanh.f32 %v513_v47  ;;  %v514_v55 = vmul.f32 0.7978846, %v506_v53  ;;  %v474_v16 = vmul.f32 0.5, %v845_v30  ;;  %v472_v19 = vmul.f32 0.5, %v852_v36 }
 0x23d   : > { %677 = vtanh.f32 %v511_v21  ;;  %v512_v56 = vmul.f32 0.7978846, %v504_v29 }
 0x23e   : > { %679 = vtanh.f32 %v514_v55 }
 0x23f   : > { %681 = vtanh.f32 %v512_v56 }
 0x242   : > { %v668_v38 = vpop.eup %667 }
 0x243   : > { %v670_v57 = vpop.eup %669  ;;  %v525_v59 = vadd.f32 1.0, %v668_v38 }
 0x244   : > { %v672_v39 = vpop.eup %671  ;;  %v523_v61 = vadd.f32 1.0, %v670_v57 }
 0x245   : > { %v674_v48 = vpop.eup %673  ;;  %v533_v62 = vmul.f32 %v525_v59, %v469_v58  ;;  %v526_v49 = vadd.f32 1.0, %v672_v39 }
 0x246   : > { %v676_v1 = vpop.eup %675  ;;  %v531_v2 = vmul.f32 %v523_v61, %v467_v60  ;;  %v524_v5 = vadd.f32 1.0, %v674_v48 }
 0x247   : > { %v678_v7 = vpop.eup %677  ;;  %541 = vst [vmem:[%s872_s16 + $0x10] sm:$0xff] %v533_v62  ;;  %v534_v0 = vmul.f32 %v526_v49, %v470_v63  ;;  %v529_v9 = vadd.f32 1.0, %v676_v1 }
 0x248   : > { %539 = vst [vmem:[%s872_s16] sm:$0xff] %v531_v2  ;;  %v532_v11 = vmul.f32 %v524_v5, %v468_v4  ;;  %v527_v12 = vadd.f32 1.0, %v678_v7  ;;  %v680_v15 = vpop.eup %679 }
 0x249   : > { %542 = vst [vmem:[%s872_s16 + $0x18] sm:$0xff] %v534_v0  ;;  %v537_v13 = vmul.f32 %v529_v9, %v473_v8  ;;  %v530_v17 = vadd.f32 1.0, %v680_v15  ;;  %v682_v18 = vpop.eup %681 }
 0x24a   : > { %540 = vst [vmem:[%s872_s16 + $0x8] sm:$0xff] %v532_v11  ;;  %v535_v6 = vmul.f32 %v527_v12, %v471_v3  ;;  %v528_v22 = vadd.f32 1.0, %v682_v18 }
 0x24b   : > { %545 = vst [vmem:[%s872_s16 + $0x30] sm:$0xff] %v537_v13  ;;  %v538_v10 = vmul.f32 %v530_v17, %v474_v16 }
 0x24c   : > { %543 = vst [vmem:[%s872_s16 + $0x20] sm:$0xff] %v535_v6  ;;  %v536_v23 = vmul.f32 %v528_v22, %v472_v19 }
 0x24d   : > { %546 = vst [vmem:[%s872_s16 + $0x38] sm:$0xff] %v538_v10 }
 0x24e   : > { %544 = vst [vmem:[%s872_s16 + $0x28] sm:$0xff] %v536_v23 }
 0x24f PF: > { %s15_s18 = sadd.s32 1, %s689_s18  }
 0x250   : > { %p12_p4 = scmp.ge.s32.totalorder %s15_s18, 4  }
 0x252   :  { %14 = sbr.rel (!%p12_p4) target bundleno = 1 (0x1), region = 70 }

// kernel: swin_forward.28
= control target key start
LH: loop header
LB: loop body
LE: loop exit
PB: predicated region body
PF: predicated region fallthrough
CT: control target
= control target key end

     0   :  { %s448_s12 = smov 0   ;;  %s541_s0 = inlined_call_operand.vmem [shape: f32[128,128], index: 0, kind: input, shape index: {}]   ;;  %s542_s1 = inlined_call_operand.vmem [shape: f32[128,32], index: 1, kind: input, shape index: {}]   ;;  %s543_s2 = inlined_call_operand.vmem [shape: f32[1,32], index: 2, kind: input, shape index: {}]   ;;  %s544_s3 = inlined_call_operand.vmem [shape: f32[128,32], index: 3, kind: output, shape index: {}]  }
   0x1 LB: > { %s348_s13 = sadd.s32 4294967295, %s426_s12   ;;  %p352_p0 = scmp.ge.s32.totalorder %s426_s12, 1  ;;  %s426_s12 = sphi %s448_s12, %s13_s12  }
   0x2   : > { %p138_p1 = scmp.lt.s32.totalorder %s426_s12, 3 }
   0x4   : > { %p139_p2 = pnand %p352_p0, %p138_p1 }
   0x5   : > { %v187_v0 = vld [vmem:[%s542_s1] sm:$0xff] (!%p139_p2)  ;;  %v188_v1 = vld [vmem:[%s542_s1 + $0x8] sm:$0xff] (!%p139_p2)  ;;  %v189_v2 = vld [vmem:[%s542_s1 + $0x10] sm:$0xff] (!%p139_p2)  ;;  %s353_s20 = sshll.u32 (!%p139_p2), %s348_s13, 3  ;;  %vm283_vm0 = vcmask (!%p139_p2), 261120  }
   0x6   : > { %142 = sbr.rel (%p139_p2) target bundleno = 258 (0x102), region = 32  ;;  %v203_v3 = vpack.c.bf16 (!%p139_p2), %v188_v1, %v187_v0  ;;  %v190_v4 = vld [vmem:[%s542_s1 + $0x18] sm:$0xff] (!%p139_p2)  ;;  %p163_p3 = scmp.lt.s32.totalorder (!%p139_p2), %s353_s20, 15  ;;  %v191_v6 = vld [vmem:[%s542_s1 + $0x20] sm:$0xff] (!%p139_p2)  ;;  %v192_v7 = vld [vmem:[%s542_s1 + $0x28] sm:$0xff] (!%p139_p2) }
   0x7   : > { %v204_v5 = vpack.c.bf16 (!%p139_p2), %v190_v4, %v189_v2  ;;  %v205_v8 = vpack.c.bf16 (!%p139_p2), %v192_v7, %v191_v6  ;;  %v193_v9 = vld [vmem:[%s542_s1 + $0x30] sm:$0xff] (!%p139_p2)  ;;  %v194_v10 = vld [vmem:[%s542_s1 + $0x38] sm:$0xff] (!%p139_p2)  ;;  %v195_v18 = vld [vmem:[%s542_s1 + $0x40] sm:$0xff] (!%p139_p2) }
   0x8   : > { %372 = vmatprep.subr.bf16.mxu0 (!%p139_p2), %v203_v3  ;;  %396 = vmatprep.subr.bf16.mxu1 (!%p139_p2), %v203_v3  ;;  %v206_v16 = vpack.c.bf16 (!%p139_p2), %v194_v10, %v193_v9  ;;  %v196_v19 = vld [vmem:[%s542_s1 + $0x48] sm:$0xff] (!%p139_p2)  ;;  %v197_v21 = vld [vmem:[%s542_s1 + $0x50] sm:$0xff] (!%p139_p2)  ;;  %v198_v22 = vld [vmem:[%s542_s1 + $0x58] sm:$0xff] (!%p139_p2) }
   0x9   : > { %373 = vmatpush3.bf16.msra.mxu0 (!%p139_p2), %v203_v3  ;;  %404 = vmatpush3.bf16.msra.mxu1 (!%p139_p2), %v203_v3  ;;  %v207_v20 = vpack.c.bf16 (!%p139_p2), %v196_v19, %v195_v18  ;;  %v208_v23 = vpack.c.bf16 (!%p139_p2), %v198_v22, %v197_v21  ;;  %v199_v24 = vld [vmem:[%s542_s1 + $0x60] sm:$0xff] (!%p139_p2)  ;;  %v200_v25 = vld [vmem:[%s542_s1 + $0x68] sm:$0xff] (!%p139_p2)  ;;  %v201_v27 = vld [vmem:[%s542_s1 + $0x70] sm:$0xff] (!%p139_p2) }
   0xa   : > { %374 = vmatprep.subr.bf16.mxu0 (!%p139_p2), %v204_v5  ;;  %397 = vmatprep.subr.bf16.mxu1 (!%p139_p2), %v204_v5  ;;  %v209_v26 = vpack.c.bf16 (!%p139_p2), %v200_v25, %v199_v24  ;;  %v202_v28 = vld [vmem:[%s542_s1 + $0x78] sm:$0xff] (!%p139_p2)  ;;  %v357_v36 = vld [vmem:[%s543_s2] ss:$0 sm:$0xff] (!%p139_p2) }
   0xb   : > { %v210_v29 = vpack.c.bf16 (!%p139_p2), %v202_v28, %v201_v27 }
   0xd   : > { %s546_s20 = smov (!%p163_p3, %s353_s20), 15  ;;  %375 = vmatpush3.bf16.msra.mxu0 %v204_v5  ;;  %405 = vmatpush3.bf16.msra.mxu1 %v204_v5 }
   0xe   : > { %s354_s27 = sshll.u32 %s546_s20, 3  ;;  %376 = vmatprep.subr.bf16.mxu0 %v205_v8  ;;  %398 = vmatprep.subr.bf16.mxu1 %v205_v8 }
   0xf   : > { %s488_s7 = scalar_lea.vmem %s541_s0, %s354_s27  ;;  %s172_s4 = scalar_lea.vmem %s544_s3, %s354_s27 }
  0x10   : > { %v175_v11 = vld [vmem:[%s488_s7] sm:$0xff]  ;;  %v176_v12 = vld [vmem:[%s488_s7 + $0x8] sm:$0xff]  ;;  %v177_v30 = vld [vmem:[%s488_s7 + $0x10] sm:$0xff] }
  0x11   : > { %v179_v13 = vld [vmem:[%s488_s7 + $0x20] sm:$0xff]  ;;  %v183_v14 = vpack.c.bf16 %v176_v12, %v175_v11  ;;  %v180_v15 = vld [vmem:[%s488_s7 + $0x28] sm:$0xff]  ;;  %377 = vmatpush3.bf16.msra.mxu0 %v205_v8  ;;  %406 = vmatpush3.bf16.msra.mxu1 %v205_v8  ;;  %v178_v31 = vld [vmem:[%s488_s7 + $0x18] sm:$0xff] }
  0x12   : > { %v185_v17 = vpack.c.bf16 %v180_v15, %v179_v13  ;;  %378 = vmatprep.subr.bf16.mxu0 %v206_v16  ;;  %399 = vmatprep.subr.bf16.mxu1 %v206_v16  ;;  %v181_v32 = vld [vmem:[%s488_s7 + $0x30] sm:$0xff]  ;;  %v182_v33 = vld [vmem:[%s488_s7 + $0x38] sm:$0xff]  ;;  %v184_v34 = vpack.c.bf16 %v178_v31, %v177_v30 }
  0x13   : > { %388 = vmatprep.mubr.bf16.mxu0 %v183_v14  ;;  %v186_v35 = vpack.c.bf16 %v182_v33, %v181_v32 }
  0x14   : > { %392 = vmatprep.mubr.bf16.mxu1 %v185_v17 }
  0x15   : > { %379 = vmatpush3.bf16.msra.mxu0 %v206_v16  ;;  %407 = vmatpush3.bf16.msra.mxu1 %v206_v16 }
  0x16   : > { %380 = vmatprep.subr.bf16.mxu0 %v207_v20  ;;  %400 = vmatprep.subr.bf16.mxu1 %v207_v20 }
  0x19   : > { %381 = vmatpush3.bf16.msra.mxu0 %v207_v20  ;;  %408 = vmatpush3.bf16.msra.mxu1 %v207_v20 }
  0x1a   : > { %382 = vmatprep.subr.bf16.mxu0 %v208_v23  ;;  %401 = vmatprep.subr.bf16.mxu1 %v208_v23 }
  0x1d   : > { %383 = vmatpush3.bf16.msra.mxu0 %v208_v23  ;;  %409 = vmatpush3.bf16.msra.mxu1 %v208_v23 }
  0x1e   : > { %384 = vmatprep.subr.bf16.mxu0 %v209_v26  ;;  %402 = vmatprep.subr.bf16.mxu1 %v209_v26 }
  0x21   : > { %385 = vmatpush3.bf16.msra.mxu0 %v209_v26  ;;  %410 = vmatpush3.bf16.msra.mxu1 %v209_v26 }
  0x22   : > { %386 = vmatprep.subr.bf16.mxu0 %v210_v29  ;;  %403 = vmatprep.subr.bf16.mxu1 %v210_v29 }
  0x25   : > { %387 = vmatpush3.bf16.msra.mxu0 %v210_v29  ;;  %411 = vmatpush3.bf16.msra.mxu1 %v210_v29 }
  0x28   : > { %389 = vmatmul.mubr.bf16.vlgmr.msra.gmra.mrb[0].mxu0 %v184_v34  ;;  %393 = vmatmul.mubr.bf16.vlgmr.msra.gmra.mrb[0].mxu1 %v186_v35 }
  0xfb   : > { %v390_v37 = vpop.f32.mrb[0].mxu0  ;;  %v394_v38 = vpop.f32.mrb[0].mxu1 }
  0xfc   : > { %v261_v39 = vadd.f32 %v390_v37, %v357_v36  ;;  %v277_v40 = vadd.f32 %v394_v38, %v357_v36  ;;  %v252_v41 = vpop.f32.mrb[1].mxu0  ;;  %v268_v42 = vpop.f32.mrb[1].mxu1 }
  0xfd   : > { %v253_v43 = vadd.f32 %v357_v36, %v252_v41  ;;  %v269_v44 = vadd.f32 %v357_v36, %v268_v42  ;;  %v391_v45 = vpop.f32.mrb[2].mxu0  ;;  %v395_v46 = vpop.f32.mrb[2].mxu1 }
  0xfe   : > { %286 = vst.msk [vmem:[%s172_s4 + $0x10] sm:$0xff] %vm283_vm0, %v261_v39  ;;  %290 = vst.msk [vmem:[%s172_s4 + $0x30] sm:$0xff] %vm283_vm0, %v277_v40  ;;  %v264_v47 = vadd.f32 %v391_v45, %v357_v36  ;;  %v280_v48 = vadd.f32 %v395_v46, %v357_v36  ;;  %v255_v49 = vpop.f32.mrb[3].mxu0  ;;  %v271_v50 = vpop.f32.mrb[3].mxu1 }
  0xff   : > { %284 = vst.msk [vmem:[%s172_s4] sm:$0xff] %vm283_vm0, %v253_v43  ;;  %288 = vst.msk [vmem:[%s172_s4 + $0x20] sm:$0xff] %vm283_vm0, %v269_v44  ;;  %v256_v51 = vadd.f32 %v357_v36, %v255_v49  ;;  %v272_v52 = vadd.f32 %v357_v36, %v271_v50 }
 0x100   : > { %287 = vst.msk [vmem:[%s172_s4 + $0x18] sm:$0xff] %vm283_vm0, %v264_v47  ;;  %291 = vst.msk [vmem:[%s172_s4 + $0x38] sm:$0xff] %vm283_vm0, %v280_v48 }
 0x101   : > { %285 = vst.msk [vmem:[%s172_s4 + $0x8] sm:$0xff] %vm283_vm0, %v256_v51  ;;  %289 = vst.msk [vmem:[%s172_s4 + $0x28] sm:$0xff] %vm283_vm0, %v272_v52 }
 0x102 PF: > { %s13_s12 = sadd.s32 1, %s426_s12  }
 0x103   : > { %p10_p4 = scmp.ge.s32.totalorder %s13_s12, 4  }
 0x105   :  { %12 = sbr.rel (!%p10_p4) target bundleno = 1 (0x1), region = 62 }

// kernel: swin_forward.30
= control target key start
LH: loop header
LB: loop body
LE: loop exit
PB: predicated region body
PF: predicated region fallthrough
CT: control target
= control target key end

     0   :  { %s1610_s12 = smov 0   ;;  %s1888_s0 = inlined_call_operand.vmem [shape: f32[8,16,96], index: 0, kind: input, shape index: {}]   ;;  %s1889_s1 = inlined_call_operand.vmem [shape: f32[2,16,16], index: 1, kind: input, shape index: {}]   ;;  %s1890_s2 = inlined_call_operand.vmem [shape: f32[4,16,16], index: 2, kind: input, shape index: {}]   ;;  %s1891_s3 = inlined_call_operand.vmem [shape: f32[8,16,32], index: 3, kind: output, shape index: {}]  }
   0x1 LB: > { %s1333_s13 = sadd.s32 4294967295, %s1580_s12   ;;  %p1337_p0 = scmp.ge.s32.totalorder %s1580_s12, 1  ;;  %s1580_s12 = sphi %s1610_s12, %s13_s12  }
   0x2   : > { %p139_p1 = scmp.lt.s32.totalorder %s1580_s12, 3 }
   0x4   : > { %p140_p2 = pnand %p1337_p0, %p139_p1 }
   0x5   : > { %s1338_s14 = sshll.u32 (!%p140_p2), %s1333_s13, 2  ;;  %v1582_v0 = vmov (!%p140_p2), 0.0   ;;  %vm1583_vm0 = vmmov (!%p140_p2), 0   ;;  %s1584_s19 = smov (!%p140_p2), 96   ;;  %vm195_vm1 = vcmask (!%p140_p2), 130048   ;;  %v401_v22 = vld [vmem:[%s1889_s1] sm:$0xff] (!%p140_p2) }
   0x6   : > { %143 = sbr.rel (%p140_p2) target bundleno = 1579 (0x62b), region = 32  ;;  %p166_p3 = scmp.lt.s32.totalorder (!%p140_p2), %s1338_s14, 7  ;;  %1398 = vmatprep.subr.bf16.mxu0 (!%p140_p2), %v1582_v0  ;;  %1404 = vmatprep.subr.bf16.mxu1 (!%p140_p2), %v1582_v0  ;;  %v402_v26 = vld [vmem:[%s1889_s1 + $0x8] sm:$0xff] (!%p140_p2)  ;;  %v1677_v27 = vld [vmem:[%s1890_s2] sm:$0xff] (!%p140_p2)  ;;  %v1688_v38 = vld [vmem:[%s1890_s2 + $0x10] sm:$0xff] (!%p140_p2)  ;;  %vm1266_vm2 = vcmask (!%p140_p2), 261248  }
   0x7   : > { %1400 = vmatprep.mubr.msk.bf16.mxu0 (!%p140_p2), %vm1583_vm0, %v1582_v0  ;;  %1406 = vmatprep.mubr.msk.bf16.mxu1 (!%p140_p2), %vm1583_vm0, %v1582_v0  ;;  %v1682_v32 = vld [vmem:[%s1890_s2 + $0x8] sm:$0xff] (!%p140_p2)  ;;  %v1695_v45 = vld [vmem:[%s1890_s2 + $0x18] sm:$0xff] (!%p140_p2)  ;;  %v1702_v52 = vld [vmem:[%s1890_s2 + $0x20] sm:$0xff] (!%p140_p2)  ;;  %s1585_s16 = smov (!%p140_p2), 64   ;;  %s1586_s17 = smov (!%p140_p2), 80  }
   0x8   : > { %v1709_v59 = vld [vmem:[%s1890_s2 + $0x28] sm:$0xff] (!%p140_p2)  ;;  %s1588_s24 = smov (!%p140_p2), 48   ;;  %s1589_s25 = smov (!%p140_p2), 16  }
   0xd   : > { %s1893_s14 = smov (!%p166_p3, %s1338_s14), 7 }
   0xe   : > { %s1364_s15 = sshll.u32 %s1893_s14, 4 }
   0xf   : > { %s170_s18 = scalar_lea.vmem %s1888_s0, %s1364_s15  ;;  %s1803_s21 = scalar_lea.vmem %s1891_s3, %s1364_s15 }
  0x10   : > { %v180_v1 = vld [vmem:[%s170_s18] sm:$0xff]  ;;  %v181_v2 = vld [vmem:[%s170_s18 + $0x8] sm:$0xff]  ;;  %v182_v3 = vld [vmem:[%s170_s18 + $0x10] sm:$0xff] }
  0x11   : > { %v1632_v4 = vpack.c.bf16 %v181_v2, %v180_v1  ;;  %v183_v5 = vld [vmem:[%s170_s18 + $0x18] sm:$0xff]  ;;  %v184_v6 = vld [vmem:[%s170_s18 + $0x20] sm:$0xff]  ;;  %v185_v7 = vld [vmem:[%s170_s18 + $0x28] sm:$0xff] }
  0x12   : > { %v1634_v8 = vpack.c.bf16 %v185_v7, %v184_v6  ;;  %v186_v9 = vld [vmem:[%s170_s18 + $0x30] sm:$0xff]  ;;  %v187_v10 = vld [vmem:[%s170_s18 + $0x38] sm:$0xff]  ;;  %v1637_v11 = vpack.c.bf16 %v183_v5, %v182_v3  ;;  %s1587_s18 = smov 112  }
  0x13   : > { %193 = vrot.lane.b32.xlu0 %v1632_v4, %s1584_s19  ;;  %v1640_v12 = vpack.c.bf16 %v187_v10, %v186_v9  ;;  %v1716_v3 = vld [vmem:[%s1890_s2 + $0x30] sm:$0xff] }
  0x14   : > { %294 = vrot.lane.b32.xlu1 %v1634_v8, %s1584_s19 }
  0x17   : > { %244 = vrot.lane.b32.xlu0 %v1637_v11, %s1584_s19 }
  0x18   : > { %344 = vrot.lane.b32.xlu1 %v1640_v12, %s1584_s19 }
  0x85   : > { %v194_v13 = vpop.permute.xlu0 %193 }
  0x86   : > { %v200_v14 = vsel %vm195_vm1, %v194_v13, 0  ;;  %v295_v15 = vpop.permute.xlu1 %294  ;;  %v1723_v13 = vld [vmem:[%s1890_s2 + $0x38] sm:$0xff] }
  0x87   : > { %1399 = vmatpush3.bf16.xpose.msra.mxu0 %v200_v14  ;;  %v300_v18 = vsel %vm195_vm1, %v295_v15, 0 }
  0x88   : > { %1410 = vmatprep.subr.bf16.mxu0 %v1582_v0 }
  0x89   : > { %v245_v16 = vpop.permute.xlu0 %244 }
  0x8a   : > { %v250_v17 = vsel %vm195_vm1, %v245_v16, 0  ;;  %v345_v19 = vpop.permute.xlu1 %344 }
  0x8b   : > { %1405 = vmatpush3.bf16.xpose.msra.mxu1 %v250_v17  ;;  %v350_v20 = vsel %vm195_vm1, %v345_v19, 0 }
  0x8c   : > { %1416 = vmatprep.subr.bf16.mxu1 %v1582_v0 }
  0x8e   : > { %1401 = vmatmul.mubr.msk.bf16.vlgmr.msra.gmra.mrb[0].mxu0 %vm195_vm1, %v1632_v4 }
  0x8f   : > { %1411 = vmatpush3.bf16.xpose.msra.mxu0 %v300_v18  ;;  %1412 = vmatprep.mubr.msk.bf16.mxu0 %vm1583_vm0, %v1582_v0 }
  0x90   : > { %1422 = vmatprep.subr.bf16.mxu0 %v1582_v0 }
  0x92   : > { %1407 = vmatmul.mubr.msk.bf16.vlgmr.msra.gmra.mrb[0].mxu1 %vm195_vm1, %v1637_v11 }
  0x93   : > { %1417 = vmatpush3.bf16.xpose.msra.mxu1 %v350_v20  ;;  %1418 = vmatprep.mubr.msk.bf16.mxu1 %vm1583_vm0, %v1582_v0 }
  0x94   : > { %1428 = vmatprep.subr.bf16.mxu1 %v1582_v0 }
  0x96   : > { %1413 = vmatmul.mubr.msk.bf16.vlgmr.msra.gmra.mrb[4].mxu0 %vm195_vm1, %v1634_v8 }
  0x97   : > { %1424 = vmatprep.mubr.msk.bf16.mxu0 %vm1583_vm0, %v1582_v0 }
  0x9a   : > { %1419 = vmatmul.mubr.msk.bf16.vlgmr.msra.gmra.mrb[4].mxu1 %vm195_vm1, %v1640_v12 }
  0x9b   : > { %1430 = vmatprep.mubr.msk.bf16.mxu1 %vm1583_vm0, %v1582_v0 }
 0x161   : > { %v236_v21 = vpop.f32.mrb[0].mxu0 }
 0x162   : > { %v393_v23 = vmul.f32 0.25, %v236_v21  ;;  %v1402_v24 = vpop.f32.mrb[1].mxu0 }
 0x163   : > { %v239_v25 = vpop.f32.mrb[2].mxu0 }
 0x164   : > { %v403_v28 = vadd.f32 %v401_v22, %v393_v23  ;;  %v394_v29 = vmul.f32 0.25, %v239_v25  ;;  %v1403_v30 = vpop.f32.mrb[3].mxu0 }
 0x165   : > { %v286_v31 = vpop.f32.mrb[0].mxu1 }
 0x166   : > { %v404_v33 = vadd.f32 %v402_v26, %v394_v29  ;;  %v395_v34 = vmul.f32 0.25, %v286_v31  ;;  %v1408_v35 = vpop.f32.mrb[1].mxu1  ;;  %v419_v36 = vadd.f32 %v1677_v27, %v403_v28 }
 0x167   : > { %v289_v37 = vpop.f32.mrb[2].mxu1 }
 0x168   : > { %v405_v39 = vadd.f32 %v401_v22, %v395_v34  ;;  %v396_v40 = vmul.f32 0.25, %v289_v37  ;;  %v1409_v41 = vpop.f32.mrb[3].mxu1  ;;  %v427_v42 = vsel %vm195_vm1, %v419_v36, -inf  ;;  %v420_v43 = vadd.f32 %v1682_v32, %v404_v33 }
 0x169   : > { %428 = vmax.xlane.f32.xlu0 %v427_v42  ;;  %v336_v44 = vpop.f32.mrb[4].mxu0 }
 0x16a   : > { %v406_v46 = vadd.f32 %v402_v26, %v396_v40  ;;  %v397_v47 = vmul.f32 0.25, %v336_v44  ;;  %v1414_v48 = vpop.f32.mrb[5].mxu0  ;;  %v430_v49 = vsel %vm195_vm1, %v420_v43, -inf  ;;  %v421_v50 = vadd.f32 %v1688_v38, %v405_v39 }
 0x16b   : > { %431 = vmax.xlane.f32.xlu1 %v430_v49  ;;  %v339_v51 = vpop.f32.mrb[6].mxu0 }
 0x16c   : > { %v407_v53 = vadd.f32 %v401_v22, %v397_v47  ;;  %v398_v54 = vmul.f32 0.25, %v339_v51  ;;  %v1415_v55 = vpop.f32.mrb[7].mxu0  ;;  %v433_v56 = vsel %vm195_vm1, %v421_v50, -inf  ;;  %v422_v57 = vadd.f32 %v1695_v45, %v406_v46 }
 0x16d   : > { %434 = vmax.xlane.f32.xlu0 %v433_v56  ;;  %v386_v58 = vpop.f32.mrb[4].mxu1 }
 0x16e   : > { %v408_v60 = vadd.f32 %v402_v26, %v398_v54  ;;  %v399_v61 = vmul.f32 0.25, %v386_v58  ;;  %v1420_v62 = vpop.f32.mrb[5].mxu1  ;;  %v423_v63 = vadd.f32 %v1702_v52, %v407_v53  ;;  %v436_v2 = vsel %vm195_vm1, %v422_v57, -inf }
 0x16f   : > { %v389_v1 = vpop.f32.mrb[6].mxu1 }
 0x170   : > { %v409_v5 = vadd.f32 %v401_v22, %v399_v61  ;;  %v400_v6 = vmul.f32 0.25, %v389_v1  ;;  %v1421_v7 = vpop.f32.mrb[7].mxu1  ;;  %v439_v9 = vsel %vm195_vm1, %v423_v63, -inf  ;;  %v424_v10 = vadd.f32 %v1709_v59, %v408_v60 }
 0x171   : > { %440 = vmax.xlane.f32.xlu1 %v439_v9  ;;  %437 = vmax.xlane.f32.xlu0 %v436_v2 }
 0x172   : > { %v410_v14 = vadd.f32 %v402_v26, %v400_v6  ;;  %v425_v15 = vadd.f32 %v1716_v3, %v409_v5  ;;  %v442_v16 = vsel %vm195_vm1, %v424_v10, -inf }
 0x174   : > { %v445_v17 = vsel %vm195_vm1, %v425_v15, -inf  ;;  %v426_v18 = vadd.f32 %v1723_v13, %v410_v14 }
 0x175   : > { %443 = vmax.xlane.f32.xlu0 %v442_v16  ;;  %446 = vmax.xlane.f32.xlu1 %v445_v17 }
 0x176   : > { %v448_v19 = vsel %vm195_vm1, %v426_v18, -inf }
 0x179   : > { %449 = vmax.xlane.f32.xlu0 %v448_v19 }
 0x186   : > { %519 = vrot.lane.b32.xlu1 %v1632_v4, %s1585_s16 }
 0x18a   : > { %613 = vrot.lane.b32.xlu1 %v1634_v8, %s1585_s16 }
 0x18e   : > { %660 = vrot.lane.b32.xlu1 %v1640_v12, %s1585_s16 }
 0x18f   : > { %566 = vrot.lane.b32.xlu0 %v1637_v11, %s1585_s16 }
 0x1f6   : > { %v429_v20 = vpop.xlane.xlu0 %428 }
 0x1f7   : > { %v451_v21 = vsub.f32 %v419_v36, %v429_v20 }
 0x1f8   : > { %v432_v22 = vpop.xlane.xlu1 %431 }
 0x1f9   : > { %v459_v23 = vmul.f32 1.442695, %v451_v21  ;;  %v452_v24 = vsub.f32 %v420_v43, %v432_v22 }
 0x1fa   : > { %v435_v25 = vpop.xlane.xlu0 %434 }
 0x1fb   : > { %1510 = vpow2.f32 %v459_v23  ;;  %v461_v26 = vmul.f32 1.442695, %v452_v24  ;;  %v453_v28 = vsub.f32 %v421_v50, %v435_v25 }
 0x1fd   : > { %1512 = vpow2.f32 %v461_v26  ;;  %v463_v29 = vmul.f32 1.442695, %v453_v28 }
 0x1fe   : > { %v441_v30 = vpop.xlane.xlu1 %440  ;;  %v438_v31 = vpop.xlane.xlu0 %437 }
 0x1ff   : > { %1514 = vpow2.f32 %v463_v29  ;;  %v455_v33 = vsub.f32 %v423_v63, %v441_v30  ;;  %v454_v34 = vsub.f32 %v422_v57, %v438_v31 }
 0x201   : > { %v467_v35 = vmul.f32 1.442695, %v455_v33  ;;  %v465_v37 = vmul.f32 1.442695, %v454_v34 }
 0x202   : > { %v447_v39 = vpop.xlane.xlu1 %446  ;;  %v444_v40 = vpop.xlane.xlu0 %443 }
 0x203   : > { %1516 = vpow2.f32 %v467_v35  ;;  %v457_v36 = vsub.f32 %v425_v15, %v447_v39  ;;  %v456_v41 = vsub.f32 %v424_v10, %v444_v40 }
 0x204   : > { %1518 = vpow2.f32 %v465_v37 }
 0x205   : > { %v1734_v42 = vpop.eup %1510  ;;  %v471_v43 = vmul.f32 1.442695, %v457_v36  ;;  %v469_v44 = vmul.f32 1.442695, %v456_v41 }
 0x206   : > { %v450_v46 = vpop.xlane.xlu0 %449  ;;  %v475_v47 = vsel %vm195_vm1, %v1734_v42, 0.0  ;;  %v520_v48 = vpop.permute.xlu1 %519 }
 0x207   : > { %v1513_v49 = vpop.eup %1512  ;;  %1520 = vpow2.f32 %v471_v43  ;;  %v458_v50 = vsub.f32 %v426_v18, %v450_v46  ;;  %476 = vadd.xlane.f32.xlu1 %v475_v47  ;;  %1423 = vmatpush3.bf16.msra.mxu0 %v520_v48 }
 0x208   : > { %1522 = vpow2.f32 %v469_v44  ;;  %v478_v51 = vsel %vm195_vm1, %v1513_v49, 0.0  ;;  %1434 = vmatprep.subr.bf16.mxu0 %v1582_v0 }
 0x209   : > { %v1740_v53 = vpop.eup %1514  ;;  %v473_v54 = vmul.f32 1.442695, %v458_v50  ;;  %479 = vadd.xlane.f32.xlu0 %v478_v51 }
 0x20a   : > { %v481_v55 = vsel %vm195_vm1, %v1740_v53, 0.0  ;;  %v567_v56 = vpop.permute.xlu0 %566  ;;  %v614_v7 = vpop.permute.xlu1 %613 }
 0x20b   : > { %1524 = vpow2.f32 %v473_v54  ;;  %482 = vadd.xlane.f32.xlu1 %v481_v55  ;;  %1429 = vmatpush3.bf16.msra.mxu1 %v567_v56 }
 0x20c   : > { %1440 = vmatprep.subr.bf16.mxu1 %v1582_v0 }
 0x20d   : > { %v1517_v57 = vpop.eup %1516 }
 0x20e   : > { %v1519_v58 = vpop.eup %1518  ;;  %v487_v60 = vsel %vm195_vm1, %v1517_v57, 0.0  ;;  %v661_v9 = vpop.permute.xlu1 %660 }
 0x20f   : > { %488 = vadd.xlane.f32.xlu1 %v487_v60  ;;  %v484_v61 = vsel %vm195_vm1, %v1519_v58, 0.0 }
 0x210   : > { %485 = vadd.xlane.f32.xlu0 %v484_v61 }
 0x211   : > { %v1747_v62 = vpop.eup %1520 }
 0x212   : > { %v1523_v63 = vpop.eup %1522  ;;  %v493_v1 = vsel %vm195_vm1, %v1747_v62, 0.0 }
 0x213   : > { %494 = vadd.xlane.f32.xlu1 %v493_v1  ;;  %v490_v2 = vsel %vm195_vm1, %v1523_v63, 0.0 }
 0x214   : > { %491 = vadd.xlane.f32.xlu0 %v490_v2 }
 0x215   : > { %v1525_v5 = vpop.eup %1524 }
 0x216   : > { %v496_v6 = vsel %vm195_vm1, %v1525_v5, 0.0 }
 0x218   : > { %497 = vadd.xlane.f32.xlu0 %v496_v6 }
 0x224   : > { %768 = vrot.lane.b32.xlu1 %v1637_v11, %s1586_s17 }
 0x228   : > { %819 = vrot.lane.b32.xlu1 %v1634_v8, %s1586_s17 }
 0x22c   : > { %870 = vrot.lane.b32.xlu1 %v1640_v12, %s1586_s17 }
 0x22e   : > { %717 = vrot.lane.b32.xlu0 %v1632_v4, %s1586_s17 }
 0x230   : > { %868 = vrot.lane.b32.xlu1 %v1640_v12, %s1587_s18 }
 0x232   : > { %715 = vrot.lane.b32.xlu0 %v1632_v4, %s1587_s18 }
 0x236   : > { %766 = vrot.lane.b32.xlu0 %v1637_v11, %s1587_s18 }
 0x23a   : > { %817 = vrot.lane.b32.xlu0 %v1634_v8, %s1587_s18 }
 0x294   : > { %v477_v10 = vpop.xlane.xlu1 %476 }
 0x295   : > { %1526 = vrcp.f32 %v477_v10 }
 0x296   : > { %v480_v14 = vpop.xlane.xlu0 %479 }
 0x297   : > { %1528 = vrcp.f32 %v480_v14 }
 0x298   : > { %v483_v15 = vpop.xlane.xlu1 %482 }
 0x299   : > { %1530 = vrcp.f32 %v483_v15 }
 0x29c   : > { %v489_v16 = vpop.xlane.xlu1 %488 }
 0x29d   : > { %v486_v17 = vpop.xlane.xlu0 %485 }
 0x29e   : > { %1532 = vrcp.f32 %v486_v17 }
 0x29f   : > { %v1527_v18 = vpop.eup %1526  ;;  %1534 = vrcp.f32 %v489_v16 }
 0x2a0   : > { %v495_v20 = vpop.xlane.xlu1 %494  ;;  %v507_v22 = vmul.f32 %v1527_v18, %v1734_v42 }
 0x2a1   : > { %v1529_v19 = vpop.eup %1528  ;;  %v492_v21 = vpop.xlane.xlu0 %491 }
 0x2a2   : > { %v508_v23 = vmul.f32 %v1529_v19, %v1513_v49  ;;  %1536 = vrcp.f32 %v492_v21  ;;  %v1356_v19 = vld [vmem:[%s1889_s1 + $0x10] sm:$0xff] }
 0x2a3   : > { %1538 = vrcp.f32 %v495_v20  ;;  %v1531_v26 = vpop.eup %1530 }
 0x2a4   : > { %v515_v24 = vpack.c.bf16 %v508_v23, %v507_v22  ;;  %v509_v29 = vmul.f32 %v1531_v26, %v1740_v53  ;;  %v769_v40 = vpop.permute.xlu1 %768  ;;  %v1357_v23 = vld [vmem:[%s1889_s1 + $0x18] sm:$0xff] }
 0x2a5   : > { %v498_v25 = vpop.xlane.xlu0 %497  ;;  %v774_v50 = vsel %vm195_vm1, %v769_v40, 0 }
 0x2a6   : > { %1540 = vrcp.f32 %v498_v25  ;;  %1425 = vmatmul.mubr.msk.bf16.vlgmr.msra.gmra.mrb[8].mxu0 %vm195_vm1, %v515_v24 }
 0x2a7   : > { %1435 = vmatpush3.bf16.msra.mxu0 %v614_v7  ;;  %1436 = vmatprep.mubr.msk.bf16.mxu0 %vm1583_vm0, %v1582_v0 }
 0x2a8   : > { %v1533_v28 = vpop.eup %1532  ;;  %1446 = vmatprep.subr.bf16.mxu0 %v1582_v0  ;;  %v820_v49 = vpop.permute.xlu1 %819 }
 0x2a9   : > { %v510_v30 = vmul.f32 %v1533_v28, %v1519_v58  ;;  %v1535_v31 = vpop.eup %1534  ;;  %v718_v35 = vpop.permute.xlu0 %717  ;;  %v825_v51 = vsel %vm195_vm1, %v820_v49, 0 }
 0x2aa   : > { %v511_v37 = vmul.f32 %v1535_v31, %v1517_v57  ;;  %v723_v41 = vsel %vm195_vm1, %v718_v35, 0 }
 0x2ab   : > { %v516_v33 = vpack.c.bf16 %v510_v30, %v509_v29 }
 0x2ac   : > { %v1537_v34 = vpop.eup %1536  ;;  %v871_v54 = vpop.permute.xlu1 %870 }
 0x2ad   : > { %v512_v39 = vmul.f32 %v1537_v34, %v1523_v63  ;;  %1431 = vmatmul.mubr.msk.bf16.vlgmr.msra.gmra.mrb[8].mxu1 %vm195_vm1, %v516_v33  ;;  %v1539_v36 = vpop.eup %1538  ;;  %v716_v47 = vpop.permute.xlu0 %715  ;;  %v876_v55 = vsel %vm195_vm1, %v871_v54, 0 }
 0x2ae   : > { %1441 = vmatpush3.bf16.msra.mxu1 %v661_v9  ;;  %1442 = vmatprep.mubr.msk.bf16.mxu1 %vm1583_vm0, %v1582_v0  ;;  %v513_v44 = vmul.f32 %v1539_v36, %v1747_v62 }
 0x2af   : > { %v517_v42 = vpack.c.bf16 %v512_v39, %v511_v37  ;;  %1452 = vmatprep.subr.bf16.mxu1 %v1582_v0 }
 0x2b0   : > { %v1541_v43 = vpop.eup %1540  ;;  %v869_v57 = vpop.permute.xlu1 %868 }
 0x2b1   : > { %v514_v46 = vmul.f32 %v1541_v43, %v1525_v5  ;;  %1437 = vmatmul.mubr.msk.bf16.vlgmr.msra.gmra.mrb[12].mxu0 %vm195_vm1, %v517_v42  ;;  %v767_v53 = vpop.permute.xlu0 %766 }
 0x2b2   : > { %1447 = vmatpush3.bf16.xpose.msra.mxu0 %v723_v41  ;;  %1448 = vmatprep.mubr.msk.bf16.mxu0 %vm1583_vm0, %v1582_v0 }
 0x2b3   : > { %v518_v48 = vpack.c.bf16 %v514_v46, %v513_v44  ;;  %1458 = vmatprep.subr.bf16.mxu0 %v1582_v0 }
 0x2b5   : > { %1443 = vmatmul.mubr.msk.bf16.vlgmr.msra.gmra.mrb[12].mxu1 %vm195_vm1, %v518_v48  ;;  %v818_v56 = vpop.permute.xlu0 %817 }
 0x2b6   : > { %1454 = vmatprep.mubr.msk.bf16.mxu1 %vm1583_vm0, %v1582_v0 }
 0x2b7   : > { %1453 = vmatpush3.bf16.xpose.msra.mxu1 %v774_v50 }
 0x2b8   : > { %1464 = vmatprep.subr.bf16.mxu1 %v1582_v0 }
 0x2b9   : > { %1449 = vmatmul.mubr.msk.bf16.vlgmr.msra.gmra.mrb[16].mxu0 %vm195_vm1, %v716_v47 }
 0x2ba   : > { %1459 = vmatpush3.bf16.xpose.msra.mxu0 %v825_v51  ;;  %1460 = vmatprep.mubr.msk.bf16.mxu0 %vm1583_vm0, %v1582_v0 }
 0x2bb   : > { %1470 = vmatprep.subr.bf16.mxu0 %v1582_v0 }
 0x2be   : > { %1455 = vmatmul.mubr.msk.bf16.vlgmr.msra.gmra.mrb[16].mxu1 %vm195_vm1, %v767_v53 }
 0x2bf   : > { %1465 = vmatpush3.bf16.xpose.msra.mxu1 %v876_v55  ;;  %1466 = vmatprep.mubr.msk.bf16.mxu1 %vm1583_vm0, %v1582_v0 }
 0x2c0   : > { %1476 = vmatprep.subr.bf16.mxu1 %v1582_v0 }
 0x2c1   : > { %1461 = vmatmul.mubr.msk.bf16.vlgmr.msra.gmra.mrb[20].mxu0 %vm195_vm1, %v818_v56 }
 0x2c2   : > { %1472 = vmatprep.mubr.msk.bf16.mxu0 %vm1583_vm0, %v1582_v0 }
 0x2c6   : > { %1467 = vmatmul.mubr.msk.bf16.vlgmr.msra.gmra.mrb[20].mxu1 %vm195_vm1, %v869_v57 }
 0x2c7   : > { %1478 = vmatprep.mubr.msk.bf16.mxu1 %vm1583_vm0, %v1582_v0 }
 0x379   : > { %v559_v58 = vpop.f32.mrb[8].mxu0 }
 0x37a   : > { %707 = vst.msk [vmem:[%s1803_s21] sm:$0xff] %vm195_vm1, %v559_v58  ;;  %v1426_v60 = vpop.f32.mrb[9].mxu0 }
 0x37b   : > { %v562_v61 = vpop.f32.mrb[10].mxu0 }
 0x37c   : > { %708 = vst.msk [vmem:[%s1803_s21 + $0x8] sm:$0xff] %vm195_vm1, %v562_v61  ;;  %v1427_v62 = vpop.f32.mrb[11].mxu0 }
 0x380   : > { %v606_v63 = vpop.f32.mrb[8].mxu1 }
 0x381   : > { %709 = vst.msk [vmem:[%s1803_s21 + $0x10] sm:$0xff] %vm195_vm1, %v606_v63  ;;  %v1432_v1 = vpop.f32.mrb[9].mxu1 }
 0x382   : > { %v609_v2 = vpop.f32.mrb[10].mxu1 }
 0x383   : > { %710 = vst.msk [vmem:[%s1803_s21 + $0x18] sm:$0xff] %vm195_vm1, %v609_v2  ;;  %v1433_v5 = vpop.f32.mrb[11].mxu1 }
 0x384   : > { %v653_v6 = vpop.f32.mrb[12].mxu0 }
 0x385   : > { %711 = vst.msk [vmem:[%s1803_s21 + $0x20] sm:$0xff] %vm195_vm1, %v653_v6  ;;  %v1438_v7 = vpop.f32.mrb[13].mxu0 }
 0x386   : > { %v656_v9 = vpop.f32.mrb[14].mxu0 }
 0x387   : > { %712 = vst.msk [vmem:[%s1803_s21 + $0x28] sm:$0xff] %vm195_vm1, %v656_v9  ;;  %v1439_v10 = vpop.f32.mrb[15].mxu0 }
 0x388   : > { %v700_v14 = vpop.f32.mrb[12].mxu1 }
 0x389   : > { %713 = vst.msk [vmem:[%s1803_s21 + $0x30] sm:$0xff] %vm195_vm1, %v700_v14  ;;  %v1444_v15 = vpop.f32.mrb[13].mxu1 }
 0x38a   : > { %v703_v16 = vpop.f32.mrb[14].mxu1 }
 0x38b   : > { %714 = vst.msk [vmem:[%s1803_s21 + $0x38] sm:$0xff] %vm195_vm1, %v703_v16  ;;  %v1445_v17 = vpop.f32.mrb[15].mxu1 }
 0x38c   : > { %v759_v18 = vpop.f32.mrb[16].mxu0 }
 0x38d   : > { %v919_v20 = vmul.f32 0.25, %v759_v18  ;;  %v1450_v21 = vpop.f32.mrb[17].mxu0 }
 0x38e   : > { %v762_v22 = vpop.f32.mrb[18].mxu0 }
 0x38f   : > { %v930_v24 = vadd.f32 %v1356_v19, %v919_v20  ;;  %v920_v25 = vmul.f32 0.25, %v762_v22  ;;  %v1451_v26 = vpop.f32.mrb[19].mxu0 }
 0x391   : > { %v931_v28 = vadd.f32 %v1357_v23, %v920_v25  ;;  %v810_v29 = vpop.f32.mrb[16].mxu1  ;;  %v946_v30 = vadd.f32 %v930_v24, %v1677_v27 }
 0x392   : > { %v921_v31 = vmul.f32 0.25, %v810_v29  ;;  %v1456_v33 = vpop.f32.mrb[17].mxu1 }
 0x393   : > { %v813_v34 = vpop.f32.mrb[18].mxu1  ;;  %v954_v35 = vsel %vm195_vm1, %v946_v30, -inf  ;;  %v947_v37 = vadd.f32 %v931_v28, %v1682_v32 }
 0x394   : > { %v932_v39 = vadd.f32 %v1356_v19, %v921_v31  ;;  %v922_v40 = vmul.f32 0.25, %v813_v34  ;;  %v1457_v36 = vpop.f32.mrb[19].mxu1  ;;  %955 = vmax.xlane.f32.xlu0 %v954_v35  ;;  %v861_v41 = vpop.f32.mrb[20].mxu0 }
 0x395   : > { %v923_v42 = vmul.f32 0.25, %v861_v41  ;;  %v1462_v43 = vpop.f32.mrb[21].mxu0  ;;  %v957_v44 = vsel %vm195_vm1, %v947_v37, -inf }
 0x396   : > { %v933_v46 = vadd.f32 %v1357_v23, %v922_v40  ;;  %958 = vmax.xlane.f32.xlu1 %v957_v44  ;;  %v864_v47 = vpop.f32.mrb[22].mxu0  ;;  %v948_v27 = vadd.f32 %v932_v39, %v1688_v38 }
 0x397   : > { %v934_v48 = vadd.f32 %v1356_v19, %v923_v42  ;;  %v924_v49 = vmul.f32 0.25, %v864_v47  ;;  %v1463_v50 = vpop.f32.mrb[23].mxu0 }
 0x398   : > { %v960_v51 = vsel %vm195_vm1, %v948_v27, -inf  ;;  %v949_v32 = vadd.f32 %v933_v46, %v1695_v45 }
 0x399   : > { %v935_v53 = vadd.f32 %v1357_v23, %v924_v49  ;;  %961 = vmax.xlane.f32.xlu0 %v960_v51  ;;  %v912_v54 = vpop.f32.mrb[20].mxu1  ;;  %v950_v55 = vadd.f32 %v934_v48, %v1702_v52 }
 0x39a   : > { %v925_v56 = vmul.f32 0.25, %v912_v54  ;;  %v1468_v57 = vpop.f32.mrb[21].mxu1  ;;  %v963_v63 = vsel %vm195_vm1, %v949_v32, -inf }
 0x39b   : > { %v915_v58 = vpop.f32.mrb[22].mxu1  ;;  %v966_v60 = vsel %vm195_vm1, %v950_v55, -inf  ;;  %v951_v1 = vadd.f32 %v935_v53, %v1709_v59 }
 0x39c   : > { %v936_v61 = vadd.f32 %v1356_v19, %v925_v56  ;;  %v926_v62 = vmul.f32 0.25, %v915_v58  ;;  %v1469_v38 = vpop.f32.mrb[23].mxu1  ;;  %967 = vmax.xlane.f32.xlu1 %v966_v60 }
 0x39d   : > { %964 = vmax.xlane.f32.xlu0 %v963_v63  ;;  %v969_v52 = vsel %vm195_vm1, %v951_v1, -inf }
 0x39e   : > { %v937_v45 = vadd.f32 %v1357_v23, %v926_v62  ;;  %v952_v2 = vadd.f32 %v936_v61, %v1716_v3 }
 0x3a0   : > { %v972_v5 = vsel %vm195_vm1, %v952_v2, -inf  ;;  %v953_v6 = vadd.f32 %v937_v45, %v1723_v13 }
 0x3a1   : > { %973 = vmax.xlane.f32.xlu1 %v972_v5  ;;  %970 = vmax.xlane.f32.xlu0 %v969_v52 }
 0x3a2   : > { %v975_v7 = vsel %vm195_vm1, %v953_v6, -inf }
 0x3a5   : > { %976 = vmax.xlane.f32.xlu0 %v975_v7 }
 0x3b2   : > { %1046 = vrot.lane.b32.xlu1 %v1632_v4, %s1588_s24 }
 0x421   : > { %v956_v59 = vpop.xlane.xlu0 %955 }
 0x422   : > { %v978_v9 = vsub.f32 %v946_v30, %v956_v59 }
 0x423   : > { %v959_v10 = vpop.xlane.xlu1 %958 }
 0x424   : > { %v986_v14 = vmul.f32 1.442695, %v978_v9  ;;  %v979_v3 = vsub.f32 %v947_v37, %v959_v10 }
 0x426   : > { %1542 = vpow2.f32 %v986_v14  ;;  %v988_v15 = vmul.f32 1.442695, %v979_v3  ;;  %v962_v16 = vpop.xlane.xlu0 %961 }
 0x427   : > { %v980_v17 = vsub.f32 %v948_v27, %v962_v16 }
 0x428   : > { %1544 = vpow2.f32 %v988_v15 }
 0x429   : > { %v990_v13 = vmul.f32 1.442695, %v980_v17  ;;  %v968_v18 = vpop.xlane.xlu1 %967 }
 0x42a   : > { %v982_v19 = vsub.f32 %v950_v55, %v968_v18  ;;  %v965_v20 = vpop.xlane.xlu0 %964 }
 0x42b   : > { %1546 = vpow2.f32 %v990_v13  ;;  %v981_v21 = vsub.f32 %v949_v32, %v965_v20 }
 0x42c   : > { %v994_v22 = vmul.f32 1.442695, %v982_v19 }
 0x42d   : > { %v992_v23 = vmul.f32 1.442695, %v981_v21 }
 0x42e   : > { %1548 = vpow2.f32 %v994_v22  ;;  %v974_v4 = vpop.xlane.xlu1 %973  ;;  %v971_v24 = vpop.xlane.xlu0 %970 }
 0x42f   : > { %1550 = vpow2.f32 %v992_v23  ;;  %v984_v25 = vsub.f32 %v952_v2, %v974_v4  ;;  %v983_v26 = vsub.f32 %v951_v1, %v971_v24 }
 0x430   : > { %v1543_v28 = vpop.eup %1542 }
 0x431   : > { %v998_v29 = vmul.f32 1.442695, %v984_v25  ;;  %v996_v30 = vmul.f32 1.442695, %v983_v26  ;;  %v1002_v31 = vsel %vm195_vm1, %v1543_v28, 0.0 }
 0x432   : > { %v1545_v33 = vpop.eup %1544  ;;  %v977_v34 = vpop.xlane.xlu0 %976  ;;  %1003 = vadd.xlane.f32.xlu1 %v1002_v31 }
 0x433   : > { %v1047_v35 = vpop.permute.xlu1 %1046  ;;  %1552 = vpow2.f32 %v998_v29  ;;  %v985_v37 = vsub.f32 %v953_v6, %v977_v34  ;;  %v1005_v39 = vsel %vm195_vm1, %v1545_v33, 0.0 }
 0x434   : > { %1471 = vmatpush3.bf16.msra.mxu0 %v1047_v35  ;;  %1554 = vpow2.f32 %v996_v30  ;;  %1006 = vadd.xlane.f32.xlu0 %v1005_v39 }
 0x435   : > { %1482 = vmatprep.subr.bf16.mxu0 %v1582_v0  ;;  %v1547_v40 = vpop.eup %1546  ;;  %v1000_v36 = vmul.f32 1.442695, %v985_v37 }
 0x436   : > { %v1008_v41 = vsel %vm195_vm1, %v1547_v40, 0.0 }
 0x437   : > { %1556 = vpow2.f32 %v1000_v36  ;;  %1009 = vadd.xlane.f32.xlu1 %v1008_v41 }
 0x438   : > { %v1549_v42 = vpop.eup %1548 }
 0x439   : > { %v1551_v43 = vpop.eup %1550  ;;  %v1014_v44 = vsel %vm195_vm1, %v1549_v42, 0.0 }
 0x43a   : > { %v1011_v46 = vsel %vm195_vm1, %v1551_v43, 0.0 }
 0x43b   : > { %1015 = vadd.xlane.f32.xlu1 %v1014_v44  ;;  %1012 = vadd.xlane.f32.xlu0 %v1011_v46 }
 0x43d   : > { %v1553_v47 = vpop.eup %1552 }
 0x43e   : > { %v1555_v27 = vpop.eup %1554  ;;  %v1020_v48 = vsel %vm195_vm1, %v1553_v47, 0.0 }
 0x43f   : > { %1021 = vadd.xlane.f32.xlu1 %v1020_v48  ;;  %v1017_v49 = vsel %vm195_vm1, %v1555_v27, 0.0 }
 0x440   : > { %1018 = vadd.xlane.f32.xlu0 %v1017_v49 }
 0x441   : > { %v1557_v50 = vpop.eup %1556 }
 0x442   : > { %v1023_v51 = vsel %vm195_vm1, %v1557_v50, 0.0 }
 0x444   : > { %1024 = vadd.xlane.f32.xlu0 %v1023_v51 }
 0x450   : > { %1140 = vrot.lane.b32.xlu1 %v1634_v8, %s1588_s24 }
 0x454   : > { %1187 = vrot.lane.b32.xlu1 %v1640_v12, %s1588_s24 }
 0x45a   : > { %1093 = vrot.lane.b32.xlu0 %v1637_v11, %s1588_s24 }
 0x4bf   : > { %v1004_v32 = vpop.xlane.xlu1 %1003 }
 0x4c0   : > { %1558 = vrcp.f32 %v1004_v32 }
 0x4c1   : > { %v1007_v53 = vpop.xlane.xlu0 %1006 }
 0x4c2   : > { %1560 = vrcp.f32 %v1007_v53 }
 0x4c4   : > { %v1010_v54 = vpop.xlane.xlu1 %1009 }
 0x4c5   : > { %1562 = vrcp.f32 %v1010_v54 }
 0x4c8   : > { %v1016_v55 = vpop.xlane.xlu1 %1015  ;;  %v1013_v56 = vpop.xlane.xlu0 %1012 }
 0x4c9   : > { %1564 = vrcp.f32 %v1013_v56 }
 0x4ca   : > { %v1559_v57 = vpop.eup %1558  ;;  %1566 = vrcp.f32 %v1016_v55 }
 0x4cb   : > { %v1034_v8 = vmul.f32 %v1559_v57, %v1543_v28 }
 0x4cc   : > { %v1561_v58 = vpop.eup %1560  ;;  %v1022_v60 = vpop.xlane.xlu1 %1021 }
 0x4cd   : > { %v1035_v61 = vmul.f32 %v1561_v58, %v1545_v33  ;;  %v1019_v62 = vpop.xlane.xlu0 %1018 }
 0x4ce   : > { %1568 = vrcp.f32 %v1019_v62 }
 0x4cf   : > { %v1042_v12 = vpack.c.bf16 %v1035_v61, %v1034_v8  ;;  %1570 = vrcp.f32 %v1022_v60  ;;  %v1563_v63 = vpop.eup %1562 }
 0x4d0   : > { %v1141_v11 = vpop.permute.xlu1 %1140  ;;  %v1036_v45 = vmul.f32 %v1563_v63, %v1547_v40 }
 0x4d1   : > { %v1025_v38 = vpop.xlane.xlu0 %1024  ;;  %1473 = vmatmul.mubr.msk.bf16.vlgmr.msra.gmra.mrb[24].mxu0 %vm195_vm1, %v1042_v12 }
 0x4d2   : > { %1572 = vrcp.f32 %v1025_v38  ;;  %1483 = vmatpush3.bf16.msra.mxu0 %v1141_v11  ;;  %1484 = vmatprep.mubr.msk.bf16.mxu0 %vm1583_vm0, %v1582_v0 }
 0x4d3   : > { %v1565_v1 = vpop.eup %1564 }
 0x4d4   : > { %v1037_v2 = vmul.f32 %v1565_v1, %v1551_v43  ;;  %v1567_v52 = vpop.eup %1566  ;;  %v1188_v7 = vpop.permute.xlu1 %1187 }
 0x4d5   : > { %v1094_v5 = vpop.permute.xlu0 %1093  ;;  %v1038_v9 = vmul.f32 %v1567_v52, %v1549_v42 }
 0x4d6   : > { %1477 = vmatpush3.bf16.msra.mxu1 %v1094_v5  ;;  %v1043_v6 = vpack.c.bf16 %v1037_v2, %v1036_v45 }
 0x4d7   : > { %1488 = vmatprep.subr.bf16.mxu1 %v1582_v0 }
 0x4d8   : > { %v1569_v59 = vpop.eup %1568 }
 0x4d9   : > { %v1039_v10 = vmul.f32 %v1569_v59, %v1555_v27  ;;  %1479 = vmatmul.mubr.msk.bf16.vlgmr.msra.gmra.mrb[24].mxu1 %vm195_vm1, %v1043_v6  ;;  %v1571_v14 = vpop.eup %1570 }
 0x4da   : > { %1489 = vmatpush3.bf16.msra.mxu1 %v1188_v7  ;;  %1490 = vmatprep.mubr.msk.bf16.mxu1 %vm1583_vm0, %v1582_v0  ;;  %v1040_v16 = vmul.f32 %v1571_v14, %v1553_v47 }
 0x4db   : > { %v1044_v3 = vpack.c.bf16 %v1039_v10, %v1038_v9 }
 0x4dc   : > { %v1573_v15 = vpop.eup %1572 }
 0x4dd   : > { %v1041_v17 = vmul.f32 %v1573_v15, %v1557_v50  ;;  %1485 = vmatmul.mubr.msk.bf16.vlgmr.msra.gmra.mrb[28].mxu0 %vm195_vm1, %v1044_v3 }
 0x4df   : > { %v1045_v13 = vpack.c.bf16 %v1041_v17, %v1040_v16 }
 0x4e1   : > { %1491 = vmatmul.mubr.msk.bf16.vlgmr.msra.gmra.mrb[28].mxu1 %vm195_vm1, %v1045_v13 }
 0x5a4   : > { %v1086_v18 = vpop.f32.mrb[24].mxu0 }
 0x5a5   : > { %1242 = vrot.lane.b32.xlu0 %v1086_v18, %s1589_s25  ;;  %v1474_v19 = vpop.f32.mrb[25].mxu0 }
 0x5a6   : > { %v1089_v20 = vpop.f32.mrb[26].mxu0 }
 0x5a7   : > { %1244 = vrot.lane.b32.xlu1 %v1089_v20, %s1589_s25  ;;  %v1475_v21 = vpop.f32.mrb[27].mxu0 }
 0x5ac   : > { %v1133_v22 = vpop.f32.mrb[24].mxu1 }
 0x5ad   : > { %1246 = vrot.lane.b32.xlu0 %v1133_v22, %s1589_s25  ;;  %v1480_v23 = vpop.f32.mrb[25].mxu1 }
 0x5ae   : > { %v1136_v0 = vpop.f32.mrb[26].mxu1 }
 0x5af   : > { %1248 = vrot.lane.b32.xlu1 %v1136_v0, %s1589_s25  ;;  %v1481_v4 = vpop.f32.mrb[27].mxu1 }
 0x5b0   : > { %v1180_v24 = vpop.f32.mrb[28].mxu0 }
 0x5b1   : > { %v1486_v25 = vpop.f32.mrb[29].mxu0  ;;  %1250 = vrot.lane.b32.xlu0 %v1180_v24, %s1589_s25 }
 0x5b2   : > { %v1183_v26 = vpop.f32.mrb[30].mxu0 }
 0x5b3   : > { %v1487_v28 = vpop.f32.mrb[31].mxu0  ;;  %1252 = vrot.lane.b32.xlu1 %v1183_v26, %s1589_s25 }
 0x5b4   : > { %v1227_v29 = vpop.f32.mrb[28].mxu1 }
 0x5b5   : > { %1254 = vrot.lane.b32.xlu0 %v1227_v29, %s1589_s25  ;;  %v1492_v30 = vpop.f32.mrb[29].mxu1 }
 0x5b6   : > { %v1230_v31 = vpop.f32.mrb[30].mxu1 }
 0x5b7   : > { %1256 = vrot.lane.b32.xlu1 %v1230_v31, %s1589_s25  ;;  %v1493_v33 = vpop.f32.mrb[31].mxu1 }
 0x617   : > { %v1243_v34 = vpop.permute.xlu0 %1242 }
 0x618   : > { %1267 = vst.msk [vmem:[%s1803_s21] sm:$0xff] %vm1266_vm2, %v1243_v34 }
 0x619   : > { %v1245_v35 = vpop.permute.xlu1 %1244 }
 0x61a   : > { %1268 = vst.msk [vmem:[%s1803_s21 + $0x8] sm:$0xff] %vm1266_vm2, %v1245_v35 }
 0x61f   : > { %v1247_v37 = vpop.permute.xlu0 %1246 }
 0x620   : > { %1269 = vst.msk [vmem:[%s1803_s21 + $0x10] sm:$0xff] %vm1266_vm2, %v1247_v37 }
 0x621   : > { %v1249_v39 = vpop.permute.xlu1 %1248 }
 0x622   : > { %1270 = vst.msk [vmem:[%s1803_s21 + $0x18] sm:$0xff] %vm1266_vm2, %v1249_v39 }
 0x623   : > { %v1251_v40 = vpop.permute.xlu0 %1250 }
 0x624   : > { %1271 = vst.msk [vmem:[%s1803_s21 + $0x20] sm:$0xff] %vm1266_vm2, %v1251_v40 }
 0x625   : > { %v1253_v36 = vpop.permute.xlu1 %1252 }
 0x626   : > { %1272 = vst.msk [vmem:[%s1803_s21 + $0x28] sm:$0xff] %vm1266_vm2, %v1253_v36 }
 0x627   : > { %v1255_v41 = vpop.permute.xlu0 %1254 }
 0x628   : > { %1273 = vst.msk [vmem:[%s1803_s21 + $0x30] sm:$0xff] %vm1266_vm2, %v1255_v41 }
 0x629   : > { %v1257_v42 = vpop.permute.xlu1 %1256 }
 0x62a   : > { %1274 = vst.msk [vmem:[%s1803_s21 + $0x38] sm:$0xff] %vm1266_vm2, %v1257_v42 }
 0x62b PF: > { %s13_s12 = sadd.s32 1, %s1580_s12  }
 0x62c   : > { %p10_p4 = scmp.ge.s32.totalorder %s13_s12, 4  }
 0x62e   :  { %12 = sbr.rel (!%p10_p4) target bundleno = 1 (0x1), region = 63 }

// kernel: swin_forward.34
= control target key start
LH: loop header
LB: loop body
LE: loop exit
PB: predicated region body
PF: predicated region fallthrough
CT: control target
= control target key end

     0   :  { %s461_s15 = smov 0   ;;  %s539_s0 = inlined_call_operand.vmem [shape: f32[32,128], index: 0, kind: input, shape index: {}]   ;;  %s540_s1 = inlined_call_operand.vmem [shape: f32[128,64], index: 1, kind: input, shape index: {}]   ;;  %s541_s2 = inlined_call_operand.vmem [shape: f32[1,128], index: 2, kind: input, shape index: {}]   ;;  %s542_s3 = inlined_call_operand.vmem [shape: f32[1,128], index: 3, kind: input, shape index: {}]   ;;  %s543_s4 = inlined_call_operand.vmem [shape: f32[32,64], index: 4, kind: output, shape index: {}]  }
   0x1 LB: > { %s370_s16 = sadd.s32 4294967295, %s432_s15   ;;  %p374_p0 = scmp.ge.s32.totalorder %s432_s15, 1  ;;  %s432_s15 = sphi %s461_s15, %s14_s15  }
   0x2   : > { %p163_p1 = scmp.lt.s32.totalorder %s432_s15, 3 }
   0x4   : > { %p164_p2 = pnand %p374_p0, %p163_p1 }
   0x5   : > { %s375_s17 = sshll.u32 (!%p164_p2), %s370_s16, 1  ;;  %v246_v2 = vld [vmem:[%s540_s1] sm:$0xff] (!%p164_p2)  ;;  %v247_v3 = vld [vmem:[%s540_s1 + $0x8] sm:$0xff] (!%p164_p2)  ;;  %v434_v4 = vmov (!%p164_p2), 0.0   ;;  %v248_v14 = vld [vmem:[%s540_s1 + $0x10] sm:$0xff] (!%p164_p2)  ;;  %vm435_vm0 = vmmov (!%p164_p2), 0  }
   0x6   : > { %167 = sbr.rel (%p164_p2) target bundleno = 549 (0x225), region = 36  ;;  %p190_p3 = scmp.lt.s32.totalorder (!%p164_p2), %s375_s17, 3  ;;  %392 = vmatprep.subr.bf16.mxu0 (!%p164_p2), %v434_v4  ;;  %v262_v5 = vpack.c.bf16 (!%p164_p2), %v247_v3, %v246_v2  ;;  %v249_v15 = vld [vmem:[%s540_s1 + $0x18] sm:$0xff] (!%p164_p2)  ;;  %v250_v17 = vld [vmem:[%s540_s1 + $0x20] sm:$0xff] (!%p164_p2)  ;;  %v251_v18 = vld [vmem:[%s540_s1 + $0x28] sm:$0xff] (!%p164_p2)  ;;  %408 = vmatprep.mubr.msk.bf16.mxu0 (!%p164_p2), %vm435_vm0, %v434_v4  ;;  %vm311_vm1 = vcmask (!%p164_p2), 523264  }
   0x7   : > { %v263_v16 = vpack.c.bf16 (!%p164_p2), %v249_v15, %v248_v14  ;;  %v264_v19 = vpack.c.bf16 (!%p164_p2), %v251_v18, %v250_v17  ;;  %v252_v20 = vld [vmem:[%s540_s1 + $0x30] sm:$0xff] (!%p164_p2)  ;;  %v253_v21 = vld [vmem:[%s540_s1 + $0x38] sm:$0xff] (!%p164_p2)  ;;  %v254_v23 = vld [vmem:[%s540_s1 + $0x40] sm:$0xff] (!%p164_p2) }
   0x8   : > { %393 = vmatpush3.bf16.msra.mxu0 (!%p164_p2), %v262_v5  ;;  %v265_v22 = vpack.c.bf16 (!%p164_p2), %v253_v21, %v252_v20  ;;  %v255_v24 = vld [vmem:[%s540_s1 + $0x48] sm:$0xff] (!%p164_p2)  ;;  %v256_v26 = vld [vmem:[%s540_s1 + $0x50] sm:$0xff] (!%p164_p2)  ;;  %v257_v27 = vld [vmem:[%s540_s1 + $0x58] sm:$0xff] (!%p164_p2) }
   0x9   : > { %394 = vmatprep.subr.bf16.mxu0 (!%p164_p2), %v434_v4  ;;  %v266_v25 = vpack.c.bf16 (!%p164_p2), %v255_v24, %v254_v23  ;;  %v267_v28 = vpack.c.bf16 (!%p164_p2), %v257_v27, %v256_v26  ;;  %v258_v29 = vld [vmem:[%s540_s1 + $0x60] sm:$0xff] (!%p164_p2)  ;;  %v259_v30 = vld [vmem:[%s540_s1 + $0x68] sm:$0xff] (!%p164_p2)  ;;  %v260_v32 = vld [vmem:[%s540_s1 + $0x70] sm:$0xff] (!%p164_p2) }
   0xa   : > { %v268_v31 = vpack.c.bf16 (!%p164_p2), %v259_v30, %v258_v29  ;;  %v261_v33 = vld [vmem:[%s540_s1 + $0x78] sm:$0xff] (!%p164_p2)  ;;  %v379_v43 = vld [vmem:[%s541_s2] ss:$0 sm:$0xff] (!%p164_p2) }
   0xb   : > { %v269_v34 = vpack.c.bf16 (!%p164_p2), %v261_v33, %v260_v32  ;;  %v380_v47 = vld [vmem:[%s542_s3] ss:$0 sm:$0xff] (!%p164_p2) }
   0xc   : > { %395 = vmatpush3.bf16.msra.mxu0 (!%p164_p2), %v263_v16 }
   0xd   : > { %s545_s17 = smov (!%p190_p3, %s375_s17), 3  ;;  %396 = vmatprep.subr.bf16.mxu0 %v434_v4 }
   0xe   : > { %s376_s18 = sshll.u32 %s545_s17, 3 }
   0xf   : > { %s193_s21 = scalar_lea.vmem %s539_s0, %s376_s18  ;;  %s199_s11 = scalar_lea.vmem %s543_s4, %s376_s18 }
  0x10   : > { %v202_v0 = vld [vmem:[%s193_s21] sm:$0xff]  ;;  %v203_v1 = vld [vmem:[%s193_s21 + $0x8] sm:$0xff]  ;;  %397 = vmatpush3.bf16.msra.mxu0 %v264_v19 }
  0x11   : > { %206 = vadd.xlane.f32.xlu0 %v202_v0  ;;  %398 = vmatprep.subr.bf16.mxu0 %v434_v4 }
  0x14   : > { %399 = vmatpush3.bf16.msra.mxu0 %v265_v22 }
  0x15   : > { %208 = vadd.xlane.f32.xlu0 %v203_v1  ;;  %400 = vmatprep.subr.bf16.mxu0 %v434_v4 }
  0x18   : > { %401 = vmatpush3.bf16.msra.mxu0 %v266_v25 }
  0x19   : > { %402 = vmatprep.subr.bf16.mxu0 %v434_v4 }
  0x1c   : > { %403 = vmatpush3.bf16.msra.mxu0 %v267_v28 }
  0x1d   : > { %404 = vmatprep.subr.bf16.mxu0 %v434_v4 }
  0x20   : > { %405 = vmatpush3.bf16.msra.mxu0 %v268_v31 }
  0x21   : > { %406 = vmatprep.subr.bf16.mxu0 %v434_v4 }
  0x24   : > { %407 = vmatpush3.bf16.msra.mxu0 %v269_v34 }
  0x9e   : > { %v207_v6 = vpop.xlane.xlu0 %206 }
  0x9f   : > { %v211_v7 = vmul.f32 0.0078125, %v207_v6 }
  0xa1   : > { %v213_v8 = vsub.f32 %v202_v0, %v211_v7 }
  0xa2   : > { %v209_v9 = vpop.xlane.xlu0 %208 }
  0xa3   : > { %v212_v10 = vmul.f32 0.0078125, %v209_v9  ;;  %v215_v11 = vmul.f32 %v213_v8, %v213_v8 }
  0xa5   : > { %v214_v12 = vsub.f32 %v203_v1, %v212_v10  ;;  %217 = vadd.xlane.f32.xlu1 %v215_v11 }
  0xa7   : > { %v216_v13 = vmul.f32 %v214_v12, %v214_v12 }
  0xa9   : > { %219 = vadd.xlane.f32.xlu1 %v216_v13 }
 0x132   : > { %v218_v35 = vpop.xlane.xlu1 %217 }
 0x133   : > { %v221_v36 = vmul.f32 0.0078125, %v218_v35 }
 0x135   : > { %v223_v37 = vadd.f32 1e-05, %v221_v36 }
 0x136   : > { %v220_v38 = vpop.xlane.xlu1 %219 }
 0x137   : > { %422 = vrsqrt.f32 %v223_v37  ;;  %v222_v39 = vmul.f32 0.0078125, %v220_v38 }
 0x139   : > { %v224_v40 = vadd.f32 1e-05, %v222_v39 }
 0x13b   : > { %424 = vrsqrt.f32 %v224_v40 }
 0x141   : > { %v423_v41 = vpop.eup %422 }
 0x142   : > { %v227_v42 = vmul.f32 %v423_v41, %v213_v8 }
 0x144   : > { %v235_v46 = vmul.f32 %v379_v43, %v227_v42 }
 0x145   : > { %v425_v44 = vpop.eup %424 }
 0x146   : > { %v228_v45 = vmul.f32 %v425_v44, %v214_v12  ;;  %v243_v49 = vadd.f32 %v380_v47, %v235_v46 }
 0x148   : > { %v236_v48 = vmul.f32 %v379_v43, %v228_v45 }
 0x14a   : > { %v244_v50 = vadd.f32 %v380_v47, %v236_v48 }
 0x14c   : > { %v245_v51 = vpack.c.bf16 %v244_v50, %v243_v49 }
 0x14e   : > { %409 = vmatmul.mubr.bf16.vlgmr.msra.gmra.mrb[0].mxu0 %v245_v51 }
 0x221   : > { %v304_v52 = vpop.f32.mrb[0].mxu0 }
 0x222   : > { %312 = vst.msk [vmem:[%s199_s11] sm:$0xff] %vm311_vm1, %v304_v52  ;;  %v410_v53 = vpop.f32.mrb[1].mxu0 }
 0x223   : > { %v307_v54 = vpop.f32.mrb[2].mxu0 }
 0x224   : > { %313 = vst.msk [vmem:[%s199_s11 + $0x8] sm:$0xff] %vm311_vm1, %v307_v54  ;;  %v411_v55 = vpop.f32.mrb[3].mxu0 }
 0x225 PF: > { %s14_s15 = sadd.s32 1, %s432_s15  }
 0x226   : > { %p11_p4 = scmp.ge.s32.totalorder %s14_s15, 4  }
 0x228   :  { %13 = sbr.rel (!%p11_p4) target bundleno = 1 (0x1), region = 66 }

// kernel: swin_forward.35
= control target key start
LH: loop header
LB: loop body
LE: loop exit
PB: predicated region body
PF: predicated region fallthrough
CT: control target
= control target key end

     0   :  { %s492_s18 = smov 0   ;;  %s577_s0 = inlined_call_operand.vmem [shape: f32[32,64], index: 0, kind: input, shape index: {}]   ;;  %s578_s1 = inlined_call_operand.vmem [shape: f32[64,192], index: 1, kind: input, shape index: {}]   ;;  %s579_s2 = inlined_call_operand.vmem [shape: f32[1,64], index: 2, kind: input, shape index: {}]   ;;  %s580_s3 = inlined_call_operand.vmem [shape: f32[1,64], index: 3, kind: input, shape index: {}]   ;;  %s581_s4 = inlined_call_operand.vmem [shape: f32[1,192], index: 4, kind: input, shape index: {}]   ;;  %s582_s5 = inlined_call_operand.vmem [shape: f32[32,192], index: 5, kind: output, shape index: {}]  }
   0x1 LB: > { %s424_s19 = sadd.s32 4294967295, %s459_s18   ;;  %p428_p0 = scmp.ge.s32.totalorder %s459_s18, 1  ;;  %s459_s18 = sphi %s492_s18, %s15_s18  }
   0x2   : > { %p188_p1 = scmp.lt.s32.totalorder %s459_s18, 3 }
   0x4   : > { %p189_p2 = pnand %p428_p0, %p188_p1 }
   0x5   : > { %s429_s20 = sshll.u32 (!%p189_p2), %s424_s19, 1  ;;  %vm235_vm0 = vcmask (!%p189_p2), 523264   ;;  %v281_v14 = vld [vmem:[%s578_s1 + $0x8] sm:$0xff] (!%p189_p2)  ;;  %v283_v15 = vld [vmem:[%s578_s1 + $0x18] sm:$0xff] (!%p189_p2)  ;;  %v280_v17 = vld [vmem:[%s578_s1] sm:$0xff] (!%p189_p2)  ;;  %v461_v37 = vmov (!%p189_p2), 0   ;;  %v306_v56 = vlaneseq (!%p189_p2) }
   0x6   : > { %192 = sbr.rel (%p189_p2) target bundleno = 554 (0x22a), region = 40  ;;  %p218_p3 = scmp.lt.s32.totalorder (!%p189_p2), %s429_s20, 3  ;;  %v297_v16 = vpack.c.bf16 (!%p189_p2), %v283_v15, %v281_v14  ;;  %v282_v18 = vld [vmem:[%s578_s1 + $0x10] sm:$0xff] (!%p189_p2)  ;;  %v285_v20 = vld [vmem:[%s578_s1 + $0x28] sm:$0xff] (!%p189_p2)  ;;  %v287_v21 = vld [vmem:[%s578_s1 + $0x38] sm:$0xff] (!%p189_p2)  ;;  %351 = vmatprep.mubr.bf16.mxu0 (!%p189_p2), %v461_v37 }
   0x7   : > { %v296_v19 = vpack.c.bf16 (!%p189_p2), %v282_v18, %v280_v17  ;;  %v299_v22 = vpack.c.bf16 (!%p189_p2), %v287_v21, %v285_v20  ;;  %v284_v23 = vld [vmem:[%s578_s1 + $0x20] sm:$0xff] (!%p189_p2)  ;;  %v286_v24 = vld [vmem:[%s578_s1 + $0x30] sm:$0xff] (!%p189_p2)  ;;  %v289_v26 = vld [vmem:[%s578_s1 + $0x48] sm:$0xff] (!%p189_p2)  ;;  %v307_v57 = vshrl.u32 (!%p189_p2), %v306_v56, 7 }
   0x8   : > { %319 = vmatprep.subr.bf16.mxu0 (!%p189_p2), %v297_v16  ;;  %v298_v25 = vpack.c.bf16 (!%p189_p2), %v286_v24, %v284_v23  ;;  %v291_v27 = vld [vmem:[%s578_s1 + $0x58] sm:$0xff] (!%p189_p2)  ;;  %v288_v29 = vld [vmem:[%s578_s1 + $0x40] sm:$0xff] (!%p189_p2)  ;;  %v290_v30 = vld [vmem:[%s578_s1 + $0x50] sm:$0xff] (!%p189_p2) }
   0x9   : > { %320 = vmatpush1.bf16.msra.mxu0 (!%p189_p2), %v296_v19  ;;  %v301_v28 = vpack.c.bf16 (!%p189_p2), %v291_v27, %v289_v26  ;;  %v300_v31 = vpack.c.bf16 (!%p189_p2), %v290_v30, %v288_v29  ;;  %v293_v32 = vld [vmem:[%s578_s1 + $0x68] sm:$0xff] (!%p189_p2)  ;;  %v295_v33 = vld [vmem:[%s578_s1 + $0x78] sm:$0xff] (!%p189_p2)  ;;  %v292_v34 = vld [vmem:[%s578_s1 + $0x60] sm:$0xff] (!%p189_p2)  ;;  %v308_v58 = vsub.s32 (!%p189_p2), 0, %v307_v57  ;;  %v312_v60 = vsub.s32 (!%p189_p2), 1, %v307_v57 }
   0xa   : > { %321 = vmatprep.subr.bf16.mxu0 (!%p189_p2), %v299_v22  ;;  %v303_v35 = vpack.c.bf16 (!%p189_p2), %v295_v33, %v293_v32  ;;  %v294_v36 = vld [vmem:[%s578_s1 + $0x70] sm:$0xff] (!%p189_p2)  ;;  %v434_v47 = vld [vmem:[%s579_s2] ss:$0 sm:$0xff] (!%p189_p2) }
   0xb   : > { %v302_v38 = vpack.c.bf16 (!%p189_p2), %v294_v36, %v292_v34  ;;  %v435_v51 = vld [vmem:[%s580_s3] ss:$0 sm:$0xff] (!%p189_p2) }
   0xc   : > { %v304_v59 = vld [vmem:[%s581_s4] sm:$0x3] (!%p189_p2) }
   0xd   : > { %s584_s20 = smov (!%p218_p3, %s429_s20), 3  ;;  %322 = vmatpush1.bf16.msra.mxu0 %v298_v25  ;;  %v309_v61 = vrot.slane %v304_v59, %v308_v58  ;;  %v313_v62 = vrot.slane %v304_v59, %v312_v60 }
   0xe   : > { %s430_s21 = sshll.u32 %s584_s20, 3  ;;  %323 = vmatprep.subr.bf16.mxu0 %v301_v28  ;;  %s439_s15 = sshll.u32 %s584_s20, 4 }
   0xf   : > { %s221_s24 = scalar_lea.vmem %s577_s0, %s430_s21  ;;  %s228_s19 = scalar_lea.vmem %s582_s5, %s439_s15 }
  0x10   : > { %v231_v0 = vld [vmem:[%s221_s24] sm:$0xff]  ;;  %v232_v1 = vld [vmem:[%s221_s24 + $0x8] sm:$0xff] }
  0x11   : > { %v236_v2 = vsel %vm235_vm0, %v231_v0, 0.0  ;;  %v239_v3 = vsel %vm235_vm0, %v232_v1, 0.0  ;;  %324 = vmatpush1.bf16.msra.mxu0 %v300_v31 }
  0x12   : > { %237 = vadd.xlane.f32.xlu0 %v236_v2  ;;  %325 = vmatprep.subr.bf16.mxu0 %v303_v35 }
  0x15   : > { %326 = vmatpush1.bf16.msra.mxu0 %v302_v38 }
  0x16   : > { %240 = vadd.xlane.f32.xlu0 %v239_v3 }
  0x9f   : > { %v238_v4 = vpop.xlane.xlu0 %237 }
  0xa0   : > { %v243_v5 = vmul.f32 0.015625, %v238_v4 }
  0xa2   : > { %v245_v6 = vsub.f32 %v231_v0, %v243_v5 }
  0xa3   : > { %v241_v7 = vpop.xlane.xlu0 %240 }
  0xa4   : > { %v244_v8 = vmul.f32 0.015625, %v241_v7  ;;  %v247_v9 = vmul.f32 %v245_v6, %v245_v6 }
  0xa6   : > { %v246_v10 = vsub.f32 %v232_v1, %v244_v8  ;;  %v249_v11 = vsel %vm235_vm0, %v247_v9, 0.0 }
  0xa7   : > { %250 = vadd.xlane.f32.xlu1 %v249_v11 }
  0xa8   : > { %v248_v12 = vmul.f32 %v246_v10, %v246_v10 }
  0xaa   : > { %v252_v13 = vsel %vm235_vm0, %v248_v12, 0.0 }
  0xab   : > { %253 = vadd.xlane.f32.xlu1 %v252_v13 }
 0x134   : > { %v251_v39 = vpop.xlane.xlu1 %250 }
 0x135   : > { %v255_v40 = vmul.f32 0.015625, %v251_v39 }
 0x137   : > { %v257_v41 = vadd.f32 1e-05, %v255_v40 }
 0x138   : > { %v254_v42 = vpop.xlane.xlu1 %253 }
 0x139   : > { %449 = vrsqrt.f32 %v257_v41  ;;  %v256_v43 = vmul.f32 0.015625, %v254_v42 }
 0x13b   : > { %v258_v44 = vadd.f32 1e-05, %v256_v43 }
 0x13d   : > { %451 = vrsqrt.f32 %v258_v44 }
 0x143   : > { %v450_v45 = vpop.eup %449 }
 0x144   : > { %v261_v46 = vmul.f32 %v450_v45, %v245_v6 }
 0x146   : > { %v269_v50 = vmul.f32 %v434_v47, %v261_v46 }
 0x147   : > { %v452_v48 = vpop.eup %451 }
 0x148   : > { %v262_v49 = vmul.f32 %v452_v48, %v246_v10  ;;  %v277_v53 = vadd.f32 %v435_v51, %v269_v50 }
 0x14a   : > { %v270_v52 = vmul.f32 %v434_v47, %v262_v49 }
 0x14c   : > { %v278_v54 = vadd.f32 %v435_v51, %v270_v52 }
 0x14e   : > { %v279_v55 = vpack.c.bf16 %v278_v54, %v277_v53 }
 0x150   : > { %436 = vmatmul.mubr.msk.bf16.vlgmr.msra.gmra.mrb[0].mxu0 %vm235_vm0, %v279_v55 }
 0x223   : > { %v353_v63 = vpop.f32.mrb[0].mxu0 }
 0x224   : > { %v354_v0 = vadd.f32 %v353_v63, %v309_v61  ;;  %v355_v1 = vpop.f32.mrb[1].mxu0 }
 0x225   : > { %v356_v2 = vadd.f32 %v355_v1, %v313_v62  ;;  %v357_v3 = vpop.f32.mrb[2].mxu0 }
 0x226   : > { %362 = vst [vmem:[%s228_s19] sm:$0xff] %v354_v0  ;;  %v358_v4 = vadd.f32 %v357_v3, %v309_v61  ;;  %v359_v5 = vpop.f32.mrb[3].mxu0 }
 0x227   : > { %363 = vst.msk [vmem:[%s228_s19 + $0x8] sm:$0xff] %vm235_vm0, %v356_v2  ;;  %v360_v6 = vadd.f32 %v359_v5, %v313_v62 }
 0x228   : > { %364 = vst [vmem:[%s228_s19 + $0x10] sm:$0xff] %v358_v4 }
 0x229   : > { %365 = vst.msk [vmem:[%s228_s19 + $0x18] sm:$0xff] %vm235_vm0, %v360_v6 }
 0x22a PF: > { %s15_s18 = sadd.s32 1, %s459_s18  }
 0x22b   : > { %p12_p4 = scmp.ge.s32.totalorder %s15_s18, 4  }
 0x22d   :  { %14 = sbr.rel (!%p12_p4) target bundleno = 1 (0x1), region = 70 }

// kernel: swin_forward.37
= control target key start
LH: loop header
LB: loop body
LE: loop exit
PB: predicated region body
PF: predicated region fallthrough
CT: control target
= control target key end

     0   :  { %s370_s12 = smov 0   ;;  %s414_s0 = inlined_call_operand.vmem [shape: f32[32,64], index: 0, kind: input, shape index: {}]   ;;  %s415_s1 = inlined_call_operand.vmem [shape: f32[64,64], index: 1, kind: input, shape index: {}]   ;;  %s416_s2 = inlined_call_operand.vmem [shape: f32[1,64], index: 2, kind: input, shape index: {}]   ;;  %s417_s3 = inlined_call_operand.vmem [shape: f32[32,64], index: 3, kind: output, shape index: {}]  }
   0x1 LB: > { %s300_s13 = sadd.s32 4294967295, %s346_s12   ;;  %p304_p0 = scmp.ge.s32.totalorder %s346_s12, 1  ;;  %s346_s12 = sphi %s370_s12, %s13_s12  }
   0x2   : > { %p138_p1 = scmp.lt.s32.totalorder %s346_s12, 3 }
   0x4   : > { %p139_p2 = pnand %p304_p0, %p138_p1 }
   0x5   : > { %v178_v0 = vld [vmem:[%s415_s1] sm:$0xff] (!%p139_p2)  ;;  %v179_v1 = vld [vmem:[%s415_s1 + $0x8] sm:$0xff] (!%p139_p2)  ;;  %v180_v2 = vld [vmem:[%s415_s1 + $0x10] sm:$0xff] (!%p139_p2)  ;;  %s305_s20 = sshll.u32 (!%p139_p2), %s300_s13, 1  ;;  %v348_v3 = vmov (!%p139_p2), 0.0   ;;  %vm349_vm0 = vmmov (!%p139_p2), 0  }
   0x6   : > { %142 = sbr.rel (%p139_p2) target bundleno = 240 (0xf0), region = 32  ;;  %318 = vmatprep.subr.bf16.mxu0 (!%p139_p2), %v348_v3  ;;  %v186_v4 = vpack.c.bf16 (!%p139_p2), %v179_v1, %v178_v0  ;;  %v181_v5 = vld [vmem:[%s415_s1 + $0x18] sm:$0xff] (!%p139_p2)  ;;  %326 = vmatprep.mubr.msk.bf16.mxu0 (!%p139_p2), %vm349_vm0, %v348_v3  ;;  %p163_p3 = scmp.lt.s32.totalorder (!%p139_p2), %s305_s20, 3  ;;  %v182_v7 = vld [vmem:[%s415_s1 + $0x20] sm:$0xff] (!%p139_p2)  ;;  %v183_v8 = vld [vmem:[%s415_s1 + $0x28] sm:$0xff] (!%p139_p2)  ;;  %vm197_vm1 = vcmask (!%p139_p2), 523264  }
   0x7   : > { %v187_v6 = vpack.c.bf16 (!%p139_p2), %v181_v5, %v180_v2  ;;  %v188_v9 = vpack.c.bf16 (!%p139_p2), %v183_v8, %v182_v7  ;;  %v184_v10 = vld [vmem:[%s415_s1 + $0x30] sm:$0xff] (!%p139_p2)  ;;  %v185_v11 = vld [vmem:[%s415_s1 + $0x38] sm:$0xff] (!%p139_p2)  ;;  %v309_v16 = vld [vmem:[%s416_s2] ss:$0 sm:$0xff] (!%p139_p2) }
   0x8   : > { %319 = vmatpush3.bf16.msra.mxu0 (!%p139_p2), %v186_v4  ;;  %v189_v12 = vpack.c.bf16 (!%p139_p2), %v185_v11, %v184_v10 }
   0x9   : > { %320 = vmatprep.subr.bf16.mxu0 (!%p139_p2), %v348_v3 }
   0xc   : > { %321 = vmatpush3.bf16.msra.mxu0 (!%p139_p2), %v187_v6 }
   0xd   : > { %s419_s20 = smov (!%p163_p3, %s305_s20), 3  ;;  %322 = vmatprep.subr.bf16.mxu0 %v348_v3 }
   0xe   : > { %s306_s27 = sshll.u32 %s419_s20, 3 }
   0xf   : > { %s166_s7 = scalar_lea.vmem %s414_s0, %s306_s27  ;;  %s172_s13 = scalar_lea.vmem %s417_s3, %s306_s27 }
  0x10   : > { %323 = vmatpush3.bf16.msra.mxu0 %v188_v9  ;;  %v175_v13 = vld [vmem:[%s166_s7] sm:$0xff]  ;;  %v176_v14 = vld [vmem:[%s166_s7 + $0x8] sm:$0xff] }
  0x11   : > { %324 = vmatprep.subr.bf16.mxu0 %v348_v3  ;;  %v177_v15 = vpack.c.bf16 %v176_v14, %v175_v13 }
  0x14   : > { %325 = vmatpush3.bf16.msra.mxu0 %v189_v12 }
  0x17   : > { %327 = vmatmul.mubr.msk.bf16.vlgmr.msra.gmra.mrb[0].mxu0 %vm197_vm1, %v177_v15 }
  0xea   : > { %v235_v17 = vpop.f32.mrb[0].mxu0 }
  0xeb   : > { %v236_v18 = vadd.f32 %v309_v16, %v235_v17  ;;  %v328_v19 = vpop.f32.mrb[1].mxu0 }
  0xec   : > { %v238_v20 = vpop.f32.mrb[2].mxu0 }
  0xed   : > { %242 = vst.msk [vmem:[%s172_s13] sm:$0xff] %vm197_vm1, %v236_v18  ;;  %v239_v21 = vadd.f32 %v309_v16, %v238_v20  ;;  %v329_v22 = vpop.f32.mrb[3].mxu0 }
  0xef   : > { %243 = vst.msk [vmem:[%s172_s13 + $0x8] sm:$0xff] %vm197_vm1, %v239_v21 }
  0xf0 PF: > { %s13_s12 = sadd.s32 1, %s346_s12  }
  0xf1   : > { %p10_p4 = scmp.ge.s32.totalorder %s13_s12, 4  }
  0xf3   :  { %12 = sbr.rel (!%p10_p4) target bundleno = 1 (0x1), region = 62 }

// kernel: swin_forward.38
= control target key start
LH: loop header
LB: loop body
LE: loop exit
PB: predicated region body
PF: predicated region fallthrough
CT: control target
= control target key end

     0   :  { %s536_s18 = smov 0   ;;  %s619_s0 = inlined_call_operand.vmem [shape: f32[32,64], index: 0, kind: input, shape index: {}]   ;;  %s620_s1 = inlined_call_operand.vmem [shape: f32[64,256], index: 1, kind: input, shape index: {}]   ;;  %s621_s2 = inlined_call_operand.vmem [shape: f32[1,64], index: 2, kind: input, shape index: {}]   ;;  %s622_s3 = inlined_call_operand.vmem [shape: f32[1,64], index: 3, kind: input, shape index: {}]   ;;  %s623_s4 = inlined_call_operand.vmem [shape: f32[1,256], index: 4, kind: input, shape index: {}]   ;;  %s624_s5 = inlined_call_operand.vmem [shape: f32[32,256], index: 5, kind: output, shape index: {}]  }
   0x1 LB: > { %s460_s19 = sadd.s32 4294967295, %s503_s18   ;;  %p464_p0 = scmp.ge.s32.totalorder %s503_s18, 1  ;;  %s503_s18 = sphi %s536_s18, %s15_s18  }
   0x2   : > { %p188_p1 = scmp.lt.s32.totalorder %s503_s18, 3 }
   0x4   : > { %p189_p2 = pnand %p464_p0, %p188_p1 }
   0x5   : > { %s465_s20 = sshll.u32 (!%p189_p2), %s460_s19, 1  ;;  %vm235_vm0 = vcmask (!%p189_p2), 523264   ;;  %v281_v14 = vld [vmem:[%s620_s1 + $0x8] sm:$0xff] (!%p189_p2)  ;;  %v283_v15 = vld [vmem:[%s620_s1 + $0x18] sm:$0xff] (!%p189_p2)  ;;  %v280_v17 = vld [vmem:[%s620_s1] sm:$0xff] (!%p189_p2)  ;;  %v505_v37 = vmov (!%p189_p2), 0   ;;  %v306_v56 = vlaneseq (!%p189_p2) }
   0x6   : > { %192 = sbr.rel (%p189_p2) target bundleno = 579 (0x243), region = 40  ;;  %p218_p3 = scmp.lt.s32.totalorder (!%p189_p2), %s465_s20, 3  ;;  %v297_v16 = vpack.c.bf16 (!%p189_p2), %v283_v15, %v281_v14  ;;  %v282_v18 = vld [vmem:[%s620_s1 + $0x10] sm:$0xff] (!%p189_p2)  ;;  %v285_v20 = vld [vmem:[%s620_s1 + $0x28] sm:$0xff] (!%p189_p2)  ;;  %v287_v21 = vld [vmem:[%s620_s1 + $0x38] sm:$0xff] (!%p189_p2)  ;;  %351 = vmatprep.mubr.bf16.mxu0 (!%p189_p2), %v505_v37 }
   0x7   : > { %v296_v19 = vpack.c.bf16 (!%p189_p2), %v282_v18, %v280_v17  ;;  %v299_v22 = vpack.c.bf16 (!%p189_p2), %v287_v21, %v285_v20  ;;  %v284_v23 = vld [vmem:[%s620_s1 + $0x20] sm:$0xff] (!%p189_p2)  ;;  %v286_v24 = vld [vmem:[%s620_s1 + $0x30] sm:$0xff] (!%p189_p2)  ;;  %v289_v26 = vld [vmem:[%s620_s1 + $0x48] sm:$0xff] (!%p189_p2)  ;;  %v307_v57 = vshrl.u32 (!%p189_p2), %v306_v56, 7 }
   0x8   : > { %319 = vmatprep.subr.bf16.mxu0 (!%p189_p2), %v297_v16  ;;  %v298_v25 = vpack.c.bf16 (!%p189_p2), %v286_v24, %v284_v23  ;;  %v291_v27 = vld [vmem:[%s620_s1 + $0x58] sm:$0xff] (!%p189_p2)  ;;  %v288_v29 = vld [vmem:[%s620_s1 + $0x40] sm:$0xff] (!%p189_p2)  ;;  %v290_v30 = vld [vmem:[%s620_s1 + $0x50] sm:$0xff] (!%p189_p2) }
   0x9   : > { %320 = vmatpush1.bf16.msra.mxu0 (!%p189_p2), %v296_v19  ;;  %v301_v28 = vpack.c.bf16 (!%p189_p2), %v291_v27, %v289_v26  ;;  %v300_v31 = vpack.c.bf16 (!%p189_p2), %v290_v30, %v288_v29  ;;  %v293_v32 = vld [vmem:[%s620_s1 + $0x68] sm:$0xff] (!%p189_p2)  ;;  %v295_v33 = vld [vmem:[%s620_s1 + $0x78] sm:$0xff] (!%p189_p2)  ;;  %v292_v34 = vld [vmem:[%s620_s1 + $0x60] sm:$0xff] (!%p189_p2)  ;;  %v308_v58 = vsub.s32 (!%p189_p2), 0, %v307_v57  ;;  %v312_v60 = vsub.s32 (!%p189_p2), 1, %v307_v57 }
   0xa   : > { %321 = vmatprep.subr.bf16.mxu0 (!%p189_p2), %v299_v22  ;;  %v303_v35 = vpack.c.bf16 (!%p189_p2), %v295_v33, %v293_v32  ;;  %v294_v36 = vld [vmem:[%s620_s1 + $0x70] sm:$0xff] (!%p189_p2)  ;;  %v470_v47 = vld [vmem:[%s621_s2] ss:$0 sm:$0xff] (!%p189_p2) }
   0xb   : > { %v302_v38 = vpack.c.bf16 (!%p189_p2), %v294_v36, %v292_v34  ;;  %v471_v51 = vld [vmem:[%s622_s3] ss:$0 sm:$0xff] (!%p189_p2) }
   0xc   : > { %v304_v59 = vld [vmem:[%s623_s4] sm:$0x3] (!%p189_p2) }
   0xd   : > { %s626_s20 = smov (!%p218_p3, %s465_s20), 3  ;;  %322 = vmatpush1.bf16.msra.mxu0 %v298_v25  ;;  %v309_v61 = vrot.slane %v304_v59, %v308_v58  ;;  %v313_v62 = vrot.slane %v304_v59, %v312_v60 }
   0xe   : > { %s466_s21 = sshll.u32 %s626_s20, 3  ;;  %323 = vmatprep.subr.bf16.mxu0 %v301_v28  ;;  %s475_s15 = sshll.u32 %s626_s20, 4 }
   0xf   : > { %s221_s24 = scalar_lea.vmem %s619_s0, %s466_s21  ;;  %s228_s19 = scalar_lea.vmem %s624_s5, %s475_s15 }
  0x10   : > { %v231_v0 = vld [vmem:[%s221_s24] sm:$0xff]  ;;  %v232_v1 = vld [vmem:[%s221_s24 + $0x8] sm:$0xff] }
  0x11   : > { %v236_v2 = vsel %vm235_vm0, %v231_v0, 0.0  ;;  %v239_v3 = vsel %vm235_vm0, %v232_v1, 0.0  ;;  %324 = vmatpush1.bf16.msra.mxu0 %v300_v31 }
  0x12   : > { %237 = vadd.xlane.f32.xlu0 %v236_v2  ;;  %325 = vmatprep.subr.bf16.mxu0 %v303_v35 }
  0x15   : > { %326 = vmatpush1.bf16.msra.mxu0 %v302_v38 }
  0x16   : > { %240 = vadd.xlane.f32.xlu0 %v239_v3 }
  0x9f   : > { %v238_v4 = vpop.xlane.xlu0 %237 }
  0xa0   : > { %v243_v5 = vmul.f32 0.015625, %v238_v4 }
  0xa2   : > { %v245_v6 = vsub.f32 %v231_v0, %v243_v5 }
  0xa3   : > { %v241_v7 = vpop.xlane.xlu0 %240 }
  0xa4   : > { %v244_v8 = vmul.f32 0.015625, %v241_v7  ;;  %v247_v9 = vmul.f32 %v245_v6, %v245_v6 }
  0xa6   : > { %v246_v10 = vsub.f32 %v232_v1, %v244_v8  ;;  %v249_v11 = vsel %vm235_vm0, %v247_v9, 0.0 }
  0xa7   : > { %250 = vadd.xlane.f32.xlu1 %v249_v11 }
  0xa8   : > { %v248_v12 = vmul.f32 %v246_v10, %v246_v10 }
  0xaa   : > { %v252_v13 = vsel %vm235_vm0, %v248_v12, 0.0 }
  0xab   : > { %253 = vadd.xlane.f32.xlu1 %v252_v13 }
 0x134   : > { %v251_v39 = vpop.xlane.xlu1 %250 }
 0x135   : > { %v255_v40 = vmul.f32 0.015625, %v251_v39 }
 0x137   : > { %v257_v41 = vadd.f32 1e-05, %v255_v40 }
 0x138   : > { %v254_v42 = vpop.xlane.xlu1 %253 }
 0x139   : > { %485 = vrsqrt.f32 %v257_v41  ;;  %v256_v43 = vmul.f32 0.015625, %v254_v42 }
 0x13b   : > { %v258_v44 = vadd.f32 1e-05, %v256_v43 }
 0x13d   : > { %487 = vrsqrt.f32 %v258_v44 }
 0x143   : > { %v486_v45 = vpop.eup %485 }
 0x144   : > { %v261_v46 = vmul.f32 %v486_v45, %v245_v6 }
 0x146   : > { %v269_v50 = vmul.f32 %v470_v47, %v261_v46 }
 0x147   : > { %v488_v48 = vpop.eup %487 }
 0x148   : > { %v262_v49 = vmul.f32 %v488_v48, %v246_v10  ;;  %v277_v53 = vadd.f32 %v471_v51, %v269_v50 }
 0x14a   : > { %v270_v52 = vmul.f32 %v470_v47, %v262_v49 }
 0x14c   : > { %v278_v54 = vadd.f32 %v471_v51, %v270_v52 }
 0x14e   : > { %v279_v55 = vpack.c.bf16 %v278_v54, %v277_v53 }
 0x150   : > { %472 = vmatmul.mubr.msk.bf16.vlgmr.msra.gmra.mrb[0].mxu0 %vm235_vm0, %v279_v55 }
 0x223   : > { %v353_v63 = vpop.f32.mrb[0].mxu0 }
 0x224   : > { %v354_v0 = vadd.f32 %v353_v63, %v309_v61  ;;  %v355_v1 = vpop.f32.mrb[1].mxu0 }
 0x225   : > { %v356_v2 = vadd.f32 %v355_v1, %v313_v62  ;;  %v357_v3 = vpop.f32.mrb[2].mxu0 }
 0x226   : > { %v366_v4 = vmul.f32 0.044715, %v354_v0  ;;  %v358_v5 = vadd.f32 %v357_v3, %v309_v61  ;;  %v359_v6 = vpop.f32.mrb[3].mxu0  ;;  %v362_v29 = vmul.f32 0.5, %v354_v0 }
 0x227   : > { %v367_v7 = vmul.f32 0.044715, %v356_v2  ;;  %v360_v8 = vadd.f32 %v359_v6, %v313_v62  ;;  %v363_v32 = vmul.f32 0.5, %v356_v2 }
 0x228   : > { %v370_v9 = vmul.f32 %v366_v4, %v354_v0  ;;  %v368_v10 = vmul.f32 0.044715, %v358_v5  ;;  %v364_v36 = vmul.f32 0.5, %v358_v5 }
 0x229   : > { %v371_v11 = vmul.f32 %v367_v7, %v356_v2  ;;  %v369_v12 = vmul.f32 0.044715, %v360_v8  ;;  %v365_v39 = vmul.f32 0.5, %v360_v8 }
 0x22a   : > { %v374_v13 = vmul.f32 %v370_v9, %v354_v0  ;;  %v372_v14 = vmul.f32 %v368_v10, %v358_v5 }
 0x22b   : > { %v375_v15 = vmul.f32 %v371_v11, %v356_v2  ;;  %v373_v16 = vmul.f32 %v369_v12, %v360_v8 }
 0x22c   : > { %v378_v17 = vadd.f32 %v374_v13, %v354_v0  ;;  %v376_v18 = vmul.f32 %v372_v14, %v358_v5 }
 0x22d   : > { %v379_v19 = vadd.f32 %v375_v15, %v356_v2  ;;  %v377_v20 = vmul.f32 %v373_v16, %v360_v8 }
 0x22e   : > { %v382_v21 = vmul.f32 0.7978846, %v378_v17  ;;  %v380_v22 = vadd.f32 %v376_v18, %v358_v5 }
 0x22f   : > { %v383_v23 = vmul.f32 0.7978846, %v379_v19  ;;  %v381_v24 = vadd.f32 %v377_v20, %v360_v8 }
 0x230   : > { %489 = vtanh.f32 %v382_v21  ;;  %v384_v25 = vmul.f32 0.7978846, %v380_v22 }
 0x231   : > { %491 = vtanh.f32 %v383_v23  ;;  %v385_v26 = vmul.f32 0.7978846, %v381_v24 }
 0x232   : > { %493 = vtanh.f32 %v384_v25 }
 0x233   : > { %495 = vtanh.f32 %v385_v26 }
 0x23a   : > { %v490_v27 = vpop.eup %489 }
 0x23b   : > { %v492_v28 = vpop.eup %491  ;;  %v390_v30 = vadd.f32 1.0, %v490_v27 }
 0x23c   : > { %v494_v31 = vpop.eup %493  ;;  %v391_v33 = vadd.f32 1.0, %v492_v28 }
 0x23d   : > { %v496_v34 = vpop.eup %495  ;;  %v394_v35 = vmul.f32 %v390_v30, %v362_v29  ;;  %v392_v37 = vadd.f32 1.0, %v494_v31 }
 0x23e   : > { %v395_v38 = vmul.f32 %v391_v33, %v363_v32  ;;  %v393_v40 = vadd.f32 1.0, %v496_v34 }
 0x23f   : > { %398 = vst [vmem:[%s228_s19] sm:$0xff] %v394_v35  ;;  %v396_v41 = vmul.f32 %v392_v37, %v364_v36 }
 0x240   : > { %399 = vst [vmem:[%s228_s19 + $0x8] sm:$0xff] %v395_v38  ;;  %v397_v42 = vmul.f32 %v393_v40, %v365_v39 }
 0x241   : > { %400 = vst [vmem:[%s228_s19 + $0x10] sm:$0xff] %v396_v41 }
 0x242   : > { %401 = vst [vmem:[%s228_s19 + $0x18] sm:$0xff] %v397_v42 }
 0x243 PF: > { %s15_s18 = sadd.s32 1, %s503_s18  }
 0x244   : > { %p12_p4 = scmp.ge.s32.totalorder %s15_s18, 4  }
 0x246   :  { %14 = sbr.rel (!%p12_p4) target bundleno = 1 (0x1), region = 70 }

// kernel: swin_forward.36
= control target key start
LH: loop header
LB: loop body
LE: loop exit
PB: predicated region body
PF: predicated region fallthrough
CT: control target
= control target key end

     0   :  { %s922_s9 = smov 0   ;;  %s1058_s0 = inlined_call_operand.vmem [shape: f32[2,16,192], index: 0, kind: input, shape index: {}]   ;;  %s1059_s1 = inlined_call_operand.vmem [shape: f32[4,16,16], index: 1, kind: input, shape index: {}]   ;;  %s1060_s2 = inlined_call_operand.vmem [shape: f32[2,16,64], index: 2, kind: output, shape index: {}]  }
   0x1 LB: > { %s750_s10 = sadd.s32 4294967295, %s896_s9   ;;  %p754_p0 = scmp.ge.s32.totalorder %s896_s9, 1  ;;  %s896_s9 = sphi %s922_s9, %s12_s9  }
   0x2   : > { %p112_p1 = scmp.lt.s32.totalorder %s896_s9, 3 }
   0x4   : > { %p113_p2 = pnand %p754_p0, %p112_p1 }
   0x5   : > { %p134_p3 = scmp.lt.s32.totalorder (!%p113_p2), %s750_s10, 1  ;;  %v898_v0 = vmov (!%p113_p2), 0.0   ;;  %vm899_vm0 = vmmov (!%p113_p2), 0   ;;  %s900_s15 = smov (!%p113_p2), 64   ;;  %vm153_vm1 = vcmask (!%p113_p2), 130048   ;;  %v203_v7 = vld [vmem:[%s1059_s1] sm:$0xff] (!%p113_p2) }
   0x6   : > { %116 = sbr.rel (%p113_p2) target bundleno = 1613 (0x64d), region = 28  ;;  %793 = vmatprep.subr.bf16.mxu0 (!%p113_p2), %v898_v0  ;;  %795 = vmatprep.mubr.msk.bf16.mxu0 (!%p113_p2), %vm899_vm0, %v898_v0  ;;  %v204_v11 = vld [vmem:[%s1059_s1 + $0x8] sm:$0xff] (!%p113_p2)  ;;  %s901_s20 = smov (!%p113_p2), 48   ;;  %v762_v52 = vld [vmem:[%s1059_s1 + $0x10] sm:$0xff] (!%p113_p2)  ;;  %v763_v56 = vld [vmem:[%s1059_s1 + $0x18] sm:$0xff] (!%p113_p2)  ;;  %vm414_vm2 = vcmask (!%p113_p2), 261248  }
   0x7   : > { %799 = vmatprep.subr.bf16.mxu1 (!%p113_p2), %v898_v0  ;;  %801 = vmatprep.mubr.msk.bf16.mxu1 (!%p113_p2), %vm899_vm0, %v898_v0  ;;  %s902_s21 = smov (!%p113_p2), 96   ;;  %s903_s22 = smov (!%p113_p2), 112   ;;  %vm553_vm3 = vcmask (!%p113_p2), 392448   ;;  %vm692_vm4 = vcmask (!%p113_p2), 523648  }
   0x8   : > { %s904_s23 = smov (!%p113_p2), 32   ;;  %s905_s24 = smov (!%p113_p2), 16  }
   0x9   : > { %s906_s25 = smov (!%p113_p2), 80  }
   0xd   : > { %s1062_s10 = smov (!%p134_p3, %s750_s10), 1 }
   0xe   : > { %s775_s11 = sshll.u32 %s1062_s10, 5  ;;  %s776_s26 = sshll.u32 %s1062_s10, 4 }
   0xf   : > { %s942_s14 = scalar_lea.vmem %s1058_s0, %s775_s11  ;;  %s992_s29 = scalar_lea.vmem %s1060_s2, %s776_s26 }
  0x10   : > { %v145_v1 = vld [vmem:[%s942_s14] sm:$0xff]  ;;  %v147_v2 = vld [vmem:[%s942_s14 + $0x10] sm:$0xff]  ;;  %v146_v28 = vld [vmem:[%s942_s14 + $0x8] sm:$0xff] }
  0x11   : > { %v149_v3 = vpack.c.bf16 %v147_v2, %v145_v1  ;;  %v148_v29 = vld [vmem:[%s942_s14 + $0x18] sm:$0xff]  ;;  %v766_v1 = vld [vmem:[%s1059_s1 + $0x20] sm:$0xff] }
  0x12   : > { %v965_v30 = vpack.c.bf16 %v148_v29, %v146_v28 }
  0x13   : > { %151 = vrot.lane.b32.xlu0 %v149_v3, %s900_s15 }
  0x14   : > { %800 = vmatpush3.bf16.msra.mxu1 %v965_v30 }
  0x15   : > { %805 = vmatprep.subr.bf16.mxu1 %v898_v0 }
  0x85   : > { %v152_v4 = vpop.permute.xlu0 %151 }
  0x86   : > { %v158_v5 = vsel %vm153_vm1, %v152_v4, 0 }
  0x87   : > { %794 = vmatpush3.bf16.xpose.msra.mxu0 %v158_v5  ;;  %v767_v5 = vld [vmem:[%s1059_s1 + $0x28] sm:$0xff] }
  0x88   : > { %811 = vmatprep.subr.bf16.mxu0 %v898_v0 }
  0x8e   : > { %796 = vmatmul.mubr.msk.bf16.vlgmr.msra.gmra.mrb[0].mxu0 %vm153_vm1, %v149_v3 }
  0x8f   : > { %813 = vmatprep.mubr.msk.bf16.mxu0 %vm899_vm0, %v898_v0 }
 0x161   : > { %v194_v6 = vpop.f32.mrb[0].mxu0 }
 0x162   : > { %v201_v8 = vmul.f32 0.25, %v194_v6  ;;  %v797_v9 = vpop.f32.mrb[1].mxu0 }
 0x163   : > { %v197_v10 = vpop.f32.mrb[2].mxu0 }
 0x164   : > { %v202_v12 = vmul.f32 0.25, %v197_v10  ;;  %v798_v13 = vpop.f32.mrb[3].mxu0  ;;  %v205_v14 = vadd.f32 %v203_v7, %v201_v8 }
 0x166   : > { %v207_v15 = vsel %vm153_vm1, %v205_v14, -inf  ;;  %v206_v16 = vadd.f32 %v204_v11, %v202_v12  ;;  %v770_v12 = vld [vmem:[%s1059_s1 + $0x30] sm:$0xff] }
 0x167   : > { %208 = vmax.xlane.f32.xlu0 %v207_v15 }
 0x168   : > { %v210_v17 = vsel %vm153_vm1, %v206_v16, -inf }
 0x169   : > { %211 = vmax.xlane.f32.xlu1 %v210_v17  ;;  %v771_v17 = vld [vmem:[%s1059_s1 + $0x38] sm:$0xff] }
 0x17a   : > { %279 = vrot.lane.b32.xlu1 %v149_v3, %s901_s20 }
 0x17d   : > { %417 = vrot.lane.b32.xlu0 %v149_v3, %s902_s21 }
 0x1f4   : > { %v209_v18 = vpop.xlane.xlu0 %208 }
 0x1f5   : > { %v213_v19 = vsub.f32 %v205_v14, %v209_v18 }
 0x1f6   : > { %v212_v20 = vpop.xlane.xlu1 %211 }
 0x1f7   : > { %v215_v21 = vmul.f32 1.442695, %v213_v19  ;;  %v214_v22 = vsub.f32 %v206_v16, %v212_v20 }
 0x1f8   : > { %v418_v44 = vpop.permute.xlu0 %417 }
 0x1f9   : > { %858 = vpow2.f32 %v215_v21  ;;  %v217_v23 = vmul.f32 1.442695, %v214_v22 }
 0x1fa   : > { %v280_v31 = vpop.permute.xlu1 %279 }
 0x1fb   : > { %860 = vpow2.f32 %v217_v23  ;;  %v285_v40 = vsel %vm153_vm1, %v280_v31, 0 }
 0x203   : > { %v859_v24 = vpop.eup %858 }
 0x204   : > { %v219_v25 = vsel %vm153_vm1, %v859_v24, 0.0 }
 0x205   : > { %v861_v26 = vpop.eup %860  ;;  %220 = vadd.xlane.f32.xlu1 %v219_v25 }
 0x206   : > { %v222_v27 = vsel %vm153_vm1, %v861_v26, 0.0 }
 0x209   : > { %223 = vadd.xlane.f32.xlu1 %v222_v27 }
 0x21a   : > { %277 = vrot.lane.b32.xlu1 %v149_v3, %s903_s22 }
 0x21e   : > { %419 = vrot.lane.b32.xlu1 %v149_v3, %s904_s23 }
 0x222   : > { %558 = vrot.lane.b32.xlu1 %v149_v3, %s905_s24 }
 0x226   : > { %556 = vrot.lane.b32.xlu1 %v149_v3, %s906_s25 }
 0x292   : > { %v221_v32 = vpop.xlane.xlu1 %220 }
 0x293   : > { %862 = vrcp.f32 %v221_v32 }
 0x296   : > { %v224_v33 = vpop.xlane.xlu1 %223 }
 0x297   : > { %864 = vrcp.f32 %v224_v33 }
 0x29a   : > { %v278_v38 = vpop.permute.xlu1 %277 }
 0x29d   : > { %v863_v34 = vpop.eup %862 }
 0x29e   : > { %v227_v36 = vmul.f32 %v863_v34, %v859_v24  ;;  %v420_v41 = vpop.permute.xlu1 %419 }
 0x29f   : > { %v425_v42 = vsel %vm153_vm1, %v420_v41, 0 }
 0x2a1   : > { %v865_v35 = vpop.eup %864 }
 0x2a2   : > { %v228_v37 = vmul.f32 %v865_v35, %v861_v26  ;;  %v559_v43 = vpop.permute.xlu1 %558 }
 0x2a3   : > { %v564_v45 = vsel %vm153_vm1, %v559_v43, 0 }
 0x2a4   : > { %v229_v39 = vpack.c.bf16 %v228_v37, %v227_v36 }
 0x2a6   : > { %802 = vmatmul.mubr.msk.bf16.vlgmr.msra.gmra.mrb[0].mxu1 %vm153_vm1, %v229_v39  ;;  %v557_v46 = vpop.permute.xlu1 %556 }
 0x2a7   : > { %806 = vmatpush3.bf16.xpose.msra.mxu1 %v285_v40  ;;  %807 = vmatprep.mubr.msk.bf16.mxu1 %vm899_vm0, %v898_v0 }
 0x2a8   : > { %817 = vmatprep.subr.bf16.mxu1 %v898_v0 }
 0x2ae   : > { %808 = vmatmul.mubr.msk.bf16.vlgmr.msra.gmra.mrb[4].mxu1 %vm153_vm1, %v278_v38 }
 0x2af   : > { %818 = vmatpush3.bf16.xpose.msra.mxu1 %v425_v42  ;;  %819 = vmatprep.mubr.msk.bf16.mxu1 %vm899_vm0, %v898_v0 }
 0x2b0   : > { %829 = vmatprep.subr.bf16.mxu1 %v898_v0 }
 0x2b6   : > { %820 = vmatmul.mubr.msk.bf16.vlgmr.msra.gmra.mrb[8].mxu1 %vm153_vm1, %v418_v44 }
 0x2b7   : > { %830 = vmatpush3.bf16.xpose.msra.mxu1 %v564_v45  ;;  %831 = vmatprep.mubr.msk.bf16.mxu1 %vm899_vm0, %v898_v0 }
 0x2be   : > { %832 = vmatmul.mubr.msk.bf16.vlgmr.msra.gmra.mrb[12].mxu1 %vm153_vm1, %v557_v46 }
 0x379   : > { %v268_v47 = vpop.f32.mrb[0].mxu1 }
 0x37a   : > { %275 = vst.msk [vmem:[%s992_s29] sm:$0xff] %vm153_vm1, %v268_v47  ;;  %v803_v48 = vpop.f32.mrb[1].mxu1 }
 0x37b   : > { %v271_v49 = vpop.f32.mrb[2].mxu1 }
 0x37c   : > { %276 = vst.msk [vmem:[%s992_s29 + $0x8] sm:$0xff] %vm153_vm1, %v271_v49  ;;  %v804_v50 = vpop.f32.mrb[3].mxu1 }
 0x381   : > { %v321_v51 = vpop.f32.mrb[4].mxu1 }
 0x382   : > { %v328_v53 = vmul.f32 0.25, %v321_v51  ;;  %v809_v54 = vpop.f32.mrb[5].mxu1 }
 0x383   : > { %v324_v55 = vpop.f32.mrb[6].mxu1 }
 0x384   : > { %v329_v57 = vmul.f32 0.25, %v324_v55  ;;  %v810_v58 = vpop.f32.mrb[7].mxu1  ;;  %v333_v59 = vadd.f32 %v762_v52, %v328_v53 }
 0x386   : > { %v335_v60 = vsel %vm153_vm1, %v333_v59, -inf  ;;  %v334_v61 = vadd.f32 %v763_v56, %v329_v57 }
 0x387   : > { %336 = vmax.xlane.f32.xlu1 %v335_v60 }
 0x388   : > { %v338_v62 = vsel %vm153_vm1, %v334_v61, -inf }
 0x389   : > { %339 = vmax.xlane.f32.xlu0 %v338_v62  ;;  %v461_v63 = vpop.f32.mrb[8].mxu1 }
 0x38a   : > { %v468_v2 = vmul.f32 0.25, %v461_v63  ;;  %v821_v3 = vpop.f32.mrb[9].mxu1 }
 0x38b   : > { %v464_v4 = vpop.f32.mrb[10].mxu1 }
 0x38c   : > { %v469_v6 = vmul.f32 0.25, %v464_v4  ;;  %v822_v7 = vpop.f32.mrb[11].mxu1  ;;  %v473_v8 = vadd.f32 %v766_v1, %v468_v2 }
 0x38e   : > { %v475_v9 = vsel %vm153_vm1, %v473_v8, -inf  ;;  %v474_v10 = vadd.f32 %v767_v5, %v469_v6 }
 0x38f   : > { %476 = vmax.xlane.f32.xlu1 %v475_v9 }
 0x390   : > { %v478_v15 = vsel %vm153_vm1, %v474_v10, -inf }
 0x391   : > { %v600_v11 = vpop.f32.mrb[12].mxu1 }
 0x392   : > { %v607_v13 = vmul.f32 0.25, %v600_v11  ;;  %v833_v14 = vpop.f32.mrb[13].mxu1 }
 0x393   : > { %479 = vmax.xlane.f32.xlu1 %v478_v15  ;;  %v603_v16 = vpop.f32.mrb[14].mxu1 }
 0x394   : > { %v608_v18 = vmul.f32 0.25, %v603_v16  ;;  %v612_v19 = vadd.f32 %v770_v12, %v607_v13  ;;  %v834_v20 = vpop.f32.mrb[15].mxu1 }
 0x396   : > { %v614_v21 = vsel %vm153_vm1, %v612_v19, -inf  ;;  %v613_v22 = vadd.f32 %v771_v17, %v608_v18 }
 0x397   : > { %615 = vmax.xlane.f32.xlu0 %v614_v21 }
 0x398   : > { %v617_v23 = vsel %vm153_vm1, %v613_v22, -inf }
 0x399   : > { %618 = vmax.xlane.f32.xlu1 %v617_v23 }
 0x414   : > { %v337_v24 = vpop.xlane.xlu1 %336 }
 0x415   : > { %v341_v25 = vsub.f32 %v333_v59, %v337_v24 }
 0x416   : > { %v340_v26 = vpop.xlane.xlu0 %339 }
 0x417   : > { %v343_v27 = vmul.f32 1.442695, %v341_v25  ;;  %v342_v28 = vsub.f32 %v334_v61, %v340_v26 }
 0x419   : > { %866 = vpow2.f32 %v343_v27  ;;  %v345_v29 = vmul.f32 1.442695, %v342_v28 }
 0x41b   : > { %868 = vpow2.f32 %v345_v29 }
 0x41c   : > { %v477_v31 = vpop.xlane.xlu1 %476 }
 0x41d   : > { %v481_v32 = vsub.f32 %v473_v8, %v477_v31 }
 0x41f   : > { %v483_v33 = vmul.f32 1.442695, %v481_v32 }
 0x420   : > { %v480_v34 = vpop.xlane.xlu1 %479 }
 0x421   : > { %870 = vpow2.f32 %v483_v33  ;;  %v482_v35 = vsub.f32 %v474_v10, %v480_v34 }
 0x423   : > { %v867_v36 = vpop.eup %866  ;;  %v485_v37 = vmul.f32 1.442695, %v482_v35 }
 0x424   : > { %v616_v38 = vpop.xlane.xlu0 %615  ;;  %v347_v39 = vsel %vm153_vm1, %v867_v36, 0.0 }
 0x425   : > { %v869_v40 = vpop.eup %868  ;;  %872 = vpow2.f32 %v485_v37  ;;  %v620_v41 = vsub.f32 %v612_v19, %v616_v38  ;;  %348 = vadd.xlane.f32.xlu0 %v347_v39 }
 0x426   : > { %v350_v42 = vsel %vm153_vm1, %v869_v40, 0.0  ;;  %v619_v50 = vpop.xlane.xlu1 %618 }
 0x427   : > { %v622_v43 = vmul.f32 1.442695, %v620_v41  ;;  %351 = vadd.xlane.f32.xlu1 %v350_v42  ;;  %v621_v51 = vsub.f32 %v613_v22, %v619_v50 }
 0x429   : > { %874 = vpow2.f32 %v622_v43  ;;  %v624_v52 = vmul.f32 1.442695, %v621_v51 }
 0x42b   : > { %v871_v44 = vpop.eup %870  ;;  %876 = vpow2.f32 %v624_v52 }
 0x42c   : > { %v487_v45 = vsel %vm153_vm1, %v871_v44, 0.0 }
 0x42d   : > { %488 = vadd.xlane.f32.xlu0 %v487_v45 }
 0x42f   : > { %v873_v46 = vpop.eup %872 }
 0x430   : > { %v490_v47 = vsel %vm153_vm1, %v873_v46, 0.0 }
 0x431   : > { %491 = vadd.xlane.f32.xlu1 %v490_v47 }
 0x433   : > { %v875_v48 = vpop.eup %874 }
 0x434   : > { %v626_v49 = vsel %vm153_vm1, %v875_v48, 0.0 }
 0x435   : > { %627 = vadd.xlane.f32.xlu0 %v626_v49  ;;  %v877_v53 = vpop.eup %876 }
 0x436   : > { %v629_v54 = vsel %vm153_vm1, %v877_v53, 0.0 }
 0x442   : > { %498 = vrot.lane.b32.xlu1 %v965_v30, %s902_s21 }
 0x44b   : > { %359 = vrot.lane.b32.xlu0 %v965_v30, %s903_s22 }
 0x466   : > { %630 = vadd.xlane.f32.xlu1 %v629_v54 }
 0x477   : > { %637 = vrot.lane.b32.xlu1 %v965_v30, %s906_s25 }
 0x4b2   : > { %v349_v56 = vpop.xlane.xlu0 %348 }
 0x4b4   : > { %v352_v55 = vpop.xlane.xlu1 %351 }
 0x4b5   : > { %878 = vrcp.f32 %v352_v55 }
 0x4b6   : > { %880 = vrcp.f32 %v349_v56 }
 0x4ba   : > { %v489_v57 = vpop.xlane.xlu0 %488 }
 0x4be   : > { %v492_v58 = vpop.xlane.xlu1 %491 }
 0x4bf   : > { %882 = vrcp.f32 %v492_v58  ;;  %v879_v59 = vpop.eup %878 }
 0x4c0   : > { %884 = vrcp.f32 %v489_v57  ;;  %v881_v61 = vpop.eup %880  ;;  %v356_v62 = vmul.f32 %v879_v59, %v869_v40 }
 0x4c1   : > { %v355_v63 = vmul.f32 %v881_v61, %v867_v36 }
 0x4c2   : > { %v628_v60 = vpop.xlane.xlu0 %627  ;;  %v499_v30 = vpop.permute.xlu1 %498 }
 0x4c3   : > { %v357_v2 = vpack.c.bf16 %v356_v62, %v355_v63  ;;  %886 = vrcp.f32 %v628_v60 }
 0x4c6   : > { %v360_v1 = vpop.permute.xlu0 %359 }
 0x4c7   : > { %812 = vmatpush3.bf16.msra.mxu0 %v360_v1 }
 0x4c8   : > { %823 = vmatprep.subr.bf16.mxu0 %v898_v0 }
 0x4c9   : > { %v883_v3 = vpop.eup %882 }
 0x4ca   : > { %814 = vmatmul.mubr.msk.bf16.vlgmr.msra.gmra.mrb[4].mxu0 %vm153_vm1, %v357_v2  ;;  %v885_v4 = vpop.eup %884  ;;  %v496_v5 = vmul.f32 %v883_v3, %v873_v46 }
 0x4cb   : > { %824 = vmatpush3.bf16.msra.mxu0 %v499_v30  ;;  %825 = vmatprep.mubr.msk.bf16.mxu0 %vm899_vm0, %v898_v0  ;;  %v495_v6 = vmul.f32 %v885_v4, %v871_v44 }
 0x4cc   : > { %835 = vmatprep.subr.bf16.mxu0 %v898_v0 }
 0x4cd   : > { %v497_v7 = vpack.c.bf16 %v496_v5, %v495_v6  ;;  %v887_v10 = vpop.eup %886 }
 0x4ce   : > { %v634_v12 = vmul.f32 %v887_v10, %v875_v48 }
 0x4d2   : > { %826 = vmatmul.mubr.msk.bf16.vlgmr.msra.gmra.mrb[8].mxu0 %vm153_vm1, %v497_v7 }
 0x4d3   : > { %837 = vmatprep.mubr.msk.bf16.mxu0 %vm899_vm0, %v898_v0 }
 0x4f3   : > { %v631_v8 = vpop.xlane.xlu1 %630 }
 0x4f4   : > { %888 = vrcp.f32 %v631_v8 }
 0x4f7   : > { %v638_v9 = vpop.permute.xlu1 %637 }
 0x4f8   : > { %836 = vmatpush3.bf16.msra.mxu0 %v638_v9 }
 0x4fe   : > { %v889_v11 = vpop.eup %888 }
 0x4ff   : > { %v635_v13 = vmul.f32 %v889_v11, %v877_v53 }
 0x501   : > { %v636_v14 = vpack.c.bf16 %v635_v13, %v634_v12 }
 0x503   : > { %838 = vmatmul.mubr.msk.bf16.vlgmr.msra.gmra.mrb[12].mxu0 %vm153_vm1, %v636_v14 }
 0x59d   : > { %v399_v15 = vpop.f32.mrb[4].mxu0 }
 0x59e   : > { %408 = vrot.lane.b32.xlu0 %v399_v15, %s905_s24  ;;  %v815_v16 = vpop.f32.mrb[5].mxu0 }
 0x59f   : > { %v402_v17 = vpop.f32.mrb[6].mxu0 }
 0x5a0   : > { %410 = vrot.lane.b32.xlu1 %v402_v17, %s905_s24  ;;  %v816_v0 = vpop.f32.mrb[7].mxu0 }
 0x5a5   : > { %v538_v18 = vpop.f32.mrb[8].mxu0 }
 0x5a6   : > { %547 = vrot.lane.b32.xlu0 %v538_v18, %s904_s23  ;;  %v827_v19 = vpop.f32.mrb[9].mxu0 }
 0x5a7   : > { %v541_v20 = vpop.f32.mrb[10].mxu0 }
 0x5a8   : > { %549 = vrot.lane.b32.xlu1 %v541_v20, %s904_s23  ;;  %v828_v21 = vpop.f32.mrb[11].mxu0 }
 0x5d6   : > { %v677_v22 = vpop.f32.mrb[12].mxu0 }
 0x5d7   : > { %686 = vrot.lane.b32.xlu0 %v677_v22, %s901_s20  ;;  %v839_v23 = vpop.f32.mrb[13].mxu0 }
 0x5d8   : > { %v680_v24 = vpop.f32.mrb[14].mxu0 }
 0x5d9   : > { %688 = vrot.lane.b32.xlu1 %v680_v24, %s901_s20  ;;  %v840_v25 = vpop.f32.mrb[15].mxu0 }
 0x610   : > { %v409_v26 = vpop.permute.xlu0 %408 }
 0x611   : > { %415 = vst.msk [vmem:[%s992_s29] sm:$0xff] %vm414_vm2, %v409_v26 }
 0x612   : > { %v411_v27 = vpop.permute.xlu1 %410 }
 0x613   : > { %416 = vst.msk [vmem:[%s992_s29 + $0x8] sm:$0xff] %vm414_vm2, %v411_v27 }
 0x618   : > { %v548_v28 = vpop.permute.xlu0 %547 }
 0x619   : > { %554 = vst.msk [vmem:[%s992_s29] sm:$0xff] %vm553_vm3, %v548_v28 }
 0x61a   : > { %v550_v29 = vpop.permute.xlu1 %549 }
 0x61b   : > { %555 = vst.msk [vmem:[%s992_s29 + $0x8] sm:$0xff] %vm553_vm3, %v550_v29 }
 0x649   : > { %v687_v31 = vpop.permute.xlu0 %686 }
 0x64a   : > { %693 = vst.msk [vmem:[%s992_s29] sm:$0xff] %vm692_vm4, %v687_v31 }
 0x64b   : > { %v689_v32 = vpop.permute.xlu1 %688 }
 0x64c   : > { %694 = vst.msk [vmem:[%s992_s29 + $0x8] sm:$0xff] %vm692_vm4, %v689_v32 }
 0x64d PF: > { %s12_s9 = sadd.s32 1, %s896_s9  }
 0x64e   : > { %p9_p4 = scmp.ge.s32.totalorder %s12_s9, 4  }
 0x650   :  { %11 = sbr.rel (!%p9_p4) target bundleno = 1 (0x1), region = 61 }

// kernel: swin_forward.39
= control target key start
LH: loop header
LB: loop body
LE: loop exit
PB: predicated region body
PF: predicated region fallthrough
CT: control target
= control target key end

     0   :  { %s411_s12 = smov 0   ;;  %s537_s0 = inlined_call_operand.vmem [shape: f32[32,256], index: 0, kind: input, shape index: {}]   ;;  %s538_s1 = inlined_call_operand.vmem [shape: f32[256,64], index: 1, kind: input, shape index: {}]   ;;  %s539_s2 = inlined_call_operand.vmem [shape: f32[1,64], index: 2, kind: input, shape index: {}]   ;;  %s540_s3 = inlined_call_operand.vmem [shape: f32[32,64], index: 3, kind: output, shape index: {}]  }
   0x1 LB: > { %s339_s13 = sadd.s32 4294967295, %s389_s12   ;;  %p343_p0 = scmp.ge.s32.totalorder %s389_s12, 1  ;;  %s389_s12 = sphi %s411_s12, %s13_s12  }
   0x2   : > { %p139_p1 = scmp.lt.s32.totalorder %s389_s12, 3 }
   0x4   : > { %p140_p2 = pnand %p343_p0, %p139_p1 }
   0x5   : > { %v200_v0 = vld [vmem:[%s538_s1 + $0x80] sm:$0xff] (!%p140_p2)  ;;  %v201_v1 = vld [vmem:[%s538_s1 + $0x88] sm:$0xff] (!%p140_p2)  ;;  %s344_s20 = sshll.u32 (!%p140_p2), %s339_s13, 1  ;;  %v202_v5 = vld [vmem:[%s538_s1 + $0x90] sm:$0xff] (!%p140_p2)  ;;  %vm280_vm0 = vcmask (!%p140_p2), 523264  }
   0x6   : > { %143 = sbr.rel (%p140_p2) target bundleno = 260 (0x104), region = 32  ;;  %v184_v2 = vld [vmem:[%s538_s1] sm:$0xff] (!%p140_p2)  ;;  %v224_v3 = vpack.c.bf16 (!%p140_p2), %v201_v1, %v200_v0  ;;  %v185_v4 = vld [vmem:[%s538_s1 + $0x8] sm:$0xff] (!%p140_p2)  ;;  %v203_v6 = vld [vmem:[%s538_s1 + $0x98] sm:$0xff] (!%p140_p2)  ;;  %p165_p3 = scmp.lt.s32.totalorder (!%p140_p2), %s344_s20, 3 }
   0x7   : > { %v216_v7 = vpack.c.bf16 (!%p140_p2), %v185_v4, %v184_v2  ;;  %v225_v8 = vpack.c.bf16 (!%p140_p2), %v203_v6, %v202_v5  ;;  %v186_v9 = vld [vmem:[%s538_s1 + $0x10] sm:$0xff] (!%p140_p2)  ;;  %v187_v10 = vld [vmem:[%s538_s1 + $0x18] sm:$0xff] (!%p140_p2)  ;;  %v204_v11 = vld [vmem:[%s538_s1 + $0xa0] sm:$0xff] (!%p140_p2) }
   0x8   : > { %353 = vmatprep.subr.bf16.mxu0 (!%p140_p2), %v224_v3  ;;  %v205_v12 = vld [vmem:[%s538_s1 + $0xa8] sm:$0xff] (!%p140_p2)  ;;  %v217_v13 = vpack.c.bf16 (!%p140_p2), %v187_v10, %v186_v9  ;;  %v188_v15 = vld [vmem:[%s538_s1 + $0x20] sm:$0xff] (!%p140_p2)  ;;  %v206_v17 = vld [vmem:[%s538_s1 + $0xb0] sm:$0xff] (!%p140_p2) }
   0x9   : > { %354 = vmatpush3.bf16.msra.mxu0 (!%p140_p2), %v216_v7  ;;  %v226_v14 = vpack.c.bf16 (!%p140_p2), %v205_v12, %v204_v11  ;;  %v189_v16 = vld [vmem:[%s538_s1 + $0x28] sm:$0xff] (!%p140_p2)  ;;  %v207_v18 = vld [vmem:[%s538_s1 + $0xb8] sm:$0xff] (!%p140_p2)  ;;  %v190_v21 = vld [vmem:[%s538_s1 + $0x30] sm:$0xff] (!%p140_p2) }
   0xa   : > { %355 = vmatprep.subr.bf16.mxu0 (!%p140_p2), %v225_v8  ;;  %v218_v19 = vpack.c.bf16 (!%p140_p2), %v189_v16, %v188_v15  ;;  %v227_v20 = vpack.c.bf16 (!%p140_p2), %v207_v18, %v206_v17  ;;  %v191_v22 = vld [vmem:[%s538_s1 + $0x38] sm:$0xff] (!%p140_p2)  ;;  %v208_v23 = vld [vmem:[%s538_s1 + $0xc0] sm:$0xff] (!%p140_p2)  ;;  %v209_v24 = vld [vmem:[%s538_s1 + $0xc8] sm:$0xff] (!%p140_p2) }
   0xb   : > { %v219_v27 = vpack.c.bf16 (!%p140_p2), %v191_v22, %v190_v21  ;;  %v228_v29 = vpack.c.bf16 (!%p140_p2), %v209_v24, %v208_v23  ;;  %v192_v30 = vld [vmem:[%s538_s1 + $0x40] sm:$0xff] (!%p140_p2)  ;;  %v193_v31 = vld [vmem:[%s538_s1 + $0x48] sm:$0xff] (!%p140_p2)  ;;  %v210_v32 = vld [vmem:[%s538_s1 + $0xd0] sm:$0xff] (!%p140_p2) }
   0xc   : > { %v211_v33 = vld [vmem:[%s538_s1 + $0xd8] sm:$0xff] (!%p140_p2)  ;;  %v220_v34 = vpack.c.bf16 (!%p140_p2), %v193_v31, %v192_v30  ;;  %v194_v36 = vld [vmem:[%s538_s1 + $0x50] sm:$0xff] (!%p140_p2)  ;;  %v212_v38 = vld [vmem:[%s538_s1 + $0xe0] sm:$0xff] (!%p140_p2) }
   0xd   : > { %s542_s20 = smov (!%p165_p3, %s344_s20), 3  ;;  %356 = vmatpush3.bf16.msra.mxu0 %v217_v13  ;;  %v229_v35 = vpack.c.bf16 %v211_v33, %v210_v32  ;;  %v195_v37 = vld [vmem:[%s538_s1 + $0x58] sm:$0xff]  ;;  %v213_v39 = vld [vmem:[%s538_s1 + $0xe8] sm:$0xff]  ;;  %v196_v42 = vld [vmem:[%s538_s1 + $0x60] sm:$0xff] }
   0xe   : > { %s352_s13 = sshll.u32 %s542_s20, 4  ;;  %357 = vmatprep.subr.bf16.mxu0 %v226_v14  ;;  %v221_v40 = vpack.c.bf16 %v195_v37, %v194_v36  ;;  %v230_v41 = vpack.c.bf16 %v213_v39, %v212_v38  ;;  %v197_v43 = vld [vmem:[%s538_s1 + $0x68] sm:$0xff]  ;;  %v214_v44 = vld [vmem:[%s538_s1 + $0xf0] sm:$0xff]  ;;  %v215_v45 = vld [vmem:[%s538_s1 + $0xf8] sm:$0xff]  ;;  %s348_s7 = sshll.u32 %s542_s20, 3 }
   0xf   : > { %s467_s21 = scalar_lea.vmem %s537_s0, %s352_s13  ;;  %v222_v46 = vpack.c.bf16 %v197_v43, %v196_v42  ;;  %v231_v47 = vpack.c.bf16 %v215_v45, %v214_v44  ;;  %v198_v48 = vld [vmem:[%s538_s1 + $0x70] sm:$0xff]  ;;  %v199_v49 = vld [vmem:[%s538_s1 + $0x78] sm:$0xff]  ;;  %v349_v55 = vld [vmem:[%s539_s2] ss:$0 sm:$0xff]  ;;  %s175_s13 = scalar_lea.vmem %s540_s3, %s348_s7 }
  0x10   : > { %v179_v25 = vld [vmem:[%s467_s21 + $0x8] sm:$0xff]  ;;  %v181_v26 = vld [vmem:[%s467_s21 + $0x18] sm:$0xff]  ;;  %v223_v50 = vpack.c.bf16 %v199_v49, %v198_v48  ;;  %v178_v51 = vld [vmem:[%s467_s21] sm:$0xff] }
  0x11   : > { %358 = vmatpush3.bf16.msra.mxu0 %v218_v19  ;;  %v183_v28 = vpack.c.bf16 %v181_v26, %v179_v25  ;;  %v180_v52 = vld [vmem:[%s467_s21 + $0x10] sm:$0xff] }
  0x12   : > { %359 = vmatprep.subr.bf16.mxu0 %v227_v20  ;;  %v182_v53 = vpack.c.bf16 %v180_v52, %v178_v51 }
  0x13   : > { %271 = vmatprep.mubr.bf16.mxu0 %v183_v28 }
  0x15   : > { %360 = vmatpush3.bf16.msra.mxu0 %v219_v27 }
  0x16   : > { %361 = vmatprep.subr.bf16.mxu0 %v228_v29 }
  0x19   : > { %362 = vmatpush3.bf16.msra.mxu0 %v220_v34 }
  0x1a   : > { %363 = vmatprep.subr.bf16.mxu0 %v229_v35 }
  0x1d   : > { %364 = vmatpush3.bf16.msra.mxu0 %v221_v40 }
  0x1e   : > { %365 = vmatprep.subr.bf16.mxu0 %v230_v41 }
  0x21   : > { %366 = vmatpush3.bf16.msra.mxu0 %v222_v46 }
  0x22   : > { %367 = vmatprep.subr.bf16.mxu0 %v231_v47 }
  0x25   : > { %368 = vmatpush3.bf16.msra.mxu0 %v223_v50 }
  0x28   : > { %272 = vmatmul.mubr.bf16.vlgmr.msra.gmra.mrb[0].mxu0 %v182_v53 }
  0xfb   : > { %v369_v54 = vpop.f32.mrb[0].mxu0 }
  0xfc   : > { %v370_v56 = vpop.f32.mrb[1].mxu0 }
  0xfd   : > { %v371_v57 = vadd.f32 %v370_v56, %v369_v54  ;;  %v372_v58 = vpop.f32.mrb[2].mxu0 }
  0xfe   : > { %v373_v59 = vpop.f32.mrb[3].mxu0 }
  0xff   : > { %v274_v60 = vadd.f32 %v371_v57, %v349_v55  ;;  %v374_v61 = vadd.f32 %v373_v59, %v372_v58 }
 0x101   : > { %281 = vst.msk [vmem:[%s175_s13] sm:$0xff] %vm280_vm0, %v274_v60  ;;  %v277_v62 = vadd.f32 %v374_v61, %v349_v55 }
 0x103   : > { %282 = vst.msk [vmem:[%s175_s13 + $0x8] sm:$0xff] %vm280_vm0, %v277_v62 }
 0x104 PF: > { %s13_s12 = sadd.s32 1, %s389_s12  }
 0x105   : > { %p10_p4 = scmp.ge.s32.totalorder %s13_s12, 4  }
 0x107   :  { %12 = sbr.rel (!%p10_p4) target bundleno = 1 (0x1), region = 62 }

// kernel: swin_forward.45
= control target key start
LH: loop header
LB: loop body
LE: loop exit
PB: predicated region body
PF: predicated region fallthrough
CT: control target
= control target key end

     0   :  { %vm28_vm0 = vcmask 523264   ;;  %s559_s0 = inlined_call_operand.vmem [shape: f32[2,16,64], index: 0, kind: input, shape index: {}]   ;;  %s560_s1 = inlined_call_operand.vmem [shape: f32[1,64], index: 1, kind: input, shape index: {}]   ;;  %s561_s2 = inlined_call_operand.vmem [shape: f32[1,64], index: 2, kind: input, shape index: {}]   ;;  %s562_s3 = inlined_call_operand.vmem [shape: f32[64,512], index: 3, kind: input, shape index: {}]   ;;  %s563_s4 = inlined_call_operand.vmem [shape: f32[1,512], index: 4, kind: input, shape index: {}]   ;;  %s564_s5 = inlined_call_operand.hbm [shape: f32[2,512], index: 5, kind: output, shape index: {}]  }
   0x1   :  { %v22_v0 = vld [vmem:[%s559_s0] sm:$0xff]  ;;  %v24_v1 = vld [vmem:[%s559_s0 + $0x10] sm:$0xff]  ;;  %v23_v2 = vld [vmem:[%s559_s0 + $0x8] sm:$0xff] }
   0x2   :  { %v29_v3 = vsel %vm28_vm0, %v22_v0, 0.0  ;;  %v35_v4 = vsel %vm28_vm0, %v24_v1, 0.0  ;;  %v25_v5 = vld [vmem:[%s559_s0 + $0x18] sm:$0xff] }
   0x3   :  { %10 = vsyncpa [#allocation3], 0  ;;  %30 = vadd.xlane.f32.xlu0 %v29_v3  ;;  %36 = vadd.xlane.f32.xlu1 %v35_v4  ;;  %v32_v6 = vsel %vm28_vm0, %v23_v2, 0.0  ;;  %v38_v7 = vsel %vm28_vm0, %v25_v5, 0.0  ;;  %v126_v28 = vld [vmem:[%s562_s3 + $0x8] sm:$0xff]  ;;  %v128_v30 = vld [vmem:[%s562_s3 + $0x18] sm:$0xff] }
   0x4   :  { %v130_v29 = vld [vmem:[%s562_s3 + $0x28] sm:$0xff]  ;;  %v132_v32 = vld [vmem:[%s562_s3 + $0x38] sm:$0xff]  ;;  %v125_v33 = vld [vmem:[%s562_s3] sm:$0xff]  ;;  %v363_v35 = vmov 0   ;;  %vm199_vm1 = vcmask 1041409  }
   0x5   :  { %v158_v31 = vpack.c.bf16 %v130_v29, %v126_v28  ;;  %v129_v34 = vld [vmem:[%s562_s3 + $0x20] sm:$0xff]  ;;  %237 = vmatprep.mubr.bf16.mxu0 %v363_v35  ;;  %278 = vmatprep.mubr.bf16.mxu1 %v363_v35  ;;  %v160_v36 = vpack.c.bf16 %v132_v32, %v128_v30  ;;  %v127_v38 = vld [vmem:[%s562_s3 + $0x10] sm:$0xff]  ;;  %v134_v40 = vld [vmem:[%s562_s3 + $0x48] sm:$0xff] }
   0x6   :  { %v157_v37 = vpack.c.bf16 %v129_v34, %v125_v33  ;;  %v131_v39 = vld [vmem:[%s562_s3 + $0x30] sm:$0xff]  ;;  %v138_v42 = vld [vmem:[%s562_s3 + $0x68] sm:$0xff]  ;;  %v136_v43 = vld [vmem:[%s562_s3 + $0x58] sm:$0xff] }
   0x7   :  { %33 = vadd.xlane.f32.xlu0 %v32_v6  ;;  %39 = vadd.xlane.f32.xlu1 %v38_v7  ;;  %v159_v41 = vpack.c.bf16 %v131_v39, %v127_v38  ;;  %v140_v44 = vld [vmem:[%s562_s3 + $0x78] sm:$0xff]  ;;  %v162_v45 = vpack.c.bf16 %v138_v42, %v134_v40  ;;  %v133_v47 = vld [vmem:[%s562_s3 + $0x40] sm:$0xff]  ;;  %v135_v49 = vld [vmem:[%s562_s3 + $0x50] sm:$0xff] }
   0x8   :  { %205 = vmatprep.subr.bf16.mxu0 %v158_v31  ;;  %246 = vmatprep.subr.bf16.mxu1 %v160_v36  ;;  %v164_v46 = vpack.c.bf16 %v140_v44, %v136_v43  ;;  %v137_v48 = vld [vmem:[%s562_s3 + $0x60] sm:$0xff]  ;;  %v139_v51 = vld [vmem:[%s562_s3 + $0x70] sm:$0xff]  ;;  %v142_v52 = vld [vmem:[%s562_s3 + $0x88] sm:$0xff] }
   0x9   :  { %206 = vmatpush1.bf16.msra.mxu0 %v157_v37  ;;  %247 = vmatpush1.bf16.msra.mxu1 %v159_v41  ;;  %v161_v50 = vpack.c.bf16 %v137_v48, %v133_v47  ;;  %v146_v53 = vld [vmem:[%s562_s3 + $0xa8] sm:$0xff]  ;;  %v163_v54 = vpack.c.bf16 %v139_v51, %v135_v49  ;;  %v144_v56 = vld [vmem:[%s562_s3 + $0x98] sm:$0xff]  ;;  %v141_v58 = vld [vmem:[%s562_s3 + $0x80] sm:$0xff] }
   0xa   :  { %207 = vmatprep.subr.bf16.mxu0 %v162_v45  ;;  %248 = vmatprep.subr.bf16.mxu1 %v164_v46  ;;  %v166_v55 = vpack.c.bf16 %v146_v53, %v142_v52  ;;  %v148_v57 = vld [vmem:[%s562_s3 + $0xb8] sm:$0xff]  ;;  %v145_v60 = vld [vmem:[%s562_s3 + $0xa0] sm:$0xff]  ;;  %v143_v61 = vld [vmem:[%s562_s3 + $0x90] sm:$0xff] }
   0xb   :  { %v168_v59 = vpack.c.bf16 %v148_v57, %v144_v56  ;;  %v147_v62 = vld [vmem:[%s562_s3 + $0xb0] sm:$0xff]  ;;  %v165_v63 = vpack.c.bf16 %v145_v60, %v141_v58  ;;  %v149_v6 = vld [vmem:[%s562_s3 + $0xc0] sm:$0xff] }
   0xc   :  { %v167_v3 = vpack.c.bf16 %v147_v62, %v143_v61  ;;  %v153_v7 = vld [vmem:[%s562_s3 + $0xe0] sm:$0xff] }
   0xd   :  { %208 = vmatpush1.bf16.msra.mxu0 %v161_v50  ;;  %249 = vmatpush1.bf16.msra.mxu1 %v163_v54  ;;  %v324_v30 = vld [vmem:[%s560_s1] ss:$0 sm:$0xff] }
   0xe   :  { %209 = vmatprep.subr.bf16.mxu0 %v166_v55  ;;  %250 = vmatprep.subr.bf16.mxu1 %v168_v59  ;;  %v325_v34 = vld [vmem:[%s561_s2] ss:$0 sm:$0xff] }
  0x11   :  { %210 = vmatpush1.bf16.msra.mxu0 %v165_v63  ;;  %251 = vmatpush1.bf16.msra.mxu1 %v167_v3 }
  0x90   :  { %v31_v8 = vpop.xlane.xlu0 %30  ;;  %v37_v9 = vpop.xlane.xlu1 %36 }
  0x91   :  { %v42_v10 = vmul.f32 0.015625, %v31_v8  ;;  %v44_v11 = vmul.f32 0.015625, %v37_v9  ;;  %v151_v9 = vld [vmem:[%s562_s3 + $0xd0] sm:$0xff] }
  0x93   :  { %v412_v12 = vsub.f32 %v22_v0, %v42_v10  ;;  %v414_v13 = vsub.f32 %v24_v1, %v44_v11  ;;  %v150_v0 = vld [vmem:[%s562_s3 + $0xc8] sm:$0xff]  ;;  %v155_v10 = vld [vmem:[%s562_s3 + $0xf0] sm:$0xff]  ;;  %v169_v11 = vpack.c.bf16 %v153_v7, %v149_v6 }
  0x94   :  { %v34_v14 = vpop.xlane.xlu0 %33  ;;  %v40_v15 = vpop.xlane.xlu1 %39  ;;  %v154_v1 = vld [vmem:[%s562_s3 + $0xe8] sm:$0xff] }
  0x95   :  { %v43_v16 = vmul.f32 0.015625, %v34_v14  ;;  %v45_v17 = vmul.f32 0.015625, %v40_v15  ;;  %v50_v18 = vmul.f32 %v412_v12, %v412_v12  ;;  %v52_v19 = vmul.f32 %v414_v13, %v414_v13 }
  0x96   :  { %v170_v4 = vpack.c.bf16 %v154_v1, %v150_v0  ;;  %v171_v14 = vpack.c.bf16 %v155_v10, %v151_v9  ;;  %v173_v9 = vld [vmem:[%s563_s4] sm:$0xf]  ;;  %s365_s4 = smov [#allocation2]  }
  0x97   :  { %v420_v20 = vsub.f32 %v23_v2, %v43_v16  ;;  %v422_v21 = vsub.f32 %v25_v5, %v45_v17  ;;  %v54_v22 = vsel %vm28_vm0, %v50_v18, 0.0  ;;  %v60_v23 = vsel %vm28_vm0, %v52_v19, 0.0  ;;  %v152_v2 = vld [vmem:[%s562_s3 + $0xd8] sm:$0xff]  ;;  %s316_s15 = sshll.u32 %s365_s4, 4  ;;  %s317_s15 = int_to_ptr.vmem [resolvable:$true] %s316_s15 }
  0x98   :  { %55 = vadd.xlane.f32.xlu0 %v54_v22  ;;  %v156_v5 = vld [vmem:[%s562_s3 + $0xf8] sm:$0xff]  ;;  %211 = vmatprep.subr.bf16.mxu0 %v170_v4  ;;  %s339_s16 = scalar_lea.vmem %s317_s15, 128  ;;  %p344_p1 = scmp.lt.s32.totalorder %s317_s15, %s317_s15 }
  0x99   :  { %v51_v24 = vmul.f32 %v420_v20, %v420_v20  ;;  %v53_v25 = vmul.f32 %v422_v21, %v422_v21  ;;  %v172_v8 = vpack.c.bf16 %v156_v5, %v152_v2  ;;  %212 = vmatpush1.bf16.msra.mxu0 %v169_v11  ;;  %v175_v5 = vlaneseq  ;;  %p340_p0 = scmp.ne.s32.totalorder %s317_s15, %s339_s16  ;;  %p345_p2 = scmp.lt.s32.totalorder %s339_s16, %s339_s16 }
  0x9b   :  { %v57_v26 = vsel %vm28_vm0, %v51_v24, 0.0  ;;  %v63_v27 = vsel %vm28_vm0, %v53_v25, 0.0  ;;  %252 = vmatprep.subr.bf16.mxu1 %v172_v8  ;;  %v176_v6 = vshrl.u32 %v175_v5, 7  ;;  %p346_p3 = por %p345_p2, %p344_p1 }
  0x9c   :  { %61 = vadd.xlane.f32.xlu0 %v60_v23  ;;  %58 = vadd.xlane.f32.xlu1 %v57_v26 }
  0x9d   :  { %253 = vmatpush1.bf16.msra.mxu1 %v171_v14  ;;  %v177_v7 = vsub.s32 0, %v176_v6  ;;  %v185_v8 = vsub.s32 2, %v176_v6  ;;  %v181_v10 = vsub.s32 1, %v176_v6  ;;  %v189_v11 = vsub.s32 3, %v176_v6  ;;  %p347_p4 = pnand %p346_p3, %p340_p0 }
  0x9e   :  { %v364_v14 = vmov 1983009808  }
  0xa0   :  { %64 = vadd.xlane.f32.xlu1 %v63_v27 }
 0x125   :  { %v56_v15 = vpop.xlane.xlu0 %55 }
 0x126   :  { %v66_v16 = vmul.f32 0.015625, %v56_v15  ;;  %v294_v15 = vunpack.c.l.s4 %v364_v14 }
 0x128   :  { %v70_v17 = vadd.f32 1e-05, %v66_v16  ;;  %v178_v16 = vrot.slane %v173_v9, %v177_v7 }
 0x129   :  { %v59_v18 = vpop.xlane.xlu1 %58  ;;  %v62_v19 = vpop.xlane.xlu0 %61 }
 0x12a   :  { %331 = vrsqrt.f32 %v70_v17  ;;  %v67_v22 = vmul.f32 0.015625, %v59_v18  ;;  %v68_v23 = vmul.f32 0.015625, %v62_v19  ;;  %v186_v17 = vrot.slane %v173_v9, %v185_v8 }
 0x12b   :  { %v182_v18 = vrot.slane %v173_v9, %v181_v10  ;;  %v190_v19 = vrot.slane %v173_v9, %v189_v11 }
 0x12c   :  { %v71_v24 = vadd.f32 1e-05, %v67_v22  ;;  %v72_v25 = vadd.f32 1e-05, %v68_v23  ;;  %v295_v22 = vunpack.c.0.s8 %v294_v15 }
 0x12d   :  { %v65_v26 = vpop.xlane.xlu1 %64 }
 0x12e   :  { %333 = vrsqrt.f32 %v71_v24  ;;  %v69_v27 = vmul.f32 0.015625, %v65_v26 }
 0x12f   :  { %335 = vrsqrt.f32 %v72_v25 }
 0x130   :  { %v73_v28 = vadd.f32 1e-05, %v69_v27 }
 0x132   :  { %337 = vrsqrt.f32 %v73_v28 }
 0x134   :  { %v332_v29 = vpop.eup %331 }
 0x135   :  { %v78_v31 = vmul.f32 %v332_v29, %v412_v12 }
 0x137   :  { %v88_v32 = vmul.f32 %v324_v30, %v78_v31 }
 0x138   :  { %v334_v33 = vpop.eup %333 }
 0x139   :  { %v336_v35 = vpop.eup %335  ;;  %v79_v36 = vmul.f32 %v334_v33, %v420_v20  ;;  %v98_v38 = vadd.f32 %v325_v34, %v88_v32  ;;  %v298_v33 = vsub.s32 %v295_v22, %v176_v6 }
 0x13a   :  { %v80_v37 = vmul.f32 %v336_v35, %v414_v13 }
 0x13b   :  { %v89_v39 = vmul.f32 %v324_v30, %v79_v36  ;;  %v102_v12 = vsel %vm28_vm0, %v98_v38, 0.0 }
 0x13c   :  { %v338_v40 = vpop.eup %337  ;;  %v90_v41 = vmul.f32 %v324_v30, %v80_v37 }
 0x13d   :  { %v99_v42 = vadd.f32 %v325_v34, %v89_v39  ;;  %v81_v43 = vmul.f32 %v338_v40, %v422_v21 }
 0x13e   :  { %v100_v45 = vadd.f32 %v325_v34, %v90_v41 }
 0x13f   :  { %v103_v44 = vsel %vm28_vm0, %v99_v42, 0.0  ;;  %v91_v46 = vmul.f32 %v324_v30, %v81_v43 }
 0x140   :  { %v104_v47 = vadd.f32 %v103_v44, %v102_v12  ;;  %v111_v20 = vsel %vm28_vm0, %v100_v45, 0.0 }
 0x141   :  { %v101_v48 = vadd.f32 %v325_v34, %v91_v46 }
 0x142   :  { %v105_v49 = vrot.slane %v104_v47, 4 }
 0x143   :  { %v112_v13 = vsel %vm28_vm0, %v101_v48, 0.0 }
 0x144   :  { %v113_v50 = vadd.f32 %v112_v13, %v111_v20  ;;  %v106_v51 = vadd.f32 %v105_v49, %v104_v47 }
 0x146   :  { %v107_v52 = vrot.slane %v106_v51, 2  ;;  %v114_v53 = vrot.slane %v113_v50, 4 }
 0x148   :  { %v108_v54 = vadd.f32 %v107_v52, %v106_v51  ;;  %v115_v55 = vadd.f32 %v114_v53, %v113_v50 }
 0x14a   :  { %v109_v21 = vrot.slane %v108_v54, 1  ;;  %v116_v56 = vrot.slane %v115_v55, 2 }
 0x14c   :  { %v110_v57 = vadd.f32 %v109_v21, %v108_v54  ;;  %v117_v58 = vadd.f32 %v116_v56, %v115_v55 }
 0x14e   :  { %v118_v59 = vrot.slane %v117_v58, 1  ;;  %v121_v60 = vmul.f32 0.0625, %v110_v57 }
 0x150   :  { %v119_v61 = vadd.f32 %v118_v59, %v117_v58  ;;  %v123_v63 = vpack.c.bf16 %v121_v60, %v121_v60 }
 0x152   :  { %v122_v62 = vmul.f32 0.0625, %v119_v61  ;;  %v197_v1 = vunpack.c.l.b16 %v123_v63 }
 0x154   :  { %v124_v0 = vpack.c.bf16 %v122_v62, %v122_v62 }
 0x156   :  { %v198_v2 = vunpack.c.l.b16 %v124_v0 }
 0x158   :  { %v200_v3 = vsel %vm199_vm1, %v198_v2, %v197_v1 }
 0x159   :  { %v201_v4 = vpack.c.b16 %v200_v3, %v200_v3 }
 0x15b   :  { %326 = vmatmul.mubr.msk.bf16.vlgmr.msra.gmra.mrb[0].mxu0 %vm28_vm0, %v201_v4  ;;  %327 = vmatmul.mubr.msk.bf16.vlgmr.msra.gmra.mrb[0].mxu1 %vm28_vm0, %v201_v4 }
 0x22e   :  { %v239_v23 = vpop.f32.mrb[0].mxu0  ;;  %v280_v24 = vpop.f32.mrb[0].mxu1 }
 0x22f   :  { %v240_v25 = vadd.f32 %v239_v23, %v178_v16  ;;  %v281_v26 = vadd.f32 %v280_v24, %v186_v17  ;;  %v241_v27 = vpop.f32.mrb[1].mxu0  ;;  %v282_v28 = vpop.f32.mrb[1].mxu1 }
 0x230   :  { %v242_v29 = vadd.f32 %v241_v27, %v182_v18  ;;  %v283_v30 = vadd.f32 %v282_v28, %v190_v19  ;;  %v243_v31 = vpop.f32.mrb[2].mxu0  ;;  %v284_v32 = vpop.f32.mrb[2].mxu1 }
 0x231   :  { %v244_v34 = vpop.f32.mrb[3].mxu0  ;;  %v285_v35 = vpop.f32.mrb[3].mxu1 }
 0x232   :  { %v291_v36 = vcombine.low %v240_v25, %v242_v29  ;;  %v292_v37 = vcombine.low %v281_v26, %v283_v30 }
 0x234   :  { %v299_v38 = vrot.slane %v291_v36, %v298_v33  ;;  %v306_v39 = vrot.slane %v292_v37, %v298_v33 }
 0x236   :  { %v307_v40 = vcombine.low %v299_v38, %v306_v39 }
 0x238   :  { %309 = vst [vmem:[#allocation2] sm:$0xff] %v307_v40 }
 0x239   :  { %350 = shalt.err (!%p347_p4)
}
 0x23a   :  { %s351_s19 = scalar_lea.hbm %s564_s5, 128 }
 0x23b   :  { %p352_p5 = scmp.ne.s32.totalorder %s564_s5, %s351_s19  ;;  %p355_p6 = scmp.lt.u32.totalorder %s351_s19, %s564_s5 }
 0x23d   :  { %p357_p7 = pnand %p355_p6, %p352_p5 }
 0x23f   :  { %360 = shalt.err (!%p357_p7)
}
 0x240   :  { %319 = dma.vmem_to_hbm [thread:$0]  %s317_s15, 128, %s564_s5, [#allocation3]  }
 0x241   :  { %361 = dma.done.wait [#allocation3], 128  }
 0x242   :  { %362 = vsyncadd [#allocation3], 4294967168 }
 0x243   :  { %323 = vsyncpa [#allocation3], 1 }

</bundles_post_ra>
